<compile_context>
chip_gen: v7x
topology: tpu7x:2x2x1
jax: 0.10.0
libtpu: 0.0.40
codegen_flags: <defaults>
</compile_context>

<pallas_src>
import jax
import jax.numpy as jnp
from jax.experimental import pallas as pl
from jax.experimental.pallas import tpu as pltpu

# Small synthetic config consistent with the module's shapes.
VOCAB = 100
VOCAB_PAD = 128          # table padded so the fused one-hot matmul has K=128
EMBED_DIM = 128          # embed_dim inferred from the pretrained table
NUM_FILTERS = 256
FILTER_SIZES = (2, 3, 4)
NUM_CLASSES = 10
CLASSES_PAD = 128        # lane-dense FC output, sliced to NUM_CLASSES outside
BATCH = 16               # B*L = 256 -> one M=256 MXU matmul (fills v6e/v7x depth)
SEQ_LEN = 16
TOKENS = BATCH * SEQ_LEN                   # 256
TOTAL_SHIFTS = sum(FILTER_SIZES)           # 9
WALL_N = TOTAL_SHIFTS * NUM_FILTERS        # 2304


def textcnn_kernel(ids_ref, fused_ref,
                   b2_ref, b3_ref, b4_ref,
                   fcw2_ref, fcw3_ref, fcw4_ref, fcb_ref,
                   out_ref):
    # ---- embedding gather fused into the conv weights ----------------------
    # fused_ref = bf16(f32_table @ f32_W_all): (VOCAB_PAD, 9*F).  One 2-D
    # one-hot MXU matmul performs the embedding lookup AND all nine shifted
    # conv matmuls:  (B*L, 128) @ (128, 2304) -> (B*L, 2304) f32.
    ids = ids_ref[...]                                          # (B*L, 1) i32
    iota = jax.lax.broadcasted_iota(jnp.int32, (TOKENS, VOCAB_PAD), 1)
    one_hot = jnp.where(iota == ids, 1.0, 0.0).astype(jnp.bfloat16)
    y2d = jnp.dot(one_hot, fused_ref[...],
                  preferred_element_type=jnp.float32)           # (B*L, 2304)
    # Layout-preserving reshape: 256 sublanes -> (16, 16), 16 % 8 == 0.
    y = y2d.reshape(BATCH, SEQ_LEN, WALL_N)

    # ---- shifted adds + bias + ReLU + max over time per filter size --------
    # y columns are [W2_0, W2_1 | W3_0..W3_2 | W4_0..W4_3].
    feats = []
    col = 0
    for k, b_ref in ((FILTER_SIZES[0], b2_ref),
                     (FILTER_SIZES[1], b3_ref),
                     (FILTER_SIZES[2], b4_ref)):
        T = SEQ_LEN - k + 1
        acc = y[:, 0:T, col:col + NUM_FILTERS]                  # j==0 inits acc
        col += NUM_FILTERS
        for j in range(1, k):
            acc = acc + y[:, j:j + T, col:col + NUM_FILTERS]
            col += NUM_FILTERS
        acc = jnp.maximum(acc + b_ref[...].reshape(1, 1, NUM_FILTERS), 0.0)
        feats.append(jnp.max(acc, axis=1))                      # (B, F) f32

    # ---- FC with pre-split weights (no lane-axis concat) -------------------
    out = jnp.dot(feats[0].astype(jnp.bfloat16), fcw2_ref[...],
                  preferred_element_type=jnp.float32)
    out = out + jnp.dot(feats[1].astype(jnp.bfloat16), fcw3_ref[...],
                        preferred_element_type=jnp.float32)
    out = out + jnp.dot(feats[2].astype(jnp.bfloat16), fcw4_ref[...],
                        preferred_element_type=jnp.float32)
    # TODO(synk): nn.Dropout(0.5) is implemented as eval-mode identity (no RNG).
    out_ref[...] = out + fcb_ref[...]                           # (B, 128) f32


_COST = pl.CostEstimate(
    flops=(2 * TOKENS * VOCAB_PAD * WALL_N
           + 2 * len(FILTER_SIZES) * BATCH * NUM_FILTERS * CLASSES_PAD),
    transcendentals=0,
    bytes_accessed=(TOKENS * 4                                  # ids
                    + VOCAB_PAD * WALL_N * 2                    # fused wall bf16
                    + len(FILTER_SIZES) * NUM_FILTERS * 4       # conv biases
                    + len(FILTER_SIZES) * NUM_FILTERS * CLASSES_PAD * 2  # fc w
                    + CLASSES_PAD * 4                           # fc bias
                    + BATCH * CLASSES_PAD * 4))                 # output


@jax.jit
def textcnn_forward(input_ids, kp):
    vmem = pl.BlockSpec(memory_space=pltpu.MemorySpace.VMEM)
    ids2d = input_ids.reshape(TOKENS, 1)   # sublane-resident ids for the one-hot
    args = (ids2d, kp["fused"],
            kp["b2"], kp["b3"], kp["b4"],
            kp["fcw2"], kp["fcw3"], kp["fcw4"], kp["fcb"])
    out_pad = pl.pallas_call(
        textcnn_kernel,
        out_shape=jax.ShapeDtypeStruct((BATCH, CLASSES_PAD), jnp.float32),
        in_specs=[vmem] * len(args),
        out_specs=vmem,
        cost_estimate=_COST,
    )(*args)
    return out_pad[:, :NUM_CLASSES]


def make_params(key):
    """f32 master parameters (same layout as the PyTorch module; conv weights
    stored as (k, E, F))."""
    ks = jax.random.split(key, 9)
    p = {
        "embedding": jax.random.normal(ks[0], (VOCAB, EMBED_DIM), jnp.float32) * 0.1,
        "fcw": jax.random.normal(ks[1], (NUM_FILTERS * len(FILTER_SIZES),
                                         NUM_CLASSES), jnp.float32) * 0.05,
        "fcb": jax.random.normal(ks[2], (1, NUM_CLASSES), jnp.float32) * 0.01,
    }
    for i, k in enumerate(FILTER_SIZES):
        p[f"w{k}"] = jax.random.normal(
            ks[3 + 2 * i], (k, EMBED_DIM, NUM_FILTERS), jnp.float32) * 0.05
        p[f"b{k}"] = jax.random.normal(
            ks[4 + 2 * i], (1, NUM_FILTERS), jnp.float32) * 0.01
    return p


def prepare_kernel_params(p):
    """One-time host-side repacking: pad table, fuse table@W_all, split FC."""
    table = jnp.zeros((VOCAB_PAD, EMBED_DIM), jnp.float32)
    table = table.at[:VOCAB].set(p["embedding"])
    # W_all: (E, 9*F), columns ordered [k=2: j=0,1 | k=3: j=0..2 | k=4: j=0..3]
    wall = jnp.concatenate(
        [p[f"w{k}"][j] for k in FILTER_SIZES for j in range(k)], axis=1)
    # Fuse the embedding table into the conv weights (f32 matmul, one bf16
    # rounding): one_hot @ fused == gather + all shifted conv matmuls.
    fused = table @ wall                                        # (128, 2304) f32

    kp = {
        "fused": fused.astype(jnp.bfloat16),
        "fcb": jnp.zeros((1, CLASSES_PAD), jnp.float32
                         ).at[:, :NUM_CLASSES].set(p["fcb"]),
    }
    off = 0
    for k in FILTER_SIZES:
        blk = p["fcw"][off:off + NUM_FILTERS]                   # (F, C)
        off += NUM_FILTERS
        blk_pad = jnp.zeros((NUM_FILTERS, CLASSES_PAD), jnp.float32)
        blk_pad = blk_pad.at[:, :NUM_CLASSES].set(blk)
        kp[f"fcw{k}"] = blk_pad.astype(jnp.bfloat16)
        kp[f"b{k}"] = p[f"b{k}"]                                # (1, F) f32
    return kp


def reference_forward(input_ids, params):
    """Pure-JAX f32 reference matching the PyTorch module semantics (eval)."""
    embed = jnp.take(params["embedding"], input_ids, axis=0)
    feats = []
    for k in FILTER_SIZES:
        T = SEQ_LEN - k + 1
        acc = jnp.zeros((BATCH, T, NUM_FILTERS), jnp.float32)
        for j in range(k):
            acc = acc + jnp.einsum("bte,ef->btf",
                                   embed[:, j:j + T, :], params[f"w{k}"][j])
        acc = jnp.maximum(acc + params[f"b{k}"].reshape(1, 1, -1), 0.0)
        feats.append(jnp.max(acc, axis=1))
    cat = jnp.concatenate(feats, axis=-1)
    return cat @ params["fcw"] + params["fcb"]


if __name__ == "__main__":
    key = jax.random.PRNGKey(0)
    k_param, k_ids = jax.random.split(key)
    params = make_params(k_param)
    kparams = prepare_kernel_params(params)
    input_ids = jax.random.randint(k_ids, (BATCH, SEQ_LEN), 0, VOCAB,
                                   dtype=jnp.int32)

    out = textcnn_forward(input_ids, kparams)
    out = jax.block_until_ready(out)

    ref = reference_forward(input_ids, params)
    assert out.shape == (BATCH, NUM_CLASSES)
    # bf16 MXU operands vs f32 reference -> relaxed tolerance.
    assert jnp.allclose(out, ref, atol=3e-2, rtol=3e-2), (
        float(jnp.max(jnp.abs(out - ref))))
    print("KERNEL_OK")
</pallas_src>

<mosaic_0001>
module attributes {stable_mosaic.version = 11 : i64} {
  func.func @textcnn_kernel(%arg0: memref<256x1xi32, #tpu.memory_space<vmem>>, %arg1: memref<128x2304xbf16, #tpu.memory_space<vmem>>, %arg2: memref<1x256xf32, #tpu.memory_space<vmem>>, %arg3: memref<1x256xf32, #tpu.memory_space<vmem>>, %arg4: memref<1x256xf32, #tpu.memory_space<vmem>>, %arg5: memref<256x128xbf16, #tpu.memory_space<vmem>>, %arg6: memref<256x128xbf16, #tpu.memory_space<vmem>>, %arg7: memref<256x128xbf16, #tpu.memory_space<vmem>>, %arg8: memref<1x128xf32, #tpu.memory_space<vmem>>, %arg9: memref<16x128xf32, #tpu.memory_space<vmem>>) attributes {dimension_semantics = [], scalar_prefetch = 0 : i64, scratch_operands = 0 : i64, tpu.core_type = #tpu.core_type<tc>} {
    %c0 = arith.constant 0 : index
    %c0_0 = arith.constant 0 : index
    %0 = vector.load %arg0[%c0, %c0_0] : memref<256x1xi32, #tpu.memory_space<vmem>>, vector<256x1xi32>
    %1 = tpu.iota {dimensions = array<i32: 1>} : vector<256x128xi32>
    %2 = vector.broadcast %0 : vector<256x1xi32> to vector<256x128xi32>
    %3 = arith.cmpi eq, %1, %2 : vector<256x128xi32>
    %cst = arith.constant 1.000000e+00 : f32
    %cst_1 = arith.constant 0.000000e+00 : f32
    %4 = vector.broadcast %cst : f32 to vector<256x128xf32>
    %5 = vector.broadcast %cst_1 : f32 to vector<256x128xf32>
    %6 = arith.select %3, %4, %5 : vector<256x128xi1>, vector<256x128xf32>
    %7 = arith.truncf %6 : vector<256x128xf32> to vector<256x128xbf16>
    %c0_2 = arith.constant 0 : index
    %c0_3 = arith.constant 0 : index
    %8 = vector.load %arg1[%c0_2, %c0_3] : memref<128x2304xbf16, #tpu.memory_space<vmem>>, vector<128x2304xbf16>
    %cst_4 = arith.constant dense<0.000000e+00> : vector<256x2304xf32>
    %9 = tpu.matmul %7, %8, %cst_4 {dimension_numbers = #tpu.dot_dimension_numbers<[1], [0], [0], [1], [0, 0, 1, 1], [], []>} : vector<256x128xbf16>, vector<128x2304xbf16>, vector<256x2304xf32> -> vector<256x2304xf32>
    %10 = vector.shape_cast %9 : vector<256x2304xf32> to vector<16x16x2304xf32>
    %11 = vector.extract_strided_slice %10 {offsets = [0, 0, 0], sizes = [16, 15, 256], strides = [1, 1, 1]} : vector<16x16x2304xf32> to vector<16x15x256xf32>
    %12 = vector.extract_strided_slice %10 {offsets = [0, 1, 256], sizes = [16, 15, 256], strides = [1, 1, 1]} : vector<16x16x2304xf32> to vector<16x15x256xf32>
    %13 = arith.addf %11, %12 : vector<16x15x256xf32>
    %c0_5 = arith.constant 0 : index
    %c0_6 = arith.constant 0 : index
    %14 = vector.load %arg2[%c0_5, %c0_6] : memref<1x256xf32, #tpu.memory_space<vmem>>, vector<1x256xf32>
    %15 = vector.shape_cast %14 : vector<1x256xf32> to vector<1x1x256xf32>
    %16 = vector.broadcast %15 : vector<1x1x256xf32> to vector<16x15x256xf32>
    %17 = arith.addf %13, %16 : vector<16x15x256xf32>
    %cst_7 = arith.constant 0.000000e+00 : f32
    %18 = vector.broadcast %cst_7 : f32 to vector<16x15x256xf32>
    %19 = arith.maximumf %17, %18 : vector<16x15x256xf32>
    %cst_8 = arith.constant dense<0xFF800000> : vector<16x256xf32>
    %20 = vector.multi_reduction <maximumf>, %19, %cst_8 [1] : vector<16x15x256xf32> to vector<16x256xf32>
    %21 = vector.extract_strided_slice %10 {offsets = [0, 0, 512], sizes = [16, 14, 256], strides = [1, 1, 1]} : vector<16x16x2304xf32> to vector<16x14x256xf32>
    %22 = vector.extract_strided_slice %10 {offsets = [0, 1, 768], sizes = [16, 14, 256], strides = [1, 1, 1]} : vector<16x16x2304xf32> to vector<16x14x256xf32>
    %23 = arith.addf %21, %22 : vector<16x14x256xf32>
    %24 = vector.extract_strided_slice %10 {offsets = [0, 2, 1024], sizes = [16, 14, 256], strides = [1, 1, 1]} : vector<16x16x2304xf32> to vector<16x14x256xf32>
    %25 = arith.addf %23, %24 : vector<16x14x256xf32>
    %c0_9 = arith.constant 0 : index
    %c0_10 = arith.constant 0 : index
    %26 = vector.load %arg3[%c0_9, %c0_10] : memref<1x256xf32, #tpu.memory_space<vmem>>, vector<1x256xf32>
    %27 = vector.shape_cast %26 : vector<1x256xf32> to vector<1x1x256xf32>
    %28 = vector.broadcast %27 : vector<1x1x256xf32> to vector<16x14x256xf32>
    %29 = arith.addf %25, %28 : vector<16x14x256xf32>
    %cst_11 = arith.constant 0.000000e+00 : f32
    %30 = vector.broadcast %cst_11 : f32 to vector<16x14x256xf32>
    %31 = arith.maximumf %29, %30 : vector<16x14x256xf32>
    %cst_12 = arith.constant dense<0xFF800000> : vector<16x256xf32>
    %32 = vector.multi_reduction <maximumf>, %31, %cst_12 [1] : vector<16x14x256xf32> to vector<16x256xf32>
    %33 = vector.extract_strided_slice %10 {offsets = [0, 0, 1280], sizes = [16, 13, 256], strides = [1, 1, 1]} : vector<16x16x2304xf32> to vector<16x13x256xf32>
    %34 = vector.extract_strided_slice %10 {offsets = [0, 1, 1536], sizes = [16, 13, 256], strides = [1, 1, 1]} : vector<16x16x2304xf32> to vector<16x13x256xf32>
    %35 = arith.addf %33, %34 : vector<16x13x256xf32>
    %36 = vector.extract_strided_slice %10 {offsets = [0, 2, 1792], sizes = [16, 13, 256], strides = [1, 1, 1]} : vector<16x16x2304xf32> to vector<16x13x256xf32>
    %37 = arith.addf %35, %36 : vector<16x13x256xf32>
    %38 = vector.extract_strided_slice %10 {offsets = [0, 3, 2048], sizes = [16, 13, 256], strides = [1, 1, 1]} : vector<16x16x2304xf32> to vector<16x13x256xf32>
    %39 = arith.addf %37, %38 : vector<16x13x256xf32>
    %c0_13 = arith.constant 0 : index
    %c0_14 = arith.constant 0 : index
    %40 = vector.load %arg4[%c0_13, %c0_14] : memref<1x256xf32, #tpu.memory_space<vmem>>, vector<1x256xf32>
    %41 = vector.shape_cast %40 : vector<1x256xf32> to vector<1x1x256xf32>
    %42 = vector.broadcast %41 : vector<1x1x256xf32> to vector<16x13x256xf32>
    %43 = arith.addf %39, %42 : vector<16x13x256xf32>
    %cst_15 = arith.constant 0.000000e+00 : f32
    %44 = vector.broadcast %cst_15 : f32 to vector<16x13x256xf32>
    %45 = arith.maximumf %43, %44 : vector<16x13x256xf32>
    %cst_16 = arith.constant dense<0xFF800000> : vector<16x256xf32>
    %46 = vector.multi_reduction <maximumf>, %45, %cst_16 [1] : vector<16x13x256xf32> to vector<16x256xf32>
    %47 = arith.truncf %20 : vector<16x256xf32> to vector<16x256xbf16>
    %c0_17 = arith.constant 0 : index
    %c0_18 = arith.constant 0 : index
    %48 = vector.load %arg5[%c0_17, %c0_18] : memref<256x128xbf16, #tpu.memory_space<vmem>>, vector<256x128xbf16>
    %cst_19 = arith.constant dense<0.000000e+00> : vector<16x128xf32>
    %49 = tpu.matmul %47, %48, %cst_19 {dimension_numbers = #tpu.dot_dimension_numbers<[1], [0], [0], [1], [0, 0, 1, 1], [], []>} : vector<16x256xbf16>, vector<256x128xbf16>, vector<16x128xf32> -> vector<16x128xf32>
    %50 = arith.truncf %32 : vector<16x256xf32> to vector<16x256xbf16>
    %c0_20 = arith.constant 0 : index
    %c0_21 = arith.constant 0 : index
    %51 = vector.load %arg6[%c0_20, %c0_21] : memref<256x128xbf16, #tpu.memory_space<vmem>>, vector<256x128xbf16>
    %cst_22 = arith.constant dense<0.000000e+00> : vector<16x128xf32>
    %52 = tpu.matmul %50, %51, %cst_22 {dimension_numbers = #tpu.dot_dimension_numbers<[1], [0], [0], [1], [0, 0, 1, 1], [], []>} : vector<16x256xbf16>, vector<256x128xbf16>, vector<16x128xf32> -> vector<16x128xf32>
    %53 = arith.addf %49, %52 : vector<16x128xf32>
    %54 = arith.truncf %46 : vector<16x256xf32> to vector<16x256xbf16>
    %c0_23 = arith.constant 0 : index
    %c0_24 = arith.constant 0 : index
    %55 = vector.load %arg7[%c0_23, %c0_24] : memref<256x128xbf16, #tpu.memory_space<vmem>>, vector<256x128xbf16>
    %cst_25 = arith.constant dense<0.000000e+00> : vector<16x128xf32>
    %56 = tpu.matmul %54, %55, %cst_25 {dimension_numbers = #tpu.dot_dimension_numbers<[1], [0], [0], [1], [0, 0, 1, 1], [], []>} : vector<16x256xbf16>, vector<256x128xbf16>, vector<16x128xf32> -> vector<16x128xf32>
    %57 = arith.addf %53, %56 : vector<16x128xf32>
    %c0_26 = arith.constant 0 : index
    %c0_27 = arith.constant 0 : index
    %58 = vector.load %arg8[%c0_26, %c0_27] : memref<1x128xf32, #tpu.memory_space<vmem>>, vector<1x128xf32>
    %59 = vector.broadcast %58 : vector<1x128xf32> to vector<16x128xf32>
    %60 = arith.addf %57, %59 : vector<16x128xf32>
    %c0_28 = arith.constant 0 : index
    %c0_29 = arith.constant 0 : index
    %61 = vector.load %arg9[%c0_28, %c0_29] : memref<16x128xf32, #tpu.memory_space<vmem>>, vector<16x128xf32>
    tpu.vector_store %arg9[%c0_28, %c0_29], %60 {strides = array<i32>} : memref<16x128xf32, #tpu.memory_space<vmem>>, vector<16x128xf32>,
    return
  }
}

</mosaic_0001>

<bundles_post_ra>
// kernel: textcnn_forward.1
= control target key start
LH: loop header
LB: loop body
LE: loop exit
PB: predicated region body
PF: predicated region fallthrough
CT: control target
= control target key end

     0   :  { %14 = vsyncpa [#allocation3], 0  ;;  %s10931_s0 = inlined_call_operand.vmem [shape: s32[256,1], index: 0, kind: input, shape index: {}]   ;;  %s10932_s1 = inlined_call_operand.hbm [shape: bf16[128,2304], index: 1, kind: input, shape index: {}]   ;;  %s10933_s2 = inlined_call_operand.vmem [shape: f32[1,256], index: 2, kind: input, shape index: {}]   ;;  %s10934_s3 = inlined_call_operand.vmem [shape: f32[1,256], index: 3, kind: input, shape index: {}]   ;;  %s10935_s4 = inlined_call_operand.vmem [shape: f32[1,256], index: 4, kind: input, shape index: {}]   ;;  %s10936_s5 = inlined_call_operand.vmem [shape: bf16[256,128], index: 5, kind: input, shape index: {}]   ;;  %s10937_s6 = inlined_call_operand.vmem [shape: bf16[256,128], index: 6, kind: input, shape index: {}]   ;;  %s10938_s7 = inlined_call_operand.hbm [shape: bf16[256,128], index: 7, kind: input, shape index: {}]   ;;  %s10939_s8 = inlined_call_operand.vmem [shape: f32[1,128], index: 8, kind: input, shape index: {}]   ;;  %s10940_s9 = inlined_call_operand.hbm [shape: f32[16,128], index: 9, kind: output, shape index: {}]  }
   0x1   :  { %15 = vsyncpa [#allocation6], 0 }
   0x2   :  { %16 = vsyncpa [#allocation4], 0  ;;  %s7617_s30 = smov [#allocation2]   ;;  %s7545_s13 = scalar_lea.hbm %s10932_s1, 18432 }
   0x3   :  { %s24_s10 = sshll.u32 %s7617_s30, 4  ;;  %p7546_p0 = scmp.ne.s32.totalorder %s10932_s1, %s7545_s13  ;;  %s25_s10 = int_to_ptr.vmem [resolvable:$true] %s24_s10 }
   0x4   :  { %p7549_p1 = scmp.lt.u32.totalorder %s7545_s13, %s10932_s1 }
   0x6   :  { %p7551_p2 = pnand %p7549_p1, %p7546_p0 }
   0x8   :  { %7554 = shalt.err (!%p7551_p2)
}
   0x9   :  { %s7555_s18 = scalar_lea.vmem %s25_s10, 18432  ;;  %p7560_p4 = scmp.lt.s32.totalorder %s25_s10, %s25_s10 }
   0xa   :  { %p7556_p3 = scmp.ne.s32.totalorder %s25_s10, %s7555_s18  ;;  %p7561_p5 = scmp.lt.s32.totalorder %s7555_s18, %s7555_s18 }
   0xc   :  { %p7562_p6 = por %p7561_p5, %p7560_p4 }
   0xe   :  { %p7563_p7 = pnand %p7562_p6, %p7556_p3 }
  0x10   :  { %7566 = shalt.err (!%p7563_p7)
}
  0x11   :  { %s7618_s19 = smov 1152   ;;  %s7619_s20 = smov 72  }
  0x12   :  { %30 = dma.hbm_to_vmem [thread:$0]  %s10932_s1, 18432, %s25_s10, [#allocation3], %s7618_s19, %s7618_s19, %s7619_s20  }
  0x13   :  { %s7620_s23 = smov [#allocation5]   ;;  %s7567_s27 = scalar_lea.hbm %s10938_s7, 2048 }
  0x14   :  { %s46_s24 = sshll.u32 %s7620_s23, 4  ;;  %p7568_p8 = scmp.ne.s32.totalorder %s10938_s7, %s7567_s27  ;;  %s47_s24 = int_to_ptr.vmem [resolvable:$true] %s46_s24 }
  0x15   :  { %p7571_p9 = scmp.lt.u32.totalorder %s7567_s27, %s10938_s7 }
  0x17   :  { %p7573_p10 = pnand %p7571_p9, %p7568_p8 }
  0x19   :  { %7576 = shalt.err (!%p7573_p10)
}
  0x1a   :  { %s7577_s12 = scalar_lea.vmem %s47_s24, 2048  ;;  %p7582_p12 = scmp.lt.s32.totalorder %s47_s24, %s47_s24 }
  0x1b   :  { %p7578_p11 = scmp.ne.s32.totalorder %s47_s24, %s7577_s12  ;;  %p7583_p13 = scmp.lt.s32.totalorder %s7577_s12, %s7577_s12 }
  0x1d   :  { %p7584_p0 = por %p7583_p13, %p7582_p12 }
  0x1f   :  { %p7585_p1 = pnand %p7584_p0, %p7578_p11 }
  0x21   :  { %7588 = shalt.err (!%p7585_p1)
}
  0x22   :  { %s7621_s1 = smov 64   ;;  %s7622_s10 = smov 4  }
  0x23   :  { %52 = dma.hbm_to_vmem [thread:$0]  %s10938_s7, 2048, %s47_s24, [#allocation6], %s7621_s1, %s7621_s1, %s7622_s10  }
  0x24   :  { %7611 = dma.done.wait [#allocation3], 18432  }
  0x25   :  { %7612 = vsyncadd [#allocation3], 4294948864 }
  0x26   :  { %7613 = dma.done.wait [#allocation6], 2048  }
  0x27   :  { %7614 = vsyncadd [#allocation6], 4294965248  ;;  %v10953_v0 = vmov 0   ;;  %v64_v1 = vld [vmem:[%s10931_s0 + $0x10] sm:$0xff]  ;;  %v62_v2 = vld [vmem:[%s10931_s0] sm:$0xff]  ;;  %s7625_s22 = smov [#allocation7]  }
  0x28   :  { %7280 = vset.pattern.permute.xlu1 %v10953_v0  ;;  %7279 = vset.pattern.permute.xlu0 %v10953_v0  ;;  %v65_v3 = vld [vmem:[%s10931_s0 + $0x18] sm:$0xff]  ;;  %v63_v4 = vld [vmem:[%s10931_s0 + $0x8] sm:$0xff]  ;;  %v66_v6 = vld [vmem:[%s10931_s0 + $0x20] sm:$0xff]  ;;  %s6708_s23 = sshll.u32 %s7625_s22, 4  ;;  %s6709_s23 = int_to_ptr.vmem [resolvable:$true] %s6708_s23 }
  0x29   :  { %1168 = vmatprep.mubr.bf16.mxu0 %v10953_v0  ;;  %1361 = vmatprep.mubr.bf16.mxu1 %v10953_v0  ;;  %v67_v5 = vld [vmem:[%s10931_s0 + $0x28] sm:$0xff]  ;;  %v69_v7 = vld [vmem:[%s10931_s0 + $0x38] sm:$0xff]  ;;  %v68_v8 = vld [vmem:[%s10931_s0 + $0x30] sm:$0xff]  ;;  %s7589_s24 = scalar_lea.vmem %s6709_s23, 256  ;;  %p7594_p3 = scmp.lt.s32.totalorder %s6709_s23, %s6709_s23 }
  0x2a   :  { %103 = vperm.xlu1 %7280, %v64_v1   ;;  %97 = vperm.xlu0 %7279, %v62_v2   ;;  %v7281_v9 = vld [vmem:[#allocation2 + $0x4] ss:$72 sps:$4 sm:$0xff]   ;;  %v7283_v10 = vld [vmem:[#allocation2] ss:$72 sps:$4 sm:$0xff]   ;;  %v7287_v15 = vld [vmem:[#allocation2 + $0x94] ss:$72 sps:$4 sm:$0xff]   ;;  %p7590_p2 = scmp.ne.s32.totalorder %s6709_s23, %s7589_s24  ;;  %p7595_p4 = scmp.lt.s32.totalorder %s7589_s24, %s7589_s24 }
  0x2b   :  { %v71_v11 = vld [vmem:[%s10931_s0 + $0x48] sm:$0xff]  ;;  %v70_v12 = vld [vmem:[%s10931_s0 + $0x40] sm:$0xff]  ;;  %1136 = vmatprep.subr.bf16.mxu0 %v7281_v9  ;;  %v7289_v16 = vld [vmem:[#allocation2 + $0x90] ss:$72 sps:$4 sm:$0xff]  }
  0x2c   :  { %v7284_v13 = vld [vmem:[#allocation2 + $0xc] ss:$72 sps:$4 sm:$0xff]   ;;  %v7286_v14 = vld [vmem:[#allocation2 + $0x8] ss:$72 sps:$4 sm:$0xff]   ;;  %1137 = vmatpush1.bf16.msra.mxu0 %v7283_v10  ;;  %v7290_v17 = vld [vmem:[#allocation2 + $0x9c] ss:$72 sps:$4 sm:$0xff]   ;;  %p7596_p5 = por %p7595_p4, %p7594_p3 }
  0x2d   :  { %1329 = vmatprep.subr.bf16.mxu1 %v7284_v13  ;;  %v7292_v18 = vld [vmem:[#allocation2 + $0x98] ss:$72 sps:$4 sm:$0xff]   ;;  %1138 = vmatprep.subr.bf16.mxu0 %v7287_v15  ;;  %v7293_v20 = vld [vmem:[#allocation2 + $0x124] ss:$72 sps:$4 sm:$0xff]   ;;  %v72_v21 = vld [vmem:[%s10931_s0 + $0x50] sm:$0xff] }
  0x2e   :  { %106 = vperm.xlu1 %7280, %v65_v3   ;;  %100 = vperm.xlu0 %7279, %v63_v4   ;;  %v73_v19 = vld [vmem:[%s10931_s0 + $0x58] sm:$0xff]  ;;  %v7295_v22 = vld [vmem:[#allocation2 + $0x120] ss:$72 sps:$4 sm:$0xff]   ;;  %v7296_v23 = vld [vmem:[#allocation2 + $0x12c] ss:$72 sps:$4 sm:$0xff]   ;;  %v94_v4 = vlaneseq  ;;  %p7597_p6 = pnand %p7596_p5, %p7590_p2 }
  0x2f   :  { %1330 = vmatpush1.bf16.msra.mxu1 %v7286_v14  ;;  %v7298_v24 = vld [vmem:[#allocation2 + $0x128] ss:$72 sps:$4 sm:$0xff]   ;;  %v7299_v25 = vld [vmem:[#allocation2 + $0x1b4] ss:$72 sps:$4 sm:$0xff]   ;;  %v74_v28 = vld [vmem:[%s10931_s0 + $0x60] sm:$0xff] }
  0x30   :  { %1331 = vmatprep.subr.bf16.mxu1 %v7290_v17  ;;  %1139 = vmatpush1.bf16.msra.mxu0 %v7289_v16  ;;  %v7302_v26 = vld [vmem:[#allocation2 + $0x1bc] ss:$72 sps:$4 sm:$0xff]   ;;  %v75_v27 = vld [vmem:[%s10931_s0 + $0x68] sm:$0xff]  ;;  %v7301_v29 = vld [vmem:[#allocation2 + $0x1b0] ss:$72 sps:$4 sm:$0xff]  }
  0x31   :  { %1140 = vmatprep.subr.bf16.mxu0 %v7293_v20  ;;  %v7304_v30 = vld [vmem:[#allocation2 + $0x1b8] ss:$72 sps:$4 sm:$0xff]   ;;  %v7305_v31 = vld [vmem:[#allocation2 + $0x244] ss:$72 sps:$4 sm:$0xff]   ;;  %v76_v34 = vld [vmem:[%s10931_s0 + $0x70] sm:$0xff] }
  0x32   :  { %112 = vperm.xlu1 %7280, %v67_v5   ;;  %109 = vperm.xlu0 %7279, %v66_v6   ;;  %v7308_v32 = vld [vmem:[#allocation2 + $0x24c] ss:$72 sps:$4 sm:$0xff]   ;;  %v77_v33 = vld [vmem:[%s10931_s0 + $0x78] sm:$0xff]  ;;  %v7307_v35 = vld [vmem:[#allocation2 + $0x240] ss:$72 sps:$4 sm:$0xff]   ;;  %v7803_v6 = vand.u32 127, %v94_v4 }
  0x33   :  { %1332 = vmatpush1.bf16.msra.mxu1 %v7292_v18  ;;  %v7310_v36 = vld [vmem:[#allocation2 + $0x248] ss:$72 sps:$4 sm:$0xff]   ;;  %v7311_v37 = vld [vmem:[#allocation2 + $0x2d4] ss:$72 sps:$4 sm:$0xff]   ;;  %v78_v40 = vld [vmem:[%s10931_s0 + $0x80] sm:$0xff] }
  0x34   :  { %1333 = vmatprep.subr.bf16.mxu1 %v7296_v23  ;;  %1141 = vmatpush1.bf16.msra.mxu0 %v7295_v22  ;;  %v7314_v38 = vld [vmem:[#allocation2 + $0x2dc] ss:$72 sps:$4 sm:$0xff]   ;;  %v79_v39 = vld [vmem:[%s10931_s0 + $0x88] sm:$0xff]  ;;  %v7313_v41 = vld [vmem:[#allocation2 + $0x2d0] ss:$72 sps:$4 sm:$0xff]  }
  0x35   :  { %1142 = vmatprep.subr.bf16.mxu0 %v7299_v25  ;;  %v7316_v42 = vld [vmem:[#allocation2 + $0x2d8] ss:$72 sps:$4 sm:$0xff]   ;;  %v7317_v43 = vld [vmem:[#allocation2 + $0x364] ss:$72 sps:$4 sm:$0xff]   ;;  %v80_v45 = vld [vmem:[%s10931_s0 + $0x90] sm:$0xff] }
  0x36   :  { %118 = vperm.xlu1 %7280, %v69_v7   ;;  %115 = vperm.xlu0 %7279, %v68_v8   ;;  %v81_v44 = vld [vmem:[%s10931_s0 + $0x98] sm:$0xff]  ;;  %v7320_v46 = vld [vmem:[#allocation2 + $0x36c] ss:$72 sps:$4 sm:$0xff]   ;;  %v7319_v47 = vld [vmem:[#allocation2 + $0x360] ss:$72 sps:$4 sm:$0xff]  }
  0x37   :  { %1334 = vmatpush1.bf16.msra.mxu1 %v7298_v24  ;;  %v7322_v48 = vld [vmem:[#allocation2 + $0x368] ss:$72 sps:$4 sm:$0xff]   ;;  %v7323_v49 = vld [vmem:[#allocation2 + $0x3f4] ss:$72 sps:$4 sm:$0xff]   ;;  %v82_v52 = vld [vmem:[%s10931_s0 + $0xa0] sm:$0xff] }
  0x38   :  { %1335 = vmatprep.subr.bf16.mxu1 %v7302_v26  ;;  %1143 = vmatpush1.bf16.msra.mxu0 %v7301_v29  ;;  %v7326_v50 = vld [vmem:[#allocation2 + $0x3fc] ss:$72 sps:$4 sm:$0xff]   ;;  %v83_v51 = vld [vmem:[%s10931_s0 + $0xa8] sm:$0xff]  ;;  %v7325_v53 = vld [vmem:[#allocation2 + $0x3f0] ss:$72 sps:$4 sm:$0xff]  }
  0x39   :  { %1144 = vmatprep.subr.bf16.mxu0 %v7305_v31  ;;  %v7328_v54 = vld [vmem:[#allocation2 + $0x3f8] ss:$72 sps:$4 sm:$0xff]   ;;  %v7331_v55 = vld [vmem:[#allocation2 + $0x14] ss:$72 sps:$4 sm:$0xff]   ;;  %v87_v58 = vld [vmem:[%s10931_s0 + $0xc8] sm:$0xff] }
  0x3a   :  { %124 = vperm.xlu1 %7280, %v71_v11   ;;  %121 = vperm.xlu0 %7279, %v70_v12   ;;  %v85_v56 = vld [vmem:[%s10931_s0 + $0xb8] sm:$0xff]  ;;  %v84_v57 = vld [vmem:[%s10931_s0 + $0xb0] sm:$0xff]  ;;  %v86_v59 = vld [vmem:[%s10931_s0 + $0xc0] sm:$0xff]  ;;  %v11012_v11 = vmov 0  ;;  %v10955_v13 = vmov 1.0|1.0  }
  0x3b   :  { %1336 = vmatpush1.bf16.msra.mxu1 %v7304_v30  ;;  %v89_v60 = vld [vmem:[%s10931_s0 + $0xd8] sm:$0xff]  ;;  %v88_v61 = vld [vmem:[%s10931_s0 + $0xd0] sm:$0xff]  ;;  %v91_v62 = vld [vmem:[%s10931_s0 + $0xe8] sm:$0xff] }
  0x3c   :  { %1337 = vmatprep.subr.bf16.mxu1 %v7308_v32  ;;  %1145 = vmatpush1.bf16.msra.mxu0 %v7307_v35  ;;  %v90_v63 = vld [vmem:[%s10931_s0 + $0xe0] sm:$0xff]  ;;  %v93_v1 = vld [vmem:[%s10931_s0 + $0xf8] sm:$0xff]  ;;  %v92_v2 = vld [vmem:[%s10931_s0 + $0xf0] sm:$0xff]  ;;  %v11017_v32 = vmov 0 }
  0x3d   :  { %1146 = vmatprep.subr.bf16.mxu0 %v7311_v37  ;;  %v7352_v3 = vld [vmem:[#allocation2 + $0x1c] ss:$72 sps:$4 sm:$0xff]   ;;  %v7329_v9 = vld [vmem:[#allocation2 + $0x10] ss:$72 sps:$4 sm:$0xff]   ;;  %v7355_v14 = vld [vmem:[#allocation2 + $0xac] ss:$72 sps:$4 sm:$0xff]  }
  0x3e   :  { %130 = vperm.xlu1 %7280, %v73_v19   ;;  %127 = vperm.xlu0 %7279, %v72_v21   ;;  %v7334_v10 = vld [vmem:[#allocation2 + $0xa4] ss:$72 sps:$4 sm:$0xff]   ;;  %v7350_v12 = vld [vmem:[#allocation2 + $0x18] ss:$72 sps:$4 sm:$0xff]   ;;  %v7337_v16 = vld [vmem:[#allocation2 + $0x134] ss:$72 sps:$4 sm:$0xff]  }
  0x3f   :  { %1338 = vmatpush1.bf16.msra.mxu1 %v7310_v36  ;;  %v7332_v15 = vld [vmem:[#allocation2 + $0xa0] ss:$72 sps:$4 sm:$0xff]   ;;  %v7335_v19 = vld [vmem:[#allocation2 + $0x130] ss:$72 sps:$4 sm:$0xff]   ;;  %v7358_v20 = vld [vmem:[#allocation2 + $0x13c] ss:$72 sps:$4 sm:$0xff]  }
  0x40   :  { %1339 = vmatprep.subr.bf16.mxu1 %v7314_v38  ;;  %1147 = vmatpush1.bf16.msra.mxu0 %v7313_v41  ;;  %v7353_v18 = vld [vmem:[#allocation2 + $0xa8] ss:$72 sps:$4 sm:$0xff]   ;;  %v11014_v21 = vmov 0  ;;  %v7340_v22 = vld [vmem:[#allocation2 + $0x1c4] ss:$72 sps:$4 sm:$0xff]  }
  0x41   :  { %1148 = vmatprep.subr.bf16.mxu0 %v7317_v43  ;;  %v7356_v23 = vld [vmem:[#allocation2 + $0x138] ss:$72 sps:$4 sm:$0xff]   ;;  %v7361_v24 = vld [vmem:[#allocation2 + $0x1cc] ss:$72 sps:$4 sm:$0xff]   ;;  %v7359_v29 = vld [vmem:[#allocation2 + $0x1c8] ss:$72 sps:$4 sm:$0xff]  }
  0x42   :  { %136 = vperm.xlu1 %7280, %v75_v27   ;;  %133 = vperm.xlu0 %7279, %v74_v28   ;;  %v7338_v27 = vld [vmem:[#allocation2 + $0x1c0] ss:$72 sps:$4 sm:$0xff]   ;;  %v7343_v28 = vld [vmem:[#allocation2 + $0x254] ss:$72 sps:$4 sm:$0xff]   ;;  %v7341_v30 = vld [vmem:[#allocation2 + $0x250] ss:$72 sps:$4 sm:$0xff]  }
  0x43   :  { %1340 = vmatpush1.bf16.msra.mxu1 %v7316_v42  ;;  %v7367_v31 = vld [vmem:[#allocation2 + $0x25c] ss:$72 sps:$4 sm:$0xff]   ;;  %v7370_v35 = vld [vmem:[#allocation2 + $0x2ec] ss:$72 sps:$4 sm:$0xff]   ;;  %v7344_v38 = vld [vmem:[#allocation2 + $0x2e0] ss:$72 sps:$4 sm:$0xff]  }
  0x44   :  { %1341 = vmatprep.subr.bf16.mxu1 %v7320_v46  ;;  %1149 = vmatpush1.bf16.msra.mxu0 %v7319_v47  ;;  %v7347_v41 = vld [vmem:[#allocation2 + $0x370] ss:$72 sps:$4 sm:$0xff]   ;;  %v7373_v42 = vld [vmem:[#allocation2 + $0x37c] ss:$72 sps:$4 sm:$0xff]   ;;  %v11020_v43 = vmov 0 }
  0x45   :  { %1150 = vmatprep.subr.bf16.mxu0 %v7323_v49  ;;  %v7376_v46 = vld [vmem:[#allocation2 + $0x40c] ss:$72 sps:$4 sm:$0xff]   ;;  %v7362_v49 = vld [vmem:[#allocation2 + $0x400] ss:$72 sps:$4 sm:$0xff]  }
  0x46   :  { %142 = vperm.xlu1 %7280, %v77_v33   ;;  %139 = vperm.xlu0 %7279, %v76_v34   ;;  %v7346_v33 = vld [vmem:[#allocation2 + $0x2e4] ss:$72 sps:$4 sm:$0xff]   ;;  %v7365_v34 = vld [vmem:[#allocation2 + $0x258] ss:$72 sps:$4 sm:$0xff]  }
  0x47   :  { %1342 = vmatpush1.bf16.msra.mxu1 %v7322_v48 }
  0x48   :  { %1343 = vmatprep.subr.bf16.mxu1 %v7326_v50  ;;  %1151 = vmatpush1.bf16.msra.mxu0 %v7325_v53  ;;  %v7374_v50 = vld [vmem:[#allocation2 + $0x408] ss:$72 sps:$4 sm:$0xff]  }
  0x49   :  { %1522 = vmatprep.subr.bf16.mxu0 %v7331_v55  ;;  %v11026_v55 = vmov 0 }
  0x4a   :  { %148 = vperm.xlu1 %7280, %v79_v39   ;;  %145 = vperm.xlu0 %7279, %v78_v40   ;;  %v7349_v39 = vld [vmem:[#allocation2 + $0x374] ss:$72 sps:$4 sm:$0xff]   ;;  %v7368_v40 = vld [vmem:[#allocation2 + $0x2e8] ss:$72 sps:$4 sm:$0xff]  }
  0x4b   :  { %1344 = vmatpush1.bf16.msra.mxu1 %v7328_v54 }
  0x4c   :  { %1715 = vmatprep.subr.bf16.mxu1 %v7352_v3 }
  0x4e   :  { %154 = vperm.xlu1 %7280, %v81_v44   ;;  %151 = vperm.xlu0 %7279, %v80_v45   ;;  %v7364_v44 = vld [vmem:[#allocation2 + $0x404] ss:$72 sps:$4 sm:$0xff]   ;;  %v7371_v45 = vld [vmem:[#allocation2 + $0x378] ss:$72 sps:$4 sm:$0xff]  }
  0x52   :  { %160 = vperm.xlu1 %7280, %v83_v51   ;;  %157 = vperm.xlu0 %7279, %v82_v52   ;;  %v7379_v51 = vld [vmem:[#allocation2 + $0x24] ss:$72 sps:$4 sm:$0xff]   ;;  %v11023_v52 = vmov 0 }
  0x56   :  { %166 = vperm.xlu1 %7280, %v85_v56   ;;  %163 = vperm.xlu0 %7279, %v84_v57  }
  0x5a   :  { %172 = vperm.xlu1 %7280, %v87_v58   ;;  %169 = vperm.xlu0 %7279, %v86_v59   ;;  %v11029_v58 = vmov 0 }
  0x5e   :  { %178 = vperm.xlu1 %7280, %v89_v60   ;;  %175 = vperm.xlu0 %7279, %v88_v61   ;;  %v11032_v61 = vmov 0 }
  0x62   :  { %184 = vperm.xlu1 %7280, %v91_v62   ;;  %181 = vperm.xlu0 %7279, %v90_v63  }
  0x66   :  { %190 = vperm.xlu1 %7280, %v93_v1   ;;  %187 = vperm.xlu0 %7279, %v92_v2   ;;  %v11035_v1 = vmov 0 }
  0xa9   :  { %v98_v5 = vpop.permute.xlu0 %97  ;;  %v104_v8 = vpop.permute.xlu1 %103 }
  0xaa   :  { %vm192_vm1 = vcmp.eq.s32.totalorder %v7803_v6, %v98_v5  ;;  %vm194_vm3 = vcmp.eq.s32.totalorder %v7803_v6, %v104_v8  ;;  %v11038_v5 = vmov 0 }
  0xad   :  { %v101_v7 = vpop.permute.xlu0 %100  ;;  %v107_v17 = vpop.permute.xlu1 %106 }
  0xae   :  { %vm193_vm0 = vcmp.eq.s32.totalorder %v7803_v6, %v101_v7  ;;  %vm195_vm4 = vcmp.eq.s32.totalorder %v7803_v6, %v107_v17  ;;  %v7400_v17 = vld [vmem:[#allocation2 + $0x2c] ss:$72 sps:$4 sm:$0xff]  }
  0xaf   :  { %vm7807_vm2 = vmpackc.low %vm193_vm0, %vm192_vm1 }
  0xb0   :  { %v11013_v11 = vsel %vm7807_vm2, 4294967295, %v11012_v11  ;;  %6866 = vmatmul.mubr.msk.bf16.vlgmr.msra.gmra.mrb[0].mxu0 %vm7807_vm2, %v10955_v13  ;;  %6898 = vmatmul.mubr.msk.bf16.vlgmr.msra.gmra.mrb[0].mxu1 %vm7807_vm2, %v10955_v13  ;;  %vm7821_vm5 = vmpackc.low %vm195_vm4, %vm194_vm3 }
  0xb1   :  { %1523 = vmatpush1.bf16.msra.mxu0 %v7329_v9  ;;  %1178 = vmatprep.mubr.bf16.mxu0 %v10953_v0  ;;  %v11015_v21 = vsel %vm7821_vm5, 4294967295, %v11014_v21  ;;  %v113_v25 = vpop.permute.xlu1 %112  ;;  %v110_v26 = vpop.permute.xlu0 %109  ;;  %v11041_v9 = vmov 0 }
  0xb2   :  { %1371 = vmatprep.mubr.bf16.mxu1 %v10953_v0  ;;  %1524 = vmatprep.subr.bf16.mxu0 %v7334_v10  ;;  %11016 = vst [vmem:[#allocation11_spill] sm:$0xff] %v11015_v21  ;;  %vm197_vm6 = vcmp.eq.s32.totalorder %v7803_v6, %v113_v25  ;;  %vm196_vm7 = vcmp.eq.s32.totalorder %v7803_v6, %v110_v26  ;;  %v11053_v25 = vmov 0 }
  0xb3   :  { %1716 = vmatpush1.bf16.msra.mxu1 %v7350_v12  ;;  %vm7835_vm8 = vmpackc.low %vm197_vm6, %vm196_vm7 }
  0xb4   :  { %1717 = vmatprep.subr.bf16.mxu1 %v7355_v14  ;;  %v11018_v32 = vsel %vm7835_vm8, 4294967295, %v11017_v32  ;;  %v11044_v14 = vmov 0 }
  0xb5   :  { %1525 = vmatpush1.bf16.msra.mxu0 %v7332_v15  ;;  %11019 = vst [vmem:[#allocation12_spill] sm:$0xff] %v11018_v32  ;;  %v119_v36 = vpop.permute.xlu1 %118  ;;  %v116_v37 = vpop.permute.xlu0 %115 }
  0xb6   :  { %1526 = vmatprep.subr.bf16.mxu0 %v7337_v16  ;;  %vm199_vm9 = vcmp.eq.s32.totalorder %v7803_v6, %v119_v36  ;;  %vm198_vm10 = vcmp.eq.s32.totalorder %v7803_v6, %v116_v37  ;;  %v7383_v36 = vld [vmem:[#allocation2 + $0x140] ss:$72 sps:$4 sm:$0xff]   ;;  %v7406_v37 = vld [vmem:[#allocation2 + $0x14c] ss:$72 sps:$4 sm:$0xff]  }
  0xb7   :  { %1718 = vmatpush1.bf16.msra.mxu1 %v7353_v18  ;;  %vm7849_vm11 = vmpackc.low %vm199_vm9, %vm198_vm10  ;;  %v11047_v18 = vmov 0 }
  0xb8   :  { %6868 = vmatmul.mubr.msk.bf16.gmra.mrb[4].mxu0 %vm7821_vm5, %v10955_v13  ;;  %6900 = vmatmul.mubr.msk.bf16.gmra.mrb[4].mxu1 %vm7821_vm5, %v10955_v13  ;;  %v11021_v43 = vsel %vm7849_vm11, 4294967295, %v11020_v43 }
  0xb9   :  { %1188 = vmatprep.mubr.bf16.mxu0 %v10953_v0  ;;  %1381 = vmatprep.mubr.bf16.mxu1 %v10953_v0  ;;  %11022 = vst [vmem:[#allocation13_spill] sm:$0xff] %v11021_v43  ;;  %v125_v47 = vpop.permute.xlu1 %124  ;;  %v122_v48 = vpop.permute.xlu0 %121 }
  0xba   :  { %1527 = vmatpush1.bf16.msra.mxu0 %v7335_v19  ;;  %1719 = vmatprep.subr.bf16.mxu1 %v7358_v20  ;;  %vm201_vm12 = vcmp.eq.s32.totalorder %v7803_v6, %v125_v47  ;;  %vm200_vm13 = vcmp.eq.s32.totalorder %v7803_v6, %v122_v48  ;;  %v7394_v47 = vld [vmem:[#allocation2 + $0x2f4] ss:$72 sps:$4 sm:$0xff]   ;;  %v7413_v48 = vld [vmem:[#allocation2 + $0x268] ss:$72 sps:$4 sm:$0xff]  }
  0xbb   :  { %1528 = vmatprep.subr.bf16.mxu0 %v7340_v22  ;;  %1720 = vmatpush1.bf16.msra.mxu1 %v7356_v23  ;;  %vm7863_vm14 = vmpackc.low %vm201_vm12, %vm200_vm13  ;;  %v11050_v22 = vmov 0 }
  0xbc   :  { %1721 = vmatprep.subr.bf16.mxu1 %v7361_v24  ;;  %v11024_v52 = vsel %vm7863_vm14, 4294967295, %v11023_v52 }
  0xbd   :  { %11025 = vst [vmem:[#allocation14_spill] sm:$0xff] %v11024_v52  ;;  %v131_v53 = vpop.permute.xlu1 %130  ;;  %v128_v54 = vpop.permute.xlu0 %127 }
  0xbe   :  { %1529 = vmatpush1.bf16.msra.mxu0 %v7338_v27  ;;  %vm203_vm15 = vcmp.eq.s32.totalorder %v7803_v6, %v131_v53  ;;  %vm202_vm0 = vcmp.eq.s32.totalorder %v7803_v6, %v128_v54  ;;  %v7416_v53 = vld [vmem:[#allocation2 + $0x2f8] ss:$72 sps:$4 sm:$0xff]  }
  0xbf   :  { %1530 = vmatprep.subr.bf16.mxu0 %v7343_v28  ;;  %1722 = vmatpush1.bf16.msra.mxu1 %v7359_v29  ;;  %vm7877_vm1 = vmpackc.low %vm203_vm15, %vm202_vm0  ;;  %v11055_v28 = vmov 0  ;;  %v7377_v29 = vld [vmem:[#allocation2 + $0x20] ss:$72 sps:$4 sm:$0xff]  }
  0xc0   :  { %6870 = vmatmul.mubr.msk.bf16.gmra.mrb[8].mxu0 %vm7835_vm8, %v10955_v13  ;;  %6902 = vmatmul.mubr.msk.bf16.gmra.mrb[8].mxu1 %vm7835_vm8, %v10955_v13  ;;  %v11027_v55 = vsel %vm7877_vm1, 4294967295, %v11026_v55  ;;  %v7395_v54 = vld [vmem:[#allocation2 + $0x380] ss:$72 sps:$4 sm:$0xff]  }
  0xc1   :  { %1198 = vmatprep.mubr.bf16.mxu0 %v10953_v0  ;;  %1391 = vmatprep.mubr.bf16.mxu1 %v10953_v0  ;;  %11028 = vst [vmem:[#allocation15_spill] sm:$0xff] %v11027_v55  ;;  %v137_v56 = vpop.permute.xlu1 %136  ;;  %v134_v57 = vpop.permute.xlu0 %133 }
  0xc2   :  { %1531 = vmatpush1.bf16.msra.mxu0 %v7341_v30  ;;  %1723 = vmatprep.subr.bf16.mxu1 %v7367_v31  ;;  %vm205_vm3 = vcmp.eq.s32.totalorder %v7803_v6, %v137_v56  ;;  %vm204_vm4 = vcmp.eq.s32.totalorder %v7803_v6, %v134_v57  ;;  %v7382_v30 = vld [vmem:[#allocation2 + $0xb4] ss:$72 sps:$4 sm:$0xff]   ;;  %v7398_v31 = vld [vmem:[#allocation2 + $0x28] ss:$72 sps:$4 sm:$0xff]  }
  0xc3   :  { %1532 = vmatprep.subr.bf16.mxu0 %v7346_v33  ;;  %1724 = vmatpush1.bf16.msra.mxu1 %v7365_v34  ;;  %vm7891_vm6 = vmpackc.low %vm205_vm3, %vm204_vm4  ;;  %v7380_v33 = vld [vmem:[#allocation2 + $0xb0] ss:$72 sps:$4 sm:$0xff]   ;;  %v7385_v34 = vld [vmem:[#allocation2 + $0x144] ss:$72 sps:$4 sm:$0xff]  }
  0xc4   :  { %1725 = vmatprep.subr.bf16.mxu1 %v7370_v35  ;;  %v11030_v58 = vsel %vm7891_vm6, 4294967295, %v11029_v58  ;;  %v7401_v35 = vld [vmem:[#allocation2 + $0xb8] ss:$72 sps:$4 sm:$0xff]   ;;  %v7421_v56 = vld [vmem:[#allocation2 + $0x38c] ss:$72 sps:$4 sm:$0xff]  }
  0xc5   :  { %11031 = vst [vmem:[#allocation16_spill] sm:$0xff] %v11030_v58  ;;  %v143_v59 = vpop.permute.xlu1 %142  ;;  %v140_v60 = vpop.permute.xlu0 %139  ;;  %v7412_v57 = vld [vmem:[#allocation2 + $0x414] ss:$72 sps:$4 sm:$0xff]  }
  0xc6   :  { %1533 = vmatpush1.bf16.msra.mxu0 %v7344_v38  ;;  %vm207_vm7 = vcmp.eq.s32.totalorder %v7803_v6, %v143_v59  ;;  %vm206_vm9 = vcmp.eq.s32.totalorder %v7803_v6, %v140_v60  ;;  %v7388_v38 = vld [vmem:[#allocation2 + $0x1d4] ss:$72 sps:$4 sm:$0xff]   ;;  %v7419_v59 = vld [vmem:[#allocation2 + $0x388] ss:$72 sps:$4 sm:$0xff]  }
  0xc7   :  { %1534 = vmatprep.subr.bf16.mxu0 %v7349_v39  ;;  %1726 = vmatpush1.bf16.msra.mxu1 %v7368_v40  ;;  %vm7905_vm10 = vmpackc.low %vm207_vm7, %vm206_vm9  ;;  %v7404_v39 = vld [vmem:[#allocation2 + $0x148] ss:$72 sps:$4 sm:$0xff]   ;;  %v7409_v40 = vld [vmem:[#allocation2 + $0x1dc] ss:$72 sps:$4 sm:$0xff]  }
  0xc8   :  { %6872 = vmatmul.mubr.msk.bf16.gmra.mrb[12].mxu0 %vm7849_vm11, %v10955_v13  ;;  %6904 = vmatmul.mubr.msk.bf16.gmra.mrb[12].mxu1 %vm7849_vm11, %v10955_v13  ;;  %v11033_v61 = vsel %vm7905_vm10, 4294967295, %v11032_v61  ;;  %v7424_v60 = vld [vmem:[#allocation2 + $0x41c] ss:$72 sps:$4 sm:$0xff]  }
  0xc9   :  { %1208 = vmatprep.mubr.bf16.mxu0 %v10953_v0  ;;  %1401 = vmatprep.mubr.bf16.mxu1 %v10953_v0  ;;  %11034 = vst [vmem:[#allocation17_spill] sm:$0xff] %v11033_v61  ;;  %v149_v62 = vpop.permute.xlu1 %148  ;;  %v146_v63 = vpop.permute.xlu0 %145 }
  0xca   :  { %1535 = vmatpush1.bf16.msra.mxu0 %v7347_v41  ;;  %1727 = vmatprep.subr.bf16.mxu1 %v7373_v42  ;;  %vm209_vm12 = vcmp.eq.s32.totalorder %v7803_v6, %v149_v62  ;;  %vm208_vm13 = vcmp.eq.s32.totalorder %v7803_v6, %v146_v63  ;;  %v7386_v41 = vld [vmem:[#allocation2 + $0x1d0] ss:$72 sps:$4 sm:$0xff]   ;;  %v7391_v42 = vld [vmem:[#allocation2 + $0x264] ss:$72 sps:$4 sm:$0xff]  }
  0xcb   :  { %1536 = vmatprep.subr.bf16.mxu0 %v7364_v44  ;;  %1728 = vmatpush1.bf16.msra.mxu1 %v7371_v45  ;;  %vm7919_vm15 = vmpackc.low %vm209_vm12, %vm208_vm13  ;;  %v7407_v44 = vld [vmem:[#allocation2 + $0x1d8] ss:$72 sps:$4 sm:$0xff]  }
  0xcc   :  { %1729 = vmatprep.subr.bf16.mxu1 %v7376_v46  ;;  %v11036_v1 = vsel %vm7919_vm15, 4294967295, %v11035_v1  ;;  %v7389_v45 = vld [vmem:[#allocation2 + $0x260] ss:$72 sps:$4 sm:$0xff]   ;;  %v7415_v46 = vld [vmem:[#allocation2 + $0x26c] ss:$72 sps:$4 sm:$0xff]  }
  0xcd   :  { %11037 = vst [vmem:[#allocation18_spill] sm:$0xff] %v11036_v1  ;;  %v155_v2 = vpop.permute.xlu1 %154  ;;  %v152_v3 = vpop.permute.xlu0 %151  ;;  %v7410_v62 = vld [vmem:[#allocation2 + $0x410] ss:$72 sps:$4 sm:$0xff]  }
  0xce   :  { %1537 = vmatpush1.bf16.msra.mxu0 %v7362_v49  ;;  %vm211_vm0 = vcmp.eq.s32.totalorder %v7803_v6, %v155_v2  ;;  %vm210_vm3 = vcmp.eq.s32.totalorder %v7803_v6, %v152_v3  ;;  %v7418_v49 = vld [vmem:[#allocation2 + $0x2fc] ss:$72 sps:$4 sm:$0xff]   ;;  %v7422_v63 = vld [vmem:[#allocation2 + $0x418] ss:$72 sps:$4 sm:$0xff]   ;;  %v3165_v3 = vshrl.u32 %v94_v4, 7 }
  0xcf   :  { %1730 = vmatpush1.bf16.msra.mxu1 %v7374_v50  ;;  %1908 = vmatprep.subr.bf16.mxu0 %v7379_v51  ;;  %vm7933_vm4 = vmpackc.low %vm211_vm0, %vm210_vm3  ;;  %v7392_v50 = vld [vmem:[#allocation2 + $0x2f0] ss:$72 sps:$4 sm:$0xff]   ;;  %v7397_v51 = vld [vmem:[#allocation2 + $0x384] ss:$72 sps:$4 sm:$0xff]  }
  0xd0   :  { %6874 = vmatmul.mubr.msk.bf16.gmra.mrb[16].mxu0 %vm7863_vm14, %v10955_v13  ;;  %6906 = vmatmul.mubr.msk.bf16.gmra.mrb[16].mxu1 %vm7863_vm14, %v10955_v13  ;;  %v11039_v5 = vsel %vm7933_vm4, 4294967295, %v11038_v5  ;;  %v7427_v2 = vld [vmem:[#allocation2 + $0x34] ss:$72 sps:$4 sm:$0xff]   ;;  %v3162_v4 = vld [vmem:[%s10933_s2] sm:$0x3] }
  0xd1   :  { %1218 = vmatprep.mubr.bf16.mxu0 %v10953_v0  ;;  %1411 = vmatprep.mubr.bf16.mxu1 %v10953_v0  ;;  %11040 = vst [vmem:[#allocation19_spill] sm:$0xff] %v11039_v5  ;;  %v161_v7 = vpop.permute.xlu1 %160  ;;  %v158_v8 = vpop.permute.xlu0 %157 }
  0xd2   :  { %vm213_vm7 = vcmp.eq.s32.totalorder %v7803_v6, %v161_v7  ;;  %vm212_vm9 = vcmp.eq.s32.totalorder %v7803_v6, %v158_v8  ;;  %2101 = vmatprep.subr.bf16.mxu1 %v7400_v17  ;;  %v8118_v7 = vsub.s32 0, %v3165_v3 }
  0xd3   :  { %vm7947_vm12 = vmpackc.low %vm213_vm7, %vm212_vm9 }
  0xd4   :  { %v11042_v9 = vsel %vm7947_vm12, 4294967295, %v11041_v9  ;;  %11057 = vst [vmem:[#allocation24_spill] sm:$0xff] %v8118_v7 }
  0xd5   :  { %11043 = vst [vmem:[#allocation20_spill] sm:$0xff] %v11042_v9  ;;  %v167_v10 = vpop.permute.xlu1 %166  ;;  %v164_v12 = vpop.permute.xlu0 %163 }
  0xd6   :  { %vm215_vm13 = vcmp.eq.s32.totalorder %v7803_v6, %v167_v10  ;;  %vm214_vm0 = vcmp.eq.s32.totalorder %v7803_v6, %v164_v12  ;;  %v8123_v12 = vsub.s32 1, %v3165_v3 }
  0xd7   :  { %vm7961_vm3 = vmpackc.low %vm215_vm13, %vm214_vm0 }
  0xd8   :  { %6876 = vmatmul.mubr.msk.bf16.gmra.mrb[20].mxu0 %vm7877_vm1, %v10955_v13  ;;  %6908 = vmatmul.mubr.msk.bf16.gmra.mrb[20].mxu1 %vm7877_vm1, %v10955_v13  ;;  %v11045_v14 = vsel %vm7961_vm3, 4294967295, %v11044_v14  ;;  %11058 = vst [vmem:[#allocation25_spill] sm:$0xff] %v8123_v12 }
  0xd9   :  { %1228 = vmatprep.mubr.bf16.mxu0 %v10953_v0  ;;  %1421 = vmatprep.mubr.bf16.mxu1 %v10953_v0  ;;  %11046 = vst [vmem:[#allocation21_spill] sm:$0xff] %v11045_v14  ;;  %v173_v15 = vpop.permute.xlu1 %172  ;;  %v170_v16 = vpop.permute.xlu0 %169 }
  0xda   :  { %vm217_vm7 = vcmp.eq.s32.totalorder %v7803_v6, %v173_v15  ;;  %vm216_vm9 = vcmp.eq.s32.totalorder %v7803_v6, %v170_v16 }
  0xdb   :  { %vm7975_vm13 = vmpackc.low %vm217_vm7, %vm216_vm9 }
  0xdc   :  { %v11048_v18 = vsel %vm7975_vm13, 4294967295, %v11047_v18 }
  0xdd   :  { %11049 = vst [vmem:[#allocation22_spill] sm:$0xff] %v11048_v18  ;;  %v179_v19 = vpop.permute.xlu1 %178  ;;  %v176_v20 = vpop.permute.xlu0 %175 }
  0xde   :  { %vm219_vm0 = vcmp.eq.s32.totalorder %v7803_v6, %v179_v19  ;;  %vm218_vm7 = vcmp.eq.s32.totalorder %v7803_v6, %v176_v20 }
  0xdf   :  { %vm7989_vm9 = vmpackc.low %vm219_vm0, %vm218_vm7 }
  0xe0   :  { %6878 = vmatmul.mubr.msk.bf16.gmra.mrb[24].mxu0 %vm7891_vm6, %v10955_v13  ;;  %6910 = vmatmul.mubr.msk.bf16.gmra.mrb[24].mxu1 %vm7891_vm6, %v10955_v13  ;;  %v11051_v22 = vsel %vm7989_vm9, 4294967295, %v11050_v22 }
  0xe1   :  { %1238 = vmatprep.mubr.bf16.mxu0 %v10953_v0  ;;  %1431 = vmatprep.mubr.bf16.mxu1 %v10953_v0  ;;  %11052 = vst [vmem:[#allocation23_spill] sm:$0xff] %v11051_v22  ;;  %v185_v23 = vpop.permute.xlu1 %184  ;;  %v182_v24 = vpop.permute.xlu0 %181 }
  0xe2   :  { %vm220_vm0 = vcmp.eq.s32.totalorder %v7803_v6, %v182_v24  ;;  %v8126_v24 = vrot.slane %v3162_v4, %v8118_v7 }
  0xe5   :  { %v191_v26 = vpop.permute.xlu1 %190  ;;  %v188_v27 = vpop.permute.xlu0 %187 }
  0xe8   :  { %6880 = vmatmul.mubr.msk.bf16.gmra.mrb[28].mxu0 %vm7905_vm10, %v10955_v13  ;;  %6912 = vmatmul.mubr.msk.bf16.gmra.mrb[28].mxu1 %vm7905_vm10, %v10955_v13 }
  0xe9   :  { %1248 = vmatprep.mubr.bf16.mxu0 %v10953_v0  ;;  %1441 = vmatprep.mubr.bf16.mxu1 %v10953_v0 }
  0xf0   :  { %6882 = vmatmul.mubr.msk.bf16.gmra.mrb[32].mxu0 %vm7919_vm15, %v10955_v13  ;;  %6914 = vmatmul.mubr.msk.bf16.gmra.mrb[32].mxu1 %vm7919_vm15, %v10955_v13 }
  0xf1   :  { %1258 = vmatprep.mubr.bf16.mxu0 %v10953_v0  ;;  %1451 = vmatprep.mubr.bf16.mxu1 %v10953_v0 }
  0xf8   :  { %6884 = vmatmul.mubr.msk.bf16.gmra.mrb[36].mxu0 %vm7933_vm4, %v10955_v13  ;;  %6916 = vmatmul.mubr.msk.bf16.gmra.mrb[36].mxu1 %vm7933_vm4, %v10955_v13 }
  0xf9   :  { %1268 = vmatprep.mubr.bf16.mxu0 %v10953_v0  ;;  %1461 = vmatprep.mubr.bf16.mxu1 %v10953_v0 }
 0x100   :  { %6886 = vmatmul.mubr.msk.bf16.gmra.mrb[40].mxu0 %vm7947_vm12, %v10955_v13  ;;  %6918 = vmatmul.mubr.msk.bf16.gmra.mrb[40].mxu1 %vm7947_vm12, %v10955_v13 }
 0x101   :  { %1278 = vmatprep.mubr.bf16.mxu0 %v10953_v0  ;;  %1471 = vmatprep.mubr.bf16.mxu1 %v10953_v0 }
 0x108   :  { %6888 = vmatmul.mubr.msk.bf16.gmra.mrb[44].mxu0 %vm7961_vm3, %v10955_v13  ;;  %6920 = vmatmul.mubr.msk.bf16.gmra.mrb[44].mxu1 %vm7961_vm3, %v10955_v13 }
 0x109   :  { %1288 = vmatprep.mubr.bf16.mxu0 %v10953_v0  ;;  %1481 = vmatprep.mubr.bf16.mxu1 %v10953_v0 }
 0x110   :  { %6890 = vmatmul.mubr.msk.bf16.gmra.mrb[48].mxu0 %vm7975_vm13, %v10955_v13  ;;  %6922 = vmatmul.mubr.msk.bf16.gmra.mrb[48].mxu1 %vm7975_vm13, %v10955_v13  ;;  %vm221_vm13 = vcmp.eq.s32.totalorder %v7803_v6, %v185_v23 }
 0x111   :  { %1298 = vmatprep.mubr.bf16.mxu0 %v10953_v0  ;;  %1491 = vmatprep.mubr.bf16.mxu1 %v10953_v0  ;;  %vm8003_vm7 = vmpackc.low %vm221_vm13, %vm220_vm0  ;;  %vm222_vm13 = vcmp.eq.s32.totalorder %v7803_v6, %v188_v27 }
 0x112   :  { %v11054_v25 = vsel %vm8003_vm7, 4294967295, %v11053_v25 }
 0x118   :  { %6892 = vmatmul.mubr.msk.bf16.gmra.mrb[52].mxu0 %vm7989_vm9, %v10955_v13  ;;  %6924 = vmatmul.mubr.msk.bf16.gmra.mrb[52].mxu1 %vm7989_vm9, %v10955_v13  ;;  %vm223_vm9 = vcmp.eq.s32.totalorder %v7803_v6, %v191_v26  ;;  %v7403_v6 = vld [vmem:[#allocation2 + $0xbc] ss:$72 sps:$4 sm:$0xff]  }
 0x119   :  { %1308 = vmatprep.mubr.bf16.mxu0 %v10953_v0  ;;  %1501 = vmatprep.mubr.bf16.mxu1 %v10953_v0  ;;  %vm8017_vm0 = vmpackc.low %vm223_vm9, %vm222_vm13  ;;  %vm10947_vm9 = vcmask 1046528   ;;  %vm11059_vm13 = vnez %v11048_v18 }
 0x11a   :  { %v11056_v28 = vsel %vm8017_vm0, 4294967295, %v11055_v28 }
 0x120   :  { %6894 = vmatmul.mubr.msk.bf16.gmra.mrb[56].mxu0 %vm8003_vm7, %v10955_v13  ;;  %6926 = vmatmul.mubr.msk.bf16.gmra.mrb[56].mxu1 %vm8003_vm7, %v10955_v13 }
 0x121   :  { %1318 = vmatprep.mubr.bf16.mxu0 %v10953_v0  ;;  %1511 = vmatprep.mubr.bf16.mxu1 %v10953_v0 }
 0x128   :  { %6896 = vmatmul.mubr.msk.bf16.gmra.mrb[60].mxu0 %vm8017_vm0, %v10955_v13  ;;  %6928 = vmatmul.mubr.msk.bf16.gmra.mrb[60].mxu1 %vm8017_vm0, %v10955_v13 }
 0x129   :  { %1554 = vmatprep.mubr.bf16.mxu0 %v10953_v0  ;;  %1747 = vmatprep.mubr.bf16.mxu1 %v10953_v0 }
 0x130   :  { %6930 = vmatmul.mubr.msk.bf16.vlgmr.msra.gmra.mrb[64].mxu0 %vm7807_vm2, %v10955_v13  ;;  %6962 = vmatmul.mubr.msk.bf16.vlgmr.msra.gmra.mrb[64].mxu1 %vm7807_vm2, %v10955_v13 }
 0x131   :  { %1909 = vmatpush1.bf16.msra.mxu0 %v7377_v29  ;;  %1564 = vmatprep.mubr.bf16.mxu0 %v10953_v0 }
 0x132   :  { %1757 = vmatprep.mubr.bf16.mxu1 %v10953_v0  ;;  %1910 = vmatprep.subr.bf16.mxu0 %v7382_v30 }
 0x133   :  { %2102 = vmatpush1.bf16.msra.mxu1 %v7398_v31  ;;  %v8129_v31 = vrot.slane %v3162_v4, %v8123_v12 }
 0x134   :  { %2103 = vmatprep.subr.bf16.mxu1 %v7403_v6 }
 0x135   :  { %1911 = vmatpush1.bf16.msra.mxu0 %v7380_v33 }
 0x136   :  { %1912 = vmatprep.subr.bf16.mxu0 %v7385_v34 }
 0x137   :  { %2104 = vmatpush1.bf16.msra.mxu1 %v7401_v35 }
 0x138   :  { %6932 = vmatmul.mubr.msk.bf16.gmra.mrb[68].mxu0 %vm7821_vm5, %v10955_v13  ;;  %6964 = vmatmul.mubr.msk.bf16.gmra.mrb[68].mxu1 %vm7821_vm5, %v10955_v13 }
 0x139   :  { %1574 = vmatprep.mubr.bf16.mxu0 %v10953_v0  ;;  %1767 = vmatprep.mubr.bf16.mxu1 %v10953_v0 }
 0x13a   :  { %1913 = vmatpush1.bf16.msra.mxu0 %v7383_v36  ;;  %2105 = vmatprep.subr.bf16.mxu1 %v7406_v37 }
 0x13b   :  { %1914 = vmatprep.subr.bf16.mxu0 %v7388_v38  ;;  %2106 = vmatpush1.bf16.msra.mxu1 %v7404_v39 }
 0x13c   :  { %2107 = vmatprep.subr.bf16.mxu1 %v7409_v40 }
 0x13e   :  { %1915 = vmatpush1.bf16.msra.mxu0 %v7386_v41 }
 0x13f   :  { %1916 = vmatprep.subr.bf16.mxu0 %v7391_v42  ;;  %2108 = vmatpush1.bf16.msra.mxu1 %v7407_v44 }
 0x140   :  { %6934 = vmatmul.mubr.msk.bf16.gmra.mrb[72].mxu0 %vm7835_vm8, %v10955_v13  ;;  %6966 = vmatmul.mubr.msk.bf16.gmra.mrb[72].mxu1 %vm7835_vm8, %v10955_v13 }
 0x141   :  { %1584 = vmatprep.mubr.bf16.mxu0 %v10953_v0  ;;  %1777 = vmatprep.mubr.bf16.mxu1 %v10953_v0 }
 0x142   :  { %1917 = vmatpush1.bf16.msra.mxu0 %v7389_v45  ;;  %2109 = vmatprep.subr.bf16.mxu1 %v7415_v46 }
 0x143   :  { %1918 = vmatprep.subr.bf16.mxu0 %v7394_v47  ;;  %2110 = vmatpush1.bf16.msra.mxu1 %v7413_v48 }
 0x144   :  { %2111 = vmatprep.subr.bf16.mxu1 %v7418_v49 }
 0x146   :  { %1919 = vmatpush1.bf16.msra.mxu0 %v7392_v50 }
 0x147   :  { %1920 = vmatprep.subr.bf16.mxu0 %v7397_v51  ;;  %2112 = vmatpush1.bf16.msra.mxu1 %v7416_v53 }
 0x148   :  { %6936 = vmatmul.mubr.msk.bf16.gmra.mrb[76].mxu0 %vm7849_vm11, %v10955_v13  ;;  %6968 = vmatmul.mubr.msk.bf16.gmra.mrb[76].mxu1 %vm7849_vm11, %v10955_v13 }
 0x149   :  { %1594 = vmatprep.mubr.bf16.mxu0 %v10953_v0  ;;  %1787 = vmatprep.mubr.bf16.mxu1 %v10953_v0 }
 0x14a   :  { %1921 = vmatpush1.bf16.msra.mxu0 %v7395_v54  ;;  %2113 = vmatprep.subr.bf16.mxu1 %v7421_v56 }
 0x14b   :  { %1922 = vmatprep.subr.bf16.mxu0 %v7412_v57  ;;  %2114 = vmatpush1.bf16.msra.mxu1 %v7419_v59 }
 0x14c   :  { %2115 = vmatprep.subr.bf16.mxu1 %v7424_v60 }
 0x14e   :  { %1923 = vmatpush1.bf16.msra.mxu0 %v7410_v62 }
 0x14f   :  { %2116 = vmatpush1.bf16.msra.mxu1 %v7422_v63  ;;  %2294 = vmatprep.subr.bf16.mxu0 %v7427_v2 }
 0x150   :  { %6938 = vmatmul.mubr.msk.bf16.gmra.mrb[80].mxu0 %vm7863_vm14, %v10955_v13  ;;  %6970 = vmatmul.mubr.msk.bf16.gmra.mrb[80].mxu1 %vm7863_vm14, %v10955_v13 }
 0x151   :  { %1604 = vmatprep.mubr.bf16.mxu0 %v10953_v0  ;;  %1797 = vmatprep.mubr.bf16.mxu1 %v10953_v0 }
 0x158   :  { %6940 = vmatmul.mubr.msk.bf16.gmra.mrb[84].mxu0 %vm7877_vm1, %v10955_v13  ;;  %6972 = vmatmul.mubr.msk.bf16.gmra.mrb[84].mxu1 %vm7877_vm1, %v10955_v13 }
 0x159   :  { %1614 = vmatprep.mubr.bf16.mxu0 %v10953_v0  ;;  %1807 = vmatprep.mubr.bf16.mxu1 %v10953_v0 }
 0x160   :  { %6942 = vmatmul.mubr.msk.bf16.gmra.mrb[88].mxu0 %vm7891_vm6, %v10955_v13  ;;  %6974 = vmatmul.mubr.msk.bf16.gmra.mrb[88].mxu1 %vm7891_vm6, %v10955_v13 }
 0x161   :  { %1624 = vmatprep.mubr.bf16.mxu0 %v10953_v0  ;;  %1817 = vmatprep.mubr.bf16.mxu1 %v10953_v0 }
 0x168   :  { %6944 = vmatmul.mubr.msk.bf16.gmra.mrb[92].mxu0 %vm7905_vm10, %v10955_v13  ;;  %6976 = vmatmul.mubr.msk.bf16.gmra.mrb[92].mxu1 %vm7905_vm10, %v10955_v13 }
 0x169   :  { %1634 = vmatprep.mubr.bf16.mxu0 %v10953_v0  ;;  %1827 = vmatprep.mubr.bf16.mxu1 %v10953_v0 }
 0x170   :  { %6946 = vmatmul.mubr.msk.bf16.gmra.mrb[96].mxu0 %vm7919_vm15, %v10955_v13  ;;  %6978 = vmatmul.mubr.msk.bf16.gmra.mrb[96].mxu1 %vm7919_vm15, %v10955_v13 }
 0x171   :  { %1644 = vmatprep.mubr.bf16.mxu0 %v10953_v0  ;;  %1837 = vmatprep.mubr.bf16.mxu1 %v10953_v0 }
 0x178   :  { %6948 = vmatmul.mubr.msk.bf16.gmra.mrb[100].mxu0 %vm7933_vm4, %v10955_v13  ;;  %6980 = vmatmul.mubr.msk.bf16.gmra.mrb[100].mxu1 %vm7933_vm4, %v10955_v13 }
 0x179   :  { %1654 = vmatprep.mubr.bf16.mxu0 %v10953_v0  ;;  %1847 = vmatprep.mubr.bf16.mxu1 %v10953_v0 }
 0x180   :  { %6950 = vmatmul.mubr.msk.bf16.gmra.mrb[104].mxu0 %vm7947_vm12, %v10955_v13  ;;  %6982 = vmatmul.mubr.msk.bf16.gmra.mrb[104].mxu1 %vm7947_vm12, %v10955_v13 }
 0x181   :  { %1664 = vmatprep.mubr.bf16.mxu0 %v10953_v0  ;;  %1857 = vmatprep.mubr.bf16.mxu1 %v10953_v0 }
 0x183   :  { %v1170_v8 = vpop.f32.mrb[0].mxu0  ;;  %v1363_v10 = vpop.f32.mrb[0].mxu1 }
 0x184   :  { %v1172_v15 = vpop.f32.mrb[1].mxu0  ;;  %v1365_v16 = vpop.f32.mrb[1].mxu1  ;;  %v2938_v20 = vrot.slane %v1363_v10, 1 }
 0x185   :  { %v1174_v17 = vpop.f32.mrb[2].mxu0  ;;  %v1367_v19 = vpop.f32.mrb[2].mxu1  ;;  %v2941_v29 = vrot.slane %v1365_v16, 1 }
 0x186   :  { %v2939_v23 = vrot.slane %v1367_v19, 1  ;;  %v1176_v26 = vpop.f32.mrb[3].mxu0  ;;  %v1369_v27 = vpop.f32.mrb[3].mxu1 }
 0x187   :  { %v2942_v30 = vrot.slane %v1369_v27, 1 }
 0x188   :  { %v2940_v6 = vsel %vm10947_vm9, %v2938_v20, %v2939_v23  ;;  %v3100_v33 = vadd.f32 %v2939_v23, %v1174_v17  ;;  %6952 = vmatmul.mubr.msk.bf16.gmra.mrb[108].mxu0 %vm7961_vm3, %v10955_v13  ;;  %6984 = vmatmul.mubr.msk.bf16.gmra.mrb[108].mxu1 %vm7961_vm3, %v10955_v13 }
 0x189   :  { %v3098_v34 = vadd.f32 %v2940_v6, %v1170_v8  ;;  %v2943_v35 = vsel %vm10947_vm9, %v2941_v29, %v2942_v30  ;;  %v3101_v36 = vadd.f32 %v2942_v30, %v1176_v26  ;;  %1674 = vmatprep.mubr.bf16.mxu0 %v10953_v0  ;;  %1867 = vmatprep.mubr.bf16.mxu1 %v10953_v0 }
 0x18a   :  { %v3176_v37 = vadd.f32 %v8126_v24, %v3100_v33  ;;  %v3099_v38 = vadd.f32 %v2943_v35, %v1172_v15 }
 0x18b   :  { %v3174_v39 = vadd.f32 %v8126_v24, %v3098_v34  ;;  %v3177_v40 = vadd.f32 %v8129_v31, %v3101_v36  ;;  %v1180_v41 = vpop.f32.mrb[4].mxu0  ;;  %v1373_v42 = vpop.f32.mrb[4].mxu1 }
 0x18c   :  { %v3240_v44 = vmax.f32 %v3176_v37, 0.0  ;;  %v3175_v45 = vadd.f32 %v8129_v31, %v3099_v38  ;;  %v1182_v46 = vpop.f32.mrb[5].mxu0  ;;  %v1375_v47 = vpop.f32.mrb[5].mxu1  ;;  %v2944_v56 = vrot.slane %v1373_v42, 1 }
 0x18d   :  { %v3238_v48 = vmax.f32 %v3174_v39, 0.0  ;;  %v3241_v49 = vmax.f32 %v3177_v40, 0.0  ;;  %v1184_v50 = vpop.f32.mrb[6].mxu0  ;;  %v1377_v51 = vpop.f32.mrb[6].mxu1  ;;  %v2947_v2 = vrot.slane %v1375_v47, 1 }
 0x18e   :  { %v3302_v53 = vsel %vm10947_vm9, %v3240_v44, -inf  ;;  %v3239_v54 = vmax.f32 %v3175_v45, 0.0  ;;  %v2945_v57 = vrot.slane %v1377_v51, 1  ;;  %v1186_v59 = vpop.f32.mrb[7].mxu0  ;;  %v1379_v60 = vpop.f32.mrb[7].mxu1 }
 0x18f   :  { %v3303_v62 = vmax.f32 %v3238_v48, %v3302_v53  ;;  %v3310_v63 = vsel %vm10947_vm9, %v3241_v49, -inf  ;;  %v2948_v3 = vrot.slane %v1379_v60, 1 }
 0x190   :  { %v3311_v8 = vmax.f32 %v3239_v54, %v3310_v63  ;;  %v2946_v10 = vsel %vm10947_vm9, %v2944_v56, %v2945_v57  ;;  %v3104_v4 = vadd.f32 %v2945_v57, %v1184_v50  ;;  %6954 = vmatmul.mubr.msk.bf16.gmra.mrb[112].mxu0 %vm11059_vm13, %v10955_v13  ;;  %6986 = vmatmul.mubr.msk.bf16.gmra.mrb[112].mxu1 %vm11059_vm13, %v10955_v13 }
 0x191   :  { %v3304_v15 = vrot.slane %v3303_v62, 4  ;;  %v3102_v16 = vadd.f32 %v2946_v10, %v1180_v41  ;;  %v2949_v17 = vsel %vm10947_vm9, %v2947_v2, %v2948_v3  ;;  %v3105_v19 = vadd.f32 %v2948_v3, %v1186_v59  ;;  %1684 = vmatprep.mubr.bf16.mxu0 %v10953_v0  ;;  %1877 = vmatprep.mubr.bf16.mxu1 %v10953_v0 }
 0x192   :  { %v3312_v20 = vrot.slane %v3311_v8, 4  ;;  %v3180_v23 = vadd.f32 %v8126_v24, %v3104_v4  ;;  %v3103_v26 = vadd.f32 %v2949_v17, %v1182_v46  ;;  %vm11060_vm13 = vnez %v11051_v22 }
 0x193   :  { %v3305_v27 = vmax.f32 %v3303_v62, %v3304_v15  ;;  %v3178_v29 = vadd.f32 %v8126_v24, %v3102_v16  ;;  %v3181_v30 = vadd.f32 %v8129_v31, %v3105_v19  ;;  %v1190_v6 = vpop.f32.mrb[8].mxu0  ;;  %v1383_v33 = vpop.f32.mrb[8].mxu1 }
 0x194   :  { %v3313_v34 = vmax.f32 %v3311_v8, %v3312_v20  ;;  %v3244_v35 = vmax.f32 %v3180_v23, 0.0  ;;  %v3179_v36 = vadd.f32 %v8129_v31, %v3103_v26  ;;  %v1192_v37 = vpop.f32.mrb[9].mxu0  ;;  %v1385_v38 = vpop.f32.mrb[9].mxu1  ;;  %v2950_v42 = vrot.slane %v1383_v33, 1 }
 0x195   :  { %v3306_v39 = vrot.slane %v3305_v27, 2  ;;  %v3242_v40 = vmax.f32 %v3178_v29, 0.0  ;;  %v3245_v41 = vmax.f32 %v3181_v30, 0.0  ;;  %v1194_v44 = vpop.f32.mrb[10].mxu0  ;;  %v1387_v45 = vpop.f32.mrb[10].mxu1  ;;  %v2953_v48 = vrot.slane %v1385_v38, 1 }
 0x196   :  { %v3318_v46 = vsel %vm10947_vm9, %v3244_v35, -inf  ;;  %v3243_v47 = vmax.f32 %v3179_v36, 0.0  ;;  %v2951_v49 = vrot.slane %v1387_v45, 1  ;;  %v1196_v50 = vpop.f32.mrb[11].mxu0  ;;  %v1389_v51 = vpop.f32.mrb[11].mxu1  ;;  %v3314_v59 = vrot.slane %v3313_v34, 2 }
 0x197   :  { %v3307_v53 = vmax.f32 %v3305_v27, %v3306_v39  ;;  %v3319_v54 = vmax.f32 %v3242_v40, %v3318_v46  ;;  %v3326_v56 = vsel %vm10947_vm9, %v3245_v41, -inf  ;;  %v2954_v57 = vrot.slane %v1389_v51, 1 }
 0x198   :  { %v3327_v60 = vmax.f32 %v3243_v47, %v3326_v56  ;;  %v2952_v62 = vsel %vm10947_vm9, %v2950_v42, %v2951_v49  ;;  %v3108_v63 = vadd.f32 %v2951_v49, %v1194_v44  ;;  %6956 = vmatmul.mubr.msk.bf16.gmra.mrb[116].mxu0 %vm11060_vm13, %v10955_v13  ;;  %6988 = vmatmul.mubr.msk.bf16.gmra.mrb[116].mxu1 %vm11060_vm13, %v10955_v13  ;;  %vm10950_vm13 = vcmask 1041409  }
 0x199   :  { %v3320_v2 = vrot.slane %v3319_v54, 4  ;;  %v3106_v3 = vadd.f32 %v2952_v62, %v1190_v6  ;;  %v2955_v8 = vsel %vm10947_vm9, %v2953_v48, %v2954_v57  ;;  %1694 = vmatprep.mubr.bf16.mxu0 %v10953_v0  ;;  %v3308_v10 = vrot.slane %v3307_v53, 1  ;;  %1887 = vmatprep.mubr.bf16.mxu1 %v10953_v0 }
 0x19a   :  { %v3184_v4 = vadd.f32 %v8126_v24, %v3108_v63  ;;  %v3107_v15 = vadd.f32 %v2955_v8, %v1192_v37  ;;  %v3109_v19 = vadd.f32 %v2954_v57, %v1196_v50  ;;  %v8175_v26 = vmax.f32 %v3313_v34, %v3314_v59 }
 0x19b   :  { %v3321_v16 = vmax.f32 %v3319_v54, %v3320_v2  ;;  %v3182_v17 = vadd.f32 %v8126_v24, %v3106_v3  ;;  %v1200_v20 = vpop.f32.mrb[12].mxu0  ;;  %v1393_v23 = vpop.f32.mrb[12].mxu1  ;;  %v3328_v27 = vrot.slane %v3327_v60, 4  ;;  %v3309_v40 = vmax.f32 %v3307_v53, %v3308_v10 }
 0x19c   :  { %v3248_v29 = vmax.f32 %v3184_v4, 0.0  ;;  %v3183_v30 = vadd.f32 %v8129_v31, %v3107_v15  ;;  %v1202_v6 = vpop.f32.mrb[13].mxu0  ;;  %v1395_v33 = vpop.f32.mrb[13].mxu1  ;;  %v3185_v37 = vadd.f32 %v8129_v31, %v3109_v19  ;;  %v3316_v48 = vrot.slane %v8175_v26, 1 }
 0x19d   :  { %v3322_v35 = vrot.slane %v3321_v16, 2  ;;  %v3246_v36 = vmax.f32 %v3182_v17, 0.0  ;;  %v1204_v38 = vpop.f32.mrb[14].mxu0  ;;  %v1397_v39 = vpop.f32.mrb[14].mxu1  ;;  %v3329_v49 = vmax.f32 %v3327_v60, %v3328_v27  ;;  %v2956_v50 = vrot.slane %v1393_v23, 1 }
 0x19e   :  { %v3334_v41 = vsel %vm10947_vm9, %v3248_v29, -inf  ;;  %v3247_v42 = vmax.f32 %v3183_v30, 0.0  ;;  %v1206_v44 = vpop.f32.mrb[15].mxu0  ;;  %v1399_v45 = vpop.f32.mrb[15].mxu1  ;;  %v3249_v47 = vmax.f32 %v3185_v37, 0.0  ;;  %v2957_v56 = vrot.slane %v1397_v39, 1 }
 0x19f   :  { %v3323_v34 = vmax.f32 %v3321_v16, %v3322_v35  ;;  %v3335_v46 = vmax.f32 %v3246_v36, %v3334_v41  ;;  %v5792_v57 = vpack.c.bf16 %v3309_v40, %v3309_v40  ;;  %v2959_v62 = vrot.slane %v1395_v33, 1  ;;  %v7448_v39 = vld [vmem:[#allocation2 + $0x3c] ss:$72 sps:$4 sm:$0xff]  }
 0x1a0   :  { %6958 = vmatmul.mubr.msk.bf16.gmra.mrb[120].mxu0 %vm8003_vm7, %v10955_v13  ;;  %v3342_v53 = vsel %vm10947_vm9, %v3249_v47, -inf  ;;  %6990 = vmatmul.mubr.msk.bf16.gmra.mrb[120].mxu1 %vm8003_vm7, %v10955_v13  ;;  %v2960_v60 = vrot.slane %v1399_v45, 1  ;;  %v2958_v3 = vsel %vm10947_vm9, %v2956_v50, %v2957_v56  ;;  %v3112_v8 = vadd.f32 %v2957_v56, %v1204_v38 }
 0x1a1   :  { %v3324_v51 = vrot.slane %v3323_v34, 1  ;;  %v3336_v54 = vrot.slane %v3335_v46, 4  ;;  %1704 = vmatprep.mubr.bf16.mxu0 %v10953_v0  ;;  %v3343_v59 = vmax.f32 %v3247_v42, %v3342_v53  ;;  %1897 = vmatprep.mubr.bf16.mxu1 %v10953_v0  ;;  %v3330_v15 = vrot.slane %v3329_v49, 2 }
 0x1a2   :  { %v3110_v17 = vadd.f32 %v2958_v3, %v1200_v20  ;;  %v2961_v19 = vsel %vm10947_vm9, %v2959_v62, %v2960_v60  ;;  %v3188_v33 = vadd.f32 %v8126_v24, %v3112_v8  ;;  %v6192_v38 = vunpack.c.l.b16 %v5792_v57  ;;  %2487 = vmatprep.subr.bf16.mxu1 %v7448_v39 }
 0x1a3   :  { %v3325_v63 = vmax.f32 %v3323_v34, %v3324_v51  ;;  %v3337_v2 = vmax.f32 %v3335_v46, %v3336_v54  ;;  %v8191_v10 = vpop.f32.mrb[16].mxu0  ;;  %v1403_v4 = vpop.f32.mrb[16].mxu1  ;;  %v3344_v16 = vrot.slane %v3343_v59, 4  ;;  %v3111_v35 = vadd.f32 %v2961_v19, %v1202_v6 }
 0x1a4   :  { %v8194_v23 = vpop.f32.mrb[17].mxu0  ;;  %v1405_v27 = vpop.f32.mrb[17].mxu1  ;;  %v3186_v41 = vadd.f32 %v8126_v24, %v3110_v17  ;;  %v3113_v42 = vadd.f32 %v2960_v60, %v1206_v44  ;;  %v3252_v47 = vmax.f32 %v3188_v33, 0.0  ;;  %vm10951_vm9 = vcmask 1042434  }
 0x1a5   :  { %v5794_v29 = vpack.c.bf16 %v3325_v63, %v3325_v63  ;;  %v3338_v30 = vrot.slane %v3337_v2, 2  ;;  %v1214_v36 = vpop.f32.mrb[18].mxu0  ;;  %v1407_v37 = vpop.f32.mrb[18].mxu1  ;;  %v3345_v40 = vmax.f32 %v3343_v59, %v3344_v16  ;;  %v3187_v50 = vadd.f32 %v8129_v31, %v3111_v35 }
 0x1a6   :  { %v1216_v45 = vpop.f32.mrb[19].mxu0  ;;  %v1409_v20 = vpop.f32.mrb[19].mxu1  ;;  %v3250_v54 = vmax.f32 %v3186_v41, 0.0  ;;  %v3189_v6 = vadd.f32 %v8129_v31, %v3113_v42  ;;  %vm11061_vm7 = vcmask 1046528   ;;  %v8210_v59 = vmax.f32 %v8175_v26, %v3316_v48  ;;  %v7425_v41 = vld [vmem:[#allocation2 + $0x30] ss:$72 sps:$4 sm:$0xff]  }
 0x1a7   :  { %v6194_v34 = vunpack.c.l.b16 %v5794_v29  ;;  %v3339_v46 = vmax.f32 %v3337_v2, %v3338_v30  ;;  %v3346_v51 = vrot.slane %v3345_v40, 2  ;;  %v3350_v56 = vsel %vm11061_vm7, %v3252_v47, -inf }
 0x1a8   :  { %6960 = vmatmul.mubr.msk.bf16.gmra.mrb[124].mxu0 %vm8017_vm0, %v10955_v13  ;;  %v3251_v57 = vmax.f32 %v3187_v50, 0.0  ;;  %6992 = vmatmul.mubr.msk.bf16.gmra.mrb[124].mxu1 %vm8017_vm0, %v10955_v13  ;;  %v8212_v62 = vmax.f32 %v3329_v49, %v3330_v15  ;;  %v3351_v60 = vmax.f32 %v3250_v54, %v3350_v56  ;;  %v3253_v63 = vmax.f32 %v3189_v6, 0.0  ;;  %v7430_v54 = vld [vmem:[#allocation2 + $0xc4] ss:$72 sps:$4 sm:$0xff]   ;;  %v7446_v6 = vld [vmem:[#allocation2 + $0x38] ss:$72 sps:$4 sm:$0xff]  }
 0x1a9   :  { %v6224_v53 = vsel %vm10950_vm13, %v6194_v34, %v6192_v38  ;;  %v3340_v44 = vrot.slane %v3339_v46, 1  ;;  %1940 = vmatprep.mubr.bf16.mxu0 %v10953_v0  ;;  %2133 = vmatprep.mubr.bf16.mxu1 %v10953_v0  ;;  %v2962_v3 = vrot.slane %v1403_v4, 1  ;;  %v2963_v8 = vrot.slane %v1407_v37, 1  ;;  %vm11062_vm13 = vmmov %vm11061_vm7 }
 0x1aa   :  { %v2966_v16 = vrot.slane %v1409_v20, 1  ;;  %v8219_v29 = vmax.f32 %v3345_v40, %v3346_v51  ;;  %v3352_v30 = vrot.slane %v3351_v60, 4  ;;  %v3358_v26 = vsel %vm11061_vm7, %v3253_v63, -inf }
 0x1ab   :  { %v3341_v2 = vmax.f32 %v3339_v46, %v3340_v44  ;;  %v8215_v17 = vpop.f32.mrb[20].mxu0  ;;  %v8217_v19 = vpop.f32.mrb[20].mxu1  ;;  %v2965_v48 = vrot.slane %v1405_v27, 1  ;;  %v3359_v35 = vmax.f32 %v3251_v57, %v3358_v26  ;;  %v2964_v4 = vsel %vm11062_vm13, %v2962_v3, %v2963_v8 }
 0x1ac   :  { %v8222_v49 = vpop.f32.mrb[21].mxu0  ;;  %v8224_v15 = vpop.f32.mrb[21].mxu1  ;;  %v3116_v37 = vadd.f32 %v2963_v8, %v1214_v36  ;;  %v3332_v40 = vrot.slane %v8212_v62, 1  ;;  %v3353_v42 = vmax.f32 %v3351_v60, %v3352_v30  ;;  %v3114_v20 = vadd.f32 %v2964_v4, %v8191_v10  ;;  %v7451_v60 = vld [vmem:[#allocation2 + $0xcc] ss:$72 sps:$4 sm:$0xff]  }
 0x1ad   :  { %v5796_v33 = vpack.c.bf16 %v3341_v2, %v3341_v2  ;;  %v8227_v39 = vpop.f32.mrb[22].mxu0  ;;  %v8229_v38 = vpop.f32.mrb[22].mxu1  ;;  %v2967_v27 = vsel %vm11061_vm7, %v2965_v48, %v2966_v16  ;;  %v3360_v50 = vrot.slane %v3359_v35, 4  ;;  %v3348_v44 = vrot.slane %v8219_v29, 1  ;;  %v7428_v8 = vld [vmem:[#allocation2 + $0xc0] ss:$72 sps:$4 sm:$0xff]  }
 0x1ae   :  { %v8234_v34 = vpop.f32.mrb[23].mxu0  ;;  %v8236_v46 = vpop.f32.mrb[23].mxu1  ;;  %v3192_v36 = vadd.f32 %v8126_v24, %v3116_v37  ;;  %v3115_v51 = vadd.f32 %v2967_v27, %v8194_v23  ;;  %v3354_v56 = vrot.slane %v3353_v42, 2  ;;  %v3190_v57 = vadd.f32 %v8126_v24, %v3114_v20  ;;  %v7449_v48 = vld [vmem:[#allocation2 + $0xc8] ss:$72 sps:$4 sm:$0xff]  }
 0x1af   :  { %v6196_v47 = vunpack.c.l.b16 %v5796_v33  ;;  %v3117_v10 = vadd.f32 %v2966_v16, %v1216_v45  ;;  %vm10952_vm13 = vcmask 1043459   ;;  %v3361_v2 = vmax.f32 %v3359_v35, %v3360_v50  ;;  %v7442_v45 = vld [vmem:[#allocation2 + $0x304] ss:$72 sps:$4 sm:$0xff]  }
 0x1b0   :  { %6994 = vmatmul.mubr.msk.bf16.vlgmr.msra.gmra.mrb[128].mxu0 %vm7807_vm2, %v10955_v13  ;;  %v3256_v3 = vmax.f32 %v3192_v36, 0.0  ;;  %v3191_v23 = vadd.f32 %v8129_v31, %v3115_v51  ;;  %7026 = vmatmul.mubr.msk.bf16.vlgmr.msra.gmra.mrb[128].mxu1 %vm7807_vm2, %v10955_v13  ;;  %v3355_v16 = vmax.f32 %v3353_v42, %v3354_v56  ;;  %v3254_v30 = vmax.f32 %v3190_v57, 0.0 }
 0x1b1   :  { %v8246_v63 = vsel %vm10951_vm9, %v6196_v47, %v6224_v53  ;;  %2295 = vmatpush1.bf16.msra.mxu0 %v7425_v41  ;;  %v3193_v26 = vadd.f32 %v8129_v31, %v3117_v10  ;;  %1950 = vmatprep.mubr.bf16.mxu0 %v10953_v0  ;;  %v7433_v53 = vld [vmem:[#allocation2 + $0x154] ss:$72 sps:$4 sm:$0xff]   ;;  %v3362_v33 = vrot.slane %v3361_v2, 2  ;;  %v2968_v37 = vrot.slane %v8217_v19, 1  ;;  %vm11063_vm9 = vmmov %vm11061_vm7 }
 0x1b2   :  { %2143 = vmatprep.mubr.bf16.mxu1 %v10953_v0  ;;  %v3366_v35 = vsel %vm11061_vm7, %v3256_v3, -inf  ;;  %v3255_v4 = vmax.f32 %v3191_v23, 0.0  ;;  %2296 = vmatprep.subr.bf16.mxu0 %v7430_v54  ;;  %v3356_v42 = vrot.slane %v3355_v16, 1  ;;  %v2969_v50 = vrot.slane %v8229_v38, 1 }
 0x1b3   :  { %v8259_v41 = vpop.f32.mrb[24].mxu0  ;;  %v8261_v20 = vpop.f32.mrb[24].mxu1  ;;  %2488 = vmatpush1.bf16.msra.mxu1 %v7446_v6  ;;  %v3367_v27 = vmax.f32 %v3254_v30, %v3366_v35  ;;  %v3257_v47 = vmax.f32 %v3193_v26, 0.0  ;;  %v8269_v56 = vmax.f32 %v8212_v62, %v3332_v40  ;;  %v8272_v19 = vmax.f32 %v8219_v29, %v3348_v44  ;;  %v7431_v29 = vld [vmem:[#allocation2 + $0x150] ss:$72 sps:$4 sm:$0xff]  }
 0x1b4   :  { %v8264_v36 = vpop.f32.mrb[25].mxu0  ;;  %v8266_v51 = vpop.f32.mrb[25].mxu1  ;;  %2489 = vmatprep.subr.bf16.mxu1 %v7451_v60  ;;  %v2971_v57 = vrot.slane %v8224_v15, 1  ;;  %v2972_v54 = vrot.slane %v8236_v46, 1  ;;  %v3357_v38 = vmax.f32 %v3355_v16, %v3356_v42  ;;  %v2970_v60 = vsel %vm11063_vm9, %v2968_v37, %v2969_v50  ;;  %v7454_v16 = vld [vmem:[#allocation2 + $0x15c] ss:$72 sps:$4 sm:$0xff]   ;;  %vm11065_vm9 = vmmov %vm11061_vm7 }
 0x1b5   :  { %v8276_v6 = vpop.f32.mrb[26].mxu0  ;;  %v8278_v10 = vpop.f32.mrb[26].mxu1  ;;  %2297 = vmatpush1.bf16.msra.mxu0 %v7428_v8  ;;  %v3368_v3 = vrot.slane %v3367_v27, 4  ;;  %v3374_v23 = vsel %vm11061_vm7, %v3257_v47, -inf  ;;  %v8286_v15 = vmax.f32 %v3361_v2, %v3362_v33  ;;  %v3118_v44 = vadd.f32 %v2970_v60, %v8215_v17  ;;  %v7436_v8 = vld [vmem:[#allocation2 + $0x1e4] ss:$72 sps:$4 sm:$0xff]  }
 0x1b6   :  { %v8282_v62 = vpop.f32.mrb[27].mxu0  ;;  %v8284_v40 = vpop.f32.mrb[27].mxu1  ;;  %2298 = vmatprep.subr.bf16.mxu0 %v7433_v53  ;;  %v3375_v46 = vmax.f32 %v3255_v4, %v3374_v23  ;;  %v3120_v30 = vadd.f32 %v2969_v50, %v8227_v39  ;;  %v5798_v26 = vpack.c.bf16 %v3357_v38, %v3357_v38  ;;  %v2973_v37 = vsel %vm11061_vm7, %v2971_v57, %v2972_v54  ;;  %v7452_v2 = vld [vmem:[#allocation2 + $0x158] ss:$72 sps:$4 sm:$0xff]   ;;  %v7439_v57 = vld [vmem:[#allocation2 + $0x274] ss:$72 sps:$4 sm:$0xff]  }
 0x1b7   :  { %2490 = vmatpush1.bf16.msra.mxu1 %v7449_v48  ;;  %v3369_v35 = vmax.f32 %v3367_v27, %v3368_v3  ;;  %v3121_v42 = vadd.f32 %v2972_v54, %v8234_v34  ;;  %v3194_v33 = vadd.f32 %v8126_v24, %v3118_v44  ;;  %v2974_v39 = vrot.slane %v8261_v20, 1  ;;  %v7457_v48 = vld [vmem:[#allocation2 + $0x1ec] ss:$72 sps:$4 sm:$0xff]   ;;  %v7434_v50 = vld [vmem:[#allocation2 + $0x1e0] ss:$72 sps:$4 sm:$0xff]  }
 0x1b8   :  { %6996 = vmatmul.mubr.msk.bf16.gmra.mrb[132].mxu0 %vm7821_vm5, %v10955_v13  ;;  %v3376_v53 = vrot.slane %v3375_v46, 4  ;;  %v3196_v17 = vadd.f32 %v8126_v24, %v3120_v30  ;;  %7028 = vmatmul.mubr.msk.bf16.gmra.mrb[132].mxu1 %vm7821_vm5, %v10955_v13  ;;  %v6198_v34 = vunpack.c.l.b16 %v5798_v26  ;;  %v3119_v27 = vadd.f32 %v2973_v37, %v8222_v49  ;;  %v7437_v37 = vld [vmem:[#allocation2 + $0x270] ss:$72 sps:$4 sm:$0xff]  }
 0x1b9   :  { %1960 = vmatprep.mubr.bf16.mxu0 %v10953_v0  ;;  %v3370_v4 = vrot.slane %v3369_v35, 2  ;;  %v3197_v47 = vadd.f32 %v8129_v31, %v3121_v42  ;;  %2153 = vmatprep.mubr.bf16.mxu1 %v10953_v0  ;;  %v3258_v54 = vmax.f32 %v3194_v33, 0.0  ;;  %v2977_v3 = vrot.slane %v8266_v51, 1  ;;  %v7455_v51 = vld [vmem:[#allocation2 + $0x1e8] ss:$72 sps:$4 sm:$0xff]  }
 0x1ba   :  { %2299 = vmatpush1.bf16.msra.mxu0 %v7431_v29  ;;  %v3377_v20 = vmax.f32 %v3375_v46, %v3376_v53  ;;  %v3260_v38 = vmax.f32 %v3196_v17, 0.0  ;;  %2491 = vmatprep.subr.bf16.mxu1 %v7454_v16  ;;  %v8312_v49 = vsel %vm10952_vm13, %v6198_v34, %v8246_v63  ;;  %v3195_v29 = vadd.f32 %v8129_v31, %v3119_v27  ;;  %vm11064_vm13 = vmmov %vm11061_vm7 }
 0x1bb   :  { %v8306_v23 = vpop.f32.mrb[28].mxu0  ;;  %v8308_v60 = vpop.f32.mrb[28].mxu1  ;;  %2300 = vmatprep.subr.bf16.mxu0 %v7436_v8  ;;  %v3371_v44 = vmax.f32 %v3369_v35, %v3370_v4  ;;  %v3261_v30 = vmax.f32 %v3197_v47, 0.0  ;;  %2492 = vmatpush1.bf16.msra.mxu1 %v7452_v2  ;;  %v3364_v42 = vrot.slane %v8286_v15, 1  ;;  %v2975_v16 = vrot.slane %v8278_v10, 1 }
 0x1bc   :  { %v8315_v26 = vpop.f32.mrb[29].mxu0  ;;  %v8317_v46 = vpop.f32.mrb[29].mxu1  ;;  %v3378_v53 = vrot.slane %v3377_v20, 2  ;;  %v3382_v8 = vsel %vm11061_vm7, %v3260_v38, -inf  ;;  %2493 = vmatprep.subr.bf16.mxu1 %v7457_v48  ;;  %v3259_v34 = vmax.f32 %v3195_v29, 0.0  ;;  %v2978_v0 = vrot.slane %v8284_v40, 1 }
 0x1bd   :  { %v8322_v63 = vpop.f32.mrb[30].mxu0  ;;  %v8324_v35 = vpop.f32.mrb[30].mxu1  ;;  %v3372_v33 = vrot.slane %v3371_v44, 1  ;;  %v3383_v17 = vmax.f32 %v3258_v54, %v3382_v8  ;;  %v3390_v4 = vsel %vm11064_vm13, %v3261_v30, -inf  ;;  %v2976_v38 = vsel %vm11065_vm9, %v2974_v39, %v2975_v16  ;;  %v7463_v48 = vld [vmem:[#allocation2 + $0x27c] ss:$72 sps:$4 sm:$0xff]   ;;  %vm11069_vm13 = vmmov %vm11061_vm7 }
 0x1be   :  { %v8327_v27 = vpop.f32.mrb[31].mxu0  ;;  %v8329_v2 = vpop.f32.mrb[31].mxu1  ;;  %2301 = vmatpush1.bf16.msra.mxu0 %v7434_v50  ;;  %v3379_v47 = vmax.f32 %v3377_v20, %v3378_v53  ;;  %v3124_v10 = vadd.f32 %v2975_v16, %v8276_v6  ;;  %v3391_v29 = vmax.f32 %v3259_v34, %v3390_v4  ;;  %v3122_v30 = vadd.f32 %v2976_v38, %v8259_v41  ;;  %v7461_v50 = vld [vmem:[#allocation2 + $0x278] ss:$72 sps:$4 sm:$0xff]   ;;  %v7445_v34 = vld [vmem:[#allocation2 + $0x394] ss:$72 sps:$4 sm:$0xff]  }
 0x1bf   :  { %2302 = vmatprep.subr.bf16.mxu0 %v7439_v57  ;;  %v3373_v13 = vmax.f32 %v3371_v44, %v3372_v33  ;;  %v3384_v54 = vrot.slane %v3383_v17, 4  ;;  %v11066_v8 = vmov 1.0|1.0   ;;  %2494 = vmatpush1.bf16.msra.mxu1 %v7455_v51  ;;  %v11067_v39 = vpack.c.bf16 %v8210_v59, %v8210_v59  ;;  %v7466_v44 = vld [vmem:[#allocation2 + $0x30c] ss:$72 sps:$4 sm:$0xff]  }
 0x1c0   :  { %6998 = vmatmul.mubr.msk.bf16.gmra.mrb[136].mxu0 %vm7835_vm8, %v11066_v8  ;;  %v3200_v40 = vadd.f32 %v8126_v24, %v3124_v10  ;;  %v2979_v57 = vsel %vm11069_vm13, %v2977_v3, %v2978_v0  ;;  %v3125_v20 = vadd.f32 %v2978_v0, %v8282_v62  ;;  %7030 = vmatmul.mubr.msk.bf16.gmra.mrb[136].mxu1 %vm7835_vm8, %v11066_v8  ;;  %v11070_v41 = vmov 0   ;;  %v7440_v33 = vld [vmem:[#allocation2 + $0x300] ss:$72 sps:$4 sm:$0xff]  }
 0x1c1   :  { %v8341_v6 = vunpack.c.l.b16 %v11067_v39  ;;  %1970 = vmatprep.mubr.bf16.mxu0 %v11070_v41  ;;  %v5800_v51 = vpack.c.bf16 %v3373_v13, %v3373_v13  ;;  %v3380_v53 = vrot.slane %v3379_v47, 1  ;;  %v3385_v16 = vmax.f32 %v3383_v17, %v3384_v54  ;;  %2163 = vmatprep.mubr.bf16.mxu1 %v11070_v41  ;;  %v7464_v17 = vld [vmem:[#allocation2 + $0x308] ss:$72 sps:$4 sm:$0xff]  }
 0x1c2   :  { %v3198_v59 = vadd.f32 %v8126_v24, %v3122_v30  ;;  %2303 = vmatpush1.bf16.msra.mxu0 %v7437_v37  ;;  %v8353_v3 = vmax.f32 %v8286_v15, %v3364_v42  ;;  %v3264_v0 = vmax.f32 %v3200_v40, 0.0  ;;  %v3123_v62 = vadd.f32 %v2979_v57, %v8264_v36  ;;  %2495 = vmatprep.subr.bf16.mxu1 %v7463_v48 }
 0x1c3   :  { %11068 = vst [vmem:[#allocation26_spill] sm:$0xff] %v8341_v6  ;;  %v3201_v4 = vadd.f32 %v8129_v31, %v3125_v20  ;;  %v8357_v38 = vpop.f32.mrb[32].mxu0  ;;  %v8359_v13 = vpop.f32.mrb[32].mxu1  ;;  %2304 = vmatprep.subr.bf16.mxu0 %v7442_v45  ;;  %v6200_v10 = vunpack.c.l.b16 %v5800_v51  ;;  %v3386_v54 = vrot.slane %v3385_v16, 2  ;;  %v3392_v37 = vrot.slane %v3391_v29, 4  ;;  %2496 = vmatpush1.bf16.msra.mxu1 %v7461_v50 }
 0x1c4   :  { %v3262_v30 = vmax.f32 %v3198_v59, 0.0  ;;  %v8361_v39 = vpop.f32.mrb[33].mxu0  ;;  %v8363_v15 = vpop.f32.mrb[33].mxu1  ;;  %v5795_v36 = vpack.c.bf16 %v8269_v56, %v8269_v56  ;;  %vm10963_vm9 = vcmask 1045509   ;;  %v3398_v42 = vsel %vm11061_vm7, %v3264_v0, -inf  ;;  %2497 = vmatprep.subr.bf16.mxu1 %v7466_v44 }
 0x1c5   :  { %v3199_v40 = vadd.f32 %v8129_v31, %v3123_v62  ;;  %v3265_v45 = vmax.f32 %v3201_v4, 0.0  ;;  %v8369_v48 = vpop.f32.mrb[34].mxu0  ;;  %v8371_v57 = vpop.f32.mrb[34].mxu1  ;;  %vm11071_vm13 = vcmask 1044484   ;;  %v8377_v51 = vmax.f32 %v3379_v47, %v3380_v53  ;;  %v7443_v0 = vld [vmem:[#allocation2 + $0x390] ss:$72 sps:$4 sm:$0xff]  }
 0x1c6   :  { %v8375_v20 = vsel %vm11071_vm13, %v6200_v10, %v8312_v49  ;;  %v3387_v50 = vmax.f32 %v3385_v16, %v3386_v54  ;;  %v3399_v59 = vmax.f32 %v3262_v30, %v3398_v42  ;;  %v8379_v56 = vpop.f32.mrb[35].mxu0  ;;  %v8381_v12 = vpop.f32.mrb[35].mxu1  ;;  %2305 = vmatpush1.bf16.msra.mxu0 %v7440_v33  ;;  %v5797_v62 = vpack.c.bf16 %v8272_v19, %v8272_v19  ;;  %v7460_v47 = vld [vmem:[#allocation2 + $0x424] ss:$72 sps:$4 sm:$0xff]   ;;  %v7467_v19 = vld [vmem:[#allocation2 + $0x398] ss:$72 sps:$4 sm:$0xff]   ;;  %vm11074_vm13 = vmmov %vm11061_vm7 }
 0x1c7   :  { %v3263_v4 = vmax.f32 %v3199_v40, 0.0  ;;  %v3406_v49 = vsel %vm11061_vm7, %v3265_v45, -inf  ;;  %2306 = vmatprep.subr.bf16.mxu0 %v7445_v34  ;;  %v7469_v53 = vld [vmem:[#allocation2 + $0x39c] ss:$72 sps:$4 sm:$0xff]   ;;  %v8388_v10 = vmax.f32 %v3391_v29, %v3392_v37  ;;  %v2980_v30 = vrot.slane %v8308_v60, 1  ;;  %2498 = vmatpush1.bf16.msra.mxu1 %v7464_v17 }
 0x1c8   :  { %v3388_v16 = vrot.slane %v3387_v50, 1  ;;  %v3400_v54 = vrot.slane %v3399_v59, 4  ;;  %7000 = vmatmul.mubr.msk.bf16.gmra.mrb[140].mxu0 %vm7849_vm11, %v11066_v8  ;;  %v2983_v42 = vrot.slane %v8317_v46, 1  ;;  %v2981_v40 = vrot.slane %v8324_v35, 1  ;;  %7032 = vmatmul.mubr.msk.bf16.gmra.mrb[140].mxu1 %vm7849_vm11, %v11066_v8  ;;  %v7472_v60 = vld [vmem:[#allocation2 + $0x42c] ss:$72 sps:$4 sm:$0xff]  }
 0x1c9   :  { %v3407_v33 = vmax.f32 %v3263_v4, %v3406_v49  ;;  %v2984_v34 = vrot.slane %v8329_v2, 1  ;;  %1980 = vmatprep.mubr.bf16.mxu0 %v11070_v41  ;;  %v8401_v29 = vunpack.c.l.b16 %v5795_v36  ;;  %2173 = vmatprep.mubr.bf16.mxu1 %v11070_v41  ;;  %v7458_v46 = vld [vmem:[#allocation2 + $0x420] ss:$72 sps:$4 sm:$0xff]   ;;  %v8406_v35 = vunpack.c.l.b16 %v5797_v62 }
 0x1ca   :  { %v3389_v37 = vmax.f32 %v3387_v50, %v3388_v16  ;;  %v3401_v45 = vmax.f32 %v3399_v59, %v3400_v54  ;;  %2307 = vmatpush1.bf16.msra.mxu0 %v7443_v0  ;;  %v2982_v2 = vsel %vm11074_vm13, %v2980_v30, %v2981_v40  ;;  %v3128_v4 = vadd.f32 %v2981_v40, %v8322_v63  ;;  %v7475_v50 = vld [vmem:[#allocation2 + $0x44] ss:$72 sps:$4 sm:$0xff]   ;;  %v7470_v63 = vld [vmem:[#allocation2 + $0x428] ss:$72 sps:$4 sm:$0xff]   ;;  %vm11075_vm13 = vmmov %vm11061_vm7 }
 0x1cb   :  { %11072 = vst [vmem:[#allocation27_spill] sm:$0xff] %v8401_v29  ;;  %11073 = vst [vmem:[#allocation28_spill] sm:$0xff] %v8406_v35  ;;  %v2985_v49 = vsel %vm11061_vm7, %v2983_v42, %v2984_v34  ;;  %v8411_v44 = vpop.f32.mrb[36].mxu0  ;;  %v8413_v36 = vpop.f32.mrb[36].mxu1  ;;  %2308 = vmatprep.subr.bf16.mxu0 %v7460_v47  ;;  %2499 = vmatprep.subr.bf16.mxu1 %v7469_v53  ;;  %v3126_v0 = vadd.f32 %v2982_v2, %v8306_v23  ;;  %v2986_v62 = vrot.slane %v8359_v13, 1 }
 0x1cc   :  { %v5802_v59 = vpack.c.bf16 %v3389_v37, %v3389_v37  ;;  %v3402_v16 = vrot.slane %v3401_v45, 2  ;;  %v8417_v54 = vpop.f32.mrb[37].mxu0  ;;  %v8419_v30 = vpop.f32.mrb[37].mxu1  ;;  %2500 = vmatpush1.bf16.msra.mxu1 %v7467_v19  ;;  %v3408_v42 = vrot.slane %v3407_v33, 4  ;;  %v3204_v40 = vadd.f32 %v8126_v24, %v3128_v4 }
 0x1cd   :  { %v3127_v47 = vadd.f32 %v2985_v49, %v8315_v26  ;;  %v3129_v53 = vadd.f32 %v2984_v34, %v8327_v27  ;;  %v8424_v37 = vpop.f32.mrb[38].mxu0  ;;  %v8426_v17 = vpop.f32.mrb[38].mxu1  ;;  %2501 = vmatprep.subr.bf16.mxu1 %v7472_v60  ;;  %v3202_v2 = vadd.f32 %v8126_v24, %v3126_v0  ;;  %v2987_v19 = vrot.slane %v8371_v57, 1 }
 0x1ce   :  { %v6202_v23 = vunpack.c.l.b16 %v5802_v59  ;;  %v3403_v13 = vmax.f32 %v3401_v45, %v3402_v16  ;;  %v8430_v7 = vpop.f32.mrb[39].mxu0  ;;  %v8432_v43 = vpop.f32.mrb[39].mxu1  ;;  %2309 = vmatpush1.bf16.msra.mxu0 %v7458_v46  ;;  %v3394_v26 = vrot.slane %v8388_v10, 2  ;;  %v3268_v4 = vmax.f32 %v3204_v40, 0.0 }
 0x1cf   :  { %v3203_v27 = vadd.f32 %v8129_v31, %v3127_v47  ;;  %v3205_v34 = vadd.f32 %v8129_v31, %v3129_v53  ;;  %2680 = vmatprep.subr.bf16.mxu0 %v7475_v50  ;;  %v3266_v49 = vmax.f32 %v3202_v2, 0.0  ;;  %v2988_v57 = vsel %vm11061_vm7, %v2986_v62, %v2987_v19 }
 0x1d0   :  { %v6228_v60 = vsel %vm10963_vm9, %v6202_v23, %v8375_v20  ;;  %v3404_v45 = vrot.slane %v3403_v13, 1  ;;  %7002 = vmatmul.mubr.msk.bf16.gmra.mrb[144].mxu0 %vm7863_vm14, %v11066_v8  ;;  %2502 = vmatpush1.bf16.msra.mxu1 %v7470_v63  ;;  %v3409_v46 = vmax.f32 %v3407_v33, %v3408_v42  ;;  %v3414_v59 = vsel %vm11075_vm13, %v3268_v4, -inf  ;;  %vm11076_vm13 = vmmov %vm11061_vm7 }
 0x1d1   :  { %v3267_v16 = vmax.f32 %v3203_v27, 0.0  ;;  %v3269_v0 = vmax.f32 %v3205_v34, 0.0  ;;  %7034 = vmatmul.mubr.msk.bf16.gmra.mrb[144].mxu1 %vm7863_vm14, %v11066_v8  ;;  %1990 = vmatprep.mubr.bf16.mxu0 %v11070_v41  ;;  %v3415_v50 = vmax.f32 %v3266_v49, %v3414_v59  ;;  %v3130_v62 = vadd.f32 %v2988_v57, %v8357_v38 }
 0x1d2   :  { %v3405_v20 = vmax.f32 %v3403_v13, %v3404_v45  ;;  %v3132_v40 = vadd.f32 %v2987_v19, %v8369_v48  ;;  %2183 = vmatprep.mubr.bf16.mxu1 %v11070_v41  ;;  %v8452_v33 = vmax.f32 %v8388_v10, %v3394_v26  ;;  %v2989_v42 = vrot.slane %v8363_v15, 1 }
 0x1d3   :  { %v3422_v63 = vsel %vm11076_vm13, %v3269_v0, -inf  ;;  %v2990_v47 = vrot.slane %v8381_v12, 1  ;;  %v8457_v53 = vpop.f32.mrb[40].mxu0  ;;  %v8459_v23 = vpop.f32.mrb[40].mxu1  ;;  %v3416_v2 = vrot.slane %v3415_v50, 4  ;;  %v3206_v48 = vadd.f32 %v8126_v24, %v3130_v62 }
 0x1d4   :  { %v5804_v13 = vpack.c.bf16 %v3405_v20, %v3405_v20  ;;  %v8461_v38 = vmax.f32 %v3267_v16, %v3422_v63  ;;  %v8464_v19 = vpop.f32.mrb[41].mxu0  ;;  %v8466_v10 = vpop.f32.mrb[41].mxu1  ;;  %v3410_v26 = vrot.slane %v3409_v46, 2  ;;  %v3208_v4 = vadd.f32 %v8126_v24, %v3132_v40 }
 0x1d5   :  { %v2991_v15 = vsel %vm11061_vm7, %v2989_v42, %v2990_v47  ;;  %v3133_v12 = vadd.f32 %v2990_v47, %v8379_v56  ;;  %v8471_v27 = vpop.f32.mrb[42].mxu0  ;;  %v8473_v34 = vpop.f32.mrb[42].mxu1  ;;  %v3417_v49 = vmax.f32 %v3415_v50, %v3416_v2  ;;  %v3270_v57 = vmax.f32 %v3206_v48, 0.0 }
 0x1d6   :  { %v6204_v45 = vunpack.c.l.b16 %v5804_v13  ;;  %v2992_v59 = vrot.slane %v8413_v36, 1  ;;  %v8476_v16 = vpop.f32.mrb[43].mxu0  ;;  %v8478_v0 = vpop.f32.mrb[43].mxu1  ;;  %v3272_v20 = vmax.f32 %v3208_v4, 0.0  ;;  %v3131_v62 = vadd.f32 %v2991_v15, %v8361_v39 }
 0x1d7   :  { %v3209_v40 = vadd.f32 %v8129_v31, %v3133_v12  ;;  %v2993_v56 = vrot.slane %v8426_v17, 1  ;;  %vm11077_vm13 = vcmask 1046534   ;;  %v3418_v42 = vrot.slane %v3417_v49, 2 }
 0x1d8   :  { %v8484_v63 = vsel %vm11077_vm13, %v6204_v45, %v6228_v60  ;;  %v2995_v50 = vrot.slane %v8419_v30, 1  ;;  %v2996_v47 = vrot.slane %v8432_v43, 1  ;;  %7004 = vmatmul.mubr.msk.bf16.gmra.mrb[148].mxu0 %vm7877_vm1, %v11066_v8  ;;  %vm10986_vm7 = vcmask 1047559  }
 0x1d9   :  { %vm11078_vm9 = vcmask 1046528   ;;  %v3207_v39 = vadd.f32 %v8129_v31, %v3131_v62  ;;  %v3273_v13 = vmax.f32 %v3209_v40, 0.0  ;;  %7036 = vmatmul.mubr.msk.bf16.gmra.mrb[148].mxu1 %vm7877_vm1, %v11066_v8  ;;  %2000 = vmatprep.mubr.bf16.mxu0 %v11070_v41  ;;  %v3419_v30 = vmax.f32 %v3417_v49, %v3418_v42 }
 0x1da   :  { %v3430_v36 = vsel %vm11078_vm9, %v3272_v20, -inf  ;;  %vm11079_vm14 = vmmov %vm11078_vm9  ;;  %2193 = vmatprep.mubr.bf16.mxu1 %v11070_v41  ;;  %v3136_v15 = vadd.f32 %v2993_v56, %v8424_v37  ;;  %v8508_v20 = vmax.f32 %v3409_v46, %v3410_v26  ;;  %v3424_v26 = vrot.slane %v8461_v38, 4 }
 0x1db   :  { %v2994_v17 = vsel %vm11079_vm14, %v2992_v59, %v2993_v56  ;;  %v3431_v60 = vmax.f32 %v3270_v57, %v3430_v36  ;;  %v3271_v48 = vmax.f32 %v3207_v39, 0.0  ;;  %v3438_v4 = vsel %vm11078_vm9, %v3273_v13, -inf  ;;  %vm11080_vm14 = vmmov %vm11078_vm9  ;;  %v8504_v45 = vpop.f32.mrb[44].mxu0  ;;  %v8506_v59 = vpop.f32.mrb[44].mxu1 }
 0x1dc   :  { %v3134_v2 = vadd.f32 %v2994_v17, %v8411_v44  ;;  %v2997_v12 = vsel %vm11080_vm14, %v2995_v50, %v2996_v47  ;;  %v3420_v62 = vrot.slane %v3419_v30, 1  ;;  %v8511_v44 = vpop.f32.mrb[45].mxu0  ;;  %v8513_v40 = vpop.f32.mrb[45].mxu1  ;;  %v3212_v36 = vadd.f32 %v8126_v24, %v3136_v15  ;;  %vm11081_vm13 = vmmov %vm11078_vm9 }
 0x1dd   :  { %v3432_v49 = vrot.slane %v3431_v60, 4  ;;  %v3439_v42 = vmax.f32 %v3271_v48, %v3438_v4  ;;  %v3135_v37 = vadd.f32 %v2997_v12, %v8417_v54  ;;  %v3137_v56 = vadd.f32 %v2996_v47, %v8430_v7  ;;  %v8518_v50 = vpop.f32.mrb[46].mxu0  ;;  %v8520_v39 = vpop.f32.mrb[46].mxu1  ;;  %vm11082_vm14 = vmmov %vm11078_vm9 }
 0x1de   :  { %v3210_v57 = vadd.f32 %v8126_v24, %v3134_v2  ;;  %v3421_v46 = vmax.f32 %v3419_v30, %v3420_v62  ;;  %v8523_v2 = vpop.f32.mrb[47].mxu0  ;;  %v8525_v43 = vpop.f32.mrb[47].mxu1  ;;  %v3276_v4 = vmax.f32 %v3212_v36, 0.0  ;;  %v2998_v12 = vrot.slane %v8459_v23, 1 }
 0x1df   :  { %v3433_v13 = vmax.f32 %v3431_v60, %v3432_v49  ;;  %v3440_v48 = vrot.slane %v3439_v42, 4  ;;  %v3211_v15 = vadd.f32 %v8129_v31, %v3135_v37  ;;  %v3213_v54 = vadd.f32 %v8129_v31, %v3137_v56 }
 0x1e0   :  { %v3274_v17 = vmax.f32 %v3210_v57, 0.0  ;;  %v5806_v7 = vpack.c.bf16 %v3421_v46, %v3421_v46  ;;  %v2999_v30 = vrot.slane %v8473_v34, 1  ;;  %7006 = vmatmul.mubr.msk.bf16.gmra.mrb[152].mxu0 %vm7891_vm6, %v11066_v8  ;;  %v3446_v62 = vsel %vm11081_vm13, %v3276_v4, -inf  ;;  %vm11088_vm13 = vmmov %vm11078_vm9 }
 0x1e1   :  { %v3434_v47 = vrot.slane %v3433_v13, 2  ;;  %v3441_v60 = vmax.f32 %v3439_v42, %v3440_v48  ;;  %v3275_v49 = vmax.f32 %v3211_v15, 0.0  ;;  %v3277_v57 = vmax.f32 %v3213_v54, 0.0  ;;  %7038 = vmatmul.mubr.msk.bf16.gmra.mrb[152].mxu1 %vm7891_vm6, %v11066_v8  ;;  %2010 = vmatprep.mubr.bf16.mxu0 %v11070_v41 }
 0x1e2   :  { %v6206_v36 = vunpack.c.l.b16 %v5806_v7  ;;  %v3447_v23 = vmax.f32 %v3274_v17, %v3446_v62  ;;  %v3000_v34 = vsel %vm11078_vm9, %v2998_v12, %v2999_v30  ;;  %2203 = vmatprep.mubr.bf16.mxu1 %v11070_v41  ;;  %v3140_v48 = vadd.f32 %v2999_v30, %v8471_v27 }
 0x1e3   :  { %v3435_v37 = vmax.f32 %v3433_v13, %v3434_v47  ;;  %v3442_v56 = vrot.slane %v3441_v60, 2  ;;  %v3454_v42 = vsel %vm11082_vm14, %v3277_v57, -inf  ;;  %v3138_v46 = vadd.f32 %v3000_v34, %v8457_v53  ;;  %v8544_v4 = vpop.f32.mrb[48].mxu0  ;;  %v8546_v15 = vpop.f32.mrb[48].mxu1  ;;  %vm11090_vm14 = vmmov %vm11078_vm9 }
 0x1e4   :  { %v8550_v54 = vsel %vm10986_vm7, %v6206_v36, %v8484_v63  ;;  %v8553_v13 = vmax.f32 %v8461_v38, %v3424_v26  ;;  %v3448_v17 = vrot.slane %v3447_v23, 4  ;;  %v3455_v7 = vmax.f32 %v3275_v49, %v3454_v42  ;;  %v8555_v47 = vpop.f32.mrb[49].mxu0  ;;  %v8557_v12 = vpop.f32.mrb[49].mxu1 }
 0x1e5   :  { %11083 = vst [vmem:[#allocation29_spill] sm:$0xff] %v8550_v54  ;;  %v3001_v53 = vrot.slane %v8466_v10, 1  ;;  %v3214_v27 = vadd.f32 %v8126_v24, %v3138_v46  ;;  %v3216_v30 = vadd.f32 %v8126_v24, %v3140_v48  ;;  %v3002_v62 = vrot.slane %v8478_v0, 1  ;;  %v8563_v57 = vpop.f32.mrb[50].mxu0  ;;  %v8565_v63 = vpop.f32.mrb[50].mxu1 }
 0x1e6   :  { %v11084_v38 = vpack.c.bf16 %v8353_v3, %v8353_v3  ;;  %v11086_v49 = vpack.c.bf16 %v8377_v51, %v8377_v51  ;;  %v3436_v10 = vrot.slane %v3435_v37, 1  ;;  %v3449_v34 = vmax.f32 %v3447_v23, %v3448_v17  ;;  %v8577_v42 = vpop.f32.mrb[51].mxu0  ;;  %v8579_v46 = vpop.f32.mrb[51].mxu1 }
 0x1e7   :  { %v8581_v0 = vmax.f32 %v3441_v60, %v3442_v56  ;;  %v3278_v48 = vmax.f32 %v3214_v27, 0.0  ;;  %v3280_v58 = vmax.f32 %v3216_v30, 0.0  ;;  %v3003_v55 = vsel %vm11088_vm13, %v3001_v53, %v3002_v62  ;;  %vm11091_vm13 = vmmov %vm11078_vm9 }
 0x1e8   :  { %v8570_v26 = vunpack.c.l.b16 %v11084_v38  ;;  %v8575_v36 = vunpack.c.l.b16 %v11086_v49  ;;  %v11089_v3 = vrot.slane %v8452_v33, 1  ;;  %v3450_v51 = vrot.slane %v3449_v34, 2  ;;  %7008 = vmatmul.mubr.msk.bf16.gmra.mrb[156].mxu0 %vm7905_vm10, %v11066_v8 }
 0x1e9   :  { %v3456_v49 = vrot.slane %v3455_v7, 4  ;;  %v3139_v52 = vadd.f32 %v3003_v55, %v8464_v19  ;;  %v3462_v56 = vsel %vm11078_vm9, %v3280_v58, -inf  ;;  %v3141_v17 = vadd.f32 %v3002_v62, %v8476_v16  ;;  %7040 = vmatmul.mubr.msk.bf16.gmra.mrb[156].mxu1 %vm7905_vm10, %v11066_v8  ;;  %2020 = vmatprep.mubr.bf16.mxu0 %v11070_v41 }
 0x1ea   :  { %11085 = vst [vmem:[#allocation30_spill] sm:$0xff] %v8570_v26  ;;  %11087 = vst [vmem:[#allocation31_spill] sm:$0xff] %v8575_v36  ;;  %v8587_v38 = vmax.f32 %v8452_v33, %v11089_v3  ;;  %v3437_v33 = vmax.f32 %v3435_v37, %v3436_v10  ;;  %v3451_v55 = vmax.f32 %v3449_v34, %v3450_v51  ;;  %v3004_v53 = vrot.slane %v8506_v59, 1 }
 0x1eb   :  { %v3463_v19 = vmax.f32 %v3278_v48, %v3462_v56  ;;  %2213 = vmatprep.mubr.bf16.mxu1 %v11070_v41  ;;  %v3444_v27 = vrot.slane %v8581_v0, 1  ;;  %v3215_v30 = vadd.f32 %v8129_v31, %v3139_v52  ;;  %v3217_v58 = vadd.f32 %v8129_v31, %v3141_v17  ;;  %v8607_v62 = vpop.f32.mrb[52].mxu0  ;;  %v8609_v3 = vpop.f32.mrb[52].mxu1 }
 0x1ec   :  { %v3005_v16 = vrot.slane %v8520_v39, 1  ;;  %v3452_v60 = vrot.slane %v3451_v55, 1  ;;  %v3457_v37 = vmax.f32 %v3455_v7, %v3456_v49  ;;  %v3008_v34 = vrot.slane %v8525_v43, 1  ;;  %v8612_v59 = vpop.f32.mrb[53].mxu0  ;;  %v8614_v48 = vpop.f32.mrb[53].mxu1 }
 0x1ed   :  { %v3464_v10 = vrot.slane %v3463_v19, 4  ;;  %v3279_v51 = vmax.f32 %v3215_v30, 0.0  ;;  %v3281_v56 = vmax.f32 %v3217_v58, 0.0  ;;  %v3007_v52 = vrot.slane %v8513_v40, 1  ;;  %v8618_v39 = vpop.f32.mrb[54].mxu0  ;;  %v8620_v23 = vpop.f32.mrb[54].mxu1 }
 0x1ee   :  { %v3006_v17 = vsel %vm11090_vm14, %v3004_v53, %v3005_v16  ;;  %v5808_v61 = vpack.c.bf16 %v3437_v33, %v3437_v33  ;;  %v3453_v32 = vmax.f32 %v3451_v55, %v3452_v60  ;;  %v8623_v43 = vpop.f32.mrb[55].mxu0  ;;  %v8625_v36 = vpop.f32.mrb[55].mxu1  ;;  %v3144_v58 = vadd.f32 %v3005_v16, %v8518_v50 }
 0x1ef   :  { %v3465_v7 = vmax.f32 %v3463_v19, %v3464_v10  ;;  %v3142_v49 = vadd.f32 %v3006_v17, %v8504_v45  ;;  %v3470_v30 = vsel %vm11091_vm13, %v3281_v56, -inf  ;;  %v3009_v40 = vsel %vm11078_vm9, %v3007_v52, %v3008_v34  ;;  %vm11093_vm13 = vmmov %vm11078_vm9 }
 0x1f0   :  { %v3145_v53 = vadd.f32 %v3008_v34, %v8523_v2  ;;  %v5810_v26 = vpack.c.bf16 %v3453_v32, %v3453_v32  ;;  %v3458_v35 = vrot.slane %v3457_v37, 2  ;;  %v3471_v33 = vmax.f32 %v3279_v51, %v3470_v30  ;;  %7010 = vmatmul.mubr.msk.bf16.gmra.mrb[160].mxu0 %vm7919_vm15, %v11066_v8 }
 0x1f1   :  { %v3466_v21 = vrot.slane %v3465_v7, 2  ;;  %v3218_v45 = vadd.f32 %v8126_v24, %v3142_v49  ;;  %v3220_v60 = vadd.f32 %v8126_v24, %v3144_v58  ;;  %v3143_v55 = vadd.f32 %v3009_v40, %v8511_v44  ;;  %7042 = vmatmul.mubr.msk.bf16.gmra.mrb[160].mxu1 %vm7919_vm15, %v11066_v8  ;;  %2030 = vmatprep.mubr.bf16.mxu0 %v11070_v41 }
 0x1f2   :  { %v3221_v50 = vadd.f32 %v8129_v31, %v3145_v53  ;;  %v6208_v32 = vunpack.c.l.b16 %v5808_v61  ;;  %v6210_v2 = vunpack.c.l.b16 %v5810_v26  ;;  %v3472_v16 = vrot.slane %v3471_v33, 4  ;;  %2223 = vmatprep.mubr.bf16.mxu1 %v11070_v41 }
 0x1f3   :  { %v3467_v19 = vmax.f32 %v3465_v7, %v3466_v21  ;;  %v3282_v10 = vmax.f32 %v3218_v45, 0.0  ;;  %v3284_v34 = vmax.f32 %v3220_v60, 0.0  ;;  %v3219_v51 = vadd.f32 %v8129_v31, %v3143_v55  ;;  %v8644_v44 = vpop.f32.mrb[56].mxu0  ;;  %v8646_v52 = vpop.f32.mrb[56].mxu1 }
 0x1f4   :  { %v3285_v56 = vmax.f32 %v3221_v50, 0.0  ;;  %vm11092_vm14 = vcmask 1041409   ;;  %v3459_v49 = vmax.f32 %v3457_v37, %v3458_v35  ;;  %v3473_v26 = vmax.f32 %v3471_v33, %v3472_v16  ;;  %v8649_v21 = vpop.f32.mrb[57].mxu0  ;;  %v8651_v7 = vpop.f32.mrb[57].mxu1 }
 0x1f5   :  { %v6238_v17 = vsel %vm11092_vm14, %v6210_v2, %v6208_v32  ;;  %v3468_v61 = vrot.slane %v3467_v19, 1  ;;  %v8654_v30 = vmax.f32 %v8581_v0, %v3444_v27  ;;  %v3478_v58 = vsel %vm11093_vm13, %v3284_v34, -inf  ;;  %v8658_v45 = vpop.f32.mrb[58].mxu0  ;;  %v8660_v60 = vpop.f32.mrb[58].mxu1  ;;  %vm11095_vm14 = vmmov %vm11078_vm9 }
 0x1f6   :  { %v3283_v40 = vmax.f32 %v3219_v51, 0.0  ;;  %v3486_v53 = vsel %vm11078_vm9, %v3285_v56, -inf  ;;  %v3474_v35 = vrot.slane %v3473_v26, 2  ;;  %v3479_v37 = vmax.f32 %v3282_v10, %v3478_v58  ;;  %v8663_v50 = vpop.f32.mrb[59].mxu0  ;;  %v8665_v32 = vpop.f32.mrb[59].mxu1  ;;  %vm11096_vm13 = vmmov %vm11078_vm9 }
 0x1f7   :  { %v3469_v55 = vmax.f32 %v3467_v19, %v3468_v61  ;;  %v3010_v33 = vrot.slane %v8546_v15, 1  ;;  %v3013_v27 = vrot.slane %v8557_v12, 1  ;;  %v3011_v2 = vrot.slane %v8565_v63, 1 }
 0x1f8   :  { %v3487_v0 = vmax.f32 %v3283_v40, %v3486_v53  ;;  %v3014_v16 = vrot.slane %v8579_v46, 1  ;;  %v11094_v34 = vrot.slane %v8553_v13, 2  ;;  %v3460_v19 = vrot.slane %v3459_v49, 1  ;;  %7012 = vmatmul.mubr.msk.bf16.gmra.mrb[164].mxu0 %vm7933_vm4, %v11066_v8 }
 0x1f9   :  { %v5812_v10 = vpack.c.bf16 %v3469_v55, %v3469_v55  ;;  %v3480_v56 = vrot.slane %v3479_v37, 4  ;;  %v3012_v61 = vsel %vm11095_vm14, %v3010_v33, %v3011_v2  ;;  %v3148_v12 = vadd.f32 %v3011_v2, %v8563_v57  ;;  %7044 = vmatmul.mubr.msk.bf16.gmra.mrb[164].mxu1 %vm7933_vm4, %v11066_v8  ;;  %2040 = vmatprep.mubr.bf16.mxu0 %v11070_v41  ;;  %vm11098_vm14 = vmmov %vm11096_vm13 }
 0x1fa   :  { %v8673_v51 = vmax.f32 %v8553_v13, %v11094_v34  ;;  %v3488_v15 = vrot.slane %v3487_v0, 4  ;;  %v3015_v63 = vsel %vm11096_vm13, %v3013_v27, %v3014_v16  ;;  %v3146_v40 = vadd.f32 %v3012_v61, %v8544_v4  ;;  %2233 = vmatprep.mubr.bf16.mxu1 %v11070_v41 }
 0x1fb   :  { %v6212_v46 = vunpack.c.l.b16 %v5812_v10  ;;  %v3481_v58 = vmax.f32 %v3479_v37, %v3480_v56  ;;  %v3475_v53 = vmax.f32 %v3473_v26, %v3474_v35  ;;  %v3224_v57 = vadd.f32 %v8126_v24, %v3148_v12  ;;  %v8692_v27 = vpop.f32.mrb[60].mxu0  ;;  %v8694_v2 = vpop.f32.mrb[60].mxu1 }
 0x1fc   :  { %v3147_v55 = vadd.f32 %v3015_v63, %v8555_v47  ;;  %v3149_v33 = vadd.f32 %v3014_v16, %v8577_v42  ;;  %v8696_v34 = vmax.f32 %v3459_v49, %v3460_v19  ;;  %vm11097_vm9 = vcmask 1042434   ;;  %v8702_v56 = vpop.f32.mrb[61].mxu0  ;;  %v8704_v26 = vpop.f32.mrb[61].mxu1 }
 0x1fd   :  { %v8699_v10 = vsel %vm11097_vm9, %v6212_v46, %v6238_v17  ;;  %v3482_v37 = vrot.slane %v3481_v58, 2  ;;  %v3222_v4 = vadd.f32 %v8126_v24, %v3146_v40  ;;  %v3489_v35 = vmax.f32 %v3487_v0, %v3488_v15  ;;  %v8708_v61 = vpop.f32.mrb[62].mxu0  ;;  %v8710_v49 = vpop.f32.mrb[62].mxu1  ;;  %vm11099_vm9 = vmmov %vm11096_vm13 }
 0x1fe   :  { %v3288_v47 = vmax.f32 %v3224_v57, 0.0  ;;  %v3223_v42 = vadd.f32 %v8129_v31, %v3147_v55  ;;  %v3225_v16 = vadd.f32 %v8129_v31, %v3149_v33  ;;  %v3016_v12 = vrot.slane %v8609_v3, 1  ;;  %v8714_v46 = vpop.f32.mrb[63].mxu0  ;;  %v8716_v40 = vpop.f32.mrb[63].mxu1 }
 0x1ff   :  { %v3483_v19 = vmax.f32 %v3481_v58, %v3482_v37  ;;  %v3286_v17 = vmax.f32 %v3222_v4, 0.0  ;;  %v3017_v63 = vrot.slane %v8620_v23, 1  ;;  %v3476_v0 = vrot.slane %v3475_v53, 1 }
 0x200   :  { %v3494_v15 = vsel %vm11098_vm14, %v3288_v47, -inf  ;;  %v3287_v57 = vmax.f32 %v3223_v42, 0.0  ;;  %v3289_v55 = vmax.f32 %v3225_v16, 0.0  ;;  %v3019_v5 = vrot.slane %v8614_v48, 1  ;;  %7014 = vmatmul.mubr.msk.bf16.gmra.mrb[168].mxu0 %vm7947_vm12, %v11066_v8  ;;  %vm11100_vm14 = vmmov %vm11099_vm9 }
 0x201   :  { %v3484_v33 = vrot.slane %v3483_v19, 1  ;;  %v3495_v13 = vmax.f32 %v3286_v17, %v3494_v15  ;;  %v3018_v58 = vsel %vm11096_vm13, %v3016_v12, %v3017_v63  ;;  %v3490_v23 = vrot.slane %v3489_v35, 2  ;;  %7046 = vmatmul.mubr.msk.bf16.gmra.mrb[168].mxu1 %vm7947_vm12, %v11066_v8  ;;  %2050 = vmatprep.mubr.bf16.mxu0 %v11070_v41  ;;  %vm11101_vm13 = vmmov %vm11099_vm9 }
 0x202   :  { %v3502_v3 = vsel %vm11099_vm9, %v3289_v55, -inf  ;;  %v3150_v37 = vadd.f32 %v3018_v58, %v8607_v62  ;;  %v3152_v4 = vadd.f32 %v3017_v63, %v8618_v39  ;;  %v3020_v16 = vrot.slane %v8625_v36, 1  ;;  %2243 = vmatprep.mubr.bf16.mxu1 %v11070_v41 }
 0x203   :  { %v3485_v48 = vmax.f32 %v3483_v19, %v3484_v33  ;;  %v3496_v47 = vrot.slane %v3495_v13, 4  ;;  %v3503_v42 = vmax.f32 %v3287_v57, %v3502_v3  ;;  %v8735_v12 = vmax.f32 %v3475_v53, %v3476_v0  ;;  %v8739_v63 = vpop.f32.mrb[64].mxu0  ;;  %v8741_v15 = vpop.f32.mrb[64].mxu1 }
 0x204   :  { %v3226_v62 = vadd.f32 %v8126_v24, %v3150_v37  ;;  %v3228_v39 = vadd.f32 %v8126_v24, %v3152_v4  ;;  %v3021_v36 = vsel %vm11100_vm14, %v3019_v5, %v3020_v16  ;;  %v8744_v33 = vpop.f32.mrb[65].mxu0  ;;  %v8746_v58 = vpop.f32.mrb[65].mxu1  ;;  %v3491_v3 = vmax.f32 %v3489_v35, %v3490_v23  ;;  %vm11103_vm14 = vmmov %vm11101_vm13 }
 0x205   :  { %v5814_v19 = vpack.c.bf16 %v3485_v48, %v3485_v48  ;;  %v3497_v55 = vmax.f32 %v3495_v13, %v3496_v47  ;;  %v3504_v57 = vrot.slane %v3503_v42, 4  ;;  %v3151_v37 = vadd.f32 %v3021_v36, %v8612_v59  ;;  %v8749_v17 = vpop.f32.mrb[66].mxu0  ;;  %v8751_v4 = vpop.f32.mrb[66].mxu1 }
 0x206   :  { %v3290_v53 = vmax.f32 %v3226_v62, 0.0  ;;  %v3292_v0 = vmax.f32 %v3228_v39, 0.0  ;;  %v3153_v13 = vadd.f32 %v3020_v16, %v8623_v43  ;;  %v8754_v47 = vpop.f32.mrb[67].mxu0  ;;  %v8756_v5 = vpop.f32.mrb[67].mxu1  ;;  %v3022_v62 = vrot.slane %v8646_v52, 1 }
 0x207   :  { %v6214_v9 = vunpack.c.l.b16 %v5814_v19  ;;  %v3498_v1 = vrot.slane %v3497_v55, 2  ;;  %v3505_v48 = vmax.f32 %v3503_v42, %v3504_v57  ;;  %v3227_v59 = vadd.f32 %v8129_v31, %v3151_v37 }
 0x208   :  { %v3510_v23 = vsel %vm11101_vm13, %v3292_v0, -inf  ;;  %vm11102_vm9 = vcmask 1043459   ;;  %7016 = vmatmul.mubr.msk.bf16.gmra.mrb[172].mxu0 %vm7961_vm3, %v11066_v8  ;;  %v3229_v43 = vadd.f32 %v8129_v31, %v3153_v13  ;;  %v3025_v16 = vrot.slane %v8651_v7, 1 }
 0x209   :  { %v6240_v39 = vsel %vm11102_vm9, %v6214_v9, %v8699_v10  ;;  %v3499_v19 = vmax.f32 %v3497_v55, %v3498_v1  ;;  %v3506_v42 = vrot.slane %v3505_v48, 2  ;;  %v3511_v57 = vmax.f32 %v3290_v53, %v3510_v23  ;;  %7048 = vmatmul.mubr.msk.bf16.gmra.mrb[172].mxu1 %vm7961_vm3, %v11066_v8  ;;  %2060 = vmatprep.mubr.bf16.mxu0 %v11070_v41  ;;  %vm11104_vm9 = vmmov %vm11101_vm13 }
 0x20a   :  { %v3023_v36 = vrot.slane %v8660_v60, 1  ;;  %v3026_v0 = vrot.slane %v8665_v32, 1  ;;  %v3492_v1 = vrot.slane %v3491_v3, 1  ;;  %v3291_v10 = vmax.f32 %v3227_v59, 0.0  ;;  %2253 = vmatprep.mubr.bf16.mxu1 %v11070_v41 }
 0x20b   :  { %v3500_v9 = vrot.slane %v3499_v19, 1  ;;  %v3512_v52 = vrot.slane %v3511_v57, 4  ;;  %v3293_v55 = vmax.f32 %v3229_v43, 0.0  ;;  %v8780_v32 = vpop.f32.mrb[68].mxu0  ;;  %v8782_v37 = vpop.f32.mrb[68].mxu1  ;;  %v3507_v23 = vmax.f32 %v3505_v48, %v3506_v42 }
 0x20c   :  { %v3024_v53 = vsel %vm11103_vm14, %v3022_v62, %v3023_v36  ;;  %v3156_v7 = vadd.f32 %v3023_v36, %v8658_v45  ;;  %v3027_v60 = vsel %vm11101_vm13, %v3025_v16, %v3026_v0  ;;  %v8785_v29 = vpop.f32.mrb[69].mxu0  ;;  %v8787_v59 = vpop.f32.mrb[69].mxu1  ;;  %v3157_v16 = vadd.f32 %v3026_v0, %v8663_v50  ;;  %vm11107_vm13 = vmmov %vm11104_vm9 }
 0x20d   :  { %v3501_v13 = vmax.f32 %v3499_v19, %v3500_v9  ;;  %v3513_v35 = vmax.f32 %v3511_v57, %v3512_v52  ;;  %v3154_v14 = vadd.f32 %v3024_v53, %v8644_v44  ;;  %v3518_v43 = vsel %vm11104_vm9, %v3293_v55, -inf  ;;  %v8793_v36 = vpop.f32.mrb[70].mxu0  ;;  %v8795_v6 = vpop.f32.mrb[70].mxu1  ;;  %vm11109_vm7 = vmmov %vm11107_vm13 }
 0x20e   :  { %v3232_v62 = vadd.f32 %v8126_v24, %v3156_v7  ;;  %v3155_v45 = vadd.f32 %v3027_v60, %v8649_v21  ;;  %v8797_v48 = vmax.f32 %v3491_v3, %v3492_v1  ;;  %v3519_v42 = vmax.f32 %v3291_v10, %v3518_v43  ;;  %v8799_v57 = vpop.f32.mrb[71].mxu0  ;;  %v8801_v9 = vpop.f32.mrb[71].mxu1 }
 0x20f   :  { %v5816_v19 = vpack.c.bf16 %v3501_v13, %v3501_v13  ;;  %v3514_v44 = vrot.slane %v3513_v35, 2  ;;  %v3230_v52 = vadd.f32 %v8126_v24, %v3154_v14  ;;  %v3233_v50 = vadd.f32 %v8129_v31, %v3157_v16 }
 0x210   :  { %11105 = vst [vmem:[#allocation32_spill] sm:$0xff] %v8797_v48  ;;  %v3296_v55 = vmax.f32 %v3232_v62, 0.0  ;;  %v3231_v21 = vadd.f32 %v8129_v31, %v3155_v45  ;;  %v3508_v53 = vrot.slane %v3507_v23, 1  ;;  %v3520_v60 = vrot.slane %v3519_v42, 4 }
 0x211   :  { %v6216_v0 = vunpack.c.l.b16 %v5816_v19  ;;  %v3515_v7 = vmax.f32 %v3513_v35, %v3514_v44  ;;  %vm11106_vm14 = vnez %v11048_v18  ;;  %v3294_v3 = vmax.f32 %v3230_v52, 0.0 }
 0x212   :  { %7018 = vmatmul.mubr.msk.bf16.gmra.mrb[176].mxu0 %vm11106_vm14, %v11066_v8  ;;  %v3526_v1 = vsel %vm11107_vm13, %v3296_v55, -inf  ;;  %v3295_v10 = vmax.f32 %v3231_v21, 0.0  ;;  %v3297_v13 = vmax.f32 %v3233_v50, 0.0  ;;  %7050 = vmatmul.mubr.msk.bf16.gmra.mrb[176].mxu1 %vm11106_vm14, %v11066_v8  ;;  %vm11108_vm9 = vcmask 1044484   ;;  %vm11110_vm13 = vmmov %vm11109_vm7 }
 0x213   :  { %2070 = vmatprep.mubr.bf16.mxu0 %v11070_v41  ;;  %v6241_v35 = vsel %vm11108_vm9, %v6216_v0, %v6240_v39  ;;  %v3516_v43 = vrot.slane %v3515_v7, 1  ;;  %v3521_v62 = vmax.f32 %v3519_v42, %v3520_v60  ;;  %2263 = vmatprep.mubr.bf16.mxu1 %v11070_v41  ;;  %v3527_v45 = vmax.f32 %v3294_v3, %v3526_v1  ;;  %v8821_v52 = vpop.f32.mrb[72].mxu0  ;;  %v8823_v55 = vpop.f32.mrb[72].mxu1 }
 0x214   :  { %v3534_v16 = vsel %vm11109_vm7, %v3297_v13, -inf  ;;  %v3028_v19 = vrot.slane %v8694_v2, 1  ;;  %v3029_v44 = vrot.slane %v8710_v49, 1  ;;  %v8825_v21 = vmax.f32 %v3507_v23, %v3508_v53  ;;  %v8828_v42 = vpop.f32.mrb[73].mxu0  ;;  %v8830_v0 = vpop.f32.mrb[73].mxu1 }
 0x215   :  { %v3517_v50 = vmax.f32 %v3515_v7, %v3516_v43  ;;  %v3535_v14 = vmax.f32 %v3295_v10, %v3534_v16  ;;  %v3032_v39 = vrot.slane %v8716_v40, 1  ;;  %v3528_v60 = vrot.slane %v3527_v45, 4  ;;  %v8835_v1 = vpop.f32.mrb[74].mxu0  ;;  %v8837_v13 = vpop.f32.mrb[74].mxu1 }
 0x216   :  { %v3031_v3 = vrot.slane %v8704_v26, 1  ;;  %v3030_v2 = vsel %vm11109_vm7, %v3028_v19, %v3029_v44  ;;  %v3160_v49 = vadd.f32 %v3029_v44, %v8708_v61  ;;  %v3522_v53 = vrot.slane %v3521_v62, 2  ;;  %v8840_v10 = vpop.f32.mrb[75].mxu0  ;;  %v8842_v43 = vpop.f32.mrb[75].mxu1 }
 0x217   :  { %v5818_v23 = vpack.c.bf16 %v3517_v50, %v3517_v50  ;;  %v3536_v7 = vrot.slane %v3535_v14, 4  ;;  %v3158_v40 = vadd.f32 %v3030_v2, %v8692_v27  ;;  %v3529_v16 = vmax.f32 %v3527_v45, %v3528_v60 }
 0x218   :  { %v3236_v26 = vadd.f32 %v8126_v24, %v3160_v49  ;;  %v3033_v19 = vsel %vm11110_vm13, %v3031_v3, %v3032_v39  ;;  %v3161_v61 = vadd.f32 %v3032_v39, %v8714_v46  ;;  %vm11111_vm9 = vnez %v11051_v22 }
 0x219   :  { %v6218_v18 = vunpack.c.l.b16 %v5818_v23  ;;  %v3537_v50 = vmax.f32 %v3535_v14, %v3536_v7  ;;  %v3234_v48 = vadd.f32 %v8126_v24, %v3158_v40  ;;  %v3530_v27 = vrot.slane %v3529_v16, 2 }
 0x21a   :  { %7020 = vmatmul.mubr.msk.bf16.gmra.mrb[180].mxu0 %vm11111_vm9, %v11066_v8  ;;  %v3300_v2 = vmax.f32 %v3236_v26, 0.0  ;;  %v3159_v45 = vadd.f32 %v3033_v19, %v8702_v56  ;;  %v3237_v60 = vadd.f32 %v8129_v31, %v3161_v61  ;;  %7052 = vmatmul.mubr.msk.bf16.gmra.mrb[180].mxu1 %vm11111_vm9, %v11066_v8  ;;  %vm11112_vm7 = vcmask 1045509  }
 0x21b   :  { %2080 = vmatprep.mubr.bf16.mxu0 %v11070_v41  ;;  %v6242_v46 = vsel %vm11112_vm7, %v6218_v18, %v6241_v35  ;;  %v8860_v14 = vmax.f32 %v3521_v62, %v3522_v53  ;;  %v3298_v24 = vmax.f32 %v3234_v48, 0.0  ;;  %v3622_v39 = vrot.slane %v8741_v15, 1  ;;  %2273 = vmatprep.mubr.bf16.mxu1 %v11070_v41  ;;  %v8866_v7 = vpop.f32.mrb[76].mxu0  ;;  %v8868_v40 = vpop.f32.mrb[76].mxu1  ;;  %vm11113_vm7 = vmmov %vm11110_vm13 }
 0x21c   :  { %v3531_v3 = vmax.f32 %v3529_v16, %v3530_v27  ;;  %v3542_v56 = vsel %vm11110_vm13, %v3300_v2, -inf  ;;  %v3235_v49 = vadd.f32 %v8129_v31, %v3159_v45  ;;  %v3301_v23 = vmax.f32 %v3237_v60, 0.0  ;;  %v8872_v35 = vpop.f32.mrb[77].mxu0  ;;  %v8874_v15 = vpop.f32.mrb[77].mxu1  ;;  %vm11114_vm13 = vmmov %vm11113_vm7 }
 0x21d   :  { %v3538_v26 = vrot.slane %v3537_v50, 2  ;;  %v3543_v19 = vmax.f32 %v3298_v24, %v3542_v56  ;;  %v3625_v18 = vrot.slane %v8746_v58, 1  ;;  %v3623_v48 = vrot.slane %v8751_v4, 1  ;;  %v8878_v61 = vpop.f32.mrb[78].mxu0  ;;  %v8880_v27 = vpop.f32.mrb[78].mxu1 }
 0x21e   :  { %v3532_v62 = vrot.slane %v3531_v3, 1  ;;  %v3299_v53 = vmax.f32 %v3235_v49, 0.0  ;;  %v3550_v16 = vsel %vm11113_vm7, %v3301_v23, -inf  ;;  %v3626_v31 = vrot.slane %v8756_v5, 1  ;;  %v8887_v60 = vpop.f32.mrb[79].mxu0  ;;  %v8889_v24 = vpop.f32.mrb[79].mxu1 }
 0x21f   :  { %v3544_v45 = vrot.slane %v3543_v19, 4  ;;  %v3624_v58 = vsel %vm11114_vm13, %v3622_v39, %v3623_v48  ;;  %v8885_v4 = vadd.f32 %v3623_v48, %v8749_v17  ;;  %v8895_v44 = vmax.f32 %v3537_v50, %v3538_v26 }
 0x220   :  { %v3533_v56 = vmax.f32 %v3531_v3, %v3532_v62  ;;  %v3551_v49 = vmax.f32 %v3299_v53, %v3550_v16  ;;  %v8892_v5 = vadd.f32 %v3624_v58, %v8739_v63  ;;  %v3627_v23 = vsel %vm11113_vm7, %v3625_v18, %v3626_v31 }
 0x221   :  { %v3545_v2 = vmax.f32 %v3543_v19, %v3544_v45  ;;  %v8898_v22 = vadd.f32 %v3627_v23, %v8744_v33  ;;  %v8901_v17 = vadd.f32 %v3626_v31, %v8754_v47  ;;  %vm11115_vm13 = vnez %v11054_v25 }
 0x222   :  { %7022 = vmatmul.mubr.msk.bf16.gmra.mrb[184].mxu0 %vm11115_vm13, %v11066_v8  ;;  %v5820_v39 = vpack.c.bf16 %v3533_v56, %v3533_v56  ;;  %v3552_v3 = vrot.slane %v3551_v49, 4  ;;  %v3628_v63 = vrot.slane %v8782_v37, 1  ;;  %v3629_v48 = vrot.slane %v8795_v6, 1  ;;  %7054 = vmatmul.mubr.msk.bf16.gmra.mrb[184].mxu1 %vm11115_vm13, %v11066_v8  ;;  %vm11116_vm13 = vmmov %vm11113_vm7 }
 0x223   :  { %2090 = vmatprep.mubr.bf16.mxu0 %v11070_v41  ;;  %v3546_v33 = vrot.slane %v3545_v2, 2  ;;  %v3631_v47 = vrot.slane %v8787_v59, 1  ;;  %v3632_v50 = vrot.slane %v8801_v9, 1  ;;  %v3634_v26 = vrot.slane %v8823_v55, 1  ;;  %2283 = vmatprep.mubr.bf16.mxu1 %v11070_v41  ;;  %v1596_v62 = vpop.f32.mrb[80].mxu0  ;;  %v1789_v53 = vpop.f32.mrb[80].mxu1 }
 0x224   :  { %v6220_v19 = vunpack.c.l.b16 %v5820_v39  ;;  %v3553_v18 = vmax.f32 %v3551_v49, %v3552_v3  ;;  %v3630_v37 = vsel %vm11113_vm7, %v3628_v63, %v3629_v48  ;;  %v8918_v6 = vadd.f32 %v3629_v48, %v8793_v36  ;;  %v1598_v55 = vpop.f32.mrb[81].mxu0  ;;  %v1791_v45 = vpop.f32.mrb[81].mxu1 }
 0x225   :  { %v3547_v16 = vmax.f32 %v3545_v2, %v3546_v33  ;;  %v8921_v31 = vadd.f32 %v3630_v37, %v8780_v32  ;;  %v3633_v59 = vsel %vm11116_vm13, %v3631_v47, %v3632_v50  ;;  %v8925_v9 = vadd.f32 %v3632_v50, %v8799_v57  ;;  %v1600_v2 = vpop.f32.mrb[82].mxu0  ;;  %v1793_v23 = vpop.f32.mrb[82].mxu1  ;;  %vm11118_vm13 = vmmov %vm11113_vm7 }
 0x226   :  { %vm11117_vm9 = vcmask 1046534   ;;  %v8929_v56 = vadd.f32 %v3633_v59, %v8785_v29  ;;  %v3637_v36 = vrot.slane %v8830_v0, 1  ;;  %v3635_v49 = vrot.slane %v8837_v13, 1  ;;  %v1602_v63 = vpop.f32.mrb[83].mxu0  ;;  %v1795_v48 = vpop.f32.mrb[83].mxu1 }
 0x227   :  { %v6243_v58 = vsel %vm11117_vm9, %v6220_v19, %v6242_v46  ;;  %v3548_v32 = vrot.slane %v3547_v16, 1  ;;  %v3554_v39 = vrot.slane %v3553_v18, 2  ;;  %v3638_v3 = vrot.slane %v8842_v43, 1  ;;  %vm11119_vm9 = vmmov %vm11113_vm7 }
 0x228   :  { %v3640_v57 = vrot.slane %v8868_v40, 1  ;;  %v3636_v33 = vsel %vm11118_vm13, %v3634_v26, %v3635_v49  ;;  %v8937_v46 = vadd.f32 %v3635_v49, %v8835_v1  ;;  %v3643_v29 = vrot.slane %v8874_v15, 1  ;;  %vm11120_vm13 = vmmov %vm11113_vm7 }
 0x229   :  { %v3641_v0 = vrot.slane %v8880_v27, 1  ;;  %v3549_v13 = vmax.f32 %v3547_v16, %v3548_v32  ;;  %v8942_v47 = vadd.f32 %v3636_v33, %v8821_v52  ;;  %v3639_v50 = vsel %vm11119_vm9, %v3637_v36, %v3638_v3  ;;  %vm11121_vm9 = vmmov %vm11113_vm7 }
 0x22a   :  { %v8946_v43 = vadd.f32 %v3638_v3, %v8840_v10  ;;  %7024 = vmatmul.mubr.msk.bf16.gmra.mrb[188].mxu0 %vm8017_vm0, %v11066_v8  ;;  %v8952_v1 = vadd.f32 %v3639_v50, %v8828_v42  ;;  %v3644_v52 = vrot.slane %v8889_v24, 1  ;;  %7056 = vmatmul.mubr.msk.bf16.gmra.mrb[188].mxu1 %vm8017_vm0, %v11066_v8  ;;  %v3646_v26 = vrot.slane %v1789_v53, 1  ;;  %v7473_v50 = vld [vmem:[#allocation2 + $0x40] ss:$72 sps:$4 sm:$0xff]   ;;  %vm11140_vm0 = vmmov %vm11113_vm7 }
 0x22b   :  { %v3642_v40 = vsel %vm11113_vm7, %v3640_v57, %v3641_v0  ;;  %v8956_v15 = vadd.f32 %v3641_v0, %v8878_v61  ;;  %2326 = vmatprep.mubr.bf16.mxu0 %v11070_v41  ;;  %v5822_v10 = vpack.c.bf16 %v3549_v13, %v3549_v13  ;;  %v3649_v42 = vrot.slane %v1791_v45, 1  ;;  %2519 = vmatprep.mubr.bf16.mxu1 %v11070_v41  ;;  %v1606_v16 = vpop.f32.mrb[84].mxu0  ;;  %v1799_v59 = vpop.f32.mrb[84].mxu1 }
 0x22c   :  { %v8964_v27 = vadd.f32 %v3642_v40, %v8866_v7  ;;  %v3645_v19 = vsel %vm11120_vm13, %v3643_v29, %v3644_v52  ;;  %v8969_v61 = vadd.f32 %v3644_v52, %v8887_v60  ;;  %v3647_v24 = vrot.slane %v1793_v23, 1  ;;  %v1608_v53 = vpop.f32.mrb[85].mxu0  ;;  %v1801_v45 = vpop.f32.mrb[85].mxu1 }
 0x22d   :  { %v3650_v37 = vrot.slane %v1795_v48, 1  ;;  %v3540_v36 = vrot.slane %v8895_v44, 1  ;;  %v6222_v49 = vunpack.c.l.b16 %v5822_v10  ;;  %v3555_v32 = vmax.f32 %v3553_v18, %v3554_v39  ;;  %v1610_v23 = vpop.f32.mrb[86].mxu0  ;;  %v1803_v48 = vpop.f32.mrb[86].mxu1  ;;  %v7478_v10 = vld [vmem:[#allocation2 + $0xd4] ss:$72 sps:$4 sm:$0xff]  }
 0x22e   :  { %v8973_v7 = vadd.f32 %v3645_v19, %v8872_v35  ;;  %v3648_v3 = vsel %vm11121_vm9, %v3646_v26, %v3647_v24  ;;  %v8976_v57 = vadd.f32 %v3647_v24, %v1600_v2  ;;  %vm11122_vm13 = vcmask 1047559   ;;  %v1612_v39 = vpop.f32.mrb[87].mxu0  ;;  %v1805_v13 = vpop.f32.mrb[87].mxu1  ;;  %vm11126_vm9 = vmmov %vm11113_vm7 }
 0x22f   :  { %v3651_v60 = vsel %vm11113_vm7, %v3649_v42, %v3650_v37  ;;  %v8979_v33 = vadd.f32 %v3650_v37, %v1602_v63  ;;  %v8982_v29 = vsel %vm11122_vm13, %v6222_v49, %v6243_v58  ;;  %v8984_v0 = vadd.f32 %v3648_v3, %v1596_v62 }
 0x230   :  { %11123 = vst [vmem:[#allocation33_spill] sm:$0xff] %v8982_v29  ;;  %v8986_v18 = vadd.f32 %v3651_v60, %v1598_v55  ;;  %v3652_v35 = vrot.slane %v1799_v59, 1  ;;  %v3655_v40 = vrot.slane %v1801_v45, 1  ;;  %v3653_v52 = vrot.slane %v1803_v48, 1 }
 0x231   :  { %v3656_v63 = vrot.slane %v1805_v13, 1  ;;  %v11124_v26 = vrot.slane %v8860_v14, 1  ;;  %v11125_v62 = vrot.slane %v8508_v20, 1  ;;  %v3428_v42 = vrot.slane %v8673_v51, 1 }
 0x232   :  { %7058 = vmatmul.mubr.msk.bf16.vlgmr.msra.gmra.mrb[192].mxu0 %vm7807_vm2, %v11066_v8  ;;  %v9001_v19 = vmax.f32 %v8895_v44, %v3540_v36  ;;  %v3654_v24 = vsel %vm11126_vm9, %v3652_v35, %v3653_v52  ;;  %v9004_v37 = vadd.f32 %v3653_v52, %v1610_v23  ;;  %7090 = vmatmul.mubr.msk.bf16.vlgmr.msra.gmra.mrb[192].mxu1 %vm7807_vm2, %v11066_v8  ;;  %v7476_v44 = vld [vmem:[#allocation2 + $0xd0] ss:$72 sps:$4 sm:$0xff]   ;;  %v3556_v45 = vrot.slane %v3555_v32, 1 }
 0x233   :  { %v3525_v58 = vmax.f32 %v8860_v14, %v11124_v26  ;;  %v3413_v55 = vmax.f32 %v8508_v20, %v11125_v62  ;;  %v3657_v59 = vsel %vm11113_vm7, %v3655_v40, %v3656_v63  ;;  %v9007_v14 = vadd.f32 %v3656_v63, %v1612_v39  ;;  %2681 = vmatpush1.bf16.msra.mxu0 %v7473_v50  ;;  %v1616_v35 = vpop.f32.mrb[88].mxu0 }
 0x234   :  { %v9012_v49 = vadd.f32 %v3654_v24, %v1606_v16  ;;  %v9014_v20 = vadd.f32 %v3657_v59, %v1608_v53  ;;  %2336 = vmatprep.mubr.bf16.mxu0 %v11070_v41  ;;  %v3429_v36 = vmax.f32 %v8673_v51, %v3428_v42  ;;  %v11127_v3 = vpack.c.bf16 %v8654_v30, %v8654_v30  ;;  %v1809_v16 = vpop.f32.mrb[88].mxu1  ;;  %v7481_v53 = vld [vmem:[#allocation2 + $0x164] ss:$72 sps:$4 sm:$0xff]   ;;  %v11130_v30 = vld [vmem:[#allocation32_spill] sm:$0xff] }
 0x235   :  { %v11128_v23 = vpack.c.bf16 %v8696_v34, %v8696_v34  ;;  %2529 = vmatprep.mubr.bf16.mxu1 %v11070_v41  ;;  %2682 = vmatprep.subr.bf16.mxu0 %v7478_v10  ;;  %v5803_v39 = vpack.c.bf16 %v8587_v38, %v8587_v38  ;;  %v5805_v13 = vpack.c.bf16 %v3413_v55, %v3413_v55  ;;  %v1618_v34 = vpop.f32.mrb[89].mxu0  ;;  %v1811_v63 = vpop.f32.mrb[89].mxu1  ;;  %v3658_v24 = vrot.slane %v1809_v16, 1  ;;  %v11134_v16 = vld [vmem:[#allocation27_spill] sm:$0xff] }
 0x236   :  { %v6209_v60 = vunpack.c.l.b16 %v11127_v3  ;;  %v11129_v51 = vpack.c.bf16 %v8735_v12, %v8735_v12  ;;  %v11131_v40 = vpack.c.bf16 %v11130_v30, %v11130_v30  ;;  %v3557_v26 = vmax.f32 %v3555_v32, %v3556_v45  ;;  %v1620_v59 = vpop.f32.mrb[90].mxu0  ;;  %v1813_v38 = vpop.f32.mrb[90].mxu1  ;;  %v7484_v45 = vld [vmem:[#allocation2 + $0x1f4] ss:$72 sps:$4 sm:$0xff]  }
 0x237   :  { %v6211_v48 = vunpack.c.l.b16 %v11128_v23  ;;  %v5819_v62 = vpack.c.bf16 %v3525_v58, %v3525_v58  ;;  %v11132_v10 = vpack.c.bf16 %v8825_v21, %v8825_v21  ;;  %v5807_v55 = vpack.c.bf16 %v3429_v36, %v3429_v36  ;;  %v1815_v30 = vpop.f32.mrb[91].mxu1  ;;  %2683 = vmatpush1.bf16.msra.mxu0 %v7476_v44 }
 0x238   :  { %v6213_v50 = vunpack.c.l.b16 %v11129_v51  ;;  %v6215_v52 = vunpack.c.l.b16 %v11131_v40  ;;  %v5821_v12 = vpack.c.bf16 %v9001_v19, %v9001_v19  ;;  %v3661_v3 = vrot.slane %v1811_v63, 1  ;;  %v1622_v51 = vpop.f32.mrb[91].mxu0  ;;  %v7479_v40 = vld [vmem:[#allocation2 + $0x160] ss:$72 sps:$4 sm:$0xff]   ;;  %2684 = vmatprep.subr.bf16.mxu0 %v7481_v53 }
 0x239   :  { %v6217_v42 = vunpack.c.l.b16 %v11132_v10  ;;  %v3659_v23 = vrot.slane %v1813_v38, 1  ;;  %v6203_v2 = vunpack.c.l.b16 %v5803_v39  ;;  %v6205_v32 = vunpack.c.l.b16 %v5805_v13  ;;  %v11133_v10 = vld [vmem:[#allocation26_spill] sm:$0xff]  ;;  %v11137_v38 = vld [vmem:[#allocation11_spill] sm:$0xff]  ;;  %v11138_v39 = vld [vmem:[#allocation28_spill] sm:$0xff] }
 0x23a   :  { %v3662_v58 = vrot.slane %v1815_v30, 1  ;;  %v5823_v21 = vpack.c.bf16 %v3557_v26, %v3557_v26  ;;  %vm11135_vm13 = vcmask 1041409   ;;  %7060 = vmatmul.mubr.msk.bf16.gmra.mrb[196].mxu0 %vm7821_vm5, %v11066_v8  ;;  %v6219_v44 = vunpack.c.l.b16 %v5819_v62  ;;  %7092 = vmatmul.mubr.msk.bf16.gmra.mrb[196].mxu1 %vm7821_vm5, %v11066_v8  ;;  %v7482_v62 = vld [vmem:[#allocation2 + $0x1f0] ss:$72 sps:$4 sm:$0xff]  }
 0x23b   :  { %v6231_v54 = vsel %vm11135_vm13, %v11134_v16, %v11133_v10  ;;  %vm11136_vm9 = vmmov %vm11135_vm13  ;;  %v3660_v19 = vsel %vm11113_vm7, %v3658_v24, %v3659_v23  ;;  %v9043_v63 = vadd.f32 %v3659_v23, %v1620_v59  ;;  %vm11139_vm2 = vcmask 1042434   ;;  %2346 = vmatprep.mubr.bf16.mxu0 %v11070_v41  ;;  %2539 = vmatprep.mubr.bf16.mxu1 %v11070_v41  ;;  %v1819_v23 = vpop.f32.mrb[92].mxu1  ;;  %v11144_v10 = vld [vmem:[#allocation31_spill] sm:$0xff] }
 0x23c   :  { %v6245_v36 = vsel %vm11136_vm9, %v6211_v48, %v6209_v60  ;;  %v6232_v53 = vsel %vm11139_vm2, %v11138_v39, %v6231_v54  ;;  %v9050_v13 = vadd.f32 %v3660_v19, %v1616_v35  ;;  %v3663_v26 = vsel %vm11140_vm0, %v3661_v3, %v3662_v58  ;;  %2685 = vmatpush1.bf16.msra.mxu0 %v7479_v40  ;;  %v11141_v35 = vld [vmem:[#allocation30_spill] sm:$0xff]  ;;  %v1626_v3 = vpop.f32.mrb[92].mxu0  ;;  %v1821_v19 = vpop.f32.mrb[93].mxu1 }
 0x23d   :  { %v9053_v30 = vadd.f32 %v3662_v58, %v1622_v51  ;;  %v6207_v60 = vunpack.c.l.b16 %v5807_v55  ;;  %v9059_v48 = vadd.f32 %v3663_v26, %v1618_v34  ;;  %v6221_v54 = vunpack.c.l.b16 %v5821_v12  ;;  %2686 = vmatprep.subr.bf16.mxu0 %v7484_v45  ;;  %v7487_v51 = vld [vmem:[#allocation2 + $0x284] ss:$72 sps:$4 sm:$0xff]   ;;  %v1628_v16 = vpop.f32.mrb[93].mxu0 }
 0x23e   :  { %vm11142_vm2 = vcmask 1043459   ;;  %vm11143_vm0 = vcmask 1042434   ;;  %v6223_v58 = vunpack.c.l.b16 %v5823_v21  ;;  %vm11145_vm13 = vcmask 1044484   ;;  %v1630_v39 = vpop.f32.mrb[94].mxu0 }
 0x23f   :  { %v6233_v24 = vsel %vm11142_vm2, %v11141_v35, %v6232_v53  ;;  %v6246_v59 = vsel %vm11143_vm0, %v6213_v50, %v6245_v36  ;;  %vm11146_vm9 = vmmov %vm11142_vm2  ;;  %vm11147_vm7 = vcmask 1045509   ;;  %v1823_v53 = vpop.f32.mrb[94].mxu1  ;;  %vm11149_vm2 = vcmask 1046534   ;;  %v1632_v21 = vpop.f32.mrb[95].mxu0 }
 0x240   :  { %v6234_v55 = vsel %vm11145_vm13, %v11144_v10, %v6233_v24  ;;  %v6247_v34 = vsel %vm11146_vm9, %v6215_v52, %v6246_v59  ;;  %vm11148_vm5 = vmmov %vm11145_vm13  ;;  %v3664_v45 = vrot.slane %v1819_v23, 1  ;;  %v3665_v26 = vrot.slane %v1823_v53, 1  ;;  %v1825_v35 = vpop.f32.mrb[95].mxu1  ;;  %2687 = vmatpush1.bf16.msra.mxu0 %v7482_v62  ;;  %v7485_v24 = vld [vmem:[#allocation2 + $0x280] ss:$72 sps:$4 sm:$0xff]  }
 0x241   :  { %v6235_v40 = vsel %vm11147_vm7, %v6203_v2, %v6234_v55  ;;  %v6248_v12 = vsel %vm11148_vm5, %v6217_v42, %v6247_v34  ;;  %vm11150_vm0 = vmmov %vm11147_vm7  ;;  %vm11151_vm13 = vcmask 1047559   ;;  %v3667_v2 = vrot.slane %v1821_v19, 1  ;;  %2688 = vmatprep.subr.bf16.mxu0 %v7487_v51  ;;  %v7490_v42 = vld [vmem:[#allocation2 + $0x314] ss:$72 sps:$4 sm:$0xff]   ;;  %v7488_v34 = vld [vmem:[#allocation2 + $0x310] ss:$72 sps:$4 sm:$0xff]  }
 0x242   :  { %v6236_v50 = vsel %vm11149_vm2, %v6205_v32, %v6235_v40  ;;  %v6249_v36 = vsel %vm11150_vm0, %v6219_v44, %v6248_v12  ;;  %vm11153_vm9 = vmmov %vm11149_vm2  ;;  %v3668_v10 = vrot.slane %v1825_v35, 1  ;;  %vm11156_vm7 = vcmask 1046528   ;;  %7062 = vmatmul.mubr.msk.bf16.gmra.mrb[200].mxu0 %vm7835_vm8, %v11066_v8  ;;  %7094 = vmatmul.mubr.msk.bf16.gmra.mrb[200].mxu1 %vm7835_vm8, %v11066_v8  ;;  %v7491_v35 = vld [vmem:[#allocation2 + $0x3a0] ss:$72 sps:$4 sm:$0xff]  }
 0x243   :  { %v9073_v52 = vsel %vm11151_vm13, %v6207_v60, %v6236_v50  ;;  %v6250_v59 = vsel %vm11153_vm9, %v6221_v54, %v6249_v36  ;;  %vm11154_vm5 = vmmov %vm11151_vm13  ;;  %v3666_v32 = vsel %vm11156_vm7, %v3664_v45, %v3665_v26  ;;  %v9080_v44 = vadd.f32 %v3665_v26, %v1630_v39  ;;  %2356 = vmatprep.mubr.bf16.mxu0 %v11070_v41  ;;  %v1636_v19 = vpop.f32.mrb[96].mxu0  ;;  %v1829_v40 = vpop.f32.mrb[96].mxu1 }
 0x244   :  { %11152 = vst [vmem:[#allocation32_spill] sm:$0xff] %v9073_v52  ;;  %v9077_v55 = vsel %vm11154_vm5, %v6223_v58, %v6250_v59  ;;  %v9087_v62 = vadd.f32 %v3666_v32, %v1626_v3  ;;  %vm11158_vm2 = vmmov %vm11156_vm7  ;;  %v9090_v51 = vadd.f32 %v3668_v10, %v1632_v21  ;;  %2549 = vmatprep.mubr.bf16.mxu1 %v11070_v41  ;;  %v7493_v3 = vld [vmem:[#allocation2 + $0x3a4] ss:$72 sps:$4 sm:$0xff]   ;;  %v1638_v12 = vpop.f32.mrb[97].mxu0  ;;  %v1831_v39 = vpop.f32.mrb[97].mxu1  ;;  %v3670_v36 = vrot.slane %v1829_v40, 1 }
 0x245   :  { %11155 = vst [vmem:[#allocation26_spill] sm:$0xff] %v9077_v55  ;;  %v3669_v54 = vsel %vm11158_vm2, %v3667_v2, %v3668_v10  ;;  %2689 = vmatpush1.bf16.msra.mxu0 %v7485_v24  ;;  %v1640_v53 = vpop.f32.mrb[98].mxu0  ;;  %v1833_v50 = vpop.f32.mrb[98].mxu1  ;;  %v7496_v2 = vld [vmem:[#allocation2 + $0x434] ss:$72 sps:$4 sm:$0xff]   ;;  %vm11159_vm0 = vmmov %vm11158_vm2 }
 0x246   :  { %v9096_v58 = vadd.f32 %v3669_v54, %v1628_v16  ;;  %2690 = vmatprep.subr.bf16.mxu0 %v7490_v42  ;;  %v3671_v45 = vrot.slane %v1833_v50, 1  ;;  %v1642_v26 = vpop.f32.mrb[99].mxu0  ;;  %v1835_v21 = vpop.f32.mrb[99].mxu1  ;;  %v3673_v16 = vrot.slane %v1831_v39, 1  ;;  %vm11161_vm13 = vmmov %vm11159_vm0 }
 0x247   :  { %v3674_v59 = vrot.slane %v1835_v21, 1  ;;  %vm11163_vm9 = vmmov %vm11159_vm0 }
 0x248   :  { %v3672_v24 = vsel %vm11159_vm0, %v3670_v36, %v3671_v45  ;;  %v9100_v10 = vadd.f32 %v3671_v45, %v1640_v53  ;;  %vm11168_vm7 = vmmov %vm11159_vm0 }
 0x249   :  { %2691 = vmatpush1.bf16.msra.mxu0 %v7488_v34  ;;  %v9105_v32 = vadd.f32 %v3672_v24, %v1636_v19  ;;  %v3675_v54 = vsel %vm11161_vm13, %v3673_v16, %v3674_v59  ;;  %v9108_v40 = vadd.f32 %v3674_v59, %v1642_v26  ;;  %vm11171_vm2 = vmmov %vm11159_vm0 }
 0x24a   :  { %2692 = vmatprep.subr.bf16.mxu0 %v7493_v3  ;;  %7064 = vmatmul.mubr.msk.bf16.gmra.mrb[204].mxu0 %vm7849_vm11, %v11066_v8  ;;  %v9114_v34 = vadd.f32 %v3675_v54, %v1638_v12  ;;  %v7494_v3 = vld [vmem:[#allocation2 + $0x430] ss:$72 sps:$4 sm:$0xff]   ;;  %vm11177_vm13 = vmmov %vm11159_vm0 }
 0x24b   :  { %7096 = vmatmul.mubr.msk.bf16.gmra.mrb[204].mxu1 %vm7849_vm11, %v11066_v8  ;;  %2366 = vmatprep.mubr.bf16.mxu0 %v11070_v41  ;;  %v1646_v39 = vpop.f32.mrb[100].mxu0  ;;  %v1839_v53 = vpop.f32.mrb[100].mxu1 }
 0x24c   :  { %11162 = vst [vmem:[#allocation27_spill] sm:$0xff] %v9114_v34  ;;  %2559 = vmatprep.mubr.bf16.mxu1 %v11070_v41  ;;  %v1648_v19 = vpop.f32.mrb[101].mxu0  ;;  %v1841_v50 = vpop.f32.mrb[101].mxu1  ;;  %v3676_v26 = vrot.slane %v1839_v53, 1 }
 0x24d   :  { %2693 = vmatpush1.bf16.msra.mxu0 %v7491_v35  ;;  %v1650_v36 = vpop.f32.mrb[102].mxu0  ;;  %v1843_v45 = vpop.f32.mrb[102].mxu1  ;;  %v3679_v24 = vrot.slane %v1841_v50, 1  ;;  %v11165_v35 = vld [vmem:[#allocation14_spill] sm:$0xff] }
 0x24e   :  { %2694 = vmatprep.subr.bf16.mxu0 %v7496_v2  ;;  %v3677_v21 = vrot.slane %v1843_v45, 1  ;;  %v1652_v16 = vpop.f32.mrb[103].mxu0  ;;  %v1845_v59 = vpop.f32.mrb[103].mxu1  ;;  %vm11166_vm5 = vnez %v11165_v35 }
 0x24f   :  { %v3680_v60 = vrot.slane %v1845_v59, 1 }
 0x250   :  { %v3678_v12 = vsel %vm11163_vm9, %v3676_v26, %v3677_v21  ;;  %v9118_v54 = vadd.f32 %v3677_v21, %v1650_v36  ;;  %vm11181_vm9 = vmmov %vm11159_vm0 }
 0x251   :  { %2695 = vmatpush1.bf16.msra.mxu0 %v7494_v3  ;;  %v9123_v2 = vadd.f32 %v3678_v12, %v1646_v39  ;;  %v3681_v29 = vsel %vm11168_vm7, %v3679_v24, %v3680_v60  ;;  %v9126_v52 = vadd.f32 %v3680_v60, %v1652_v16  ;;  %vm11184_vm7 = vmmov %vm11159_vm0 }
 0x252   :  { %11164 = vst [vmem:[#allocation11_spill] sm:$0xff] %v9118_v54  ;;  %7066 = vmatmul.mubr.msk.bf16.gmra.mrb[208].mxu0 %vm11166_vm5, %v11066_v8  ;;  %v9132_v3 = vadd.f32 %v3681_v29, %v1648_v19 }
 0x253   :  { %11167 = vst [vmem:[#allocation28_spill] sm:$0xff] %v9123_v2  ;;  %11169 = vst [vmem:[#allocation30_spill] sm:$0xff] %v9126_v52  ;;  %7098 = vmatmul.mubr.msk.bf16.gmra.mrb[208].mxu1 %vm11166_vm5, %v11066_v8  ;;  %2376 = vmatprep.mubr.bf16.mxu0 %v11070_v41  ;;  %v1656_v53 = vpop.f32.mrb[104].mxu0  ;;  %v1849_v50 = vpop.f32.mrb[104].mxu1 }
 0x254   :  { %11170 = vst [vmem:[#allocation31_spill] sm:$0xff] %v9132_v3  ;;  %2569 = vmatprep.mubr.bf16.mxu1 %v11070_v41  ;;  %v1658_v36 = vpop.f32.mrb[105].mxu0  ;;  %v1851_v45 = vpop.f32.mrb[105].mxu1  ;;  %v3682_v21 = vrot.slane %v1849_v50, 1 }
 0x255   :  { %v1660_v39 = vpop.f32.mrb[106].mxu0  ;;  %v1853_v26 = vpop.f32.mrb[106].mxu1  ;;  %v3685_v24 = vrot.slane %v1851_v45, 1 }
 0x256   :  { %v3683_v59 = vrot.slane %v1853_v26, 1  ;;  %v1662_v60 = vpop.f32.mrb[107].mxu0  ;;  %v1855_v16 = vpop.f32.mrb[107].mxu1 }
 0x257   :  { %v3686_v12 = vrot.slane %v1855_v16, 1 }
 0x258   :  { %v3684_v55 = vsel %vm11171_vm2, %v3682_v21, %v3683_v59  ;;  %v9136_v52 = vadd.f32 %v3683_v59, %v1660_v39  ;;  %vm11188_vm2 = vmmov %vm11159_vm0 }
 0x259   :  { %v9141_v19 = vadd.f32 %v3684_v55, %v1656_v53  ;;  %v3687_v3 = vsel %vm11159_vm0, %v3685_v24, %v3686_v12  ;;  %v9144_v54 = vadd.f32 %v3686_v12, %v1662_v60 }
 0x25a   :  { %11172 = vst [vmem:[#allocation12_spill] sm:$0xff] %v9136_v52  ;;  %7068 = vmatmul.mubr.msk.bf16.gmra.mrb[212].mxu0 %vm7877_vm1, %v11066_v8  ;;  %v9150_v50 = vadd.f32 %v3687_v3, %v1658_v36 }
 0x25b   :  { %11174 = vst [vmem:[#allocation13_spill] sm:$0xff] %v9141_v19  ;;  %11175 = vst [vmem:[#allocation14_spill] sm:$0xff] %v9144_v54  ;;  %7100 = vmatmul.mubr.msk.bf16.gmra.mrb[212].mxu1 %vm7877_vm1, %v11066_v8  ;;  %2386 = vmatprep.mubr.bf16.mxu0 %v11070_v41  ;;  %v1666_v45 = vpop.f32.mrb[108].mxu0  ;;  %v1859_v39 = vpop.f32.mrb[108].mxu1 }
 0x25c   :  { %11176 = vst [vmem:[#allocation34_spill] sm:$0xff] %v9150_v50  ;;  %2579 = vmatprep.mubr.bf16.mxu1 %v11070_v41  ;;  %v1668_v26 = vpop.f32.mrb[109].mxu0  ;;  %v1861_v21 = vpop.f32.mrb[109].mxu1  ;;  %v3688_v59 = vrot.slane %v1859_v39, 1 }
 0x25d   :  { %v1670_v55 = vpop.f32.mrb[110].mxu0  ;;  %v1863_v53 = vpop.f32.mrb[110].mxu1  ;;  %v3691_v12 = vrot.slane %v1861_v21, 1 }
 0x25e   :  { %v3689_v16 = vrot.slane %v1863_v53, 1  ;;  %v1672_v60 = vpop.f32.mrb[111].mxu0  ;;  %v1865_v24 = vpop.f32.mrb[111].mxu1 }
 0x25f   :  { %v3692_v54 = vrot.slane %v1865_v24, 1 }
 0x260   :  { %v3690_v52 = vsel %vm11177_vm13, %v3688_v59, %v3689_v16  ;;  %v9154_v19 = vadd.f32 %v3689_v16, %v1670_v55  ;;  %vm11194_vm13 = vmmov %vm11159_vm0 }
 0x261   :  { %v9159_v36 = vadd.f32 %v3690_v52, %v1666_v45  ;;  %v3693_v50 = vsel %vm11181_vm9, %v3691_v12, %v3692_v54  ;;  %v9162_v2 = vadd.f32 %v3692_v54, %v1672_v60  ;;  %vm11198_vm9 = vmmov %vm11159_vm0 }
 0x262   :  { %11178 = vst [vmem:[#allocation35_spill] sm:$0xff] %v9154_v19  ;;  %7070 = vmatmul.mubr.msk.bf16.gmra.mrb[216].mxu0 %vm7891_vm6, %v11066_v8  ;;  %v9168_v39 = vadd.f32 %v3693_v50, %v1668_v26 }
 0x263   :  { %11180 = vst [vmem:[#allocation36_spill] sm:$0xff] %v9159_v36  ;;  %11182 = vst [vmem:[#allocation37_spill] sm:$0xff] %v9162_v2  ;;  %7102 = vmatmul.mubr.msk.bf16.gmra.mrb[216].mxu1 %vm7891_vm6, %v11066_v8  ;;  %2396 = vmatprep.mubr.bf16.mxu0 %v11070_v41  ;;  %v1676_v21 = vpop.f32.mrb[112].mxu0  ;;  %v1869_v55 = vpop.f32.mrb[112].mxu1 }
 0x264   :  { %11183 = vst [vmem:[#allocation38_spill] sm:$0xff] %v9168_v39  ;;  %2589 = vmatprep.mubr.bf16.mxu1 %v11070_v41  ;;  %v1678_v53 = vpop.f32.mrb[113].mxu0  ;;  %v1871_v59 = vpop.f32.mrb[113].mxu1  ;;  %v3694_v16 = vrot.slane %v1869_v55, 1 }
 0x265   :  { %v1680_v52 = vpop.f32.mrb[114].mxu0  ;;  %v1873_v45 = vpop.f32.mrb[114].mxu1  ;;  %v3697_v12 = vrot.slane %v1871_v59, 1 }
 0x266   :  { %v3695_v24 = vrot.slane %v1873_v45, 1  ;;  %v1682_v54 = vpop.f32.mrb[115].mxu0  ;;  %v1875_v60 = vpop.f32.mrb[115].mxu1 }
 0x267   :  { %v3698_v2 = vrot.slane %v1875_v60, 1 }
 0x268   :  { %v3696_v19 = vsel %vm11184_vm7, %v3694_v16, %v3695_v24  ;;  %v9172_v36 = vadd.f32 %v3695_v24, %v1680_v52  ;;  %vm11201_vm7 = vmmov %vm11159_vm0 }
 0x269   :  { %v9177_v26 = vadd.f32 %v3696_v19, %v1676_v21  ;;  %v3699_v39 = vsel %vm11188_vm2, %v3697_v12, %v3698_v2  ;;  %v9180_v3 = vadd.f32 %v3698_v2, %v1682_v54  ;;  %vm11205_vm2 = vmmov %vm11159_vm0 }
 0x26a   :  { %11185 = vst [vmem:[#allocation39_spill] sm:$0xff] %v9172_v36  ;;  %7072 = vmatmul.mubr.msk.bf16.gmra.mrb[220].mxu0 %vm7905_vm10, %v11066_v8  ;;  %v9186_v55 = vadd.f32 %v3699_v39, %v1678_v53 }
 0x26b   :  { %11187 = vst [vmem:[#allocation40_spill] sm:$0xff] %v9177_v26  ;;  %11189 = vst [vmem:[#allocation41_spill] sm:$0xff] %v9180_v3  ;;  %7104 = vmatmul.mubr.msk.bf16.gmra.mrb[220].mxu1 %vm7905_vm10, %v11066_v8  ;;  %2406 = vmatprep.mubr.bf16.mxu0 %v11070_v41  ;;  %v1686_v59 = vpop.f32.mrb[116].mxu0  ;;  %v1879_v52 = vpop.f32.mrb[116].mxu1 }
 0x26c   :  { %11190 = vst [vmem:[#allocation42_spill] sm:$0xff] %v9186_v55  ;;  %2599 = vmatprep.mubr.bf16.mxu1 %v11070_v41  ;;  %v1688_v45 = vpop.f32.mrb[117].mxu0  ;;  %v1881_v16 = vpop.f32.mrb[117].mxu1  ;;  %v3700_v60 = vrot.slane %v1879_v52, 1 }
 0x26d   :  { %v1690_v19 = vpop.f32.mrb[118].mxu0  ;;  %v1883_v21 = vpop.f32.mrb[118].mxu1  ;;  %v3703_v12 = vrot.slane %v1881_v16, 1 }
 0x26e   :  { %v1692_v24 = vpop.f32.mrb[119].mxu0  ;;  %v3701_v2 = vrot.slane %v1883_v21, 1  ;;  %v1885_v54 = vpop.f32.mrb[119].mxu1 }
 0x26f   :  { %v3704_v3 = vrot.slane %v1885_v54, 1 }
 0x270   :  { %v3702_v39 = vsel %vm11159_vm0, %v3700_v60, %v3701_v2  ;;  %v9193_v53 = vadd.f32 %v3701_v2, %v1690_v19 }
 0x271   :  { %v9199_v55 = vadd.f32 %v3702_v39, %v1686_v59  ;;  %v3705_v52 = vsel %vm11194_vm13, %v3703_v12, %v3704_v3  ;;  %v9202_v16 = vadd.f32 %v3704_v3, %v1692_v24  ;;  %vm11010_vm13 = vcmask 1045504  }
 0x272   :  { %7074 = vmatmul.mubr.msk.bf16.gmra.mrb[224].mxu0 %vm7919_vm15, %v11066_v8  ;;  %11192 = vst [vmem:[#allocation43_spill] sm:$0xff] %v9193_v53  ;;  %v9205_v21 = vadd.f32 %v3705_v52, %v1688_v45 }
 0x273   :  { %7106 = vmatmul.mubr.msk.bf16.gmra.mrb[224].mxu1 %vm7919_vm15, %v11066_v8  ;;  %2416 = vmatprep.mubr.bf16.mxu0 %v11070_v41  ;;  %11193 = vst [vmem:[#allocation44_spill] sm:$0xff] %v9199_v55  ;;  %11195 = vst [vmem:[#allocation45_spill] sm:$0xff] %v9202_v16  ;;  %v1696_v54 = vpop.f32.mrb[120].mxu0  ;;  %v1889_v60 = vpop.f32.mrb[120].mxu1 }
 0x274   :  { %2609 = vmatprep.mubr.bf16.mxu1 %v11070_v41  ;;  %11196 = vst [vmem:[#allocation46_spill] sm:$0xff] %v9205_v21  ;;  %v1698_v19 = vpop.f32.mrb[121].mxu0  ;;  %v1891_v2 = vpop.f32.mrb[121].mxu1  ;;  %v3706_v50 = vrot.slane %v1889_v60, 1 }
 0x275   :  { %v1700_v53 = vpop.f32.mrb[122].mxu0  ;;  %v1893_v36 = vpop.f32.mrb[122].mxu1  ;;  %v3709_v59 = vrot.slane %v1891_v2, 1 }
 0x276   :  { %v1702_v26 = vpop.f32.mrb[123].mxu0  ;;  %v3707_v29 = vrot.slane %v1893_v36, 1  ;;  %v1895_v34 = vpop.f32.mrb[123].mxu1 }
 0x277   :  { %v3710_v39 = vrot.slane %v1895_v34, 1 }
 0x278   :  { %v3708_v3 = vsel %vm11198_vm9, %v3706_v50, %v3707_v29  ;;  %v9211_v45 = vadd.f32 %v3707_v29, %v1700_v53 }
 0x279   :  { %v9217_v24 = vadd.f32 %v3708_v3, %v1696_v54  ;;  %v3711_v36 = vsel %vm11201_vm7, %v3709_v59, %v3710_v39  ;;  %v9220_v52 = vadd.f32 %v3710_v39, %v1702_v26  ;;  %vm11231_vm7 = vnez %v11054_v25 }
 0x27a   :  { %7076 = vmatmul.mubr.msk.bf16.gmra.mrb[228].mxu0 %vm7933_vm4, %v11066_v8  ;;  %11199 = vst [vmem:[#allocation47_spill] sm:$0xff] %v9211_v45  ;;  %v9223_v34 = vadd.f32 %v3711_v36, %v1698_v19 }
 0x27b   :  { %7108 = vmatmul.mubr.msk.bf16.gmra.mrb[228].mxu1 %vm7933_vm4, %v11066_v8  ;;  %2426 = vmatprep.mubr.bf16.mxu0 %v11070_v41  ;;  %11200 = vst [vmem:[#allocation48_spill] sm:$0xff] %v9217_v24  ;;  %11202 = vst [vmem:[#allocation49_spill] sm:$0xff] %v9220_v52  ;;  %v1706_v60 = vpop.f32.mrb[124].mxu0  ;;  %v1899_v50 = vpop.f32.mrb[124].mxu1 }
 0x27c   :  { %2619 = vmatprep.mubr.bf16.mxu1 %v11070_v41  ;;  %11203 = vst [vmem:[#allocation50_spill] sm:$0xff] %v9223_v34  ;;  %v1708_v29 = vpop.f32.mrb[125].mxu0  ;;  %v1901_v53 = vpop.f32.mrb[125].mxu1  ;;  %v3712_v21 = vrot.slane %v1899_v50, 1 }
 0x27d   :  { %v1710_v2 = vpop.f32.mrb[126].mxu0  ;;  %v1903_v45 = vpop.f32.mrb[126].mxu1  ;;  %v3715_v54 = vrot.slane %v1901_v53, 1 }
 0x27e   :  { %v1712_v16 = vpop.f32.mrb[127].mxu0  ;;  %v3713_v55 = vrot.slane %v1903_v45, 1  ;;  %v1905_v12 = vpop.f32.mrb[127].mxu1 }
 0x27f   :  { %v3716_v3 = vrot.slane %v1905_v12, 1 }
 0x280   :  { %v3714_v26 = vsel %vm11205_vm2, %v3712_v21, %v3713_v55  ;;  %v9229_v19 = vadd.f32 %v3713_v55, %v1710_v2  ;;  %v4135_v55 = vld [vmem:[%s10934_s3] sm:$0x3]  ;;  %vm11236_vm2 = vnez %v11056_v28 }
 0x281   :  { %v9235_v39 = vadd.f32 %v3714_v26, %v1706_v60  ;;  %v3717_v45 = vsel %vm11159_vm0, %v3715_v54, %v3716_v3  ;;  %v9238_v36 = vadd.f32 %v3716_v3, %v1712_v16  ;;  %v11212_v16 = vld [vmem:[#allocation24_spill] sm:$0xff]  ;;  %vm11237_vm0 = vcmask 1041409  }
 0x282   :  { %7078 = vmatmul.mubr.msk.bf16.gmra.mrb[232].mxu0 %vm7947_vm12, %v11066_v8  ;;  %11206 = vst [vmem:[#allocation20_spill] sm:$0xff] %v9229_v19  ;;  %v9241_v12 = vadd.f32 %v3717_v45, %v1708_v29  ;;  %v9251_v3 = vrot.slane %v4135_v55, %v11212_v16 }
 0x283   :  { %7110 = vmatmul.mubr.msk.bf16.gmra.mrb[232].mxu1 %vm7947_vm12, %v11066_v8  ;;  %2436 = vmatprep.mubr.bf16.mxu0 %v11070_v41  ;;  %11207 = vst [vmem:[#allocation51_spill] sm:$0xff] %v9235_v39  ;;  %11208 = vst [vmem:[#allocation52_spill] sm:$0xff] %v9238_v36  ;;  %v1942_v50 = vpop.f32.mrb[128].mxu0  ;;  %v9246_v21 = vpop.f32.mrb[128].mxu1  ;;  %v11214_v39 = vld [vmem:[#allocation25_spill] sm:$0xff] }
 0x284   :  { %2629 = vmatprep.mubr.bf16.mxu1 %v11070_v41  ;;  %11209 = vst [vmem:[#allocation53_spill] sm:$0xff] %v9241_v12  ;;  %11210 = vst [vmem:[#allocation54_spill] sm:$0xff] %v9246_v21  ;;  %v1944_v53 = vpop.f32.mrb[129].mxu0  ;;  %v9248_v2 = vpop.f32.mrb[129].mxu1  ;;  %v3911_v26 = vrot.slane %v1942_v50, 2  ;;  %v9256_v19 = vrot.slane %v4135_v55, %v11214_v39 }
 0x285   :  { %11211 = vst [vmem:[#allocation55_spill] sm:$0xff] %v9248_v2  ;;  %v1946_v60 = vpop.f32.mrb[130].mxu0  ;;  %v9253_v36 = vpop.f32.mrb[130].mxu1  ;;  %v3914_v45 = vrot.slane %v1944_v53, 2 }
 0x286   :  { %v3912_v54 = vrot.slane %v1946_v60, 2  ;;  %11213 = vst [vmem:[#allocation56_spill] sm:$0xff] %v9253_v36  ;;  %v1948_v29 = vpop.f32.mrb[131].mxu0  ;;  %v9258_v52 = vpop.f32.mrb[131].mxu1 }
 0x287   :  { %v3915_v12 = vrot.slane %v1948_v29, 2  ;;  %11215 = vst [vmem:[#allocation57_spill] sm:$0xff] %v9258_v52 }
 0x288   :  { %v3913_v21 = vsel %vm11010_vm13, %v3911_v26, %v3912_v54  ;;  %v4073_v2 = vadd.f32 %v3912_v54, %v8885_v4 }
 0x289   :  { %v4071_v60 = vadd.f32 %v3913_v21, %v8892_v5  ;;  %v3916_v16 = vsel %vm11010_vm13, %v3914_v45, %v3915_v12  ;;  %v4074_v53 = vadd.f32 %v3915_v12, %v8901_v17 }
 0x28a   :  { %7080 = vmatmul.mubr.msk.bf16.gmra.mrb[236].mxu0 %vm7961_vm3, %v11066_v8  ;;  %v4149_v55 = vadd.f32 %v9251_v3, %v4073_v2  ;;  %v4072_v4 = vadd.f32 %v3916_v16, %v8898_v22 }
 0x28b   :  { %7112 = vmatmul.mubr.msk.bf16.gmra.mrb[236].mxu1 %vm7961_vm3, %v11066_v8  ;;  %2446 = vmatprep.mubr.bf16.mxu0 %v11070_v41  ;;  %v4147_v26 = vadd.f32 %v9251_v3, %v4071_v60  ;;  %v4150_v5 = vadd.f32 %v9256_v19, %v4074_v53  ;;  %v1952_v21 = vpop.f32.mrb[132].mxu0  ;;  %v9278_v12 = vpop.f32.mrb[132].mxu1 }
 0x28c   :  { %2639 = vmatprep.mubr.bf16.mxu1 %v11070_v41  ;;  %v4213_v54 = vmax.f32 %v4149_v55, 0.0  ;;  %v4148_v17 = vadd.f32 %v9256_v19, %v4072_v4  ;;  %11217 = vst [vmem:[#allocation58_spill] sm:$0xff] %v9278_v12  ;;  %v1954_v29 = vpop.f32.mrb[133].mxu0  ;;  %v9280_v52 = vpop.f32.mrb[133].mxu1  ;;  %v3917_v36 = vrot.slane %v1952_v21, 2 }
 0x28d   :  { %v4211_v45 = vmax.f32 %v4147_v26, 0.0  ;;  %v4214_v39 = vmax.f32 %v4150_v5, 0.0  ;;  %11218 = vst [vmem:[#allocation59_spill] sm:$0xff] %v9280_v52  ;;  %v1956_v2 = vpop.f32.mrb[134].mxu0  ;;  %v9283_v60 = vpop.f32.mrb[134].mxu1  ;;  %v3920_v4 = vrot.slane %v1954_v29, 2 }
 0x28e   :  { %v4275_v22 = vsel %vm11010_vm13, %v4213_v54, -inf  ;;  %v4212_v16 = vmax.f32 %v4148_v17, 0.0  ;;  %v3918_v34 = vrot.slane %v1956_v2, 2  ;;  %11219 = vst [vmem:[#allocation60_spill] sm:$0xff] %v9283_v60  ;;  %v1958_v53 = vpop.f32.mrb[135].mxu0  ;;  %v9286_v12 = vpop.f32.mrb[135].mxu1 }
 0x28f   :  { %v4276_v24 = vmax.f32 %v4211_v45, %v4275_v22  ;;  %v4283_v55 = vsel %vm11010_vm13, %v4214_v39, -inf  ;;  %v3921_v50 = vrot.slane %v1958_v53, 2  ;;  %11220 = vst [vmem:[#allocation61_spill] sm:$0xff] %v9286_v12  ;;  %v7498_v22 = vld [vmem:[%s10937_s6] sm:$0xff]  }
 0x290   :  { %v4284_v26 = vmax.f32 %v4212_v16, %v4283_v55  ;;  %v3919_v5 = vsel %vm11010_vm13, %v3917_v36, %v3918_v34  ;;  %v4077_v52 = vadd.f32 %v3918_v34, %v8918_v6 }
 0x291   :  { %v4277_v21 = vrot.slane %v4276_v24, 4  ;;  %v4075_v17 = vadd.f32 %v3919_v5, %v8921_v31  ;;  %v3922_v45 = vsel %vm11010_vm13, %v3920_v4, %v3921_v50  ;;  %v4078_v39 = vadd.f32 %v3921_v50, %v8925_v9  ;;  %v7497_v31 = vld [vmem:[%s10937_s6 + $0x40] sm:$0xff]  }
 0x292   :  { %7082 = vmatmul.mubr.msk.bf16.gmra.mrb[240].mxu0 %vm11106_vm14, %v11066_v8  ;;  %v4285_v36 = vrot.slane %v4284_v26, 4  ;;  %v4153_v6 = vadd.f32 %v9251_v3, %v4077_v52  ;;  %v4076_v34 = vadd.f32 %v3922_v45, %v8929_v56  ;;  %7202 = vmatprep.subr.bf16.mxu1 %v7497_v31 }
 0x293   :  { %7114 = vmatmul.mubr.msk.bf16.gmra.mrb[240].mxu1 %vm11106_vm14, %v11066_v8  ;;  %2456 = vmatprep.mubr.bf16.mxu0 %v11070_v41  ;;  %v4278_v29 = vmax.f32 %v4276_v24, %v4277_v21  ;;  %v4151_v9 = vadd.f32 %v9251_v3, %v4075_v17  ;;  %v4154_v50 = vadd.f32 %v9256_v19, %v4078_v39  ;;  %v1962_v2 = vpop.f32.mrb[136].mxu0  ;;  %v9312_v55 = vpop.f32.mrb[136].mxu1 }
 0x294   :  { %2649 = vmatprep.mubr.bf16.mxu1 %v11070_v41  ;;  %v4286_v16 = vmax.f32 %v4284_v26, %v4285_v36  ;;  %v4217_v52 = vmax.f32 %v4153_v6, 0.0  ;;  %v4152_v56 = vadd.f32 %v9256_v19, %v4076_v34  ;;  %v3923_v53 = vrot.slane %v1962_v2, 2  ;;  %11222 = vst [vmem:[#allocation62_spill] sm:$0xff] %v9312_v55  ;;  %v1964_v4 = vpop.f32.mrb[137].mxu0  ;;  %v9314_v45 = vpop.f32.mrb[137].mxu1  ;;  %7203 = vmatpush3.bf16.msra.mxu1 %v7498_v22  ;;  %v7500_v22 = vld [vmem:[%s10937_s6 + $0x8] sm:$0xff]  }
 0x295   :  { %v4279_v5 = vrot.slane %v4278_v29, 2  ;;  %v4215_v24 = vmax.f32 %v4151_v9, 0.0  ;;  %v4218_v21 = vmax.f32 %v4154_v50, 0.0  ;;  %v3926_v17 = vrot.slane %v1964_v4, 2  ;;  %11223 = vst [vmem:[#allocation63_spill] sm:$0xff] %v9314_v45  ;;  %v1966_v39 = vpop.f32.mrb[138].mxu0 }
 0x296   :  { %v4287_v12 = vrot.slane %v4286_v16, 2  ;;  %v4291_v60 = vsel %vm11010_vm13, %v4217_v52, -inf  ;;  %v4216_v26 = vmax.f32 %v4152_v56, 0.0  ;;  %v3924_v36 = vrot.slane %v1966_v39, 2  ;;  %v9317_v6 = vpop.f32.mrb[138].mxu1  ;;  %v1968_v34 = vpop.f32.mrb[139].mxu0 }
 0x297   :  { %v4280_v2 = vmax.f32 %v4278_v29, %v4279_v5  ;;  %v4292_v55 = vmax.f32 %v4215_v24, %v4291_v60  ;;  %v4299_v31 = vsel %vm11010_vm13, %v4218_v21, -inf  ;;  %v3927_v54 = vrot.slane %v1968_v34, 2  ;;  %v9320_v9 = vpop.f32.mrb[139].mxu1  ;;  %v7499_v50 = vld [vmem:[%s10937_s6 + $0x48] sm:$0xff]   ;;  %v11225_v60 = vld [vmem:[#allocation23_spill] sm:$0xff] }
 0x298   :  { %11224 = vst [vmem:[#allocation64_spill] sm:$0xff] %v9320_v9  ;;  %v4288_v52 = vmax.f32 %v4286_v16, %v4287_v12  ;;  %v4300_v56 = vmax.f32 %v4216_v26, %v4299_v31  ;;  %v3925_v4 = vsel %vm11010_vm13, %v3923_v53, %v3924_v36  ;;  %v4081_v29 = vadd.f32 %v3924_v36, %v8937_v46  ;;  %v7501_v31 = vld [vmem:[%s10937_s6 + $0x50] sm:$0xff]  }
 0x299   :  { %vm11226_vm9 = vnez %v11225_v60  ;;  %v4281_v5 = vrot.slane %v4280_v2, 1  ;;  %v4293_v24 = vrot.slane %v4292_v55, 4  ;;  %v4079_v21 = vadd.f32 %v3925_v4, %v8942_v47  ;;  %7204 = vmatprep.subr.bf16.mxu1 %v7499_v50 }
 0x29a   :  { %7084 = vmatmul.mubr.msk.bf16.gmra.mrb[244].mxu0 %vm11226_vm9, %v11066_v8  ;;  %v3928_v39 = vsel %vm11010_vm13, %v3926_v17, %v3927_v54  ;;  %v4289_v12 = vrot.slane %v4288_v52, 1  ;;  %v4301_v16 = vrot.slane %v4300_v56, 4  ;;  %v4157_v46 = vadd.f32 %v9251_v3, %v4081_v29  ;;  %7205 = vmatpush3.bf16.msra.mxu1 %v7500_v22 }
 0x29b   :  { %7116 = vmatmul.mubr.msk.bf16.gmra.mrb[244].mxu1 %vm11226_vm9, %v11066_v8  ;;  %2466 = vmatprep.mubr.bf16.mxu0 %v11070_v41  ;;  %v4080_v53 = vadd.f32 %v3928_v39, %v8952_v1  ;;  %v4282_v26 = vmax.f32 %v4280_v2, %v4281_v5  ;;  %v4294_v36 = vmax.f32 %v4292_v55, %v4293_v24  ;;  %v1972_v34 = vpop.f32.mrb[140].mxu0  ;;  %v9348_v39 = vpop.f32.mrb[140].mxu1 }
 0x29c   :  { %2659 = vmatprep.mubr.bf16.mxu1 %v11070_v41  ;;  %v4155_v47 = vadd.f32 %v9251_v3, %v4079_v21  ;;  %v4082_v17 = vadd.f32 %v3927_v54, %v8946_v43  ;;  %v4290_v4 = vmax.f32 %v4288_v52, %v4289_v12  ;;  %v4302_v45 = vmax.f32 %v4300_v56, %v4301_v16  ;;  %v1974_v50 = vpop.f32.mrb[141].mxu0  ;;  %v9351_v43 = vpop.f32.mrb[141].mxu1 }
 0x29d   :  { %v4221_v29 = vmax.f32 %v4157_v46, 0.0  ;;  %v4156_v1 = vadd.f32 %v9256_v19, %v4080_v53  ;;  %11227 = vst [vmem:[#allocation23_spill] sm:$0xff] %v9348_v39  ;;  %v5856_v2 = vpack.c.bf16 %v4282_v26, %v4282_v26  ;;  %v4295_v55 = vrot.slane %v4294_v36, 2  ;;  %11228 = vst [vmem:[#allocation65_spill] sm:$0xff] %v9351_v43  ;;  %v1976_v54 = vpop.f32.mrb[142].mxu0  ;;  %7206 = vmatprep.subr.bf16.mxu1 %v7501_v31  ;;  %v9354_v12 = vpop.f32.mrb[142].mxu1 }
 0x29e   :  { %v4219_v5 = vmax.f32 %v4155_v47, 0.0  ;;  %v4158_v24 = vadd.f32 %v9256_v19, %v4082_v17  ;;  %v5857_v22 = vpack.c.bf16 %v4290_v4, %v4290_v4  ;;  %v4303_v21 = vrot.slane %v4302_v45, 2  ;;  %11229 = vst [vmem:[#allocation66_spill] sm:$0xff] %v9354_v12  ;;  %v1978_v16 = vpop.f32.mrb[143].mxu0  ;;  %v7502_v46 = vld [vmem:[%s10937_s6 + $0x10] sm:$0xff]   ;;  %v9359_v17 = vpop.f32.mrb[143].mxu1 }
 0x29f   :  { %v4307_v52 = vsel %vm11010_vm13, %v4221_v29, -inf  ;;  %v4220_v56 = vmax.f32 %v4156_v1, 0.0  ;;  %v4296_v53 = vmax.f32 %v4294_v36, %v4295_v55  ;;  %11230 = vst [vmem:[#allocation67_spill] sm:$0xff] %v9359_v17  ;;  %v5952_v43 = vunpack.c.l.b16 %v5856_v2  ;;  %7207 = vmatpush3.bf16.msra.mxu1 %v7502_v46 }
 0x2a0   :  { %v4308_v26 = vmax.f32 %v4219_v5, %v4307_v52  ;;  %v4222_v47 = vmax.f32 %v4158_v24, 0.0  ;;  %v9361_v39 = vunpack.c.l.b16 %v5857_v22  ;;  %v4304_v31 = vmax.f32 %v4302_v45, %v4303_v21  ;;  %v7503_v45 = vld [vmem:[%s10937_s6 + $0x58] sm:$0xff]  }
 0x2a1   :  { %v3929_v4 = vrot.slane %v1972_v34, 2  ;;  %v4297_v29 = vrot.slane %v4296_v53, 1  ;;  %v3930_v9 = vrot.slane %v1976_v54, 2  ;;  %v3932_v2 = vrot.slane %v1974_v50, 2  ;;  %v7504_v5 = vld [vmem:[%s10937_s6 + $0x18] sm:$0xff]   ;;  %7208 = vmatprep.subr.bf16.mxu1 %v7503_v45 }
 0x2a2   :  { %7086 = vmatmul.mubr.msk.bf16.gmra.mrb[248].mxu0 %vm11231_vm7, %v11066_v8  ;;  %v4309_v1 = vrot.slane %v4308_v26, 4  ;;  %v4315_v12 = vsel %vm11010_vm13, %v4222_v47, -inf  ;;  %v4305_v36 = vrot.slane %v4304_v31, 1  ;;  %v3933_v55 = vrot.slane %v1978_v16, 2 }
 0x2a3   :  { %7118 = vmatmul.mubr.msk.bf16.gmra.mrb[248].mxu1 %vm11231_vm7, %v11066_v8  ;;  %2476 = vmatprep.mubr.bf16.mxu0 %v11070_v41  ;;  %v4316_v34 = vmax.f32 %v4220_v56, %v4315_v12  ;;  %v4298_v24 = vmax.f32 %v4296_v53, %v4297_v29  ;;  %v3931_v22 = vsel %vm11010_vm13, %v3929_v4, %v3930_v9  ;;  %v9380_v52 = vpop.f32.mrb[144].mxu0 }
 0x2a4   :  { %2669 = vmatprep.mubr.bf16.mxu1 %v11070_v41  ;;  %v4310_v54 = vmax.f32 %v4308_v26, %v4309_v1  ;;  %v4085_v21 = vadd.f32 %v3930_v9, %v8956_v15  ;;  %v4306_v46 = vmax.f32 %v4304_v31, %v4305_v36  ;;  %v4083_v50 = vadd.f32 %v3931_v22, %v8964_v27  ;;  %v9384_v12 = vpop.f32.mrb[144].mxu1  ;;  %v9386_v16 = vpop.f32.mrb[145].mxu0  ;;  %v7505_v27 = vld [vmem:[%s10937_s6 + $0x60] sm:$0xff]  }
 0x2a5   :  { %v4317_v47 = vrot.slane %v4316_v34, 4  ;;  %v3934_v56 = vsel %vm11010_vm13, %v3932_v2, %v3933_v55  ;;  %11232 = vst [vmem:[#allocation68_spill] sm:$0xff] %v9384_v12  ;;  %7209 = vmatpush3.bf16.msra.mxu1 %v7504_v5  ;;  %v5858_v53 = vpack.c.bf16 %v4298_v24, %v4298_v24  ;;  %v9390_v9 = vpop.f32.mrb[145].mxu1  ;;  %v1986_v29 = vpop.f32.mrb[146].mxu0  ;;  %v4086_v36 = vadd.f32 %v3933_v55, %v8969_v61 }
 0x2a6   :  { %v4311_v26 = vrot.slane %v4310_v54, 2  ;;  %v4161_v4 = vadd.f32 %v9251_v3, %v4085_v21  ;;  %v4084_v15 = vadd.f32 %v3934_v56, %v8973_v7  ;;  %11233 = vst [vmem:[#allocation69_spill] sm:$0xff] %v9390_v9  ;;  %v5859_v31 = vpack.c.bf16 %v4306_v46, %v4306_v46  ;;  %v9397_v2 = vpop.f32.mrb[146].mxu1  ;;  %v9399_v5 = vpop.f32.mrb[147].mxu0  ;;  %v7506_v7 = vld [vmem:[%s10937_s6 + $0x20] sm:$0xff]   ;;  %7210 = vmatprep.subr.bf16.mxu1 %v7505_v27 }
 0x2a7   :  { %v4318_v1 = vmax.f32 %v4316_v34, %v4317_v47  ;;  %v4159_v45 = vadd.f32 %v9251_v3, %v4083_v50  ;;  %11234 = vst [vmem:[#allocation70_spill] sm:$0xff] %v9397_v2  ;;  %v5954_v24 = vunpack.c.l.b16 %v5858_v53  ;;  %v9405_v9 = vpop.f32.mrb[147].mxu1  ;;  %v4162_v55 = vadd.f32 %v9256_v19, %v4086_v36 }
 0x2a8   :  { %v4312_v22 = vmax.f32 %v4310_v54, %v4311_v26  ;;  %v4225_v21 = vmax.f32 %v4161_v4, 0.0  ;;  %v4160_v56 = vadd.f32 %v9256_v19, %v4084_v15  ;;  %11235 = vst [vmem:[#allocation71_spill] sm:$0xff] %v9405_v9  ;;  %v9407_v34 = vunpack.c.l.b16 %v5859_v31  ;;  %v7507_v26 = vld [vmem:[%s10937_s6 + $0x68] sm:$0xff]  }
 0x2a9   :  { %v4319_v46 = vrot.slane %v4318_v1, 2  ;;  %v4223_v61 = vmax.f32 %v4159_v45, 0.0  ;;  %7211 = vmatpush3.bf16.msra.mxu1 %v7506_v7  ;;  %v5985_v47 = vsel %vm11237_vm0, %v5954_v24, %v5952_v43  ;;  %v4226_v27 = vmax.f32 %v4162_v55, 0.0  ;;  %v7508_v43 = vld [vmem:[%s10937_s6 + $0x28] sm:$0xff]  }
 0x2aa   :  { %7088 = vmatmul.mubr.msk.bf16.gmra.mrb[252].mxu0 %vm11236_vm2, %v11066_v8  ;;  %v4313_v54 = vrot.slane %v4312_v22, 1  ;;  %v4323_v50 = vsel %vm11010_vm13, %v4225_v21, -inf  ;;  %v4224_v53 = vmax.f32 %v4160_v56, 0.0  ;;  %v3935_v31 = vrot.slane %v9380_v52, 2  ;;  %7212 = vmatprep.subr.bf16.mxu1 %v7507_v26 }
 0x2ab   :  { %7120 = vmatmul.mubr.msk.bf16.gmra.mrb[252].mxu1 %vm11236_vm2, %v11066_v8  ;;  %2712 = vmatprep.mubr.bf16.mxu0 %v11070_v41  ;;  %v4320_v4 = vmax.f32 %v4318_v1, %v4319_v46  ;;  %v4324_v15 = vmax.f32 %v4223_v61, %v4323_v50  ;;  %v3938_v36 = vrot.slane %v9386_v16, 2  ;;  %v3936_v7 = vrot.slane %v1986_v29, 2  ;;  %v9428_v21 = vpop.f32.mrb[148].mxu0  ;;  %v7509_v50 = vld [vmem:[%s10937_s6 + $0x70] sm:$0xff]  }
 0x2ac   :  { %v4314_v45 = vmax.f32 %v4312_v22, %v4313_v54  ;;  %v3939_v24 = vrot.slane %v9399_v5, 2  ;;  %v4331_v1 = vsel %vm11010_vm13, %v4226_v27, -inf  ;;  %v9432_v52 = vpop.f32.mrb[148].mxu1  ;;  %v9434_v61 = vpop.f32.mrb[149].mxu0  ;;  %vm11242_vm0 = vnez %v11013_v11 }
 0x2ad   :  { %v4321_v56 = vrot.slane %v4320_v4, 1  ;;  %v4325_v9 = vrot.slane %v4324_v15, 4  ;;  %11238 = vst [vmem:[#allocation72_spill] sm:$0xff] %v9432_v52  ;;  %7213 = vmatpush3.bf16.msra.mxu1 %v7508_v43  ;;  %v4332_v55 = vmax.f32 %v4224_v53, %v4331_v1  ;;  %v3937_v16 = vsel %vm11010_vm13, %v3935_v31, %v3936_v7  ;;  %v9438_v5 = vpop.f32.mrb[149].mxu1  ;;  %v1996_v54 = vpop.f32.mrb[150].mxu0 }
 0x2ae   :  { %v5860_v22 = vpack.c.bf16 %v4314_v45, %v4314_v45  ;;  %v4089_v29 = vadd.f32 %v3936_v7, %v8976_v57  ;;  %11239 = vst [vmem:[#allocation73_spill] sm:$0xff] %v9438_v5  ;;  %v4087_v46 = vadd.f32 %v3937_v16, %v8984_v0  ;;  %v3940_v52 = vsel %vm11010_vm13, %v3938_v36, %v3939_v24  ;;  %v9445_v43 = vpop.f32.mrb[150].mxu1  ;;  %v1998_v53 = vpop.f32.mrb[151].mxu0  ;;  %v7510_v57 = vld [vmem:[%s10937_s6 + $0x30] sm:$0xff]  }
 0x2af   :  { %v4322_v26 = vmax.f32 %v4320_v4, %v4321_v56  ;;  %v4326_v27 = vmax.f32 %v4324_v15, %v4325_v9  ;;  %11240 = vst [vmem:[#allocation74_spill] sm:$0xff] %v9445_v43  ;;  %v4333_v45 = vrot.slane %v4332_v55, 4  ;;  %v4088_v1 = vadd.f32 %v3940_v52, %v8986_v18  ;;  %v9452_v5 = vpop.f32.mrb[151].mxu1  ;;  %7214 = vmatprep.subr.bf16.mxu1 %v7509_v50  ;;  %v7511_v52 = vld [vmem:[%s10937_s6 + $0x78] sm:$0xff]  }
 0x2b0   :  { %v5956_v31 = vunpack.c.l.b16 %v5860_v22  ;;  %v4165_v7 = vadd.f32 %v9251_v3, %v4089_v29  ;;  %11241 = vst [vmem:[#allocation75_spill] sm:$0xff] %v9452_v5  ;;  %v4163_v4 = vadd.f32 %v9251_v3, %v4087_v46  ;;  %v4090_v15 = vadd.f32 %v3939_v24, %v8979_v33 }
 0x2b1   :  { %v5861_v9 = vpack.c.bf16 %v4322_v26, %v4322_v26  ;;  %v4327_v0 = vrot.slane %v4326_v27, 2  ;;  %7215 = vmatpush3.bf16.msra.mxu1 %v7510_v57  ;;  %vm11243_vm13 = vcmask 1042434   ;;  %v4334_v56 = vmax.f32 %v4332_v55, %v4333_v45 }
 0x2b2   :  { %7122 = vmatmul.mubr.msk.bf16.vlgmr.msra.gmra.mrb[0].mxu0 %vm11242_vm0, %v11066_v8  ;;  %v5987_v36 = vsel %vm11243_vm13, %v5956_v31, %v5985_v47  ;;  %v4229_v22 = vmax.f32 %v4165_v7, 0.0  ;;  %v4164_v18 = vadd.f32 %v9256_v19, %v4088_v1  ;;  %v4227_v24 = vmax.f32 %v4163_v4, 0.0  ;;  %v7512_v47 = vld [vmem:[%s10937_s6 + $0x38] sm:$0xff]   ;;  %7216 = vmatprep.subr.bf16.mxu1 %v7511_v52 }
 0x2b3   :  { %2722 = vmatprep.mubr.bf16.mxu0 %v11070_v41  ;;  %v9465_v46 = vunpack.c.l.b16 %v5861_v9  ;;  %v4328_v33 = vmax.f32 %v4326_v27, %v4327_v0  ;;  %v4166_v11 = vadd.f32 %v9256_v19, %v4090_v15  ;;  %v4335_v55 = vrot.slane %v4334_v56, 2  ;;  %v9473_v26 = vpop.f32.mrb[152].mxu0 }
 0x2b4   :  { %vm11244_vm13 = vcmask 1045504   ;;  %v4228_v29 = vmax.f32 %v4164_v18, 0.0  ;;  %v3944_v50 = vrot.slane %v9434_v61, 2  ;;  %v3942_v27 = vrot.slane %v1996_v54, 2  ;;  %v9475_v7 = vpop.f32.mrb[152].mxu1  ;;  %v9477_v1 = vpop.f32.mrb[153].mxu0 }
 0x2b5   :  { %v4339_v16 = vsel %vm11244_vm13, %v4229_v22, -inf  ;;  %v4329_v57 = vrot.slane %v4328_v33, 1  ;;  %v4230_v45 = vmax.f32 %v4166_v11, 0.0  ;;  %11245 = vst [vmem:[#allocation76_spill] sm:$0xff] %v9475_v7  ;;  %7217 = vmatpush3.bf16.msra.mxu1 %v7512_v47  ;;  %v4336_v9 = vmax.f32 %v4334_v56, %v4335_v55  ;;  %v9481_v22 = vpop.f32.mrb[153].mxu1  ;;  %v2006_v61 = vpop.f32.mrb[154].mxu0  ;;  %vm11247_vm0 = vmmov %vm11244_vm13 }
 0x2b6   :  { %v4340_v31 = vmax.f32 %v4227_v24, %v4339_v16  ;;  %v3945_v0 = vrot.slane %v1998_v53, 2  ;;  %v3947_v4 = vrot.slane %v9473_v26, 2  ;;  %11246 = vst [vmem:[#allocation77_spill] sm:$0xff] %v9481_v22  ;;  %v11248_v54 = vrot.slane %v9428_v21, 2  ;;  %vm11249_vm13 = vmmov %vm11247_vm0  ;;  %v9487_v16 = vpop.f32.mrb[154].mxu1  ;;  %v2008_v47 = vpop.f32.mrb[155].mxu0 }
 0x2b7   :  { %v4330_v18 = vmax.f32 %v4328_v33, %v4329_v57  ;;  %v4347_v24 = vsel %vm11247_vm0, %v4230_v45, -inf  ;;  %11250 = vst [vmem:[#allocation78_spill] sm:$0xff] %v9487_v16  ;;  %v4337_v56 = vrot.slane %v4336_v9, 1  ;;  %v4093_v26 = vadd.f32 %v3942_v27, %v9004_v37  ;;  %v9491_v15 = vpop.f32.mrb[155].mxu1  ;;  %vm11252_vm2 = vmmov %vm11247_vm0 }
 0x2b8   :  { %v4341_v52 = vrot.slane %v4340_v31, 4  ;;  %v3943_v11 = vsel %vm11249_vm13, %v11248_v54, %v3942_v27  ;;  %v4348_v53 = vmax.f32 %v4228_v29, %v4347_v24  ;;  %11251 = vst [vmem:[#allocation79_spill] sm:$0xff] %v9491_v15  ;;  %v3946_v57 = vsel %vm11252_vm2, %v3944_v50, %v3945_v0 }
 0x2b9   :  { %v4091_v55 = vadd.f32 %v3943_v11, %v9012_v49  ;;  %v5862_v22 = vpack.c.bf16 %v4330_v18, %v4330_v18  ;;  %v4094_v45 = vadd.f32 %v3945_v0, %v9007_v14  ;;  %vm11253_vm0 = vnez %v11137_v38 }
 0x2ba   :  { %v4342_v33 = vmax.f32 %v4340_v31, %v4341_v52  ;;  %7124 = vmatmul.mubr.msk.bf16.gmra.mrb[4].mxu0 %vm11253_vm0, %v11066_v8  ;;  %v4338_v21 = vmax.f32 %v4336_v9, %v4337_v56  ;;  %v4349_v54 = vrot.slane %v4348_v53, 4  ;;  %v4169_v49 = vadd.f32 %v9251_v3, %v4093_v26  ;;  %vm11258_vm0 = vmmov %vm11249_vm13 }
 0x2bb   :  { %v4167_v29 = vadd.f32 %v9251_v3, %v4091_v55  ;;  %2732 = vmatprep.mubr.bf16.mxu0 %v11070_v41  ;;  %v5958_v37 = vunpack.c.l.b16 %v5862_v22  ;;  %v4092_v31 = vadd.f32 %v3946_v57, %v9014_v20  ;;  %v4170_v50 = vadd.f32 %v9256_v19, %v4094_v45  ;;  %v9503_v38 = vpop.f32.mrb[156].mxu0 }
 0x2bc   :  { %v4343_v27 = vrot.slane %v4342_v33, 2  ;;  %v5863_v18 = vpack.c.bf16 %v4338_v21, %v4338_v21  ;;  %v4350_v14 = vmax.f32 %v4348_v53, %v4349_v54  ;;  %v4233_v52 = vmax.f32 %v4169_v49, 0.0  ;;  %v9507_v55 = vpop.f32.mrb[156].mxu1  ;;  %v9509_v22 = vpop.f32.mrb[157].mxu0 }
 0x2bd   :  { %v4231_v0 = vmax.f32 %v4167_v29, 0.0  ;;  %vm11254_vm2 = vcmask 1043459   ;;  %v4168_v11 = vadd.f32 %v9256_v19, %v4092_v31  ;;  %v4234_v56 = vmax.f32 %v4170_v50, 0.0  ;;  %11255 = vst [vmem:[#allocation80_spill] sm:$0xff] %v9507_v55  ;;  %v9514_v45 = vpop.f32.mrb[157].mxu1  ;;  %v9516_v21 = vpop.f32.mrb[158].mxu0 }
 0x2be   :  { %v5989_v9 = vsel %vm11254_vm2, %v5958_v37, %v5987_v36  ;;  %v4344_v24 = vmax.f32 %v4342_v33, %v4343_v27  ;;  %v9511_v26 = vunpack.c.l.b16 %v5863_v18  ;;  %v4351_v20 = vrot.slane %v4350_v14, 2  ;;  %11257 = vst [vmem:[#allocation82_spill] sm:$0xff] %v9514_v45  ;;  %v9519_v49 = vpop.f32.mrb[158].mxu1  ;;  %v9521_v37 = vpop.f32.mrb[159].mxu0  ;;  %vm11260_vm2 = vmmov %vm11258_vm0 }
 0x2bf   :  { %v4355_v57 = vsel %vm11249_vm13, %v4233_v52, -inf  ;;  %v3948_v53 = vrot.slane %v2006_v61, 2  ;;  %v4232_v33 = vmax.f32 %v4168_v11, 0.0  ;;  %v4363_v29 = vsel %vm11258_vm0, %v4234_v56, -inf  ;;  %11259 = vst [vmem:[#allocation83_spill] sm:$0xff] %v9519_v49  ;;  %v9525_v61 = vpop.f32.mrb[159].mxu1  ;;  %vm11263_vm13 = vmmov %vm11258_vm0 }
 0x2c0   :  { %11256 = vst [vmem:[#allocation81_spill] sm:$0xff] %v9511_v26  ;;  %v4345_v54 = vrot.slane %v4344_v24, 1  ;;  %v4356_v36 = vmax.f32 %v4231_v0, %v4355_v57  ;;  %v4352_v27 = vmax.f32 %v4350_v14, %v4351_v20  ;;  %v3951_v18 = vrot.slane %v2008_v47, 2  ;;  %11261 = vst [vmem:[#allocation84_spill] sm:$0xff] %v9525_v61  ;;  %v7513_v47 = vld [vmem:[%s10936_s5 + $0x40] sm:$0xff]  }
 0x2c1   :  { %v3949_v31 = vsel %vm11260_vm2, %v3947_v4, %v3948_v53  ;;  %v4097_v50 = vadd.f32 %v3948_v53, %v9043_v63  ;;  %v4364_v55 = vmax.f32 %v4232_v33, %v4363_v29  ;;  %v11262_v14 = vrot.slane %v9477_v1, 2  ;;  %7224 = vmatprep.subr.bf16.mxu1 %v7513_v47 }
 0x2c2   :  { %v4346_v52 = vmax.f32 %v4344_v24, %v4345_v54  ;;  %v4357_v45 = vrot.slane %v4356_v36, 4  ;;  %v4095_v0 = vadd.f32 %v3949_v31, %v9050_v13  ;;  %7126 = vmatmul.mubr.msk.bf16.gmra.mrb[8].mxu0 %vm7835_vm8, %v11066_v8  ;;  %v4353_v11 = vrot.slane %v4352_v27, 1  ;;  %vm11265_vm8 = vmmov %vm11258_vm0 }
 0x2c3   :  { %v4173_v56 = vadd.f32 %v9251_v3, %v4097_v50  ;;  %v3952_v4 = vsel %vm11263_vm13, %v11262_v14, %v3951_v18  ;;  %v4098_v63 = vadd.f32 %v3951_v18, %v9053_v30  ;;  %2742 = vmatprep.mubr.bf16.mxu0 %v11070_v41  ;;  %v4365_v20 = vrot.slane %v4364_v55, 4  ;;  %v9543_v33 = vpop.f32.mrb[160].mxu0  ;;  %vm11271_vm13 = vmmov %vm11260_vm2 }
 0x2c4   :  { %v5864_v13 = vpack.c.bf16 %v4346_v52, %v4346_v52  ;;  %v4358_v24 = vmax.f32 %v4356_v36, %v4357_v45  ;;  %v4171_v23 = vadd.f32 %v9251_v3, %v4095_v0  ;;  %v4354_v57 = vmax.f32 %v4352_v27, %v4353_v11  ;;  %v9545_v18 = vpop.f32.mrb[160].mxu1  ;;  %v9547_v52 = vpop.f32.mrb[161].mxu0 }
 0x2c5   :  { %v4237_v53 = vmax.f32 %v4173_v56, 0.0  ;;  %v4096_v54 = vadd.f32 %v3952_v4, %v9059_v48  ;;  %v4174_v1 = vadd.f32 %v9256_v19, %v4098_v63  ;;  %v4366_v31 = vmax.f32 %v4364_v55, %v4365_v20  ;;  %11264 = vst [vmem:[#allocation85_spill] sm:$0xff] %v9545_v18  ;;  %v9551_v48 = vpop.f32.mrb[161].mxu1  ;;  %v9553_v11 = vpop.f32.mrb[162].mxu0 }
 0x2c6   :  { %v5960_v30 = vunpack.c.l.b16 %v5864_v13  ;;  %v4359_v29 = vrot.slane %v4358_v24, 2  ;;  %v4235_v50 = vmax.f32 %v4171_v23, 0.0  ;;  %v5865_v45 = vpack.c.bf16 %v4354_v57, %v4354_v57  ;;  %11266 = vst [vmem:[#allocation86_spill] sm:$0xff] %v9551_v48  ;;  %v9556_v63 = vpop.f32.mrb[162].mxu1  ;;  %v9558_v47 = vpop.f32.mrb[163].mxu0 }
 0x2c7   :  { %v4371_v36 = vsel %vm11265_vm8, %v4237_v53, -inf  ;;  %v4172_v27 = vadd.f32 %v9256_v19, %v4096_v54  ;;  %v4238_v0 = vmax.f32 %v4174_v1, 0.0  ;;  %vm11267_vm0 = vcmask 1044484   ;;  %11268 = vst [vmem:[#allocation87_spill] sm:$0xff] %v9556_v63  ;;  %v9564_v53 = vpop.f32.mrb[163].mxu1 }
 0x2c8   :  { %v5991_v56 = vsel %vm11267_vm0, %v5960_v30, %v5989_v9  ;;  %v4360_v14 = vmax.f32 %v4358_v24, %v4359_v29  ;;  %v4367_v4 = vrot.slane %v4366_v31, 2  ;;  %v4372_v55 = vmax.f32 %v4235_v50, %v4371_v36  ;;  %11270 = vst [vmem:[#allocation89_spill] sm:$0xff] %v9564_v53  ;;  %vm11278_vm0 = vmmov %vm11260_vm2 }
 0x2c9   :  { %v9560_v13 = vunpack.c.l.b16 %v5865_v45  ;;  %v4236_v20 = vmax.f32 %v4172_v27, 0.0  ;;  %v4379_v23 = vsel %vm11260_vm2, %v4238_v0, -inf  ;;  %v3953_v57 = vrot.slane %v9503_v38, 2 }
 0x2ca   :  { %v4361_v54 = vrot.slane %v4360_v14, 1  ;;  %v4368_v1 = vmax.f32 %v4366_v31, %v4367_v4  ;;  %v4373_v48 = vrot.slane %v4372_v55, 4  ;;  %v3956_v9 = vrot.slane %v9509_v22, 2  ;;  %7128 = vmatmul.mubr.msk.bf16.gmra.mrb[12].mxu0 %vm7849_vm11, %v11066_v8  ;;  %vm11272_vm11 = vmmov %vm11260_vm2 }
 0x2cb   :  { %11269 = vst [vmem:[#allocation88_spill] sm:$0xff] %v9560_v13  ;;  %v4380_v24 = vmax.f32 %v4236_v20, %v4379_v23  ;;  %v3954_v30 = vrot.slane %v9516_v21, 2  ;;  %v3957_v29 = vrot.slane %v9521_v37, 2  ;;  %v3959_v50 = vrot.slane %v9543_v33, 2  ;;  %2752 = vmatprep.mubr.bf16.mxu0 %v11070_v41  ;;  %v9578_v4 = vpop.f32.mrb[164].mxu0  ;;  %vm11279_vm2 = vmmov %vm11278_vm0 }
 0x2cc   :  { %v4362_v38 = vmax.f32 %v4360_v14, %v4361_v54  ;;  %v4369_v45 = vrot.slane %v4368_v1, 1  ;;  %v4374_v36 = vmax.f32 %v4372_v55, %v4373_v48  ;;  %v3962_v31 = vrot.slane %v9547_v52, 2  ;;  %v9583_v14 = vpop.f32.mrb[164].mxu1  ;;  %v9585_v48 = vpop.f32.mrb[165].mxu0 }
 0x2cd   :  { %v4381_v27 = vrot.slane %v4380_v24, 4  ;;  %v3955_v22 = vsel %vm11271_vm13, %v3953_v57, %v3954_v30  ;;  %v4101_v42 = vadd.f32 %v3954_v30, %v9080_v44  ;;  %v3958_v0 = vsel %vm11272_vm11, %v3956_v9, %v3957_v29  ;;  %11273 = vst [vmem:[#allocation90_spill] sm:$0xff] %v9583_v14  ;;  %v9590_v57 = vpop.f32.mrb[165].mxu1  ;;  %v9592_v54 = vpop.f32.mrb[166].mxu0  ;;  %vm11280_vm13 = vmmov %vm11278_vm0 }
 0x2ce   :  { %v5866_v21 = vpack.c.bf16 %v4362_v38, %v4362_v38  ;;  %v9580_v37 = vmax.f32 %v4368_v1, %v4369_v45  ;;  %v4375_v33 = vrot.slane %v4374_v36, 2  ;;  %v4099_v20 = vadd.f32 %v3955_v22, %v9087_v62  ;;  %11274 = vst [vmem:[#allocation91_spill] sm:$0xff] %v9590_v57  ;;  %v9596_v38 = vpop.f32.mrb[166].mxu1  ;;  %v9598_v45 = vpop.f32.mrb[167].mxu0 }
 0x2cf   :  { %v4382_v52 = vmax.f32 %v4380_v24, %v4381_v27  ;;  %v4177_v55 = vadd.f32 %v9251_v3, %v4101_v42  ;;  %v4100_v23 = vadd.f32 %v3958_v0, %v9096_v58  ;;  %v4102_v44 = vadd.f32 %v3957_v29, %v9090_v51  ;;  %11275 = vst [vmem:[#allocation92_spill] sm:$0xff] %v9596_v38  ;;  %v9602_v29 = vpop.f32.mrb[167].mxu1  ;;  %v11321_v38 = vld [vmem:[#allocation35_spill] sm:$0xff] }
 0x2d0   :  { %v5962_v1 = vunpack.c.l.b16 %v5866_v21  ;;  %v4376_v9 = vmax.f32 %v4374_v36, %v4375_v33  ;;  %v4175_v30 = vadd.f32 %v9251_v3, %v4099_v20  ;;  %v3960_v62 = vrot.slane %v9553_v11, 2  ;;  %11276 = vst [vmem:[#allocation93_spill] sm:$0xff] %v9602_v29  ;;  %v11305_v29 = vld [vmem:[#allocation12_spill] sm:$0xff] }
 0x2d1   :  { %v4383_v24 = vrot.slane %v4382_v52, 2  ;;  %v4241_v27 = vmax.f32 %v4177_v55, 0.0  ;;  %v4176_v58 = vadd.f32 %v9256_v19, %v4100_v23  ;;  %v4178_v51 = vadd.f32 %v9256_v19, %v4102_v44 }
 0x2d2   :  { %vm11277_vm8 = vcmask 1045509   ;;  %v4377_v42 = vrot.slane %v4376_v9, 1  ;;  %v4239_v36 = vmax.f32 %v4175_v30, 0.0  ;;  %v3961_v0 = vsel %vm11278_vm0, %v3959_v50, %v3960_v62  ;;  %7130 = vmatmul.mubr.msk.bf16.gmra.mrb[16].mxu0 %vm11166_vm5, %v11066_v8  ;;  %vm11282_vm5 = vmmov %vm11278_vm0 }
 0x2d3   :  { %v5993_v22 = vsel %vm11277_vm8, %v5962_v1, %v5991_v56  ;;  %v9609_v11 = vmax.f32 %v4382_v52, %v4383_v24  ;;  %v4387_v21 = vsel %vm11279_vm2, %v4241_v27, -inf  ;;  %v4240_v33 = vmax.f32 %v4176_v58, 0.0  ;;  %2762 = vmatprep.mubr.bf16.mxu0 %v11070_v41  ;;  %v9619_v30 = vpop.f32.mrb[168].mxu0  ;;  %vm11289_vm8 = vmmov %vm11278_vm0 }
 0x2d4   :  { %v4242_v20 = vmax.f32 %v4178_v51, 0.0  ;;  %v4378_v55 = vmax.f32 %v4376_v9, %v4377_v42  ;;  %v4388_v23 = vmax.f32 %v4239_v36, %v4387_v21  ;;  %v4103_v56 = vadd.f32 %v3961_v0, %v9105_v32  ;;  %v9622_v51 = vpop.f32.mrb[168].mxu1  ;;  %v9624_v32 = vpop.f32.mrb[169].mxu0  ;;  %vm11291_vm2 = vmmov %vm11278_vm0 }
 0x2d5   :  { %v4105_v44 = vadd.f32 %v3960_v62, %v9100_v10  ;;  %v3963_v35 = vrot.slane %v9558_v47, 2  ;;  %v3965_v52 = vrot.slane %v9578_v4, 2  ;;  %11281 = vst [vmem:[#allocation94_spill] sm:$0xff] %v9622_v51  ;;  %v3968_v47 = vrot.slane %v9585_v48, 2  ;;  %v9630_v4 = vpop.f32.mrb[169].mxu1  ;;  %v9632_v36 = vpop.f32.mrb[170].mxu0 }
 0x2d6   :  { %v4395_v1 = vsel %vm11280_vm13, %v4242_v20, -inf  ;;  %v5868_v24 = vpack.c.bf16 %v4378_v55, %v4378_v55  ;;  %v4389_v27 = vrot.slane %v4388_v23, 4  ;;  %v4179_v9 = vadd.f32 %v9251_v3, %v4103_v56  ;;  %11283 = vst [vmem:[#allocation95_spill] sm:$0xff] %v9630_v4  ;;  %v9634_v55 = vpop.f32.mrb[170].mxu1  ;;  %v9636_v56 = vpop.f32.mrb[171].mxu0  ;;  %vm11301_vm13 = vmmov %vm11278_vm0 }
 0x2d7   :  { %v4396_v58 = vmax.f32 %v4240_v33, %v4395_v1  ;;  %v4181_v10 = vadd.f32 %v9251_v3, %v4105_v44  ;;  %v3964_v62 = vsel %vm11282_vm5, %v3962_v31, %v3963_v35  ;;  %v4106_v42 = vadd.f32 %v3963_v35, %v9108_v40  ;;  %11284 = vst [vmem:[#allocation96_spill] sm:$0xff] %v9634_v55  ;;  %v11285_v44 = vld [vmem:[#allocation27_spill] sm:$0xff]  ;;  %v9641_v48 = vpop.f32.mrb[171].mxu1  ;;  %vm11302_vm5 = vmmov %vm11278_vm0 }
 0x2d8   :  { %v5964_v0 = vunpack.c.l.b16 %v5868_v24  ;;  %v4390_v21 = vmax.f32 %v4388_v23, %v4389_v27  ;;  %v4243_v20 = vmax.f32 %v4179_v9, 0.0  ;;  %v4104_v50 = vadd.f32 %v3964_v62, %v11285_v44  ;;  %11286 = vst [vmem:[#allocation27_spill] sm:$0xff] %v9641_v48  ;;  %v11292_v48 = vld [vmem:[#allocation11_spill] sm:$0xff] }
 0x2d9   :  { %v4397_v33 = vrot.slane %v4396_v58, 4  ;;  %v4245_v1 = vmax.f32 %v4181_v10, 0.0  ;;  %v4182_v31 = vadd.f32 %v9256_v19, %v4106_v42  ;;  %v3966_v40 = vrot.slane %v9592_v54, 2 }
 0x2da   :  { %vm11287_vm11 = vcmask 1046534   ;;  %v4391_v4 = vrot.slane %v4390_v21, 2  ;;  %v3969_v23 = vrot.slane %v9598_v45, 2  ;;  %7132 = vmatmul.mubr.msk.bf16.gmra.mrb[20].mxu0 %vm7877_vm1, %v11066_v8  ;;  %v4180_v10 = vadd.f32 %v9256_v19, %v4104_v50  ;;  %vm11293_vm1 = vmmov %vm11278_vm0 }
 0x2db   :  { %v5995_v35 = vsel %vm11287_vm11, %v5964_v0, %v5993_v22  ;;  %v4398_v24 = vmax.f32 %v4396_v58, %v4397_v33  ;;  %v4403_v9 = vsel %vm11289_vm8, %v4245_v1, -inf  ;;  %v4246_v62 = vmax.f32 %v4182_v31, 0.0  ;;  %2772 = vmatprep.mubr.bf16.mxu0 %v11070_v41  ;;  %v11290_v0 = vld [vmem:[#allocation28_spill] sm:$0xff]  ;;  %v9656_v1 = vpop.f32.mrb[172].mxu0  ;;  %vm11303_vm11 = vmmov %vm11278_vm0 }
 0x2dc   :  { %v3967_v42 = vsel %vm11278_vm0, %v3965_v52, %v3966_v40  ;;  %v4392_v54 = vmax.f32 %v4390_v21, %v4391_v4  ;;  %v4404_v22 = vmax.f32 %v4243_v20, %v4403_v9  ;;  %v4244_v33 = vmax.f32 %v4180_v10, 0.0  ;;  %v9661_v4 = vpop.f32.mrb[172].mxu1  ;;  %v9663_v21 = vpop.f32.mrb[173].mxu0  ;;  %v11295_v10 = vld [vmem:[#allocation31_spill] sm:$0xff]  ;;  %vm11310_vm8 = vmmov %vm11278_vm0 }
 0x2dd   :  { %v4399_v44 = vrot.slane %v4398_v24, 2  ;;  %v4107_v58 = vadd.f32 %v3967_v42, %v11290_v0  ;;  %v4411_v45 = vsel %vm11291_vm2, %v4246_v62, -inf  ;;  %v4109_v27 = vadd.f32 %v3966_v40, %v11292_v48  ;;  %11294 = vst [vmem:[#allocation15_spill] sm:$0xff] %v9661_v4  ;;  %v11296_v40 = vld [vmem:[#allocation30_spill] sm:$0xff]  ;;  %v9670_v42 = vpop.f32.mrb[174].mxu0  ;;  %vm11320_vm2 = vmmov %vm11278_vm0 }
 0x2de   :  { %v3970_v51 = vsel %vm11293_vm1, %v3968_v47, %v3969_v23  ;;  %v4393_v50 = vrot.slane %v4392_v54, 1  ;;  %v4405_v52 = vrot.slane %v4404_v22, 4  ;;  %v4412_v20 = vmax.f32 %v4244_v33, %v4411_v45  ;;  %v9668_v47 = vpop.f32.mrb[173].mxu1  ;;  %v9675_v4 = vpop.f32.mrb[175].mxu0  ;;  %vm11322_vm1 = vmmov %vm11278_vm0 }
 0x2df   :  { %v9658_v31 = vmax.f32 %v4398_v24, %v4399_v44  ;;  %v4183_v55 = vadd.f32 %v9251_v3, %v4107_v58  ;;  %v4185_v9 = vadd.f32 %v9251_v3, %v4109_v27  ;;  %v4108_v62 = vadd.f32 %v3970_v51, %v11295_v10  ;;  %11297 = vst [vmem:[#allocation28_spill] sm:$0xff] %v9668_v47  ;;  %v9673_v57 = vpop.f32.mrb[174].mxu1 }
 0x2e0   :  { %v4110_v48 = vadd.f32 %v3969_v23, %v11296_v40  ;;  %v4394_v24 = vmax.f32 %v4392_v54, %v4393_v50  ;;  %v4406_v44 = vmax.f32 %v4404_v22, %v4405_v52  ;;  %v3971_v58 = vrot.slane %v9619_v30, 2  ;;  %11298 = vst [vmem:[#allocation11_spill] sm:$0xff] %v9673_v57  ;;  %v9679_v23 = vpop.f32.mrb[175].mxu1 }
 0x2e1   :  { %v4247_v0 = vmax.f32 %v4183_v55, 0.0  ;;  %v4413_v33 = vrot.slane %v4412_v20, 4  ;;  %v4249_v45 = vmax.f32 %v4185_v9, 0.0  ;;  %v4184_v27 = vadd.f32 %v9256_v19, %v4108_v62  ;;  %11299 = vst [vmem:[#allocation31_spill] sm:$0xff] %v9679_v23 }
 0x2e2   :  { %v4186_v51 = vadd.f32 %v9256_v19, %v4110_v48  ;;  %v5870_v10 = vpack.c.bf16 %v4394_v24, %v4394_v24  ;;  %v4407_v40 = vrot.slane %v4406_v44, 2  ;;  %v3974_v54 = vrot.slane %v9624_v32, 2  ;;  %7134 = vmatmul.mubr.msk.bf16.gmra.mrb[24].mxu0 %vm7891_vm6, %v11066_v8 }
 0x2e3   :  { %v3972_v55 = vrot.slane %v9632_v36, 2  ;;  %v4414_v22 = vmax.f32 %v4412_v20, %v4413_v33  ;;  %v4419_v50 = vsel %vm11301_vm13, %v4249_v45, -inf  ;;  %v4248_v52 = vmax.f32 %v4184_v27, 0.0  ;;  %2782 = vmatprep.mubr.bf16.mxu0 %v11070_v41  ;;  %v11304_v36 = vld [vmem:[#allocation13_spill] sm:$0xff]  ;;  %vm11330_vm13 = vmmov %vm11278_vm0 }
 0x2e4   :  { %v4250_v9 = vmax.f32 %v4186_v51, 0.0  ;;  %v5966_v62 = vunpack.c.l.b16 %v5870_v10  ;;  %v4408_v48 = vmax.f32 %v4406_v44, %v4407_v40  ;;  %v4420_v47 = vmax.f32 %v4247_v0, %v4419_v50 }
 0x2e5   :  { %v3973_v24 = vsel %vm11302_vm5, %v3971_v58, %v3972_v55  ;;  %v4415_v23 = vrot.slane %v4414_v22, 2  ;;  %v4113_v30 = vadd.f32 %v3972_v55, %v11305_v29  ;;  %v9692_v14 = vpop.f32.mrb[176].mxu0  ;;  %vm11306_vm6 = vcmask 1047559   ;;  %v9697_v51 = vpop.f32.mrb[176].mxu1  ;;  %vm11331_vm5 = vmmov %vm11278_vm0 }
 0x2e6   :  { %v4427_v32 = vsel %vm11303_vm11, %v4250_v9, -inf  ;;  %v4111_v57 = vadd.f32 %v3973_v24, %v11304_v36  ;;  %v9695_v20 = vsel %vm11306_vm6, %v5966_v62, %v5995_v35  ;;  %v4409_v33 = vrot.slane %v4408_v48, 1  ;;  %11307 = vst [vmem:[#allocation30_spill] sm:$0xff] %v9697_v51  ;;  %v9699_v44 = vpop.f32.mrb[177].mxu0  ;;  %v9704_v29 = vpop.f32.mrb[177].mxu1  ;;  %v11312_v51 = vld [vmem:[#allocation34_spill] sm:$0xff]  ;;  %vm11336_vm11 = vmmov %vm11278_vm0 }
 0x2e7   :  { %v4421_v45 = vrot.slane %v4420_v47, 4  ;;  %v4428_v27 = vmax.f32 %v4248_v52, %v4427_v32  ;;  %v4416_v0 = vmax.f32 %v4414_v22, %v4415_v23  ;;  %v4189_v10 = vadd.f32 %v9251_v3, %v4113_v30  ;;  %11308 = vst [vmem:[#allocation16_spill] sm:$0xff] %v9704_v29  ;;  %v9706_v55 = vpop.f32.mrb[178].mxu0  ;;  %v9709_v62 = vpop.f32.mrb[178].mxu1  ;;  %vm11338_vm6 = vmmov %vm11278_vm0 }
 0x2e8   :  { %v4187_v58 = vadd.f32 %v9251_v3, %v4111_v57  ;;  %v3975_v40 = vrot.slane %v9636_v56, 2  ;;  %v4410_v35 = vmax.f32 %v4408_v48, %v4409_v33  ;;  %v3977_v52 = vrot.slane %v9656_v1, 2  ;;  %11309 = vst [vmem:[#allocation13_spill] sm:$0xff] %v9709_v62  ;;  %v9711_v24 = vpop.f32.mrb[179].mxu0  ;;  %v9714_v36 = vpop.f32.mrb[179].mxu1 }
 0x2e9   :  { %v4422_v50 = vmax.f32 %v4420_v47, %v4421_v45  ;;  %v4429_v9 = vrot.slane %v4428_v27, 4  ;;  %v4417_v23 = vrot.slane %v4416_v0, 1  ;;  %v4253_v57 = vmax.f32 %v4189_v10, 0.0  ;;  %11311 = vst [vmem:[#allocation12_spill] sm:$0xff] %v9714_v36  ;;  %v11314_v45 = vld [vmem:[#allocation14_spill] sm:$0xff] }
 0x2ea   :  { %v4251_v22 = vmax.f32 %v4187_v58, 0.0  ;;  %v3976_v32 = vsel %vm11310_vm8, %v3974_v54, %v3975_v40  ;;  %v5872_v56 = vpack.c.bf16 %v4410_v35, %v4410_v35  ;;  %7136 = vmatmul.mubr.msk.bf16.gmra.mrb[28].mxu0 %vm7905_vm10, %v11066_v8  ;;  %v4114_v62 = vadd.f32 %v3975_v40, %v11314_v45  ;;  %vm11316_vm10 = vmmov %vm11278_vm0  ;;  %v11318_v45 = vld [vmem:[#allocation36_spill] sm:$0xff] }
 0x2eb   :  { %v4423_v30 = vrot.slane %v4422_v50, 2  ;;  %v4430_v29 = vmax.f32 %v4428_v27, %v4429_v9  ;;  %v4112_v48 = vadd.f32 %v3976_v32, %v11312_v51  ;;  %v4418_v1 = vmax.f32 %v4416_v0, %v4417_v23  ;;  %2792 = vmatprep.mubr.bf16.mxu0 %v11070_v41  ;;  %vm11346_vm8 = vmmov %vm11278_vm0 }
 0x2ec   :  { %v4435_v33 = vsel %vm11278_vm0, %v4253_v57, -inf  ;;  %v3980_v58 = vrot.slane %v9663_v21, 2  ;;  %v5968_v54 = vunpack.c.l.b16 %v5872_v56  ;;  %v4190_v9 = vadd.f32 %v9256_v19, %v4114_v62 }
 0x2ed   :  { %v4424_v10 = vmax.f32 %v4422_v50, %v4423_v30  ;;  %v4431_v35 = vrot.slane %v4430_v29, 2  ;;  %v4436_v36 = vmax.f32 %v4251_v22, %v4435_v33  ;;  %v5873_v27 = vpack.c.bf16 %v4418_v1, %v4418_v1  ;;  %v9727_v0 = vpop.f32.mrb[180].mxu0  ;;  %v9730_v47 = vpop.f32.mrb[180].mxu1 }
 0x2ee   :  { %v4188_v51 = vadd.f32 %v9256_v19, %v4112_v48  ;;  %v3978_v32 = vrot.slane %v9670_v42, 2  ;;  %v3981_v21 = vrot.slane %v9675_v4, 2  ;;  %11315 = vst [vmem:[#allocation34_spill] sm:$0xff] %v9730_v47  ;;  %v9732_v56 = vpop.f32.mrb[181].mxu0  ;;  %v4254_v30 = vmax.f32 %v4190_v9, 0.0  ;;  %v9737_v62 = vpop.f32.mrb[181].mxu1 }
 0x2ef   :  { %v4425_v23 = vrot.slane %v4424_v10, 1  ;;  %v4432_v57 = vmax.f32 %v4430_v29, %v4431_v35  ;;  %v4437_v40 = vrot.slane %v4436_v36, 4  ;;  %v9734_v50 = vunpack.c.l.b16 %v5873_v27  ;;  %11317 = vst [vmem:[#allocation17_spill] sm:$0xff] %v9737_v62  ;;  %v9739_v42 = vpop.f32.mrb[182].mxu0  ;;  %v9742_v4 = vpop.f32.mrb[182].mxu1 }
 0x2f0   :  { %v4252_v22 = vmax.f32 %v4188_v51, 0.0  ;;  %v3979_v48 = vsel %vm11316_vm10, %v3977_v52, %v3978_v32  ;;  %11319 = vst [vmem:[#allocation14_spill] sm:$0xff] %v9742_v4  ;;  %v9744_v47 = vpop.f32.mrb[183].mxu0  ;;  %v4443_v27 = vsel %vm11320_vm2, %v4254_v30, -inf  ;;  %v4117_v51 = vadd.f32 %v3978_v32, %v11321_v38  ;;  %v11323_v52 = vld [vmem:[#allocation37_spill] sm:$0xff]  ;;  %v9750_v62 = vpop.f32.mrb[183].mxu1  ;;  %vm11349_vm10 = vmmov %vm11278_vm0 }
 0x2f1   :  { %v4426_v1 = vmax.f32 %v4424_v10, %v4425_v23  ;;  %v4433_v33 = vrot.slane %v4432_v57, 1  ;;  %v4438_v29 = vmax.f32 %v4436_v36, %v4437_v40  ;;  %v4115_v35 = vadd.f32 %v3979_v48, %v11318_v45  ;;  %11324 = vst [vmem:[#allocation36_spill] sm:$0xff] %v9750_v62  ;;  %v11326_v45 = vld [vmem:[#allocation38_spill] sm:$0xff]  ;;  %v11341_v4 = vld [vmem:[#allocation41_spill] sm:$0xff]  ;;  %vm11356_vm2 = vmmov %vm11278_vm0 }
 0x2f2   :  { %v3982_v9 = vsel %vm11322_vm1, %v3980_v58, %v3981_v21  ;;  %v4118_v53 = vadd.f32 %v3981_v21, %v11323_v52  ;;  %v4444_v36 = vmax.f32 %v4252_v22, %v4443_v27  ;;  %7138 = vmatmul.mubr.msk.bf16.gmra.mrb[32].mxu0 %vm7919_vm15, %v11066_v8  ;;  %v4193_v30 = vadd.f32 %v9251_v3, %v4117_v51 }
 0x2f3   :  { %v5874_v18 = vpack.c.bf16 %v4426_v1, %v4426_v1  ;;  %v4434_v10 = vmax.f32 %v4432_v57, %v4433_v33  ;;  %v4439_v23 = vrot.slane %v4438_v29, 2  ;;  %v4191_v48 = vadd.f32 %v9251_v3, %v4115_v35  ;;  %2802 = vmatprep.mubr.bf16.mxu0 %v11070_v41 }
 0x2f4   :  { %v4116_v38 = vadd.f32 %v3982_v9, %v11326_v45  ;;  %v4194_v58 = vadd.f32 %v9256_v19, %v4118_v53  ;;  %v4445_v57 = vrot.slane %v4444_v36, 4  ;;  %v4257_v22 = vmax.f32 %v4193_v30, 0.0 }
 0x2f5   :  { %v5970_v32 = vunpack.c.l.b16 %v5874_v18  ;;  %v5875_v21 = vpack.c.bf16 %v4434_v10, %v4434_v10  ;;  %v4440_v1 = vmax.f32 %v4438_v29, %v4439_v23  ;;  %v4255_v33 = vmax.f32 %v4191_v48, 0.0  ;;  %v9761_v40 = vpop.f32.mrb[184].mxu0  ;;  %v9766_v53 = vpop.f32.mrb[184].mxu1 }
 0x2f6   :  { %v4192_v27 = vadd.f32 %v9256_v19, %v4116_v38  ;;  %v4258_v52 = vmax.f32 %v4194_v58, 0.0  ;;  %vm11327_vm15 = vcmask 1041409   ;;  %v4446_v45 = vmax.f32 %v4444_v36, %v4445_v57  ;;  %11329 = vst [vmem:[#allocation37_spill] sm:$0xff] %v9766_v53  ;;  %v9768_v62 = vpop.f32.mrb[185].mxu0  ;;  %v9773_v48 = vpop.f32.mrb[185].mxu1 }
 0x2f7   :  { %v6005_v35 = vsel %vm11327_vm15, %v5970_v32, %v5968_v54  ;;  %v9764_v51 = vunpack.c.l.b16 %v5875_v21  ;;  %v4441_v9 = vrot.slane %v4440_v1, 1  ;;  %v4451_v18 = vsel %vm11330_vm13, %v4257_v22, -inf  ;;  %11332 = vst [vmem:[#allocation18_spill] sm:$0xff] %v9773_v48  ;;  %v9775_v30 = vpop.f32.mrb[186].mxu0  ;;  %v9778_v32 = vpop.f32.mrb[186].mxu1  ;;  %vm11359_vm15 = vmmov %vm11278_vm0 }
 0x2f8   :  { %v4256_v29 = vmax.f32 %v4192_v27, 0.0  ;;  %v4459_v10 = vsel %vm11331_vm5, %v4258_v52, -inf  ;;  %v3983_v23 = vrot.slane %v9692_v14, 2  ;;  %v4447_v38 = vrot.slane %v4446_v45, 2  ;;  %11333 = vst [vmem:[#allocation38_spill] sm:$0xff] %v9778_v32  ;;  %v9780_v21 = vpop.f32.mrb[187].mxu0  ;;  %vm11363_vm13 = vmmov %vm11278_vm0 }
 0x2f9   :  { %11328 = vst [vmem:[#allocation35_spill] sm:$0xff] %v9764_v51  ;;  %v4442_v54 = vmax.f32 %v4440_v1, %v4441_v9  ;;  %v4452_v58 = vmax.f32 %v4255_v33, %v4451_v18  ;;  %v3986_v36 = vrot.slane %v9699_v44, 2  ;;  %v3984_v22 = vrot.slane %v9706_v55, 2  ;;  %v9785_v52 = vpop.f32.mrb[187].mxu1  ;;  %v11340_v32 = vld [vmem:[#allocation42_spill] sm:$0xff]  ;;  %vm11367_vm5 = vmmov %vm11278_vm0 }
 0x2fa   :  { %v4460_v57 = vmax.f32 %v4256_v29, %v4459_v10  ;;  %v3987_v27 = vrot.slane %v9711_v24, 2  ;;  %v3989_v14 = vrot.slane %v9727_v0, 2  ;;  %11334 = vst [vmem:[#allocation97_spill] sm:$0xff] %v9785_v52  ;;  %v4448_v53 = vmax.f32 %v4446_v45, %v4447_v38  ;;  %7140 = vmatmul.mubr.msk.bf16.gmra.mrb[36].mxu0 %vm7933_vm4, %v11066_v8  ;;  %v11337_v29 = vld [vmem:[#allocation39_spill] sm:$0xff]  ;;  %v11339_v45 = vld [vmem:[#allocation40_spill] sm:$0xff] }
 0x2fb   :  { %v5876_v48 = vpack.c.bf16 %v4442_v54, %v4442_v54  ;;  %v4453_v1 = vrot.slane %v4452_v58, 4  ;;  %v3992_v33 = vrot.slane %v9732_v56, 2  ;;  %v3985_v18 = vsel %vm11336_vm11, %v3983_v23, %v3984_v22  ;;  %2812 = vmatprep.mubr.bf16.mxu0 %v11070_v41 }
 0x2fc   :  { %v4461_v9 = vrot.slane %v4460_v57, 4  ;;  %v4121_v55 = vadd.f32 %v3984_v22, %v11337_v29  ;;  %v3988_v24 = vsel %vm11338_vm6, %v3986_v36, %v3987_v27  ;;  %v4449_v10 = vrot.slane %v4448_v53, 1  ;;  %vm11370_vm6 = vmmov %vm11278_vm0 }
 0x2fd   :  { %v5972_v0 = vunpack.c.l.b16 %v5876_v48  ;;  %v4454_v54 = vmax.f32 %v4452_v58, %v4453_v1  ;;  %v4119_v38 = vadd.f32 %v3985_v18, %v11339_v45  ;;  %v4120_v44 = vadd.f32 %v3988_v24, %v11340_v32  ;;  %v9799_v61 = vpop.f32.mrb[188].mxu0  ;;  %v9805_v29 = vpop.f32.mrb[188].mxu1 }
 0x2fe   :  { %v4462_v52 = vmax.f32 %v4460_v57, %v4461_v9  ;;  %v4197_v56 = vadd.f32 %v9251_v3, %v4121_v55  ;;  %v4122_v63 = vadd.f32 %v3987_v27, %v11341_v4  ;;  %vm11342_vm4 = vcmask 1042434   ;;  %11343 = vst [vmem:[#allocation19_spill] sm:$0xff] %v9805_v29  ;;  %v9807_v58 = vpop.f32.mrb[189].mxu0  ;;  %v9811_v4 = vpop.f32.mrb[189].mxu1 }
 0x2ff   :  { %v9802_v23 = vsel %vm11342_vm4, %v5972_v0, %v6005_v35  ;;  %v4450_v36 = vmax.f32 %v4448_v53, %v4449_v10  ;;  %v4455_v22 = vrot.slane %v4454_v54, 2  ;;  %v4195_v48 = vadd.f32 %v9251_v3, %v4119_v38  ;;  %11344 = vst [vmem:[#allocation39_spill] sm:$0xff] %v9811_v4  ;;  %v9813_v27 = vpop.f32.mrb[190].mxu0  ;;  %v9816_v24 = vpop.f32.mrb[190].mxu1  ;;  %vm11374_vm4 = vmmov %vm11278_vm0 }
 0x300   :  { %v4463_v57 = vrot.slane %v4462_v52, 2  ;;  %v4261_v1 = vmax.f32 %v4197_v56, 0.0  ;;  %v4196_v9 = vadd.f32 %v9256_v19, %v4120_v44  ;;  %v4198_v32 = vadd.f32 %v9256_v19, %v4122_v63  ;;  %11345 = vst [vmem:[#allocation40_spill] sm:$0xff] %v9816_v24  ;;  %v9818_v0 = vpop.f32.mrb[191].mxu0  ;;  %v9821_v44 = vpop.f32.mrb[191].mxu1 }
 0x301   :  { %v5877_v35 = vpack.c.bf16 %v4450_v36, %v4450_v36  ;;  %v4456_v18 = vmax.f32 %v4454_v54, %v4455_v22  ;;  %v4259_v53 = vmax.f32 %v4195_v48, 0.0  ;;  %v3990_v55 = vrot.slane %v9739_v42, 2  ;;  %11347 = vst [vmem:[#allocation42_spill] sm:$0xff] %v9821_v44  ;;  %v11351_v48 = vld [vmem:[#allocation43_spill] sm:$0xff] }
 0x302   :  { %v4464_v10 = vmax.f32 %v4462_v52, %v4463_v57  ;;  %v4467_v45 = vsel %vm11346_vm8, %v4261_v1, -inf  ;;  %v4260_v38 = vmax.f32 %v4196_v9, 0.0  ;;  %v4262_v56 = vmax.f32 %v4198_v32, 0.0  ;;  %7142 = vmatmul.mubr.msk.bf16.gmra.mrb[40].mxu0 %vm7947_vm12, %v11066_v8  ;;  %v11350_v52 = vld [vmem:[#allocation44_spill] sm:$0xff]  ;;  %vm11352_vm12 = vmmov %vm11278_vm0 }
 0x303   :  { %v9823_v63 = vunpack.c.l.b16 %v5877_v35  ;;  %v4457_v4 = vrot.slane %v4456_v18, 1  ;;  %v4468_v29 = vmax.f32 %v4259_v53, %v4467_v45  ;;  %v3991_v54 = vsel %vm11278_vm0, %v3989_v14, %v3990_v55  ;;  %2822 = vmatprep.mubr.bf16.mxu0 %v11070_v41 }
 0x304   :  { %v4465_v42 = vrot.slane %v4464_v10, 1  ;;  %v4475_v36 = vsel %vm11349_vm10, %v4262_v56, -inf  ;;  %v4123_v22 = vadd.f32 %v3991_v54, %v11350_v52  ;;  %v4125_v57 = vadd.f32 %v3990_v55, %v11351_v48 }
 0x305   :  { %11348 = vst [vmem:[#allocation41_spill] sm:$0xff] %v9823_v63  ;;  %v4458_v1 = vmax.f32 %v4456_v18, %v4457_v4  ;;  %v4469_v9 = vrot.slane %v4468_v29, 4  ;;  %v4476_v32 = vmax.f32 %v4260_v38, %v4475_v36  ;;  %v3993_v35 = vrot.slane %v9744_v47, 2  ;;  %v9837_v44 = vpop.f32.mrb[192].mxu0  ;;  %v9840_v48 = vpop.f32.mrb[192].mxu1  ;;  %v11353_v38 = vld [vmem:[#allocation46_spill] sm:$0xff] }
 0x306   :  { %v4466_v53 = vmax.f32 %v4464_v10, %v4465_v42  ;;  %v4199_v14 = vadd.f32 %v9251_v3, %v4123_v22  ;;  %v4201_v59 = vadd.f32 %v9251_v3, %v4125_v57  ;;  %v3995_v45 = vrot.slane %v9761_v40, 2  ;;  %v9842_v4 = vpop.f32.mrb[193].mxu0  ;;  %v9845_v36 = vpop.f32.mrb[193].mxu1 }
 0x307   :  { %v5878_v56 = vpack.c.bf16 %v4458_v1, %v4458_v1  ;;  %v4470_v54 = vmax.f32 %v4468_v29, %v4469_v9  ;;  %v4477_v52 = vrot.slane %v4476_v32, 4  ;;  %v3994_v55 = vsel %vm11352_vm12, %v3992_v33, %v3993_v35  ;;  %v9847_v22 = vpop.f32.mrb[194].mxu0  ;;  %v11354_v29 = vld [vmem:[#allocation45_spill] sm:$0xff]  ;;  %v9850_v24 = vpop.f32.mrb[194].mxu1  ;;  %vm11382_vm12 = vmmov %vm11278_vm0 }
 0x308   :  { %v5879_v18 = vpack.c.bf16 %v4466_v53, %v4466_v53  ;;  %v4263_v47 = vmax.f32 %v4199_v14, 0.0  ;;  %v4265_v10 = vmax.f32 %v4201_v59, 0.0  ;;  %v4124_v42 = vadd.f32 %v3994_v55, %v11353_v38  ;;  %v9852_v33 = vpop.f32.mrb[195].mxu0  ;;  %v9859_v55 = vpop.f32.mrb[195].mxu1 }
 0x309   :  { %v5974_v40 = vunpack.c.l.b16 %v5878_v56  ;;  %v4471_v57 = vrot.slane %v4470_v54, 2  ;;  %v4478_v1 = vmax.f32 %v4476_v32, %v4477_v52  ;;  %v4126_v9 = vadd.f32 %v3993_v35, %v11354_v29 }
 0x30a   :  { %v9854_v49 = vunpack.c.l.b16 %v5879_v18  ;;  %v4483_v53 = vsel %vm11356_vm2, %v4265_v10, -inf  ;;  %v4200_v14 = vadd.f32 %v9256_v19, %v4124_v42  ;;  %v3998_v59 = vrot.slane %v9768_v62, 2  ;;  %7144 = vmatmul.mubr.msk.bf16.gmra.mrb[44].mxu0 %vm7961_vm3, %v11066_v8  ;;  %vm11361_vm3 = vmmov %vm11278_vm0 }
 0x30b   :  { %vm11357_vm1 = vcmask 1043459   ;;  %v4472_v32 = vmax.f32 %v4470_v54, %v4471_v57  ;;  %v4479_v52 = vrot.slane %v4478_v1, 2  ;;  %v4484_v35 = vmax.f32 %v4263_v47, %v4483_v53  ;;  %2832 = vmatprep.mubr.bf16.mxu0 %v11070_v41 }
 0x30c   :  { %11355 = vst [vmem:[#allocation44_spill] sm:$0xff] %v9854_v49  ;;  %v6007_v56 = vsel %vm11357_vm1, %v5974_v40, %v9802_v23  ;;  %v4202_v18 = vadd.f32 %v9256_v19, %v4126_v9  ;;  %v4264_v29 = vmax.f32 %v4200_v14, 0.0  ;;  %v3996_v10 = vrot.slane %v9775_v30, 2  ;;  %v11360_v40 = vld [vmem:[#allocation47_spill] sm:$0xff] }
 0x30d   :  { %v3999_v42 = vrot.slane %v9780_v21, 2  ;;  %v4473_v62 = vrot.slane %v4472_v32, 1  ;;  %v4480_v15 = vmax.f32 %v4478_v1, %v4479_v52  ;;  %v4485_v7 = vrot.slane %v4484_v35, 4  ;;  %v9874_v9 = vpop.f32.mrb[196].mxu0  ;;  %v11362_v21 = vld [vmem:[#allocation48_spill] sm:$0xff]  ;;  %v9877_v5 = vpop.f32.mrb[196].mxu1 }
 0x30e   :  { %v4001_v23 = vrot.slane %v9799_v61, 2  ;;  %v4266_v54 = vmax.f32 %v4202_v18, 0.0  ;;  %v3997_v47 = vsel %vm11359_vm15, %v3995_v45, %v3996_v10  ;;  %v4129_v57 = vadd.f32 %v3996_v10, %v11360_v40  ;;  %v9879_v1 = vpop.f32.mrb[197].mxu0  ;;  %v11364_v45 = vld [vmem:[#allocation50_spill] sm:$0xff]  ;;  %v11365_v10 = vld [vmem:[#allocation49_spill] sm:$0xff] }
 0x30f   :  { %v4000_v53 = vsel %vm11361_vm3, %v3998_v59, %v3999_v42  ;;  %v4474_v14 = vmax.f32 %v4472_v32, %v4473_v62  ;;  %v4481_v30 = vrot.slane %v4480_v15, 1  ;;  %v4486_v38 = vmax.f32 %v4484_v35, %v4485_v7  ;;  %v9885_v59 = vpop.f32.mrb[197].mxu1  ;;  %v9887_v43 = vpop.f32.mrb[198].mxu0  ;;  %vm11391_vm3 = vmmov %vm11278_vm0 }
 0x310   :  { %v4127_v16 = vadd.f32 %v3997_v47, %v11362_v21  ;;  %v4491_v61 = vsel %vm11363_vm13, %v4266_v54, -inf  ;;  %v4205_v52 = vadd.f32 %v9251_v3, %v4129_v57  ;;  %v4128_v18 = vadd.f32 %v4000_v53, %v11364_v45  ;;  %v9889_v47 = vpop.f32.mrb[198].mxu1  ;;  %v9891_v21 = vpop.f32.mrb[199].mxu0 }
 0x311   :  { %v4130_v40 = vadd.f32 %v3999_v42, %v11365_v10  ;;  %v5880_v32 = vpack.c.bf16 %v4474_v14, %v4474_v14  ;;  %v4482_v7 = vmax.f32 %v4480_v15, %v4481_v30  ;;  %v4487_v35 = vrot.slane %v4486_v38, 2  ;;  %v9896_v42 = vpop.f32.mrb[199].mxu1 }
 0x312   :  { %v4492_v62 = vmax.f32 %v4264_v29, %v4491_v61  ;;  %v4203_v54 = vadd.f32 %v9251_v3, %v4127_v16  ;;  %v4269_v12 = vmax.f32 %v4205_v52, 0.0  ;;  %v4204_v57 = vadd.f32 %v9256_v19, %v4128_v18  ;;  %7146 = vmatmul.mubr.msk.bf16.gmra.mrb[48].mxu0 %vm11106_vm14, %v11066_v8  ;;  %vm11371_vm14 = vmmov %vm11278_vm0 }
 0x313   :  { %v4206_v53 = vadd.f32 %v9256_v19, %v4130_v40  ;;  %v5976_v45 = vunpack.c.l.b16 %v5880_v32  ;;  %v5881_v10 = vpack.c.bf16 %v4482_v7, %v4482_v7  ;;  %v4488_v2 = vmax.f32 %v4486_v38, %v4487_v35  ;;  %2842 = vmatprep.mubr.bf16.mxu0 %v11070_v41 }
 0x314   :  { %v4493_v14 = vrot.slane %v4492_v62, 4  ;;  %v4267_v29 = vmax.f32 %v4203_v54, 0.0  ;;  %v4499_v30 = vsel %vm11367_vm5, %v4269_v12, -inf  ;;  %v4268_v61 = vmax.f32 %v4204_v57, 0.0 }
 0x315   :  { %v4270_v16 = vmax.f32 %v4206_v53, 0.0  ;;  %vm11368_vm11 = vcmask 1044484   ;;  %v9904_v18 = vunpack.c.l.b16 %v5881_v10  ;;  %v4489_v40 = vrot.slane %v4488_v2, 1  ;;  %v9909_v54 = vpop.f32.mrb[200].mxu0  ;;  %v9912_v49 = vpop.f32.mrb[200].mxu1  ;;  %v11372_v10 = vld [vmem:[#allocation20_spill] sm:$0xff] }
 0x316   :  { %v6008_v52 = vsel %vm11368_vm11, %v5976_v45, %v6007_v56  ;;  %v4494_v32 = vmax.f32 %v4492_v62, %v4493_v14  ;;  %v4500_v7 = vmax.f32 %v4267_v29, %v4499_v30  ;;  %v4004_v35 = vrot.slane %v9807_v58, 2  ;;  %v9914_v56 = vpop.f32.mrb[201].mxu0  ;;  %v9919_v29 = vpop.f32.mrb[201].mxu1  ;;  %vm11396_vm11 = vmmov %vm11278_vm0 }
 0x317   :  { %11369 = vst [vmem:[#allocation43_spill] sm:$0xff] %v9904_v18  ;;  %v4507_v38 = vsel %vm11370_vm6, %v4270_v16, -inf  ;;  %v4002_v15 = vrot.slane %v9813_v27, 2  ;;  %v4490_v12 = vmax.f32 %v4488_v2, %v4489_v40  ;;  %v4005_v17 = vrot.slane %v9818_v0, 2  ;;  %v9921_v27 = vpop.f32.mrb[202].mxu0  ;;  %v11373_v16 = vld [vmem:[#allocation51_spill] sm:$0xff] }
 0x318   :  { %v4495_v57 = vrot.slane %v4494_v32, 2  ;;  %v4508_v53 = vmax.f32 %v4268_v61, %v4507_v38  ;;  %v4501_v45 = vrot.slane %v4500_v7, 4  ;;  %v4595_v58 = vrot.slane %v9837_v44, 1  ;;  %v9924_v40 = vpop.f32.mrb[202].mxu1  ;;  %v9926_v38 = vpop.f32.mrb[203].mxu0 }
 0x319   :  { %v4003_v62 = vsel %vm11371_vm14, %v4001_v23, %v4002_v15  ;;  %v4133_v14 = vadd.f32 %v4002_v15, %v11372_v10  ;;  %v5882_v2 = vpack.c.bf16 %v4490_v12, %v4490_v12  ;;  %v4006_v15 = vsel %vm11374_vm4, %v4004_v35, %v4005_v17  ;;  %v11375_v10 = vld [vmem:[#allocation52_spill] sm:$0xff]  ;;  %v9931_v13 = vpop.f32.mrb[203].mxu1  ;;  %vm11400_vm4 = vmmov %vm11278_vm0 }
 0x31a   :  { %v4496_v30 = vmax.f32 %v4494_v32, %v4495_v57  ;;  %v4509_v61 = vrot.slane %v4508_v53, 4  ;;  %v4131_v0 = vadd.f32 %v4003_v62, %v11373_v16  ;;  %v4502_v18 = vmax.f32 %v4500_v7, %v4501_v45  ;;  %7148 = vmatmul.mubr.msk.bf16.gmra.mrb[52].mxu0 %vm11226_vm9, %v11066_v8  ;;  %v11376_v7 = vld [vmem:[#allocation53_spill] sm:$0xff]  ;;  %vm11378_vm9 = vmmov %vm11278_vm0 }
 0x31b   :  { %v4209_v23 = vadd.f32 %v9251_v3, %v4133_v14  ;;  %v4134_v44 = vadd.f32 %v4005_v17, %v11375_v10  ;;  %v5978_v63 = vunpack.c.l.b16 %v5882_v2  ;;  %v4132_v45 = vadd.f32 %v4006_v15, %v11376_v7  ;;  %2852 = vmatprep.mubr.bf16.mxu0 %v11070_v41 }
 0x31c   :  { %v4497_v26 = vrot.slane %v4496_v30, 1  ;;  %v4510_v12 = vmax.f32 %v4508_v53, %v4509_v61  ;;  %v4207_v32 = vadd.f32 %v9251_v3, %v4131_v0  ;;  %v4503_v57 = vrot.slane %v4502_v18, 2 }
 0x31d   :  { %v4273_v62 = vmax.f32 %v4209_v23, 0.0  ;;  %v4210_v14 = vadd.f32 %v9256_v19, %v4134_v44  ;;  %vm11377_vm8 = vcmask 1045509   ;;  %v4208_v60 = vadd.f32 %v9256_v19, %v4132_v45  ;;  %v9945_v0 = vpop.f32.mrb[204].mxu0 }
 0x31e   :  { %v6009_v17 = vsel %vm11377_vm8, %v5978_v63, %v6008_v52  ;;  %v9941_v35 = vmax.f32 %v4496_v30, %v4497_v26  ;;  %v4511_v2 = vrot.slane %v4510_v12, 2  ;;  %v4271_v53 = vmax.f32 %v4207_v32, 0.0  ;;  %v9951_v63 = vpop.f32.mrb[204].mxu1  ;;  %v9953_v26 = vpop.f32.mrb[205].mxu0 }
 0x31f   :  { %v4504_v61 = vmax.f32 %v4502_v18, %v4503_v57  ;;  %v4515_v3 = vsel %vm11278_vm0, %v4273_v62, -inf  ;;  %v4274_v16 = vmax.f32 %v4210_v14, 0.0  ;;  %v4883_v10 = vrot.slane %v9840_v48, 2  ;;  %v9957_v32 = vpop.f32.mrb[205].mxu1  ;;  %v9959_v57 = vpop.f32.mrb[206].mxu0 }
 0x320   :  { %v9947_v23 = vmax.f32 %v4510_v12, %v4511_v2  ;;  %v4516_v15 = vmax.f32 %v4271_v53, %v4515_v3  ;;  %v4598_v44 = vrot.slane %v9842_v4, 1  ;;  %v4272_v18 = vmax.f32 %v4208_v60, 0.0  ;;  %v9964_v7 = vpop.f32.mrb[206].mxu1  ;;  %v9966_v45 = vpop.f32.mrb[207].mxu0  ;;  %v11381_v12 = vld [vmem:[#allocation56_spill] sm:$0xff] }
 0x321   :  { %v4505_v52 = vrot.slane %v4504_v61, 1  ;;  %v4523_v30 = vsel %vm11378_vm9, %v4274_v16, -inf  ;;  %v4886_v19 = vrot.slane %v9845_v36, 2  ;;  %v4596_v48 = vrot.slane %v9847_v22, 1  ;;  %v9970_v3 = vpop.f32.mrb[207].mxu1 }
 0x322   :  { %v4517_v62 = vrot.slane %v4516_v15, 4  ;;  %v4884_v4 = vrot.slane %v9850_v24, 2  ;;  %v4524_v2 = vmax.f32 %v4272_v18, %v4523_v30  ;;  %v4599_v53 = vrot.slane %v9852_v33, 1  ;;  %11379 = vst [vmem:[#allocation46_spill] sm:$0xff] %v9970_v3  ;;  %7150 = vmatmul.mubr.msk.bf16.gmra.mrb[56].mxu0 %vm11231_vm7, %v11066_v8  ;;  %vm11387_vm7 = vmmov %vm11278_vm0 }
 0x323   :  { %v4506_v14 = vmax.f32 %v4504_v61, %v4505_v52  ;;  %v4887_v36 = vrot.slane %v9859_v55, 2  ;;  %vm11380_vm10 = vcmask 1046528   ;;  %v4757_v51 = vadd.f32 %v4596_v48, %v11381_v12  ;;  %v11383_v52 = vld [vmem:[#allocation54_spill] sm:$0xff]  ;;  %2862 = vmatprep.mubr.bf16.mxu0 %v11070_v41  ;;  %v11386_v12 = vld [vmem:[#allocation57_spill] sm:$0xff] }
 0x324   :  { %v4518_v60 = vmax.f32 %v4516_v15, %v4517_v62  ;;  %v4597_v16 = vsel %vm11380_vm10, %v4595_v58, %v4596_v48  ;;  %v4885_v22 = vsel %vm11382_vm12, %v4883_v10, %v4884_v4  ;;  %v4525_v61 = vrot.slane %v4524_v2, 4  ;;  %vm11384_vm2 = vmmov %vm11380_vm10  ;;  %v11385_v58 = vld [vmem:[#allocation55_spill] sm:$0xff] }
 0x325   :  { %v5884_v24 = vpack.c.bf16 %v4506_v14, %v4506_v14  ;;  %v4755_v18 = vadd.f32 %v4597_v16, %v11383_v52  ;;  %v4600_v33 = vsel %vm11384_vm2, %v4598_v44, %v4599_v53  ;;  %v9981_v15 = vadd.f32 %v4884_v4, %v4757_v51  ;;  %v9988_v14 = vpop.f32.mrb[208].mxu0  ;;  %vm11389_vm15 = vmmov %vm11384_vm2 }
 0x326   :  { %v4519_v55 = vrot.slane %v4518_v60, 2  ;;  %v4756_v30 = vadd.f32 %v4600_v33, %v11385_v58  ;;  %v4758_v62 = vadd.f32 %v4599_v53, %v11386_v12  ;;  %v4526_v48 = vmax.f32 %v4524_v2, %v4525_v61  ;;  %v9995_v51 = vpop.f32.mrb[208].mxu1  ;;  %v9997_v4 = vpop.f32.mrb[209].mxu0  ;;  %vm11394_vm5 = vmmov %vm11384_vm2 }
 0x327   :  { %v5980_v10 = vunpack.c.l.b16 %v5884_v24  ;;  %v9985_v3 = vadd.f32 %v4885_v22, %v4755_v18  ;;  %v4888_v25 = vsel %vm11387_vm7, %v4886_v19, %v4887_v36  ;;  %v4601_v41 = vrot.slane %v9874_v9, 1  ;;  %v10002_v24 = vpop.f32.mrb[209].mxu1  ;;  %vm11399_vm14 = vmmov %vm11384_vm2 }
 0x328   :  { %v4520_v16 = vmax.f32 %v4518_v60, %v4519_v55  ;;  %v9990_v52 = vadd.f32 %v4888_v25, %v4756_v30  ;;  %v9992_v44 = vadd.f32 %v4887_v36, %v4758_v62  ;;  %vm11388_vm1 = vcmask 1046534   ;;  %v10004_v60 = vpop.f32.mrb[210].mxu0  ;;  %v10009_v33 = vpop.f32.mrb[210].mxu1  ;;  %vm11402_vm8 = vmmov %vm11384_vm2 }
 0x329   :  { %v6010_v53 = vsel %vm11388_vm1, %v5980_v10, %v6009_v17  ;;  %v4527_v2 = vrot.slane %v4526_v48, 2  ;;  %v4889_v22 = vrot.slane %v9877_v5, 2  ;;  %v4604_v19 = vrot.slane %v9879_v1, 1  ;;  %v10011_v55 = vpop.f32.mrb[211].mxu0  ;;  %v10018_v30 = vpop.f32.mrb[211].mxu1  ;;  %v11393_v10 = vld [vmem:[#allocation58_spill] sm:$0xff]  ;;  %vm11406_vm9 = vmmov %vm11384_vm2 }
 0x32a   :  { %v4521_v61 = vrot.slane %v4520_v16, 1  ;;  %v4892_v36 = vrot.slane %v9885_v59, 2  ;;  %v4602_v9 = vrot.slane %v9887_v43, 1  ;;  %v4890_v18 = vrot.slane %v9889_v47, 2  ;;  %v11390_v43 = vld [vmem:[#allocation60_spill] sm:$0xff]  ;;  %vm11410_vm10 = vmmov %vm11278_vm0 }
 0x32b   :  { %v10013_v17 = vmax.f32 %v4526_v48, %v4527_v2  ;;  %v4605_v5 = vrot.slane %v9891_v21, 1  ;;  %v4893_v1 = vrot.slane %v9896_v42, 2  ;;  %v4607_v58 = vrot.slane %v9909_v54, 1  ;;  %v11395_v42 = vld [vmem:[#allocation61_spill] sm:$0xff] }
 0x32c   :  { %v4522_v12 = vmax.f32 %v4520_v16, %v4521_v61  ;;  %v4603_v59 = vsel %vm11389_vm15, %v4601_v41, %v4602_v9  ;;  %v4761_v62 = vadd.f32 %v4602_v9, %v11390_v43  ;;  %v4891_v47 = vsel %vm11391_vm3, %v4889_v22, %v4890_v18  ;;  %v11397_v41 = vld [vmem:[#allocation59_spill] sm:$0xff] }
 0x32d   :  { %vm11392_vm13 = vnez %v11056_v28  ;;  %v4759_v48 = vadd.f32 %v4603_v59, %v11393_v10  ;;  %v4606_v21 = vsel %vm11394_vm5, %v4604_v19, %v4605_v5  ;;  %v4762_v25 = vadd.f32 %v4605_v5, %v11395_v42  ;;  %v10040_v19 = vpop.f32.mrb[212].mxu0 }
 0x32e   :  { %7152 = vmatmul.mubr.msk.bf16.gmra.mrb[60].mxu0 %vm11392_vm13, %v11066_v8  ;;  %v4894_v54 = vsel %vm11396_vm11, %v4892_v36, %v4893_v1  ;;  %v5886_v2 = vpack.c.bf16 %v4522_v12, %v4522_v12  ;;  %v10030_v16 = vadd.f32 %v4890_v18, %v4761_v62  ;;  %v4760_v61 = vadd.f32 %v4606_v21, %v11397_v41  ;;  %v10046_v12 = vpop.f32.mrb[212].mxu1 }
 0x32f   :  { %v4895_v9 = vrot.slane %v9912_v49, 2  ;;  %v10034_v22 = vadd.f32 %v4891_v47, %v4759_v48  ;;  %v10036_v43 = vadd.f32 %v4893_v1, %v4762_v25  ;;  %v4610_v28 = vrot.slane %v9914_v56, 1  ;;  %v10048_v49 = vpop.f32.mrb[213].mxu0  ;;  %v10054_v47 = vpop.f32.mrb[213].mxu1 }
 0x330   :  { %v4898_v8 = vrot.slane %v9919_v29, 2  ;;  %v5982_v5 = vunpack.c.l.b16 %v5886_v2  ;;  %v10042_v59 = vadd.f32 %v4894_v54, %v4760_v61  ;;  %v4608_v36 = vrot.slane %v9921_v27, 1  ;;  %v10056_v10 = vpop.f32.mrb[214].mxu0  ;;  %v11403_v54 = vld [vmem:[#allocation64_spill] sm:$0xff] }
 0x331   :  { %v4896_v18 = vrot.slane %v9924_v40, 2  ;;  %v4611_v1 = vrot.slane %v9926_v38, 1  ;;  %v4899_v62 = vrot.slane %v9931_v13, 2  ;;  %v4613_v56 = vrot.slane %v9945_v0, 1  ;;  %v10064_v38 = vpop.f32.mrb[214].mxu1  ;;  %v10066_v13 = vpop.f32.mrb[215].mxu0 }
 0x332   :  { %v4901_v29 = vrot.slane %v9951_v63, 2  ;;  %vm11398_vm6 = vcmask 1047559   ;;  %v4609_v40 = vsel %vm11399_vm14, %v4607_v58, %v4608_v36  ;;  %v4765_v48 = vadd.f32 %v4608_v36, %v9317_v6  ;;  %v11401_v63 = vld [vmem:[#allocation62_spill] sm:$0xff]  ;;  %v10073_v2 = vpop.f32.mrb[215].mxu1  ;;  %v11404_v6 = vld [vmem:[#allocation63_spill] sm:$0xff] }
 0x333   :  { %v10059_v27 = vsel %vm11398_vm6, %v5982_v5, %v6010_v53  ;;  %v4897_v21 = vsel %vm11400_vm4, %v4895_v9, %v4896_v18  ;;  %v4763_v42 = vadd.f32 %v4609_v40, %v11401_v63  ;;  %v4612_v25 = vsel %vm11402_vm8, %v4610_v28, %v4611_v1  ;;  %vm11429_vm6 = vmmov %vm11402_vm8 }
 0x334   :  { %v4766_v53 = vadd.f32 %v4611_v1, %v11403_v54  ;;  %v10075_v58 = vadd.f32 %v4896_v18, %v4765_v48  ;;  %v4764_v41 = vadd.f32 %v4612_v25, %v11404_v6  ;;  %v4900_v61 = vsel %vm11278_vm0, %v4898_v8, %v4899_v62  ;;  %v11409_v54 = vld [vmem:[#allocation23_spill] sm:$0xff]  ;;  %vm11434_vm8 = vmmov %vm11278_vm0 }
 0x335   :  { %v4616_v9 = vrot.slane %v9953_v26, 1  ;;  %v10080_v5 = vadd.f32 %v4897_v21, %v4763_v42  ;;  %v4904_v40 = vrot.slane %v9957_v32, 2  ;;  %v4614_v28 = vrot.slane %v9959_v57, 1  ;;  %v11407_v21 = vld [vmem:[#allocation66_spill] sm:$0xff]  ;;  %v10099_v25 = vpop.f32.mrb[216].mxu0 }
 0x336   :  { %v10082_v36 = vadd.f32 %v4899_v62, %v4766_v53  ;;  %v10086_v63 = vadd.f32 %v4900_v61, %v4764_v41  ;;  %v4902_v1 = vrot.slane %v9964_v7, 2  ;;  %v11405_v18 = vrot.slane %v9609_v11, 1  ;;  %v10108_v41 = vpop.f32.mrb[217].mxu0 }
 0x337   :  { %v4401_v8 = vrot.slane %v9658_v31, 1  ;;  %v4615_v26 = vsel %vm11406_vm9, %v4613_v56, %v4614_v28  ;;  %v4769_v42 = vadd.f32 %v4614_v28, %v11407_v21  ;;  %v11408_v62 = vrot.slane %v9947_v23, 1  ;;  %v10106_v56 = vpop.f32.mrb[216].mxu1 }
 0x338   :  { %v4386_v48 = vmax.f32 %v9609_v11, %v11405_v18  ;;  %v4529_v57 = vrot.slane %v10013_v17, 1  ;;  %v4767_v7 = vadd.f32 %v4615_v26, %v11409_v54  ;;  %v4903_v53 = vsel %vm11410_vm10, %v4901_v29, %v4902_v1  ;;  %v10115_v26 = vpop.f32.mrb[217].mxu1  ;;  %v10117_v29 = vpop.f32.mrb[218].mxu0 }
 0x339   :  { %v4514_v32 = vmax.f32 %v9947_v23, %v11408_v62  ;;  %v4402_v11 = vmax.f32 %v9658_v31, %v4401_v8  ;;  %v5867_v6 = vpack.c.bf16 %v9580_v37, %v9580_v37  ;;  %v10110_v61 = vadd.f32 %v4902_v1, %v4769_v42  ;;  %v10121_v62 = vpop.f32.mrb[218].mxu1  ;;  %v10123_v54 = vpop.f32.mrb[219].mxu0 }
 0x33a   :  { %v4530_v23 = vmax.f32 %v10013_v17, %v4529_v57  ;;  %v5869_v28 = vpack.c.bf16 %v4386_v48, %v4386_v48  ;;  %v5883_v18 = vpack.c.bf16 %v9941_v35, %v9941_v35  ;;  %v10119_v31 = vadd.f32 %v4903_v53, %v4767_v7  ;;  %v10128_v48 = vpop.f32.mrb[219].mxu1 }
 0x33b   :  { %11411 = vst [vmem:[#allocation45_spill] sm:$0xff] %v10110_v61  ;;  %v5871_v8 = vpack.c.bf16 %v4402_v11, %v4402_v11  ;;  %v5885_v37 = vpack.c.bf16 %v4514_v32, %v4514_v32  ;;  %v5963_v21 = vunpack.c.l.b16 %v5867_v6  ;;  %vm11413_vm12 = vcmask 1041409   ;;  %v11415_v32 = vld [vmem:[#allocation35_spill] sm:$0xff]  ;;  %v11417_v6 = vld [vmem:[#allocation81_spill] sm:$0xff] }
 0x33c   :  { %11412 = vst [vmem:[#allocation21_spill] sm:$0xff] %v10119_v31  ;;  %v5887_v1 = vpack.c.bf16 %v4530_v23, %v4530_v23  ;;  %v5965_v42 = vunpack.c.l.b16 %v5869_v28  ;;  %v5979_v17 = vunpack.c.l.b16 %v5883_v18  ;;  %v5998_v35 = vsel %vm11413_vm12, %v9407_v34, %v9361_v39  ;;  %vm11416_vm7 = vmmov %vm11413_vm12  ;;  %v11419_v28 = vld [vmem:[#allocation41_spill] sm:$0xff]  ;;  %v11421_v34 = vld [vmem:[#allocation88_spill] sm:$0xff] }
 0x33d   :  { %v5967_v57 = vunpack.c.l.b16 %v5871_v8  ;;  %v5981_v0 = vunpack.c.l.b16 %v5885_v37  ;;  %vm11414_vm2 = vcmask 1042434   ;;  %v6012_v53 = vsel %vm11416_vm7, %v11415_v32, %v9734_v50  ;;  %v11423_v37 = vld [vmem:[#allocation44_spill] sm:$0xff]  ;;  %vm11438_vm12 = vmmov %vm11429_vm6 }
 0x33e   :  { %v5999_v7 = vsel %vm11414_vm2, %v9465_v46, %v5998_v35  ;;  %v5983_v11 = vunpack.c.l.b16 %v5887_v1  ;;  %vm11418_vm1 = vcmask 1043459   ;;  %vm11420_vm15 = vmmov %vm11414_vm2  ;;  %v4617_v39 = vrot.slane %v9966_v45, 1  ;;  %v11425_v46 = vld [vmem:[#allocation46_spill] sm:$0xff]  ;;  %v11427_v1 = vld [vmem:[#allocation43_spill] sm:$0xff]  ;;  %v10151_v45 = vpop.f32.mrb[220].mxu0 }
 0x33f   :  { %v6000_v23 = vsel %vm11418_vm1, %v11417_v6, %v5999_v7  ;;  %v6013_v18 = vsel %vm11420_vm15, %v11419_v28, %v6012_v53  ;;  %vm11422_vm3 = vcmask 1044484   ;;  %vm11424_vm13 = vmmov %vm11418_vm1  ;;  %v4905_v35 = vrot.slane %v11425_v46, 2  ;;  %v11430_v53 = vld [vmem:[#allocation67_spill] sm:$0xff] }
 0x340   :  { %v6001_v8 = vsel %vm11422_vm3, %v11421_v34, %v6000_v23  ;;  %v6014_v31 = vsel %vm11424_vm13, %v11423_v37, %v6013_v18  ;;  %v4619_v61 = vrot.slane %v9988_v14, 1  ;;  %vm11426_vm5 = vcmask 1045509   ;;  %vm11428_vm11 = vmmov %vm11422_vm3  ;;  %v11433_v18 = vld [vmem:[#allocation65_spill] sm:$0xff]  ;;  %v10157_v14 = vpop.f32.mrb[220].mxu1 }
 0x341   :  { %v6002_v50 = vsel %vm11426_vm5, %v5963_v21, %v6001_v8  ;;  %v6015_v7 = vsel %vm11428_vm11, %v11427_v1, %v6014_v31  ;;  %v4618_v32 = vsel %vm11429_vm6, %v4616_v9, %v4617_v39  ;;  %v4770_v6 = vadd.f32 %v4617_v39, %v11430_v53  ;;  %vm11432_vm4 = vmmov %vm11426_vm5  ;;  %v10159_v21 = vpop.f32.mrb[221].mxu0  ;;  %v10166_v46 = vpop.f32.mrb[221].mxu1 }
 0x342   :  { %vm11431_vm14 = vcmask 1046534   ;;  %v6016_v28 = vsel %vm11432_vm4, %v5979_v17, %v6015_v7  ;;  %v4768_v34 = vadd.f32 %v4618_v32, %v11433_v18  ;;  %v4906_v37 = vsel %vm11434_vm8, %v4904_v40, %v4905_v35  ;;  %v10175_v7 = vpop.f32.mrb[222].mxu1  ;;  %vm11440_vm2 = vmmov %vm11434_vm8 }
 0x343   :  { %v6003_v23 = vsel %vm11431_vm14, %v5965_v42, %v6002_v50  ;;  %vm11435_vm0 = vcmask 1047559   ;;  %vm11436_vm9 = vmmov %vm11431_vm14  ;;  %v10163_v8 = vadd.f32 %v4905_v35, %v4770_v6  ;;  %v4907_v39 = vrot.slane %v9995_v51, 2  ;;  %v10168_v42 = vpop.f32.mrb[222].mxu0  ;;  %v7514_v51 = vld [vmem:[%s10936_s5] sm:$0xff]   ;;  %v10185_v53 = vpop.f32.mrb[223].mxu1 }
 0x344   :  { %v6004_v31 = vsel %vm11435_vm0, %v5967_v57, %v6003_v23  ;;  %v6017_v9 = vsel %vm11436_vm9, %v5981_v0, %v6016_v28  ;;  %vm11437_vm10 = vmmov %vm11435_vm0  ;;  %v10171_v50 = vadd.f32 %v4906_v37, %v4768_v34  ;;  %v4622_v40 = vrot.slane %v9997_v4, 1  ;;  %v10177_v57 = vpop.f32.mrb[223].mxu0  ;;  %v7515_v4 = vld [vmem:[%s10936_s5 + $0x48] sm:$0xff]  }
 0x345   :  { %v6018_v17 = vsel %vm11437_vm10, %v5983_v11, %v6017_v9  ;;  %v4910_v1 = vrot.slane %v10002_v24, 2  ;;  %v4620_v35 = vrot.slane %v10004_v60, 1  ;;  %v4908_v32 = vrot.slane %v10009_v33, 2  ;;  %v11439_v33 = vld [vmem:[#allocation70_spill] sm:$0xff]  ;;  %vm11441_vm7 = vmmov %vm11429_vm6 }
 0x346   :  { %v6020_v0 = vpack.c.b16 %v6018_v17, %v6004_v31  ;;  %v4623_v11 = vrot.slane %v10011_v55, 1  ;;  %v4911_v24 = vrot.slane %v10018_v30, 2  ;;  %v4625_v6 = vrot.slane %v10040_v19, 1  ;;  %v11443_v30 = vld [vmem:[#allocation68_spill] sm:$0xff]  ;;  %v11444_v19 = vld [vmem:[#allocation69_spill] sm:$0xff]  ;;  %vm11446_vm1 = vmmov %vm11440_vm2 }
 0x347   :  { %v4913_v23 = vrot.slane %v10046_v12, 2  ;;  %v4628_v28 = vrot.slane %v10048_v49, 1  ;;  %v4621_v60 = vsel %vm11438_vm12, %v4619_v61, %v4620_v35  ;;  %v4773_v18 = vadd.f32 %v4620_v35, %v11439_v33  ;;  %v11445_v12 = vld [vmem:[#allocation71_spill] sm:$0xff]  ;;  %v11447_v61 = vld [vmem:[#allocation26_spill] sm:$0xff]  ;;  %vm11450_vm15 = vmmov %vm11429_vm6 }
 0x348   :  { %6151 = vmatprep.mubr.bf16.mxu1 %v6020_v0  ;;  %v4909_v55 = vsel %vm11440_vm2, %v4907_v39, %v4908_v32  ;;  %v4624_v34 = vsel %vm11441_vm7, %v4622_v40, %v4623_v11  ;;  %v11442_v37 = vpack.c.b16 %v10059_v27, %v9695_v20  ;;  %v4771_v31 = vadd.f32 %v4621_v60, %v11443_v30  ;;  %v11448_v0 = vld [vmem:[#allocation32_spill] sm:$0xff]  ;;  %v7516_v39 = vld [vmem:[%s10936_s5 + $0x8] sm:$0xff]   ;;  %vm11452_vm3 = vmmov %vm11446_vm1 }
 0x349   :  { %v4772_v9 = vadd.f32 %v4624_v34, %v11444_v19  ;;  %v4774_v17 = vadd.f32 %v4623_v11, %v11445_v12  ;;  %v4912_v49 = vsel %vm11446_vm1, %v4910_v1, %v4911_v24  ;;  %v11449_v35 = vpack.c.b16 %v11447_v61, %v11448_v0  ;;  %v10216_v11 = vpop.f32.mrb[224].mxu0  ;;  %vm11454_vm13 = vmmov %vm11429_vm6  ;;  %v11456_v61 = vld [vmem:[#allocation73_spill] sm:$0xff] }
 0x34a   :  { %6152 = vmatmul.mubr.bf16.vlgmr.msra.gmra.mrb[0].mxu1 %v11442_v37  ;;  %v10211_v40 = vadd.f32 %v4908_v32, %v4773_v18  ;;  %v4916_v20 = vrot.slane %v10054_v47, 2  ;;  %v4626_v27 = vrot.slane %v10056_v10, 1  ;;  %v4914_v60 = vrot.slane %v10064_v38, 2  ;;  %v10228_v47 = vpop.f32.mrb[224].mxu1  ;;  %v10230_v10 = vpop.f32.mrb[225].mxu0  ;;  %v11451_v18 = vld [vmem:[#allocation74_spill] sm:$0xff]  ;;  %vm11457_vm5 = vmmov %vm11446_vm1 }
 0x34b   :  { %7225 = vmatpush3.bf16.msra.mxu1 %v7514_v51  ;;  %6384 = vmatprep.mubr.bf16.mxu1 %v11449_v35  ;;  %v10218_v1 = vadd.f32 %v4909_v55, %v4771_v31  ;;  %v7517_v51 = vld [vmem:[%s10936_s5 + $0x50] sm:$0xff]   ;;  %v10223_v33 = vadd.f32 %v4912_v49, %v4772_v9  ;;  %v10225_v34 = vadd.f32 %v4911_v24, %v4774_v17  ;;  %v4629_v32 = vrot.slane %v10066_v13, 1  ;;  %v10236_v30 = vpop.f32.mrb[225].mxu1  ;;  %v10238_v31 = vpop.f32.mrb[226].mxu0  ;;  %v11453_v24 = vld [vmem:[#allocation72_spill] sm:$0xff]  ;;  %vm11458_vm11 = vmmov %vm11429_vm6 }
 0x34c   :  { %7226 = vmatprep.subr.bf16.mxu1 %v7515_v4  ;;  %v4627_v38 = vsel %vm11450_vm15, %v4625_v6, %v4626_v27  ;;  %v4777_v4 = vadd.f32 %v4626_v27, %v11451_v18  ;;  %v4915_v55 = vsel %vm11452_vm3, %v4913_v23, %v4914_v60  ;;  %v4917_v37 = vrot.slane %v10073_v2, 2  ;;  %v11455_v9 = vld [vmem:[#allocation75_spill] sm:$0xff]  ;;  %v10244_v49 = vpop.f32.mrb[226].mxu1  ;;  %v10246_v6 = vpop.f32.mrb[227].mxu0  ;;  %vm11460_vm6 = vmmov %vm11446_vm1 }
 0x34d   :  { %v4775_v19 = vadd.f32 %v4627_v38, %v11453_v24  ;;  %v4630_v13 = vsel %vm11454_vm13, %v4628_v28, %v4629_v32  ;;  %v4778_v12 = vadd.f32 %v4629_v32, %v11455_v9  ;;  %v4631_v17 = vrot.slane %v10099_v25, 1  ;;  %v7518_v2 = vld [vmem:[%s10936_s5 + $0x10] sm:$0xff]   ;;  %v10256_v27 = vpop.f32.mrb[227].mxu1  ;;  %v7519_v25 = vld [vmem:[%s10936_s5 + $0x58] sm:$0xff]   ;;  %vm11461_vm14 = vmmov %vm11441_vm7 }
 0x34e   :  { %v10251_v23 = vadd.f32 %v4914_v60, %v4777_v4  ;;  %v4776_v0 = vadd.f32 %v4630_v13, %v11456_v61  ;;  %v4918_v35 = vsel %vm11457_vm5, %v4916_v20, %v4917_v37  ;;  %v4919_v28 = vrot.slane %v10106_v56, 2  ;;  %v11463_v13 = vld [vmem:[#allocation77_spill] sm:$0xff]  ;;  %vm11465_vm4 = vmmov %vm11446_vm1  ;;  %v10292_v61 = vpop.f32.mrb[228].mxu1 }
 0x34f   :  { %7227 = vmatpush3.bf16.msra.mxu1 %v7516_v39  ;;  %v10261_v39 = vadd.f32 %v4915_v55, %v4775_v19  ;;  %v10263_v32 = vadd.f32 %v4917_v37, %v4778_v12  ;;  %v4634_v60 = vrot.slane %v10108_v41, 1  ;;  %v4922_v38 = vrot.slane %v10115_v26, 2  ;;  %v7520_v41 = vld [vmem:[%s10936_s5 + $0x18] sm:$0xff]   ;;  %v11464_v12 = vld [vmem:[#allocation79_spill] sm:$0xff]  ;;  %vm11467_vm8 = vmmov %vm11441_vm7 }
 0x350   :  { %7228 = vmatprep.subr.bf16.mxu1 %v7517_v51  ;;  %v10267_v18 = vadd.f32 %v4918_v35, %v4776_v0  ;;  %v4632_v20 = vrot.slane %v10117_v29, 1  ;;  %v4920_v56 = vrot.slane %v10121_v62, 2  ;;  %v4635_v51 = vrot.slane %v10123_v54, 1  ;;  %v11459_v29 = vld [vmem:[#allocation78_spill] sm:$0xff]  ;;  %vm11469_vm0 = vmmov %vm11446_vm1 }
 0x351   :  { %v4923_v4 = vrot.slane %v10128_v48, 2  ;;  %v4637_v24 = vrot.slane %v10151_v45, 1  ;;  %v4925_v55 = vrot.slane %v10157_v14, 2  ;;  %v4640_v37 = vrot.slane %v10159_v21, 1  ;;  %v10283_v48 = vpop.f32.mrb[228].mxu0  ;;  %v7521_v45 = vld [vmem:[%s10936_s5 + $0x60] sm:$0xff]   ;;  %vm11471_vm9 = vmmov %vm11441_vm7 }
 0x352   :  { %v4633_v26 = vsel %vm11458_vm11, %v4631_v17, %v4632_v20  ;;  %v4781_v19 = vadd.f32 %v4632_v20, %v11459_v29  ;;  %v4921_v62 = vsel %vm11460_vm6, %v4919_v28, %v4920_v56  ;;  %v4636_v54 = vsel %vm11461_vm14, %v4634_v60, %v4635_v51  ;;  %v11462_v14 = vld [vmem:[#allocation76_spill] sm:$0xff]  ;;  %v10294_v0 = vpop.f32.mrb[229].mxu0  ;;  %v10301_v20 = vpop.f32.mrb[229].mxu1  ;;  %vm11474_vm10 = vmmov %vm11469_vm0 }
 0x353   :  { %7229 = vmatpush3.bf16.msra.mxu1 %v7518_v2  ;;  %v4779_v21 = vadd.f32 %v4633_v26, %v11462_v14  ;;  %v4780_v9 = vadd.f32 %v4636_v54, %v11463_v13  ;;  %v4782_v2 = vadd.f32 %v4635_v51, %v11464_v12  ;;  %v4924_v17 = vsel %vm11465_vm4, %v4922_v38, %v4923_v4  ;;  %v10303_v26 = vpop.f32.mrb[230].mxu0  ;;  %v11472_v12 = vld [vmem:[#allocation84_spill] sm:$0xff]  ;;  %vm11477_vm12 = vmmov %vm11441_vm7 }
 0x354   :  { %7230 = vmatprep.subr.bf16.mxu1 %v7519_v25  ;;  %v10296_v35 = vadd.f32 %v4920_v56, %v4781_v19  ;;  %v4928_v28 = vrot.slane %v10166_v46, 2  ;;  %v4638_v25 = vrot.slane %v10168_v42, 1  ;;  %v4926_v60 = vrot.slane %v10175_v7, 2  ;;  %v10312_v56 = vpop.f32.mrb[230].mxu1  ;;  %v10314_v19 = vpop.f32.mrb[231].mxu0  ;;  %v7522_v46 = vld [vmem:[%s10936_s5 + $0x20] sm:$0xff]   ;;  %vm11479_vm2 = vmmov %vm11469_vm0 }
 0x355   :  { %v10305_v29 = vadd.f32 %v4921_v62, %v4779_v21  ;;  %v10307_v51 = vadd.f32 %v4924_v17, %v4780_v9  ;;  %v10309_v38 = vadd.f32 %v4923_v4, %v4782_v2  ;;  %v4641_v54 = vrot.slane %v10177_v57, 1  ;;  %v11468_v7 = vld [vmem:[#allocation83_spill] sm:$0xff]  ;;  %v10323_v21 = vpop.f32.mrb[231].mxu1  ;;  %v7523_v57 = vld [vmem:[%s10936_s5 + $0x68] sm:$0xff]   ;;  %vm11483_vm1 = vmmov %vm11469_vm0 }
 0x356   :  { %v4639_v42 = vsel %vm11467_vm8, %v4637_v24, %v4638_v25  ;;  %v4785_v62 = vadd.f32 %v4638_v25, %v11468_v7  ;;  %v4927_v14 = vsel %vm11469_vm0, %v4925_v55, %v4926_v60  ;;  %v4929_v4 = vrot.slane %v10185_v53, 2  ;;  %v11473_v55 = vld [vmem:[#allocation82_spill] sm:$0xff]  ;;  %vm11484_vm15 = vmmov %vm11441_vm7 }
 0x357   :  { %11466 = vst [vmem:[#allocation47_spill] sm:$0xff] %v10307_v51  ;;  %7231 = vmatpush3.bf16.msra.mxu1 %v7520_v41  ;;  %v11470_v41 = vld [vmem:[#allocation80_spill] sm:$0xff]  ;;  %v4642_v9 = vsel %vm11471_vm9, %v4640_v37, %v4641_v54  ;;  %v4786_v2 = vadd.f32 %v4641_v54, %v11472_v12  ;;  %v4643_v24 = vrot.slane %v10216_v11, 1  ;;  %v4934_v37 = vrot.slane %v10236_v30, 2  ;;  %v7524_v11 = vld [vmem:[%s10936_s5 + $0x28] sm:$0xff]   ;;  %vm11486_vm3 = vmmov %vm11469_vm0 }
 0x358   :  { %7232 = vmatprep.subr.bf16.mxu1 %v7521_v45  ;;  %v4783_v13 = vadd.f32 %v4639_v42, %v11470_v41  ;;  %v10332_v17 = vadd.f32 %v4926_v60, %v4785_v62  ;;  %v4784_v25 = vadd.f32 %v4642_v9, %v11473_v55  ;;  %v4930_v53 = vsel %vm11474_vm10, %v4928_v28, %v4929_v4  ;;  %v7525_v60 = vld [vmem:[%s10936_s5 + $0x70] sm:$0xff]   ;;  %v10360_v41 = vpop.f32.mrb[232].mxu1  ;;  %vm11488_vm13 = vmmov %vm11441_vm7 }
 0x359   :  { %v4931_v45 = vrot.slane %v10228_v47, 2  ;;  %v10339_v51 = vadd.f32 %v4929_v4, %v4786_v2  ;;  %v4646_v42 = vrot.slane %v10230_v10, 1  ;;  %v4644_v47 = vrot.slane %v10238_v31, 1  ;;  %v10354_v10 = vpop.f32.mrb[232].mxu0  ;;  %v10368_v12 = vpop.f32.mrb[233].mxu1  ;;  %vm11492_vm5 = vmmov %vm11469_vm0 }
 0x35a   :  { %v10337_v7 = vadd.f32 %v4927_v14, %v4783_v13  ;;  %v10349_v28 = vadd.f32 %v4930_v53, %v4784_v25  ;;  %v4932_v54 = vrot.slane %v10244_v49, 2  ;;  %v4647_v62 = vrot.slane %v10246_v6, 1  ;;  %v10362_v13 = vpop.f32.mrb[233].mxu0  ;;  %v11478_v49 = vld [vmem:[#allocation87_spill] sm:$0xff]  ;;  %vm11495_vm11 = vmmov %vm11441_vm7 }
 0x35b   :  { %11475 = vst [vmem:[#allocation48_spill] sm:$0xff] %v10339_v51  ;;  %7233 = vmatpush3.bf16.msra.mxu1 %v7522_v46  ;;  %v4935_v30 = vrot.slane %v10256_v27, 2  ;;  %v4649_v46 = vrot.slane %v10283_v48, 1  ;;  %v4937_v14 = vrot.slane %v10292_v61, 2  ;;  %v4652_v4 = vrot.slane %v10294_v0, 1  ;;  %v2432_v27 = vpop.f32.mrb[234].mxu0  ;;  %vm11497_vm6 = vmmov %vm11469_vm0 }
 0x35c   :  { %11476 = vst [vmem:[#allocation50_spill] sm:$0xff] %v10349_v28  ;;  %7234 = vmatprep.subr.bf16.mxu1 %v7523_v57  ;;  %v4645_v31 = vsel %vm11477_vm12, %v4643_v24, %v4644_v47  ;;  %v4789_v9 = vadd.f32 %v4644_v47, %v11478_v49  ;;  %v4933_v6 = vsel %vm11479_vm2, %v4931_v45, %v4932_v54  ;;  %v11480_v48 = vld [vmem:[#allocation85_spill] sm:$0xff]  ;;  %v11481_v61 = vld [vmem:[#allocation86_spill] sm:$0xff]  ;;  %v2625_v51 = vpop.f32.mrb[234].mxu1  ;;  %v2434_v28 = vpop.f32.mrb[235].mxu0  ;;  %v7526_v24 = vld [vmem:[%s10936_s5 + $0x30] sm:$0xff]  }
 0x35d   :  { %v4648_v57 = vsel %vm11441_vm7, %v4646_v42, %v4647_v62  ;;  %v4787_v2 = vadd.f32 %v4645_v31, %v11480_v48  ;;  %v11482_v0 = vld [vmem:[#allocation89_spill] sm:$0xff]  ;;  %v4936_v53 = vsel %vm11483_vm1, %v4934_v37, %v4935_v30  ;;  %v4940_v42 = vrot.slane %v10301_v20, 2  ;;  %v2627_v49 = vpop.f32.mrb[235].mxu1  ;;  %v7527_v37 = vld [vmem:[%s10936_s5 + $0x78] sm:$0xff]   ;;  %v11487_v48 = vld [vmem:[#allocation90_spill] sm:$0xff] }
 0x35e   :  { %v4788_v55 = vadd.f32 %v4648_v57, %v11481_v61  ;;  %v4790_v25 = vadd.f32 %v4647_v62, %v11482_v0  ;;  %v10377_v45 = vadd.f32 %v4932_v54, %v4789_v9  ;;  %v4650_v47 = vrot.slane %v10303_v26, 1  ;;  %v11485_v9 = vld [vmem:[#allocation92_spill] sm:$0xff]  ;;  %vm11498_vm14 = vmmov %vm11441_vm7 }
 0x35f   :  { %7235 = vmatpush3.bf16.msra.mxu1 %v7524_v11  ;;  %v4938_v31 = vrot.slane %v10312_v56, 2  ;;  %v10385_v62 = vadd.f32 %v4933_v6, %v4787_v2  ;;  %v4653_v54 = vrot.slane %v10314_v19, 1  ;;  %v11489_v6 = vld [vmem:[#allocation93_spill] sm:$0xff]  ;;  %v7528_v19 = vld [vmem:[%s10936_s5 + $0x38] sm:$0xff]   ;;  %vm11502_vm4 = vmmov %vm11469_vm0 }
 0x360   :  { %7236 = vmatprep.subr.bf16.mxu1 %v7525_v60  ;;  %v10387_v11 = vadd.f32 %v4936_v53, %v4788_v55  ;;  %v10389_v57 = vadd.f32 %v4935_v30, %v4790_v25  ;;  %v4651_v20 = vsel %vm11484_vm15, %v4649_v46, %v4650_v47  ;;  %v4793_v26 = vadd.f32 %v4650_v47, %v11485_v9  ;;  %v11491_v46 = vld [vmem:[#allocation91_spill] sm:$0xff]  ;;  %v2438_v53 = vpop.f32.mrb[236].mxu0  ;;  %vm11506_vm8 = vmmov %vm11441_vm7 }
 0x361   :  { %v4939_v56 = vsel %vm11486_vm3, %v4937_v14, %v4938_v31  ;;  %v4941_v60 = vrot.slane %v10323_v21, 2  ;;  %v4791_v61 = vadd.f32 %v4651_v20, %v11487_v48  ;;  %v4654_v0 = vsel %vm11488_vm13, %v4652_v4, %v4653_v54  ;;  %v2440_v20 = vpop.f32.mrb[237].mxu0  ;;  %vm11509_vm9 = vmmov %vm11441_vm7 }
 0x362   :  { %v4794_v2 = vadd.f32 %v4653_v54, %v11489_v6  ;;  %v4655_v55 = vrot.slane %v10354_v10, 1  ;;  %v10403_v30 = vadd.f32 %v4938_v31, %v4793_v26  ;;  %v4792_v25 = vadd.f32 %v4654_v0, %v11491_v46  ;;  %v2631_v54 = vpop.f32.mrb[236].mxu1  ;;  %v2442_v0 = vpop.f32.mrb[238].mxu0  ;;  %vm11512_vm10 = vmmov %vm11469_vm0 }
 0x363   :  { %7237 = vmatpush3.bf16.msra.mxu1 %v7526_v24  ;;  %v4942_v14 = vsel %vm11492_vm5, %v4940_v42, %v4941_v60  ;;  %v4943_v21 = vrot.slane %v10360_v41, 2  ;;  %v10408_v4 = vadd.f32 %v4939_v56, %v4791_v61  ;;  %v4658_v10 = vrot.slane %v10362_v13, 1  ;;  %v2633_v42 = vpop.f32.mrb[237].mxu1  ;;  %vm11513_vm12 = vmmov %vm11441_vm7 }
 0x364   :  { %11490 = vst [vmem:[#allocation49_spill] sm:$0xff] %v10403_v30  ;;  %7238 = vmatprep.subr.bf16.mxu1 %v7527_v37  ;;  %v10410_v47 = vadd.f32 %v4941_v60, %v4794_v2  ;;  %v4946_v24 = vrot.slane %v10368_v12, 2  ;;  %v10414_v31 = vadd.f32 %v4942_v14, %v4792_v25  ;;  %v4656_v9 = vrot.slane %v2432_v27, 1  ;;  %v2635_v61 = vpop.f32.mrb[238].mxu1  ;;  %v2444_v60 = vpop.f32.mrb[239].mxu0  ;;  %v11496_v2 = vld [vmem:[#allocation96_spill] sm:$0xff]  ;;  %vm11515_vm2 = vmmov %vm11469_vm0 }
 0x365   :  { %v4944_v26 = vrot.slane %v2625_v51, 2  ;;  %v4659_v48 = vrot.slane %v2434_v28, 1  ;;  %v4947_v41 = vrot.slane %v2627_v49, 2  ;;  %v4661_v6 = vrot.slane %v2438_v53, 1  ;;  %v2637_v27 = vpop.f32.mrb[239].mxu1  ;;  %v11499_v51 = vld [vmem:[#allocation94_spill] sm:$0xff]  ;;  %vm11519_vm1 = vmmov %vm11469_vm0 }
 0x366   :  { %11493 = vst [vmem:[#allocation22_spill] sm:$0xff] %v10410_v47  ;;  %11494 = vst [vmem:[#allocation20_spill] sm:$0xff] %v10414_v31  ;;  %v4949_v37 = vrot.slane %v2631_v54, 2  ;;  %v4664_v56 = vrot.slane %v2440_v20, 1  ;;  %v4657_v13 = vsel %vm11495_vm11, %v4655_v55, %v4656_v9  ;;  %v4797_v12 = vadd.f32 %v4656_v9, %v11496_v2  ;;  %v11500_v14 = vld [vmem:[#allocation95_spill] sm:$0xff]  ;;  %v11503_v30 = vld [vmem:[#allocation33_spill] sm:$0xff] }
 0x367   :  { %7239 = vmatpush3.bf16.msra.mxu1 %v7528_v19  ;;  %v4945_v46 = vsel %vm11497_vm6, %v4943_v21, %v4944_v26  ;;  %v4660_v25 = vsel %vm11498_vm14, %v4658_v10, %v4659_v48  ;;  %v4795_v28 = vadd.f32 %v4657_v13, %v11499_v51  ;;  %v11501_v49 = vld [vmem:[#allocation27_spill] sm:$0xff]  ;;  %v4948_v54 = vsel %vm11502_vm4, %v4946_v24, %v4947_v41  ;;  %v11504_v9 = vld [vmem:[#allocation29_spill] sm:$0xff]  ;;  %vm11524_vm15 = vmmov %vm11441_vm7 }
 0x368   :  { %v4796_v47 = vadd.f32 %v4660_v25, %v11500_v14  ;;  %v4798_v53 = vadd.f32 %v4659_v48, %v11501_v49  ;;  %v10424_v20 = vadd.f32 %v4944_v26, %v4797_v12  ;;  %v4952_v19 = vrot.slane %v2633_v42, 2  ;;  %v11507_v51 = vld [vmem:[#allocation11_spill] sm:$0xff]  ;;  %vm11527_vm3 = vmmov %vm11469_vm0 }
 0x369   :  { %v4662_v31 = vrot.slane %v2442_v0, 1  ;;  %v4950_v55 = vrot.slane %v2635_v61, 2  ;;  %v11505_v2 = vpack.c.b16 %v11503_v30, %v11504_v9  ;;  %v10429_v21 = vadd.f32 %v4945_v46, %v4795_v28  ;;  %v2448_v0 = vpop.f32.mrb[240].mxu0  ;;  %v11508_v61 = vld [vmem:[#allocation15_spill] sm:$0xff]  ;;  %v2641_v28 = vpop.f32.mrb[240].mxu1  ;;  %vm11528_vm13 = vmmov %vm11441_vm7 }
 0x36a   :  { %v10431_v10 = vadd.f32 %v4948_v54, %v4796_v47  ;;  %v10433_v13 = vadd.f32 %v4947_v41, %v4798_v53  ;;  %v4665_v25 = vrot.slane %v2444_v60, 1  ;;  %v4953_v42 = vrot.slane %v2637_v27, 2  ;;  %v11510_v14 = vld [vmem:[#allocation31_spill] sm:$0xff]  ;;  %v2450_v47 = vpop.f32.mrb[241].mxu0  ;;  %v11511_v41 = vld [vmem:[#allocation28_spill] sm:$0xff]  ;;  %vm11532_vm5 = vmmov %vm11469_vm0 }
 0x36b   :  { %6385 = vmatmul.mubr.bf16.vlgmr.msra.gmra.mrb[4].mxu1 %v11505_v2  ;;  %v4663_v48 = vsel %vm11506_vm8, %v4661_v6, %v4662_v31  ;;  %v4801_v24 = vadd.f32 %v4662_v31, %v11507_v51  ;;  %v4951_v26 = vsel %vm11469_vm0, %v4949_v37, %v4950_v55  ;;  %v4667_v53 = vrot.slane %v2448_v0, 1  ;;  %v2643_v31 = vpop.f32.mrb[241].mxu1  ;;  %v2452_v54 = vpop.f32.mrb[242].mxu0  ;;  %v11514_v0 = vld [vmem:[#allocation13_spill] sm:$0xff]  ;;  %vm11536_vm11 = vmmov %vm11441_vm7 }
 0x36c   :  { %v4799_v12 = vadd.f32 %v4663_v48, %v11508_v61  ;;  %v4666_v30 = vsel %vm11509_vm9, %v4664_v56, %v4665_v25  ;;  %v4802_v46 = vadd.f32 %v4665_v25, %v11510_v14  ;;  %v4954_v6 = vsel %vm11512_vm10, %v4952_v19, %v4953_v42  ;;  %v2645_v56 = vpop.f32.mrb[242].mxu1  ;;  %v2454_v48 = vpop.f32.mrb[243].mxu0  ;;  %vm11539_vm6 = vmmov %vm11469_vm0 }
 0x36d   :  { %v10441_v49 = vadd.f32 %v4950_v55, %v4801_v24  ;;  %v4800_v60 = vadd.f32 %v4666_v30, %v11511_v41  ;;  %v4955_v9 = vrot.slane %v2641_v28, 2  ;;  %v4670_v2 = vrot.slane %v2450_v47, 1  ;;  %v2647_v61 = vpop.f32.mrb[243].mxu1  ;;  %v11517_v28 = vld [vmem:[#allocation16_spill] sm:$0xff]  ;;  %vm11540_vm14 = vmmov %vm11441_vm7 }
 0x36e   :  { %v10445_v37 = vadd.f32 %v4951_v26, %v4799_v12  ;;  %v10447_v27 = vadd.f32 %v4953_v42, %v4802_v46  ;;  %v4668_v51 = vrot.slane %v2452_v54, 1  ;;  %v4956_v55 = vrot.slane %v2645_v56, 2  ;;  %v11516_v12 = vld [vmem:[#allocation30_spill] sm:$0xff]  ;;  %vm11544_vm4 = vmmov %vm11469_vm0 }
 0x36f   :  { %v10449_v25 = vadd.f32 %v4954_v6, %v4800_v60  ;;  %v4671_v24 = vrot.slane %v2454_v48, 1  ;;  %v4958_v30 = vrot.slane %v2643_v31, 2  ;;  %v4959_v14 = vrot.slane %v2647_v61, 2  ;;  %v11518_v60 = vld [vmem:[#allocation12_spill] sm:$0xff]  ;;  %v2458_v31 = vpop.f32.mrb[244].mxu0  ;;  %vm11548_vm8 = vmmov %vm11441_vm7 }
 0x370   :  { %v4669_v19 = vsel %vm11513_vm12, %v4667_v53, %v4668_v51  ;;  %v4805_v41 = vadd.f32 %v4668_v51, %v11514_v0  ;;  %v4957_v26 = vsel %vm11515_vm2, %v4955_v9, %v4956_v55  ;;  %v2651_v9 = vpop.f32.mrb[244].mxu1  ;;  %v2460_v61 = vpop.f32.mrb[245].mxu0  ;;  %vm11551_vm9 = vmmov %vm11441_vm7  ;;  %vm5171_vm12 = vcmask 1044480  }
 0x371   :  { %v4672_v42 = vsel %vm11441_vm7, %v4670_v2, %v4671_v24  ;;  %v4803_v46 = vadd.f32 %v4669_v19, %v11516_v12  ;;  %v4806_v6 = vadd.f32 %v4671_v24, %v11518_v60  ;;  %v4960_v54 = vsel %vm11519_vm1, %v4958_v30, %v4959_v14  ;;  %v2653_v2 = vpop.f32.mrb[245].mxu1  ;;  %v2462_v0 = vpop.f32.mrb[246].mxu0  ;;  %vm11554_vm10 = vmmov %vm11469_vm0 }
 0x372   :  { %v4804_v47 = vadd.f32 %v4672_v42, %v11517_v28  ;;  %v10459_v56 = vadd.f32 %v4956_v55, %v4805_v41  ;;  %v4673_v19 = vrot.slane %v2458_v31, 1  ;;  %v4674_v12 = vrot.slane %v2462_v0, 1  ;;  %v2655_v42 = vpop.f32.mrb[246].mxu1  ;;  %v2464_v28 = vpop.f32.mrb[247].mxu0  ;;  %v11529_v0 = vld [vmem:[#allocation36_spill] sm:$0xff] }
 0x373   :  { %v10461_v48 = vadd.f32 %v4957_v26, %v4803_v46  ;;  %v10465_v51 = vadd.f32 %v4959_v14, %v4806_v6  ;;  %v4961_v24 = vrot.slane %v2651_v9, 2  ;;  %v4676_v60 = vrot.slane %v2460_v61, 1  ;;  %v2657_v41 = vpop.f32.mrb[247].mxu1  ;;  %v11525_v46 = vld [vmem:[#allocation14_spill] sm:$0xff]  ;;  %v11531_v9 = vld [vmem:[#allocation17_spill] sm:$0xff] }
 0x374   :  { %11520 = vst [vmem:[#allocation51_spill] sm:$0xff] %v10459_v56  ;;  %v10463_v53 = vadd.f32 %v4960_v54, %v4804_v47  ;;  %v4962_v30 = vrot.slane %v2655_v42, 2  ;;  %v4677_v55 = vrot.slane %v2464_v28, 1  ;;  %v4964_v56 = vrot.slane %v2653_v2, 2  ;;  %v11526_v6 = vld [vmem:[#allocation34_spill] sm:$0xff] }
 0x375   :  { %11521 = vst [vmem:[#allocation52_spill] sm:$0xff] %v10461_v48  ;;  %11523 = vst [vmem:[#allocation56_spill] sm:$0xff] %v10465_v51  ;;  %v4675_v26 = vsel %vm11524_vm15, %v4673_v19, %v4674_v12  ;;  %v4809_v47 = vadd.f32 %v4674_v12, %v11525_v46  ;;  %v4965_v14 = vrot.slane %v2657_v41, 2  ;;  %v2468_v12 = vpop.f32.mrb[248].mxu0  ;;  %vm11561_vm2 = vcmask 1041409  }
 0x376   :  { %11522 = vst [vmem:[#allocation53_spill] sm:$0xff] %v10463_v53  ;;  %v4807_v54 = vadd.f32 %v4675_v26, %v11526_v6  ;;  %v4963_v51 = vsel %vm11527_vm3, %v4961_v24, %v4962_v30  ;;  %v4678_v31 = vsel %vm11528_vm13, %v4676_v60, %v4677_v55  ;;  %v4810_v53 = vadd.f32 %v4677_v55, %v11529_v0  ;;  %v2661_v41 = vpop.f32.mrb[248].mxu1  ;;  %v2470_v26 = vpop.f32.mrb[249].mxu0 }
 0x377   :  { %v10473_v48 = vadd.f32 %v4962_v30, %v4809_v47  ;;  %v4808_v61 = vadd.f32 %v4678_v31, %v11531_v9  ;;  %v4966_v42 = vsel %vm11532_vm5, %v4964_v56, %v4965_v14  ;;  %v2663_v24 = vpop.f32.mrb[249].mxu1  ;;  %v2472_v46 = vpop.f32.mrb[250].mxu0  ;;  %v4679_v60 = vrot.slane %v2468_v12, 1 }
 0x378   :  { %v10477_v2 = vadd.f32 %v4963_v51, %v4807_v54  ;;  %v10479_v19 = vadd.f32 %v4965_v14, %v4810_v53  ;;  %v4680_v6 = vrot.slane %v2472_v46, 1  ;;  %v2665_v55 = vpop.f32.mrb[250].mxu1  ;;  %v2474_v30 = vpop.f32.mrb[251].mxu0  ;;  %v4967_v47 = vrot.slane %v2661_v41, 2  ;;  %v11537_v14 = vld [vmem:[#allocation38_spill] sm:$0xff]  ;;  %v11541_v46 = vld [vmem:[#allocation97_spill] sm:$0xff] }
 0x379   :  { %11530 = vst [vmem:[#allocation54_spill] sm:$0xff] %v10473_v48  ;;  %v10481_v28 = vadd.f32 %v4966_v42, %v4808_v61  ;;  %v4682_v0 = vrot.slane %v2470_v26, 1  ;;  %v4968_v31 = vrot.slane %v2665_v55, 2  ;;  %v4683_v9 = vrot.slane %v2474_v30, 1  ;;  %v2667_v56 = vpop.f32.mrb[251].mxu1  ;;  %v11538_v42 = vld [vmem:[#allocation37_spill] sm:$0xff] }
 0x37a   :  { %11533 = vst [vmem:[#allocation55_spill] sm:$0xff] %v10477_v2  ;;  %11534 = vst [vmem:[#allocation57_spill] sm:$0xff] %v10479_v19  ;;  %v4970_v51 = vrot.slane %v2663_v24, 2  ;;  %v4681_v53 = vsel %vm11536_vm11, %v4679_v60, %v4680_v6  ;;  %v4813_v54 = vadd.f32 %v4680_v6, %v11537_v14  ;;  %v4971_v61 = vrot.slane %v2667_v56, 2  ;;  %v11543_v41 = vld [vmem:[#allocation18_spill] sm:$0xff] }
 0x37b   :  { %11535 = vst [vmem:[#allocation60_spill] sm:$0xff] %v10481_v28  ;;  %v4811_v19 = vadd.f32 %v4681_v53, %v11538_v42  ;;  %v4969_v28 = vsel %vm11539_vm6, %v4967_v47, %v4968_v31  ;;  %v4684_v12 = vsel %vm11540_vm14, %v4682_v0, %v4683_v9  ;;  %v4814_v48 = vadd.f32 %v4683_v9, %v11541_v46  ;;  %vm11574_vm11 = vmmov %vm11561_vm2 }
 0x37c   :  { %v10489_v2 = vadd.f32 %v4968_v31, %v4813_v54  ;;  %v4812_v26 = vadd.f32 %v4684_v12, %v11543_v41  ;;  %v4972_v55 = vsel %vm11544_vm4, %v4970_v51, %v4971_v61  ;;  %vm11562_vm7 = vcmask 1042434  }
 0x37d   :  { %v10493_v24 = vadd.f32 %v4969_v28, %v4811_v19  ;;  %v10495_v60 = vadd.f32 %v4971_v61, %v4814_v48  ;;  %v2478_v6 = vpop.f32.mrb[252].mxu0  ;;  %v11549_v28 = vld [vmem:[#allocation40_spill] sm:$0xff]  ;;  %vm11563_vm1 = vcmask 1043459   ;;  %vm11565_vm15 = vcmask 1044484   ;;  %vm11579_vm6 = vmmov %vm11562_vm7 }
 0x37e   :  { %11542 = vst [vmem:[#allocation58_spill] sm:$0xff] %v10489_v2  ;;  %v10497_v30 = vadd.f32 %v4972_v55, %v4812_v26  ;;  %v2671_v56 = vpop.f32.mrb[252].mxu1  ;;  %v2480_v53 = vpop.f32.mrb[253].mxu0  ;;  %v4685_v0 = vrot.slane %v2478_v6, 1  ;;  %v11550_v55 = vld [vmem:[#allocation19_spill] sm:$0xff]  ;;  %vm11568_vm3 = vcmask 1045509   ;;  %vm11584_vm14 = vmmov %vm11563_vm1 }
 0x37f   :  { %11545 = vst [vmem:[#allocation61_spill] sm:$0xff] %v10493_v24  ;;  %11546 = vst [vmem:[#allocation59_spill] sm:$0xff] %v10495_v60  ;;  %v2673_v47 = vpop.f32.mrb[253].mxu1  ;;  %v2482_v14 = vpop.f32.mrb[254].mxu0  ;;  %v4973_v54 = vrot.slane %v2671_v56, 2  ;;  %v4688_v46 = vrot.slane %v2480_v53, 1 }
 0x380   :  { %11547 = vst [vmem:[#allocation62_spill] sm:$0xff] %v10497_v30  ;;  %v4686_v42 = vrot.slane %v2482_v14, 1  ;;  %v2675_v9 = vpop.f32.mrb[254].mxu1  ;;  %v2484_v31 = vpop.f32.mrb[255].mxu0  ;;  %v4976_v19 = vrot.slane %v2673_v47, 2  ;;  %v11552_v14 = vld [vmem:[#allocation42_spill] sm:$0xff]  ;;  %vm11589_vm4 = vmmov %vm11565_vm15 }
 0x381   :  { %v4974_v12 = vrot.slane %v2675_v9, 2  ;;  %v4689_v41 = vrot.slane %v2484_v31, 1  ;;  %v2677_v51 = vpop.f32.mrb[255].mxu1  ;;  %v11553_v56 = vld [vmem:[#allocation39_spill] sm:$0xff]  ;;  %v5396_v31 = vld [vmem:[%s10935_s4] sm:$0x3] }
 0x382   :  { %v4687_v48 = vsel %vm11548_vm8, %v4685_v0, %v4686_v42  ;;  %v4817_v61 = vadd.f32 %v4686_v42, %v11549_v28  ;;  %v4977_v26 = vrot.slane %v2677_v51, 2  ;;  %vm11569_vm13 = vcmask 1046534   ;;  %vm11591_vm8 = vmmov %vm11568_vm3 }
 0x383   :  { %v4815_v60 = vadd.f32 %v4687_v48, %v11550_v55  ;;  %v4975_v30 = vsel %vm11469_vm0, %v4973_v54, %v4974_v12  ;;  %v4690_v6 = vsel %vm11551_vm9, %v4688_v46, %v4689_v41  ;;  %v4818_v24 = vadd.f32 %v4689_v41, %v11552_v14  ;;  %v11557_v48 = vld [vmem:[#allocation24_spill] sm:$0xff]  ;;  %vm11593_vm0 = vmmov %vm11561_vm2 }
 0x384   :  { %v10505_v2 = vadd.f32 %v4974_v12, %v4817_v61  ;;  %v4816_v53 = vadd.f32 %v4690_v6, %v11553_v56  ;;  %v4978_v9 = vsel %vm11554_vm10, %v4976_v19, %v4977_v26  ;;  %v10519_v28 = vrot.slane %v5396_v31, %v11557_v48  ;;  %vm11594_vm9 = vmmov %vm11593_vm0 }
 0x385   :  { %v10509_v47 = vadd.f32 %v4975_v30, %v4815_v60  ;;  %v10511_v0 = vadd.f32 %v4977_v26, %v4818_v24  ;;  %v2714_v42 = vpop.f32.mrb[0].mxu0  ;;  %v11558_v24 = vld [vmem:[#allocation25_spill] sm:$0xff]  ;;  %vm11573_vm5 = vcmask 1047559   ;;  %vm11595_vm10 = vmmov %vm11579_vm6 }
 0x386   :  { %v10516_v54 = vadd.f32 %v4978_v9, %v4816_v53  ;;  %v2716_v46 = vpop.f32.mrb[1].mxu0  ;;  %v5172_v12 = vrot.slane %v2714_v42, 3  ;;  %v10522_v61 = vrot.slane %v5396_v31, %v11558_v24 }
 0x387   :  { %11555 = vst [vmem:[#allocation64_spill] sm:$0xff] %v10511_v0  ;;  %v2718_v51 = vpop.f32.mrb[2].mxu0  ;;  %v5175_v60 = vrot.slane %v2716_v46, 3 }
 0x388   :  { %11556 = vst [vmem:[#allocation63_spill] sm:$0xff] %v10516_v54  ;;  %v5173_v41 = vrot.slane %v2718_v51, 3  ;;  %v2720_v19 = vpop.f32.mrb[3].mxu0 }
 0x389   :  { %v5176_v30 = vrot.slane %v2720_v19, 3 }
 0x38a   :  { %v5174_v26 = vsel %vm5171_vm12, %v5172_v12, %v5173_v41  ;;  %v5334_v55 = vadd.f32 %v5173_v41, %v9981_v15 }
 0x38b   :  { %v5332_v6 = vadd.f32 %v5174_v26, %v9985_v3  ;;  %v5177_v14 = vsel %vm5171_vm12, %v5175_v60, %v5176_v30  ;;  %v5335_v56 = vadd.f32 %v5176_v30, %v9992_v44 }
 0x38c   :  { %v5410_v53 = vadd.f32 %v10519_v28, %v5334_v55  ;;  %v5333_v9 = vadd.f32 %v5177_v14, %v9990_v52 }
 0x38d   :  { %v5408_v42 = vadd.f32 %v10519_v28, %v5332_v6  ;;  %v5411_v46 = vadd.f32 %v10522_v61, %v5335_v56  ;;  %v2724_v31 = vpop.f32.mrb[4].mxu0 }
 0x38e   :  { %v5474_v51 = vmax.f32 %v5410_v53, 0.0  ;;  %v5409_v12 = vadd.f32 %v10522_v61, %v5333_v9  ;;  %v2726_v48 = vpop.f32.mrb[5].mxu0  ;;  %v5178_v44 = vrot.slane %v2724_v31, 3 }
 0x38f   :  { %v5472_v15 = vmax.f32 %v5408_v42, 0.0  ;;  %v5475_v41 = vmax.f32 %v5411_v46, 0.0  ;;  %v2728_v3 = vpop.f32.mrb[6].mxu0  ;;  %v5181_v55 = vrot.slane %v2726_v48, 3 }
 0x390   :  { %v5536_v19 = vsel %vm5171_vm12, %v5474_v51, -inf  ;;  %v5473_v60 = vmax.f32 %v5409_v12, 0.0  ;;  %v5179_v30 = vrot.slane %v2728_v3, 3  ;;  %v2730_v24 = vpop.f32.mrb[7].mxu0 }
 0x391   :  { %v5537_v26 = vmax.f32 %v5472_v15, %v5536_v19  ;;  %v5544_v52 = vsel %vm5171_vm12, %v5475_v41, -inf  ;;  %v5182_v6 = vrot.slane %v2730_v24, 3 }
 0x392   :  { %v5545_v14 = vmax.f32 %v5473_v60, %v5544_v52  ;;  %v5180_v56 = vsel %vm5171_vm12, %v5178_v44, %v5179_v30  ;;  %v5338_v53 = vadd.f32 %v5179_v30, %v10030_v16 }
 0x393   :  { %v5538_v9 = vrot.slane %v5537_v26, 4  ;;  %v5336_v42 = vadd.f32 %v5180_v56, %v10034_v22  ;;  %v5183_v46 = vsel %vm5171_vm12, %v5181_v55, %v5182_v6  ;;  %v5339_v51 = vadd.f32 %v5182_v6, %v10036_v43 }
 0x394   :  { %v5546_v31 = vrot.slane %v5545_v14, 4  ;;  %v5414_v12 = vadd.f32 %v10519_v28, %v5338_v53  ;;  %v5337_v15 = vadd.f32 %v5183_v46, %v10042_v59 }
 0x395   :  { %v5539_v41 = vmax.f32 %v5537_v26, %v5538_v9  ;;  %v5412_v48 = vadd.f32 %v10519_v28, %v5336_v42  ;;  %v5415_v3 = vadd.f32 %v10522_v61, %v5339_v51  ;;  %v2734_v19 = vpop.f32.mrb[8].mxu0 }
 0x396   :  { %v5547_v60 = vmax.f32 %v5545_v14, %v5546_v31  ;;  %v5478_v16 = vmax.f32 %v5414_v12, 0.0  ;;  %v5413_v44 = vadd.f32 %v10522_v61, %v5337_v15  ;;  %v5184_v22 = vrot.slane %v2734_v19, 3  ;;  %v2736_v30 = vpop.f32.mrb[9].mxu0 }
 0x397   :  { %v5540_v24 = vrot.slane %v5539_v41, 2  ;;  %v5476_v52 = vmax.f32 %v5412_v48, 0.0  ;;  %v5479_v43 = vmax.f32 %v5415_v3, 0.0  ;;  %v5187_v55 = vrot.slane %v2736_v30, 3  ;;  %v2738_v6 = vpop.f32.mrb[10].mxu0 }
 0x398   :  { %v5548_v56 = vrot.slane %v5547_v60, 2  ;;  %v5552_v59 = vsel %vm5171_vm12, %v5478_v16, -inf  ;;  %v5477_v26 = vmax.f32 %v5413_v44, 0.0  ;;  %v5185_v53 = vrot.slane %v2738_v6, 3  ;;  %v2740_v9 = vpop.f32.mrb[11].mxu0 }
 0x399   :  { %v5541_v42 = vmax.f32 %v5539_v41, %v5540_v24  ;;  %v5553_v46 = vmax.f32 %v5476_v52, %v5552_v59  ;;  %v5560_v14 = vsel %vm5171_vm12, %v5479_v43, -inf  ;;  %v5188_v51 = vrot.slane %v2740_v9, 3 }
 0x39a   :  { %v5549_v31 = vmax.f32 %v5547_v60, %v5548_v56  ;;  %v5561_v12 = vmax.f32 %v5477_v26, %v5560_v14  ;;  %v5186_v15 = vsel %vm5171_vm12, %v5184_v22, %v5185_v53  ;;  %v5342_v48 = vadd.f32 %v5185_v53, %v10075_v58 }
 0x39b   :  { %v5542_v3 = vrot.slane %v5541_v42, 1  ;;  %v5554_v19 = vrot.slane %v5553_v46, 4  ;;  %v5340_v30 = vadd.f32 %v5186_v15, %v10080_v5  ;;  %v5189_v16 = vsel %vm5171_vm12, %v5187_v55, %v5188_v51 }
 0x39c   :  { %v5550_v44 = vrot.slane %v5549_v31, 1  ;;  %v5562_v6 = vrot.slane %v5561_v12, 4  ;;  %v5418_v41 = vadd.f32 %v10519_v28, %v5342_v48  ;;  %v5341_v24 = vadd.f32 %v5189_v16, %v10086_v63 }
 0x39d   :  { %v5543_v52 = vmax.f32 %v5541_v42, %v5542_v3  ;;  %v5555_v43 = vmax.f32 %v5553_v46, %v5554_v19  ;;  %v5416_v60 = vadd.f32 %v10519_v28, %v5340_v30  ;;  %v5343_v22 = vadd.f32 %v5188_v51, %v10082_v36  ;;  %v2744_v56 = vpop.f32.mrb[12].mxu0 }
 0x39e   :  { %v5551_v58 = vmax.f32 %v5549_v31, %v5550_v44  ;;  %v5563_v59 = vmax.f32 %v5561_v12, %v5562_v6  ;;  %v5482_v26 = vmax.f32 %v5418_v41, 0.0  ;;  %v5417_v5 = vadd.f32 %v10522_v61, %v5341_v24  ;;  %v2746_v53 = vpop.f32.mrb[13].mxu0 }
 0x39f   :  { %v6393_v55 = vpack.c.bf16 %v5543_v52, %v5543_v52  ;;  %v5556_v9 = vrot.slane %v5555_v43, 2  ;;  %v5480_v14 = vmax.f32 %v5416_v60, 0.0  ;;  %v5419_v15 = vadd.f32 %v10522_v61, %v5343_v22  ;;  %v2748_v48 = vpop.f32.mrb[14].mxu0 }
 0x3a0   :  { %v5564_v63 = vrot.slane %v5563_v59, 2  ;;  %v5568_v42 = vsel %vm5171_vm12, %v5482_v26, -inf  ;;  %v5481_v46 = vmax.f32 %v5417_v5, 0.0  ;;  %v2750_v3 = vpop.f32.mrb[15].mxu0  ;;  %v6394_v12 = vpack.c.bf16 %v5551_v58, %v5551_v58 }
 0x3a1   :  { %v5557_v19 = vmax.f32 %v5555_v43, %v5556_v9  ;;  %v5569_v36 = vmax.f32 %v5480_v14, %v5568_v42  ;;  %v5483_v51 = vmax.f32 %v5419_v15, 0.0  ;;  %v6489_v31 = vunpack.c.l.b16 %v6393_v55  ;;  %v11559_v43 = vld [vmem:[#allocation45_spill] sm:$0xff] }
 0x3a2   :  { %v5565_v30 = vmax.f32 %v5563_v59, %v5564_v63  ;;  %v5190_v16 = vrot.slane %v2744_v56, 3  ;;  %v5191_v24 = vrot.slane %v2748_v48, 3  ;;  %v5193_v22 = vrot.slane %v2746_v53, 3  ;;  %v11560_v59 = vld [vmem:[#allocation21_spill] sm:$0xff] }
 0x3a3   :  { %v5558_v44 = vrot.slane %v5557_v19, 1  ;;  %v5570_v6 = vrot.slane %v5569_v36, 4  ;;  %v5576_v41 = vsel %vm5171_vm12, %v5483_v51, -inf  ;;  %v5194_v0 = vrot.slane %v2750_v3, 3 }
 0x3a4   :  { %v5566_v52 = vrot.slane %v5565_v30, 1  ;;  %v5577_v60 = vmax.f32 %v5481_v46, %v5576_v41  ;;  %v5192_v5 = vsel %vm5171_vm12, %v5190_v16, %v5191_v24  ;;  %v5346_v9 = vadd.f32 %v5191_v24, %v11559_v43 }
 0x3a5   :  { %v5559_v54 = vmax.f32 %v5557_v19, %v5558_v44  ;;  %v5571_v26 = vmax.f32 %v5569_v36, %v5570_v6  ;;  %v2754_v14 = vpop.f32.mrb[16].mxu0  ;;  %v5344_v56 = vadd.f32 %v5192_v5, %v11560_v59  ;;  %v5195_v15 = vsel %vm5171_vm12, %v5193_v22, %v5194_v0 }
 0x3a6   :  { %v5567_v55 = vmax.f32 %v5565_v30, %v5566_v52  ;;  %v5578_v58 = vrot.slane %v5577_v60, 4  ;;  %v2756_v63 = vpop.f32.mrb[17].mxu0  ;;  %v5422_v46 = vadd.f32 %v10519_v28, %v5346_v9  ;;  %v5345_v53 = vadd.f32 %v5195_v15, %v10171_v50 }
 0x3a7   :  { %v6395_v42 = vpack.c.bf16 %v5559_v54, %v5559_v54  ;;  %v5572_v48 = vrot.slane %v5571_v26, 2  ;;  %v2758_v3 = vpop.f32.mrb[18].mxu0  ;;  %v5420_v51 = vadd.f32 %v10519_v28, %v5344_v56  ;;  %v5347_v16 = vadd.f32 %v5194_v0, %v10163_v8 }
 0x3a8   :  { %v6396_v19 = vpack.c.bf16 %v5567_v55, %v5567_v55  ;;  %v5579_v36 = vmax.f32 %v5577_v60, %v5578_v58  ;;  %v2760_v30 = vpop.f32.mrb[19].mxu0  ;;  %v5486_v41 = vmax.f32 %v5422_v46, 0.0  ;;  %v5421_v24 = vadd.f32 %v10522_v61, %v5345_v53 }
 0x3a9   :  { %v6491_v44 = vunpack.c.l.b16 %v6395_v42  ;;  %v5573_v6 = vmax.f32 %v5571_v26, %v5572_v48  ;;  %v10569_v52 = vunpack.c.l.b16 %v6394_v12  ;;  %v5484_v22 = vmax.f32 %v5420_v51, 0.0 }
 0x3aa   :  { %v5580_v54 = vrot.slane %v5579_v36, 2  ;;  %v5423_v5 = vadd.f32 %v10522_v61, %v5347_v16  ;;  %v5584_v60 = vsel %vm5171_vm12, %v5486_v41, -inf  ;;  %v5485_v9 = vmax.f32 %v5421_v24, 0.0 }
 0x3ab   :  { %v6521_v50 = vsel %vm11561_vm2, %v6491_v44, %v6489_v31  ;;  %v5574_v43 = vrot.slane %v5573_v6, 1  ;;  %v10574_v55 = vunpack.c.l.b16 %v6396_v19  ;;  %v5585_v0 = vmax.f32 %v5484_v22, %v5584_v60  ;;  %v7531_v60 = vld [vmem:[#allocation5 + $0x48] sm:$0xff]   ;;  %vm11596_vm2 = vmmov %vm11579_vm6 }
 0x3ac   :  { %v5581_v8 = vmax.f32 %v5579_v36, %v5580_v54  ;;  %v5487_v26 = vmax.f32 %v5423_v5, 0.0  ;;  %v5196_v59 = vrot.slane %v2754_v14, 3  ;;  %v5197_v56 = vrot.slane %v2758_v3, 3  ;;  %v7529_v5 = vld [vmem:[#allocation5 + $0x40] sm:$0xff]  }
 0x3ad   :  { %v5575_v58 = vmax.f32 %v5573_v6, %v5574_v43  ;;  %v5200_v12 = vrot.slane %v2760_v30, 3  ;;  %v2764_v15 = vpop.f32.mrb[20].mxu0  ;;  %v5586_v48 = vrot.slane %v5585_v0, 4  ;;  %v5199_v53 = vrot.slane %v2756_v63, 3  ;;  %v7530_v43 = vld [vmem:[#allocation5] sm:$0xff]   ;;  %7246 = vmatprep.subr.bf16.mxu1 %v7529_v5 }
 0x3ae   :  { %v5582_v42 = vrot.slane %v5581_v8, 1  ;;  %v5592_v46 = vsel %vm5171_vm12, %v5487_v26, -inf  ;;  %v10577_v31 = vpop.f32.mrb[21].mxu0  ;;  %v5198_v19 = vsel %vm5171_vm12, %v5196_v59, %v5197_v56  ;;  %v5350_v36 = vadd.f32 %v5197_v56, %v10211_v40  ;;  %7247 = vmatpush3.bf16.msra.mxu1 %v7530_v43 }
 0x3af   :  { %v6397_v51 = vpack.c.bf16 %v5575_v58, %v5575_v58  ;;  %v5593_v16 = vmax.f32 %v5485_v9, %v5592_v46  ;;  %v2768_v44 = vpop.f32.mrb[22].mxu0  ;;  %v5587_v6 = vmax.f32 %v5585_v0, %v5586_v48  ;;  %v5348_v14 = vadd.f32 %v5198_v19, %v10218_v1  ;;  %v7532_v46 = vld [vmem:[#allocation5 + $0x8] sm:$0xff]   ;;  %7248 = vmatprep.subr.bf16.mxu1 %v7531_v60 }
 0x3b0   :  { %v5583_v41 = vmax.f32 %v5581_v8, %v5582_v42  ;;  %v5201_v3 = vsel %vm5171_vm12, %v5199_v53, %v5200_v12  ;;  %v2770_v30 = vpop.f32.mrb[23].mxu0  ;;  %v5426_v63 = vadd.f32 %v10519_v28, %v5350_v36  ;;  %v5351_v8 = vadd.f32 %v5200_v12, %v10225_v34 }
 0x3b1   :  { %v6493_v24 = vunpack.c.l.b16 %v6397_v51  ;;  %v5594_v54 = vrot.slane %v5593_v16, 4  ;;  %v5349_v22 = vadd.f32 %v5201_v3, %v10223_v33  ;;  %v5588_v26 = vrot.slane %v5587_v6, 2 }
 0x3b2   :  { %v6398_v9 = vpack.c.bf16 %v5583_v41, %v5583_v41  ;;  %v5424_v40 = vadd.f32 %v10519_v28, %v5348_v14  ;;  %v5490_v58 = vmax.f32 %v5426_v63, 0.0  ;;  %v5427_v33 = vadd.f32 %v10522_v61, %v5351_v8  ;;  %7249 = vmatpush3.bf16.msra.mxu1 %v7532_v46 }
 0x3b3   :  { %v10588_v1 = vsel %vm11562_vm7, %v6493_v24, %v6521_v50  ;;  %v5595_v0 = vmax.f32 %v5593_v16, %v5594_v54  ;;  %v5425_v59 = vadd.f32 %v10522_v61, %v5349_v22  ;;  %v5589_v56 = vmax.f32 %v5587_v6, %v5588_v26  ;;  %v7533_v16 = vld [vmem:[#allocation5 + $0x50] sm:$0xff]   ;;  %vm11598_vm7 = vmmov %vm11569_vm13 }
 0x3b4   :  { %v5488_v42 = vmax.f32 %v5424_v40, 0.0  ;;  %v5202_v48 = vrot.slane %v2764_v15, 3  ;;  %v10592_v53 = vunpack.c.l.b16 %v6398_v9  ;;  %v5600_v34 = vsel %vm5171_vm12, %v5490_v58, -inf  ;;  %v7534_v26 = vld [vmem:[#allocation5 + $0x10] sm:$0xff]   ;;  %7250 = vmatprep.subr.bf16.mxu1 %v7533_v16 }
 0x3b5   :  { %v5596_v51 = vrot.slane %v5595_v0, 2  ;;  %v5489_v12 = vmax.f32 %v5425_v59, 0.0  ;;  %v10595_v50 = vpop.f32.mrb[24].mxu0  ;;  %v5590_v19 = vrot.slane %v5589_v56, 1  ;;  %v5491_v41 = vmax.f32 %v5427_v33, 0.0 }
 0x3b6   :  { %v5601_v36 = vmax.f32 %v5488_v42, %v5600_v34  ;;  %v5203_v6 = vrot.slane %v2768_v44, 3  ;;  %v10597_v14 = vpop.f32.mrb[25].mxu0  ;;  %v5205_v15 = vrot.slane %v10577_v31, 3  ;;  %v5206_v24 = vrot.slane %v2770_v30, 3  ;;  %v7535_v31 = vld [vmem:[#allocation5 + $0x58] sm:$0xff]   ;;  %7251 = vmatpush3.bf16.msra.mxu1 %v7534_v26 }
 0x3b7   :  { %v5597_v3 = vmax.f32 %v5595_v0, %v5596_v51  ;;  %v5208_v54 = vrot.slane %v10595_v50, 3  ;;  %v2778_v63 = vpop.f32.mrb[26].mxu0  ;;  %v5591_v22 = vmax.f32 %v5589_v56, %v5590_v19  ;;  %v5608_v43 = vsel %vm5171_vm12, %v5491_v41, -inf  ;;  %7252 = vmatprep.subr.bf16.mxu1 %v7535_v31  ;;  %v7537_v41 = vld [vmem:[#allocation5 + $0x60] sm:$0xff]  }
 0x3b8   :  { %v5602_v5 = vrot.slane %v5601_v36, 4  ;;  %v5204_v60 = vsel %vm5171_vm12, %v5202_v48, %v5203_v6  ;;  %v2780_v9 = vpop.f32.mrb[27].mxu0  ;;  %v5609_v44 = vmax.f32 %v5489_v12, %v5608_v43  ;;  %v5354_v0 = vadd.f32 %v5203_v6, %v10251_v23  ;;  %v7536_v12 = vld [vmem:[#allocation5 + $0x18] sm:$0xff]  }
 0x3b9   :  { %v5598_v40 = vrot.slane %v5597_v3, 1  ;;  %v5352_v8 = vadd.f32 %v5204_v60, %v10261_v39  ;;  %v6399_v30 = vpack.c.bf16 %v5591_v22, %v5591_v22  ;;  %v5207_v59 = vsel %vm5171_vm12, %v5205_v15, %v5206_v24 }
 0x3ba   :  { %v5603_v58 = vmax.f32 %v5601_v36, %v5602_v5  ;;  %v5355_v56 = vadd.f32 %v5206_v24, %v10263_v32  ;;  %v5610_v33 = vrot.slane %v5609_v44, 4  ;;  %v5430_v46 = vadd.f32 %v10519_v28, %v5354_v0  ;;  %7253 = vmatpush3.bf16.msra.mxu1 %v7536_v12  ;;  %v7538_v0 = vld [vmem:[#allocation5 + $0x20] sm:$0xff]  }
 0x3bb   :  { %v10607_v42 = vmax.f32 %v5597_v3, %v5598_v40  ;;  %v5428_v48 = vadd.f32 %v10519_v28, %v5352_v8  ;;  %v6495_v51 = vunpack.c.l.b16 %v6399_v30  ;;  %v5353_v39 = vadd.f32 %v5207_v59, %v10267_v18  ;;  %7254 = vmatprep.subr.bf16.mxu1 %v7537_v41 }
 0x3bc   :  { %v5604_v34 = vrot.slane %v5603_v58, 2  ;;  %v5431_v23 = vadd.f32 %v10522_v61, %v5355_v56  ;;  %v5611_v50 = vmax.f32 %v5609_v44, %v5610_v33  ;;  %v5494_v19 = vmax.f32 %v5430_v46, 0.0  ;;  %v7539_v56 = vld [vmem:[#allocation5 + $0x68] sm:$0xff]  }
 0x3bd   :  { %v5492_v16 = vmax.f32 %v5428_v48, 0.0  ;;  %v5211_v32 = vrot.slane %v10597_v14, 3  ;;  %v10614_v36 = vpop.f32.mrb[28].mxu0  ;;  %v6523_v6 = vsel %vm11563_vm1, %v6495_v51, %v10588_v1  ;;  %v5429_v15 = vadd.f32 %v10522_v61, %v5353_v39 }
 0x3be   :  { %v5605_v3 = vmax.f32 %v5603_v58, %v5604_v34  ;;  %v5495_v18 = vmax.f32 %v5431_v23, 0.0  ;;  %v10619_v24 = vpop.f32.mrb[29].mxu0  ;;  %v6400_v22 = vpack.c.bf16 %v10607_v42, %v10607_v42  ;;  %v5612_v5 = vrot.slane %v5611_v50, 2  ;;  %7255 = vmatpush3.bf16.msra.mxu1 %v7538_v0 }
 0x3bf   :  { %v5616_v43 = vsel %vm5171_vm12, %v5494_v19, -inf  ;;  %v5209_v14 = vrot.slane %v2778_v63, 3  ;;  %v10624_v60 = vpop.f32.mrb[30].mxu0  ;;  %v5493_v44 = vmax.f32 %v5429_v15, 0.0  ;;  %v5212_v59 = vrot.slane %v2780_v9, 3  ;;  %v7540_v9 = vld [vmem:[#allocation5 + $0x28] sm:$0xff]   ;;  %7256 = vmatprep.subr.bf16.mxu1 %v7539_v56 }
 0x3c0   :  { %v5606_v26 = vrot.slane %v5605_v3, 1  ;;  %v5617_v40 = vmax.f32 %v5492_v16, %v5616_v43  ;;  %v5624_v1 = vsel %vm5171_vm12, %v5495_v18, -inf  ;;  %v10627_v8 = vpop.f32.mrb[31].mxu0  ;;  %v5613_v31 = vmax.f32 %v5611_v50, %v5612_v5  ;;  %v11564_v19 = vld [vmem:[#allocation47_spill] sm:$0xff] }
 0x3c1   :  { %v5210_v30 = vsel %vm5171_vm12, %v5208_v54, %v5209_v14  ;;  %v5358_v58 = vadd.f32 %v5209_v14, %v10296_v35  ;;  %v5625_v33 = vmax.f32 %v5493_v44, %v5624_v1  ;;  %v5213_v34 = vsel %vm5171_vm12, %v5211_v32, %v5212_v59  ;;  %v7541_v15 = vld [vmem:[#allocation5 + $0x70] sm:$0xff]  }
 0x3c2   :  { %v5607_v63 = vmax.f32 %v5605_v3, %v5606_v26  ;;  %v5618_v42 = vrot.slane %v5617_v40, 4  ;;  %v5356_v48 = vadd.f32 %v5210_v30, %v10305_v29  ;;  %v5614_v46 = vrot.slane %v5613_v31, 1  ;;  %7257 = vmatpush3.bf16.msra.mxu1 %v7540_v9  ;;  %v7542_v56 = vld [vmem:[#allocation5 + $0x30] sm:$0xff]  }
 0x3c3   :  { %v5434_v51 = vadd.f32 %v10519_v28, %v5358_v58  ;;  %v5359_v39 = vadd.f32 %v5212_v59, %v10309_v38  ;;  %v5626_v54 = vrot.slane %v5625_v33, 4  ;;  %v5357_v41 = vadd.f32 %v5213_v34, %v11564_v19  ;;  %7258 = vmatprep.subr.bf16.mxu1 %v7541_v15  ;;  %v7544_v19 = vld [vmem:[#allocation5 + $0x38] sm:$0xff]  }
 0x3c4   :  { %v6401_v23 = vpack.c.bf16 %v5607_v63, %v5607_v63  ;;  %v5619_v12 = vmax.f32 %v5617_v40, %v5618_v42  ;;  %v5432_v35 = vadd.f32 %v10519_v28, %v5356_v48  ;;  %v5615_v50 = vmax.f32 %v5613_v31, %v5614_v46  ;;  %v7543_v46 = vld [vmem:[#allocation5 + $0x78] sm:$0xff]  }
 0x3c5   :  { %v5498_v16 = vmax.f32 %v5434_v51, 0.0  ;;  %v5435_v29 = vadd.f32 %v10522_v61, %v5359_v39  ;;  %v10638_v3 = vpop.f32.mrb[32].mxu0  ;;  %v5627_v38 = vmax.f32 %v5625_v33, %v5626_v54  ;;  %v5433_v40 = vadd.f32 %v10522_v61, %v5357_v41 }
 0x3c6   :  { %v6497_v32 = vunpack.c.l.b16 %v6401_v23  ;;  %v5620_v18 = vrot.slane %v5619_v12, 2  ;;  %v5496_v5 = vmax.f32 %v5432_v35, 0.0  ;;  %v10640_v43 = vpop.f32.mrb[33].mxu0  ;;  %v6402_v14 = vpack.c.bf16 %v5615_v50, %v5615_v50  ;;  %7259 = vmatpush3.bf16.msra.mxu1 %v7542_v56 }
 0x3c7   :  { %v5632_v26 = vsel %vm5171_vm12, %v5498_v16, -inf  ;;  %v5499_v44 = vmax.f32 %v5435_v29, 0.0  ;;  %v10644_v1 = vpop.f32.mrb[34].mxu0  ;;  %v5628_v30 = vrot.slane %v5627_v38, 2  ;;  %v10649_v63 = vunpack.c.l.b16 %v6400_v22  ;;  %7260 = vmatprep.subr.bf16.mxu1 %v7543_v46 }
 0x3c8   :  { %v6524_v0 = vsel %vm11565_vm15, %v6497_v32, %v6523_v6  ;;  %v5621_v31 = vmax.f32 %v5619_v12, %v5620_v18  ;;  %v5633_v58 = vmax.f32 %v5496_v5, %v5632_v26  ;;  %v10647_v59 = vpop.f32.mrb[35].mxu0  ;;  %v10651_v42 = vunpack.c.l.b16 %v6402_v14  ;;  %v11566_v14 = vld [vmem:[#allocation50_spill] sm:$0xff] }
 0x3c9   :  { %v5497_v33 = vmax.f32 %v5433_v40, 0.0  ;;  %v5640_v48 = vsel %vm5171_vm12, %v5499_v44, -inf  ;;  %v5629_v34 = vmax.f32 %v5627_v38, %v5628_v30  ;;  %v5214_v6 = vrot.slane %v10614_v36, 3  ;;  %v11567_v40 = vld [vmem:[#allocation48_spill] sm:$0xff] }
 0x3ca   :  { %v5622_v51 = vrot.slane %v5621_v31, 1  ;;  %v5634_v39 = vrot.slane %v5633_v58, 4  ;;  %v5217_v12 = vrot.slane %v10619_v24, 3  ;;  %v5215_v54 = vrot.slane %v10624_v60, 3  ;;  %7261 = vmatpush3.bf16.msra.mxu1 %v7544_v19 }
 0x3cb   :  { %v5641_v23 = vmax.f32 %v5497_v33, %v5640_v48  ;;  %v5218_v22 = vrot.slane %v10627_v8, 3  ;;  %v5630_v9 = vrot.slane %v5629_v34, 1  ;;  %v5220_v16 = vrot.slane %v10638_v3, 3 }
 0x3cc   :  { %v5623_v35 = vmax.f32 %v5621_v31, %v5622_v51  ;;  %v5635_v50 = vmax.f32 %v5633_v58, %v5634_v39  ;;  %v5216_v29 = vsel %vm5171_vm12, %v5214_v6, %v5215_v54  ;;  %v5362_v15 = vadd.f32 %v5215_v54, %v10332_v17 }
 0x3cd   :  { %v5642_v41 = vrot.slane %v5641_v23, 4  ;;  %v5219_v36 = vsel %vm5171_vm12, %v5217_v12, %v5218_v22  ;;  %v10662_v32 = vpop.f32.mrb[36].mxu0  ;;  %v5360_v8 = vadd.f32 %v5216_v29, %v10337_v7  ;;  %v5223_v18 = vrot.slane %v10640_v43, 3 }
 0x3ce   :  { %v6403_v24 = vpack.c.bf16 %v5623_v35, %v5623_v35  ;;  %v5636_v60 = vrot.slane %v5635_v50, 2  ;;  %v10666_v38 = vpop.f32.mrb[37].mxu0  ;;  %v5438_v5 = vadd.f32 %v10519_v28, %v5362_v15  ;;  %v5361_v26 = vadd.f32 %v5219_v36, %v11566_v14 }
 0x3cf   :  { %v5643_v3 = vmax.f32 %v5641_v23, %v5642_v41  ;;  %v5363_v17 = vadd.f32 %v5218_v22, %v11567_v40  ;;  %v2808_v44 = vpop.f32.mrb[38].mxu0  ;;  %v5436_v58 = vadd.f32 %v10519_v28, %v5360_v8  ;;  %v5221_v56 = vrot.slane %v10644_v1, 3 }
 0x3d0   :  { %v6499_v31 = vunpack.c.l.b16 %v6403_v24  ;;  %v5637_v30 = vmax.f32 %v5635_v50, %v5636_v60  ;;  %v10673_v33 = vpop.f32.mrb[39].mxu0  ;;  %v5502_v43 = vmax.f32 %v5438_v5, 0.0  ;;  %v5437_v48 = vadd.f32 %v10522_v61, %v5361_v26 }
 0x3d1   :  { %v5644_v7 = vrot.slane %v5643_v3, 2  ;;  %v5439_v46 = vadd.f32 %v10522_v61, %v5363_v17  ;;  %v5500_v6 = vmax.f32 %v5436_v58, 0.0  ;;  %v5222_v23 = vsel %vm5171_vm12, %v5220_v16, %v5221_v56 }
 0x3d2   :  { %v6525_v51 = vsel %vm11568_vm3, %v6499_v31, %v6524_v0  ;;  %v5638_v39 = vrot.slane %v5637_v30, 1  ;;  %v10679_v12 = vmax.f32 %v5629_v34, %v5630_v9  ;;  %v5648_v54 = vsel %vm5171_vm12, %v5502_v43, -inf }
 0x3d3   :  { %v5501_v1 = vmax.f32 %v5437_v48, 0.0  ;;  %v5503_v22 = vmax.f32 %v5439_v46, 0.0  ;;  %v5649_v50 = vmax.f32 %v5500_v6, %v5648_v54  ;;  %v5364_v19 = vadd.f32 %v5222_v23, %v10385_v62 }
 0x3d4   :  { %v5639_v35 = vmax.f32 %v5637_v30, %v5638_v39  ;;  %v5366_v41 = vadd.f32 %v5221_v56, %v10377_v45  ;;  %v10684_v29 = vmax.f32 %v5643_v3, %v5644_v7  ;;  %v5224_v15 = vrot.slane %v10647_v59, 3 }
 0x3d5   :  { %v5656_v0 = vsel %vm5171_vm12, %v5503_v22, -inf  ;;  %v5226_v16 = vrot.slane %v10662_v32, 3  ;;  %v10689_v34 = vpop.f32.mrb[40].mxu0  ;;  %v5650_v36 = vrot.slane %v5649_v50, 4  ;;  %v5440_v60 = vadd.f32 %v10519_v28, %v5364_v19 }
 0x3d6   :  { %v6405_v9 = vpack.c.bf16 %v5639_v35, %v5639_v35  ;;  %v5657_v24 = vmax.f32 %v5501_v1, %v5656_v0  ;;  %v10692_v8 = vpop.f32.mrb[41].mxu0  ;;  %v5442_v62 = vadd.f32 %v10519_v28, %v5366_v41  ;;  %v5225_v45 = vsel %vm5171_vm12, %v5223_v18, %v5224_v15  ;;  %v11570_v1 = vld [vmem:[#allocation49_spill] sm:$0xff] }
 0x3d7   :  { %v5367_v3 = vadd.f32 %v5224_v15, %v10389_v57  ;;  %v5229_v5 = vrot.slane %v10666_v38, 3  ;;  %v2818_v59 = vpop.f32.mrb[42].mxu0  ;;  %v5651_v32 = vmax.f32 %v5649_v50, %v5650_v36  ;;  %v5504_v40 = vmax.f32 %v5440_v60, 0.0 }
 0x3d8   :  { %v6501_v14 = vunpack.c.l.b16 %v6405_v9  ;;  %v5658_v26 = vrot.slane %v5657_v24, 4  ;;  %v10698_v17 = vpop.f32.mrb[43].mxu0  ;;  %v5506_v31 = vmax.f32 %v5442_v62, 0.0  ;;  %v5365_v30 = vadd.f32 %v5225_v45, %v10387_v11 }
 0x3d9   :  { %v5443_v58 = vadd.f32 %v10522_v61, %v5367_v3  ;;  %v5227_v56 = vrot.slane %v2808_v44, 3  ;;  %v5652_v18 = vrot.slane %v5651_v32, 2  ;;  %v5230_v57 = vrot.slane %v10673_v33, 3 }
 0x3da   :  { %v6526_v7 = vsel %vm11569_vm13, %v6501_v14, %v6525_v51  ;;  %v5659_v43 = vmax.f32 %v5657_v24, %v5658_v26  ;;  %v5664_v38 = vsel %vm5171_vm12, %v5506_v31, -inf  ;;  %v5441_v48 = vadd.f32 %v10522_v61, %v5365_v30  ;;  %v11572_v24 = vld [vmem:[#allocation22_spill] sm:$0xff] }
 0x3db   :  { %v5507_v46 = vmax.f32 %v5443_v58, 0.0  ;;  %v5228_v39 = vsel %vm5171_vm12, %v5226_v16, %v5227_v56  ;;  %v5646_v6 = vrot.slane %v10684_v29, 1  ;;  %v5653_v23 = vmax.f32 %v5651_v32, %v5652_v18 }
 0x3dc   :  { %v5665_v11 = vmax.f32 %v5504_v40, %v5664_v38  ;;  %v5368_v54 = vadd.f32 %v5228_v39, %v10408_v4  ;;  %v5505_v44 = vmax.f32 %v5441_v48, 0.0  ;;  %v5370_v22 = vadd.f32 %v5227_v56, %v11570_v1  ;;  %v11571_v4 = vld [vmem:[#allocation20_spill] sm:$0xff] }
 0x3dd   :  { %v5672_v51 = vsel %vm5171_vm12, %v5507_v46, -inf  ;;  %v5231_v33 = vsel %vm5171_vm12, %v5229_v5, %v5230_v57  ;;  %v10712_v35 = vpop.f32.mrb[44].mxu0  ;;  %v5654_v50 = vrot.slane %v5653_v23, 1  ;;  %v5660_v19 = vrot.slane %v5659_v43, 2 }
 0x3de   :  { %v5666_v41 = vrot.slane %v5665_v11, 4  ;;  %v5444_v0 = vadd.f32 %v10519_v28, %v5368_v54  ;;  %v10715_v15 = vpop.f32.mrb[45].mxu0  ;;  %v5673_v16 = vmax.f32 %v5505_v44, %v5672_v51  ;;  %v5446_v9 = vadd.f32 %v10519_v28, %v5370_v22 }
 0x3df   :  { %v5369_v36 = vadd.f32 %v5231_v33, %v11571_v4  ;;  %v5371_v60 = vadd.f32 %v5230_v57, %v11572_v24  ;;  %v10720_v62 = vpop.f32.mrb[46].mxu0  ;;  %v5655_v45 = vmax.f32 %v5653_v23, %v5654_v50  ;;  %v5232_v14 = vrot.slane %v10689_v34, 3 }
 0x3e0   :  { %v5667_v3 = vmax.f32 %v5665_v11, %v5666_v41  ;;  %v5508_v5 = vmax.f32 %v5444_v0, 0.0  ;;  %v10723_v32 = vpop.f32.mrb[47].mxu0  ;;  %v5674_v26 = vrot.slane %v5673_v16, 4  ;;  %v5510_v40 = vmax.f32 %v5446_v9, 0.0 }
 0x3e1   :  { %v5445_v31 = vadd.f32 %v10522_v61, %v5369_v36  ;;  %v5447_v30 = vadd.f32 %v10522_v61, %v5371_v60  ;;  %v6407_v58 = vpack.c.bf16 %v5655_v45, %v5655_v45  ;;  %v5235_v18 = vrot.slane %v10692_v8, 3 }
 0x3e2   :  { %v5668_v56 = vrot.slane %v5667_v3, 2  ;;  %v5233_v57 = vrot.slane %v2818_v59, 3  ;;  %v5675_v38 = vmax.f32 %v5673_v16, %v5674_v26  ;;  %v5680_v48 = vsel %vm5171_vm12, %v5510_v40, -inf }
 0x3e3   :  { %v5509_v46 = vmax.f32 %v5445_v31, 0.0  ;;  %v5511_v39 = vmax.f32 %v5447_v30, 0.0  ;;  %v6503_v23 = vunpack.c.l.b16 %v6407_v58  ;;  %v5681_v11 = vmax.f32 %v5508_v5, %v5680_v48 }
 0x3e4   :  { %v5669_v34 = vmax.f32 %v5667_v3, %v5668_v56  ;;  %v5234_v54 = vsel %vm5171_vm12, %v5232_v14, %v5233_v57  ;;  %v5676_v44 = vrot.slane %v5675_v38, 2  ;;  %v5374_v22 = vadd.f32 %v5233_v57, %v10424_v20 }
 0x3e5   :  { %v5688_v51 = vsel %vm5171_vm12, %v5511_v39, -inf  ;;  %v5372_v1 = vadd.f32 %v5234_v54, %v10429_v21  ;;  %v10733_v33 = vpop.f32.mrb[48].mxu0  ;;  %v10736_v8 = vsel %vm11573_vm5, %v6503_v23, %v6526_v7  ;;  %v5682_v50 = vrot.slane %v5681_v11, 4  ;;  %vm11602_vm5 = vmmov %vm11598_vm7 }
 0x3e6   :  { %v5670_v59 = vrot.slane %v5669_v34, 1  ;;  %v5689_v41 = vmax.f32 %v5509_v46, %v5688_v51  ;;  %v10738_v0 = vpop.f32.mrb[49].mxu0  ;;  %v5677_v16 = vmax.f32 %v5675_v38, %v5676_v44  ;;  %v5450_v4 = vadd.f32 %v10519_v28, %v5374_v22 }
 0x3e7   :  { %v5448_v9 = vadd.f32 %v10519_v28, %v5372_v1  ;;  %v5236_v36 = vrot.slane %v10698_v17, 3  ;;  %v10743_v21 = vpop.f32.mrb[50].mxu0  ;;  %v10745_v20 = vmax.f32 %v5659_v43, %v5660_v19  ;;  %v5683_v60 = vmax.f32 %v5681_v11, %v5682_v50 }
 0x3e8   :  { %v5671_v24 = vmax.f32 %v5669_v34, %v5670_v59  ;;  %v5690_v7 = vrot.slane %v5689_v41, 4  ;;  %v10747_v45 = vpop.f32.mrb[51].mxu0  ;;  %v5678_v3 = vrot.slane %v5677_v16, 1  ;;  %v5514_v14 = vmax.f32 %v5450_v4, 0.0 }
 0x3e9   :  { %v5512_v5 = vmax.f32 %v5448_v9, 0.0  ;;  %v5237_v26 = vsel %vm5171_vm12, %v5235_v18, %v5236_v36  ;;  %v5684_v31 = vrot.slane %v5683_v60, 2  ;;  %v5375_v43 = vadd.f32 %v5236_v36, %v10433_v13 }
 0x3ea   :  { %v6409_v40 = vpack.c.bf16 %v5671_v24, %v5671_v24  ;;  %v5691_v30 = vmax.f32 %v5689_v41, %v5690_v7  ;;  %v5373_v58 = vadd.f32 %v5237_v26, %v10431_v10  ;;  %v5679_v17 = vmax.f32 %v5677_v16, %v5678_v3 }
 0x3eb   :  { %v5696_v56 = vsel %vm5171_vm12, %v5514_v14, -inf  ;;  %v5238_v19 = vrot.slane %v10712_v35, 3  ;;  %v5685_v57 = vmax.f32 %v5683_v60, %v5684_v31  ;;  %v5241_v46 = vrot.slane %v10715_v15, 3 }
 0x3ec   :  { %v5692_v38 = vrot.slane %v5691_v30, 2  ;;  %v5697_v48 = vmax.f32 %v5512_v5, %v5696_v56  ;;  %v6505_v39 = vunpack.c.l.b16 %v6409_v40  ;;  %v5449_v18 = vadd.f32 %v10522_v61, %v5373_v58 }
 0x3ed   :  { %v5451_v23 = vadd.f32 %v10522_v61, %v5375_v43  ;;  %v5239_v34 = vrot.slane %v10720_v62, 3  ;;  %v10758_v10 = vpop.f32.mrb[52].mxu0  ;;  %v5686_v11 = vrot.slane %v5685_v57, 1  ;;  %v5242_v13 = vrot.slane %v10723_v32, 3 }
 0x3ee   :  { %v5693_v54 = vmax.f32 %v5691_v30, %v5692_v38  ;;  %v5698_v44 = vrot.slane %v5697_v48, 4  ;;  %v10761_v35 = vpop.f32.mrb[53].mxu0  ;;  %v6410_v51 = vpack.c.bf16 %v5679_v17, %v5679_v17  ;;  %v5513_v1 = vmax.f32 %v5449_v18, 0.0 }
 0x3ef   :  { %v5515_v22 = vmax.f32 %v5451_v23, 0.0  ;;  %v5240_v15 = vsel %vm5171_vm12, %v5238_v19, %v5239_v34  ;;  %v10764_v59 = vpop.f32.mrb[54].mxu0  ;;  %v5687_v50 = vmax.f32 %v5685_v57, %v5686_v11  ;;  %v5378_v32 = vadd.f32 %v5239_v34, %v10441_v49 }
 0x3f0   :  { %v5694_v41 = vrot.slane %v5693_v54, 1  ;;  %v5699_v16 = vmax.f32 %v5697_v48, %v5698_v44  ;;  %v5376_v62 = vadd.f32 %v5240_v15, %v10445_v37  ;;  %v10767_v9 = vpop.f32.mrb[55].mxu0  ;;  %v5243_v36 = vsel %vm5171_vm12, %v5241_v46, %v5242_v13 }
 0x3f1   :  { %v5704_v4 = vsel %vm5171_vm12, %v5515_v22, -inf  ;;  %v5379_v24 = vadd.f32 %v5242_v13, %v10447_v27  ;;  %v6411_v60 = vpack.c.bf16 %v5687_v50, %v5687_v50  ;;  %v5454_v26 = vadd.f32 %v10519_v28, %v5378_v32 }
 0x3f2   :  { %v5695_v7 = vmax.f32 %v5693_v54, %v5694_v41  ;;  %v5700_v3 = vrot.slane %v5699_v16, 2  ;;  %v5705_v5 = vmax.f32 %v5513_v1, %v5704_v4  ;;  %v5452_v14 = vadd.f32 %v10519_v28, %v5376_v62 }
 0x3f3   :  { %v5377_v37 = vadd.f32 %v5243_v36, %v10449_v25  ;;  %v5455_v40 = vadd.f32 %v10522_v61, %v5379_v24  ;;  %v6507_v31 = vunpack.c.l.b16 %v6411_v60  ;;  %v5518_v56 = vmax.f32 %v5454_v26, 0.0  ;;  %v11575_v60 = vld [vmem:[#allocation51_spill] sm:$0xff] }
 0x3f4   :  { %v6412_v30 = vpack.c.bf16 %v5695_v7, %v5695_v7  ;;  %v5701_v58 = vmax.f32 %v5699_v16, %v5700_v3  ;;  %v5706_v49 = vrot.slane %v5705_v5, 4  ;;  %v5516_v17 = vmax.f32 %v5452_v14, 0.0 }
 0x3f5   :  { %v5453_v27 = vadd.f32 %v10522_v61, %v5377_v37  ;;  %v5519_v43 = vmax.f32 %v5455_v40, 0.0  ;;  %v10778_v19 = vpop.f32.mrb[56].mxu0  ;;  %v10780_v57 = vunpack.c.l.b16 %v6410_v51  ;;  %v6535_v38 = vsel %vm11574_vm11, %v6507_v31, %v6505_v39  ;;  %v11577_v37 = vld [vmem:[#allocation53_spill] sm:$0xff]  ;;  %v11578_v31 = vld [vmem:[#allocation56_spill] sm:$0xff]  ;;  %vm11603_vm11 = vmmov %vm11568_vm3 }
 0x3f6   :  { %v5702_v48 = vrot.slane %v5701_v58, 1  ;;  %v5707_v46 = vmax.f32 %v5705_v5, %v5706_v49  ;;  %v10783_v25 = vpop.f32.mrb[57].mxu0  ;;  %v10785_v18 = vunpack.c.l.b16 %v6412_v30  ;;  %v5712_v23 = vsel %vm5171_vm12, %v5518_v56, -inf }
 0x3f7   :  { %v5517_v34 = vmax.f32 %v5453_v27, 0.0  ;;  %v5720_v11 = vsel %vm5171_vm12, %v5519_v43, -inf  ;;  %v10789_v54 = vpop.f32.mrb[58].mxu0  ;;  %v5713_v1 = vmax.f32 %v5516_v17, %v5712_v23  ;;  %v5244_v51 = vrot.slane %v10733_v33, 3 }
 0x3f8   :  { %v5703_v44 = vmax.f32 %v5701_v58, %v5702_v48  ;;  %v5708_v13 = vrot.slane %v5707_v46, 2  ;;  %v10792_v22 = vpop.f32.mrb[59].mxu0  ;;  %v5247_v15 = vrot.slane %v10738_v0, 3  ;;  %v5245_v50 = vrot.slane %v10743_v21, 3  ;;  %v11576_v0 = vld [vmem:[#allocation52_spill] sm:$0xff] }
 0x3f9   :  { %v5721_v39 = vmax.f32 %v5517_v34, %v5720_v11  ;;  %v5248_v41 = vrot.slane %v10747_v45, 3  ;;  %v5714_v4 = vrot.slane %v5713_v1, 4  ;;  %v5250_v32 = vrot.slane %v10758_v10, 3 }
 0x3fa   :  { %v6413_v16 = vpack.c.bf16 %v5703_v44, %v5703_v44  ;;  %v5709_v62 = vmax.f32 %v5707_v46, %v5708_v13  ;;  %v5246_v24 = vsel %vm5171_vm12, %v5244_v51, %v5245_v50  ;;  %v5382_v7 = vadd.f32 %v5245_v50, %v11575_v60  ;;  %v11580_v60 = vld [vmem:[#allocation55_spill] sm:$0xff] }
 0x3fb   :  { %v5722_v36 = vrot.slane %v5721_v39, 4  ;;  %v5249_v33 = vsel %vm5171_vm12, %v5247_v15, %v5248_v41  ;;  %v5715_v14 = vmax.f32 %v5713_v1, %v5714_v4  ;;  %v5380_v26 = vadd.f32 %v5246_v24, %v11576_v0 }
 0x3fc   :  { %v6509_v3 = vunpack.c.l.b16 %v6413_v16  ;;  %v5710_v5 = vrot.slane %v5709_v62, 1  ;;  %v5458_v45 = vadd.f32 %v10519_v28, %v5382_v7  ;;  %v5381_v40 = vadd.f32 %v5249_v33, %v11577_v37  ;;  %v11581_v33 = vld [vmem:[#allocation54_spill] sm:$0xff] }
 0x3fd   :  { %v5723_v21 = vmax.f32 %v5721_v39, %v5722_v36  ;;  %v5383_v30 = vadd.f32 %v5248_v41, %v11578_v31  ;;  %v5716_v17 = vrot.slane %v5715_v14, 2  ;;  %v5456_v56 = vadd.f32 %v10519_v28, %v5380_v26 }
 0x3fe   :  { %v6536_v58 = vsel %vm11579_vm6, %v6509_v3, %v6535_v38  ;;  %v5711_v49 = vmax.f32 %v5709_v62, %v5710_v5  ;;  %v5522_v48 = vmax.f32 %v5458_v45, 0.0  ;;  %v5457_v46 = vadd.f32 %v10522_v61, %v5381_v40 }
 0x3ff   :  { %v5724_v43 = vrot.slane %v5723_v21, 2  ;;  %v5459_v23 = vadd.f32 %v10522_v61, %v5383_v30  ;;  %v5717_v44 = vmax.f32 %v5715_v14, %v5716_v17  ;;  %v5520_v13 = vmax.f32 %v5456_v56, 0.0  ;;  %v11582_v56 = vld [vmem:[#allocation60_spill] sm:$0xff] }
 0x400   :  { %v6414_v11 = vpack.c.bf16 %v5711_v49, %v5711_v49  ;;  %v5251_v1 = vrot.slane %v10764_v59, 3  ;;  %v5728_v39 = vsel %vm5171_vm12, %v5522_v48, -inf  ;;  %v5521_v15 = vmax.f32 %v5457_v46, 0.0 }
 0x401   :  { %v10805_v10 = vpop.f32.mrb[60].mxu0  ;;  %v5725_v51 = vmax.f32 %v5723_v21, %v5724_v43  ;;  %v5523_v50 = vmax.f32 %v5459_v23, 0.0  ;;  %v5718_v41 = vrot.slane %v5717_v44, 1  ;;  %v5729_v16 = vmax.f32 %v5520_v13, %v5728_v39  ;;  %v11583_v23 = vld [vmem:[#allocation57_spill] sm:$0xff] }
 0x402   :  { %v10809_v27 = vpop.f32.mrb[61].mxu0  ;;  %v5253_v62 = vrot.slane %v10761_v35, 3  ;;  %v5252_v4 = vsel %vm5171_vm12, %v5250_v32, %v5251_v1  ;;  %v5386_v59 = vadd.f32 %v5251_v1, %v11581_v33  ;;  %v5254_v0 = vrot.slane %v10767_v9, 3 }
 0x403   :  { %v10813_v34 = vpop.f32.mrb[62].mxu0  ;;  %v5726_v36 = vrot.slane %v5725_v51, 1  ;;  %v5736_v24 = vsel %vm5171_vm12, %v5523_v50, -inf  ;;  %v5384_v7 = vadd.f32 %v5252_v4, %v11580_v60  ;;  %v5719_v3 = vmax.f32 %v5717_v44, %v5718_v41 }
 0x404   :  { %v10816_v38 = vpop.f32.mrb[63].mxu0  ;;  %v5730_v5 = vrot.slane %v5729_v16, 4  ;;  %v5737_v14 = vmax.f32 %v5521_v15, %v5736_v24  ;;  %v10825_v26 = vunpack.c.l.b16 %v6414_v11  ;;  %v5462_v35 = vadd.f32 %v10519_v28, %v5386_v59 }
 0x405   :  { %v5727_v21 = vmax.f32 %v5725_v51, %v5726_v36  ;;  %v5460_v45 = vadd.f32 %v10519_v28, %v5384_v7  ;;  %v6415_v32 = vpack.c.bf16 %v5719_v3, %v5719_v3  ;;  %v5255_v31 = vsel %vm5171_vm12, %v5253_v62, %v5254_v0  ;;  %v11585_v3 = vld [vmem:[#allocation58_spill] sm:$0xff] }
 0x406   :  { %v5731_v37 = vmax.f32 %v5729_v16, %v5730_v5  ;;  %v5738_v40 = vrot.slane %v5737_v14, 4  ;;  %v5526_v17 = vmax.f32 %v5462_v35, 0.0  ;;  %v5385_v43 = vadd.f32 %v5255_v31, %v11582_v56  ;;  %v11587_v35 = vld [vmem:[#allocation62_spill] sm:$0xff] }
 0x407   :  { %v6416_v30 = vpack.c.bf16 %v5727_v21, %v5727_v21  ;;  %v5524_v49 = vmax.f32 %v5460_v45, 0.0  ;;  %v6511_v48 = vunpack.c.l.b16 %v6415_v32  ;;  %v5387_v11 = vadd.f32 %v5254_v0, %v11583_v23  ;;  %v11586_v45 = vld [vmem:[#allocation61_spill] sm:$0xff] }
 0x408   :  { %v5732_v46 = vrot.slane %v5731_v37, 2  ;;  %v5739_v9 = vmax.f32 %v5737_v14, %v5738_v40  ;;  %v5744_v13 = vsel %vm5171_vm12, %v5526_v17, -inf  ;;  %v5461_v1 = vadd.f32 %v10522_v61, %v5385_v43 }
 0x409   :  { %v10832_v44 = vunpack.c.l.b16 %v6416_v30  ;;  %v5256_v51 = vrot.slane %v10778_v19, 3  ;;  %v6537_v39 = vsel %vm11584_vm14, %v6511_v48, %v6536_v58  ;;  %v5745_v41 = vmax.f32 %v5524_v49, %v5744_v13  ;;  %vm11605_vm14 = vmmov %vm11602_vm5 }
 0x40a   :  { %v5733_v15 = vmax.f32 %v5731_v37, %v5732_v46  ;;  %v5740_v50 = vrot.slane %v5739_v9, 2  ;;  %v5463_v16 = vadd.f32 %v10522_v61, %v5387_v11  ;;  %v5259_v62 = vrot.slane %v10783_v25, 3  ;;  %v11588_v37 = vld [vmem:[#allocation59_spill] sm:$0xff] }
 0x40b   :  { %v5257_v4 = vrot.slane %v10789_v54, 3  ;;  %v5260_v36 = vrot.slane %v10792_v22, 3  ;;  %v5746_v7 = vrot.slane %v5745_v41, 4  ;;  %v5525_v33 = vmax.f32 %v5461_v1, 0.0 }
 0x40c   :  { %v5734_v24 = vrot.slane %v5733_v15, 1  ;;  %v5741_v60 = vmax.f32 %v5739_v9, %v5740_v50  ;;  %v5527_v59 = vmax.f32 %v5463_v16, 0.0  ;;  %v5262_v13 = vrot.slane %v10805_v10, 3 }
 0x40d   :  { %v5258_v19 = vsel %vm5171_vm12, %v5256_v51, %v5257_v4  ;;  %v5390_v58 = vadd.f32 %v5257_v4, %v11585_v3  ;;  %v5261_v5 = vsel %vm5171_vm12, %v5259_v62, %v5260_v36  ;;  %v5747_v21 = vmax.f32 %v5745_v41, %v5746_v7 }
 0x40e   :  { %v5735_v14 = vmax.f32 %v5733_v15, %v5734_v24  ;;  %v5742_v0 = vrot.slane %v5741_v60, 1  ;;  %v5388_v25 = vadd.f32 %v5258_v19, %v11586_v45  ;;  %v5752_v54 = vsel %vm5171_vm12, %v5527_v59, -inf }
 0x40f   :  { %v5466_v22 = vadd.f32 %v10519_v28, %v5390_v58  ;;  %v5389_v32 = vadd.f32 %v5261_v5, %v11587_v35  ;;  %v5391_v40 = vadd.f32 %v5260_v36, %v11588_v37  ;;  %v5748_v49 = vrot.slane %v5747_v21, 2 }
 0x410   :  { %v6417_v31 = vpack.c.bf16 %v5735_v14, %v5735_v14  ;;  %v10850_v30 = vmax.f32 %v5741_v60, %v5742_v0  ;;  %v5753_v17 = vmax.f32 %v5525_v33, %v5752_v54  ;;  %v5464_v56 = vadd.f32 %v10519_v28, %v5388_v25 }
 0x411   :  { %v5530_v43 = vmax.f32 %v5466_v22, 0.0  ;;  %v5465_v48 = vadd.f32 %v10522_v61, %v5389_v32  ;;  %v5467_v46 = vadd.f32 %v10522_v61, %v5391_v40  ;;  %v5749_v23 = vmax.f32 %v5747_v21, %v5748_v49  ;;  %v11590_v49 = vld [vmem:[#allocation63_spill] sm:$0xff] }
 0x412   :  { %v6513_v9 = vunpack.c.l.b16 %v6417_v31  ;;  %v5754_v11 = vrot.slane %v5753_v17, 4  ;;  %v5528_v1 = vmax.f32 %v5464_v56, 0.0  ;;  %v6418_v16 = vpack.c.bf16 %v10850_v30, %v10850_v30 }
 0x413   :  { %v5760_v51 = vsel %vm5171_vm12, %v5530_v43, -inf  ;;  %v5529_v15 = vmax.f32 %v5465_v48, 0.0  ;;  %v5531_v50 = vmax.f32 %v5467_v46, 0.0  ;;  %v5750_v62 = vrot.slane %v5749_v23, 1 }
 0x414   :  { %v6538_v41 = vsel %vm11589_vm4, %v6513_v9, %v6537_v39  ;;  %v5755_v4 = vmax.f32 %v5753_v17, %v5754_v11  ;;  %v5761_v36 = vmax.f32 %v5528_v1, %v5760_v51  ;;  %v5265_v60 = vrot.slane %v10809_v27, 3 }
 0x415   :  { %v5768_v24 = vsel %vm5171_vm12, %v5531_v50, -inf  ;;  %v5263_v7 = vrot.slane %v10813_v34, 3  ;;  %v5751_v10 = vmax.f32 %v5749_v23, %v5750_v62  ;;  %v5266_v19 = vrot.slane %v10816_v38, 3  ;;  %v11592_v23 = vld [vmem:[#allocation64_spill] sm:$0xff] }
 0x416   :  { %v5756_v33 = vrot.slane %v5755_v4, 2  ;;  %v5769_v59 = vmax.f32 %v5529_v15, %v5768_v24  ;;  %v5762_v58 = vrot.slane %v5761_v36, 4  ;;  %v5647_v14 = vmax.f32 %v10684_v29, %v5646_v6 }
 0x417   :  { %v5264_v39 = vsel %vm5171_vm12, %v5262_v13, %v5263_v7  ;;  %v5394_v5 = vadd.f32 %v5263_v7, %v10505_v2  ;;  %v6419_v0 = vpack.c.bf16 %v5751_v10, %v5751_v10  ;;  %v5267_v35 = vsel %vm5171_vm12, %v5265_v60, %v5266_v19 }
 0x418   :  { %v5757_v21 = vmax.f32 %v5755_v4, %v5756_v33  ;;  %v5770_v45 = vrot.slane %v5769_v59, 4  ;;  %v5392_v34 = vadd.f32 %v5264_v39, %v10509_v47  ;;  %v5763_v38 = vmax.f32 %v5761_v36, %v5762_v58 }
 0x419   :  { %v5470_v22 = vadd.f32 %v10519_v28, %v5394_v5  ;;  %v6515_v32 = vunpack.c.l.b16 %v6419_v0  ;;  %v5393_v47 = vadd.f32 %v5267_v35, %v11590_v49  ;;  %v5395_v11 = vadd.f32 %v5266_v19, %v11592_v23 }
 0x41a   :  { %v5758_v2 = vrot.slane %v5757_v21, 1  ;;  %v5771_v40 = vmax.f32 %v5769_v59, %v5770_v45  ;;  %v5468_v29 = vadd.f32 %v10519_v28, %v5392_v34  ;;  %v5764_v31 = vrot.slane %v5763_v38, 2 }
 0x41b   :  { %v5534_v30 = vmax.f32 %v5470_v22, 0.0  ;;  %v6539_v17 = vsel %vm11591_vm8, %v6515_v32, %v6538_v41  ;;  %v5469_v13 = vadd.f32 %v10522_v61, %v5393_v47  ;;  %v5662_v51 = vrot.slane %v10745_v20, 1 }
 0x41c   :  { %v5759_v56 = vmax.f32 %v5757_v21, %v5758_v2  ;;  %v5772_v43 = vrot.slane %v5771_v40, 2  ;;  %v5532_v48 = vmax.f32 %v5468_v29, 0.0  ;;  %v5765_v46 = vmax.f32 %v5763_v38, %v5764_v31 }
 0x41d   :  { %v7218_v3 = vpop.f32.mrb[0].mxu1  ;;  %v5776_v9 = vsel %vm5171_vm12, %v5534_v30, -inf  ;;  %v6404_v15 = vpack.c.bf16 %v10679_v12, %v10679_v12  ;;  %v5471_v41 = vadd.f32 %v10522_v61, %v5395_v11  ;;  %v5533_v62 = vmax.f32 %v5469_v13, 0.0 }
 0x41e   :  { %v7219_v27 = vpop.f32.mrb[1].mxu1  ;;  %v5773_v1 = vmax.f32 %v5771_v40, %v5772_v43  ;;  %v5777_v28 = vmax.f32 %v5532_v48, %v5776_v9  ;;  %v5766_v50 = vrot.slane %v5765_v46, 1  ;;  %v6406_v4 = vpack.c.bf16 %v5647_v14, %v5647_v14 }
 0x41f   :  { %v10870_v25 = vadd.f32 %v7219_v27, %v7218_v3  ;;  %v7221_v54 = vpop.f32.mrb[2].mxu1  ;;  %v5663_v60 = vmax.f32 %v10745_v20, %v5662_v51  ;;  %v6420_v7 = vpack.c.bf16 %v5759_v56, %v5759_v56  ;;  %v6514_v10 = vunpack.c.l.b16 %v6418_v16 }
 0x420   :  { %v7222_v37 = vpop.f32.mrb[3].mxu1  ;;  %v5774_v36 = vrot.slane %v5773_v1, 1  ;;  %v5778_v24 = vrot.slane %v5777_v28, 4  ;;  %v5767_v33 = vmax.f32 %v5765_v46, %v5766_v50  ;;  %v5535_v59 = vmax.f32 %v5471_v41, 0.0 }
 0x421   :  { %v10875_v6 = vadd.f32 %v7222_v37, %v7221_v54  ;;  %v6500_v19 = vunpack.c.l.b16 %v6404_v15  ;;  %v6408_v39 = vpack.c.bf16 %v5663_v60, %v5663_v60  ;;  %v6502_v5 = vunpack.c.l.b16 %v6406_v4  ;;  %v7201_v60 = vld [vmem:[%s10939_s8] ss:$0 sm:$0xff] }
 0x422   :  { %v5779_v3 = vmax.f32 %v5777_v28, %v5778_v24  ;;  %v5775_v58 = vmax.f32 %v5773_v1, %v5774_v36  ;;  %v6421_v0 = vpack.c.bf16 %v5767_v33, %v5767_v33  ;;  %v5784_v12 = vsel %vm5171_vm12, %v5535_v59, -inf  ;;  %vm11597_vm12 = vmmov %vm11563_vm1 }
 0x423   :  { %v6528_v61 = vsel %vm11593_vm0, %v10574_v55, %v10569_v52  ;;  %v6542_v20 = vsel %vm11594_vm9, %v10785_v18, %v10780_v57  ;;  %v5785_v16 = vmax.f32 %v5533_v62, %v5784_v12  ;;  %v6516_v27 = vunpack.c.l.b16 %v6420_v7  ;;  %vm11599_vm1 = vmmov %vm11589_vm4 }
 0x424   :  { %v5780_v14 = vrot.slane %v5779_v3, 2  ;;  %v6422_v21 = vpack.c.bf16 %v5775_v58, %v5775_v58  ;;  %v6517_v45 = vunpack.c.l.b16 %v6421_v0  ;;  %v6504_v34 = vunpack.c.l.b16 %v6408_v39  ;;  %vm11600_vm15 = vmmov %vm11597_vm12 }
 0x425   :  { %v6529_v54 = vsel %vm11595_vm10, %v10592_v53, %v6528_v61  ;;  %v6543_v38 = vsel %vm11596_vm2, %v10825_v26, %v6542_v20  ;;  %v5786_v35 = vrot.slane %v5785_v16, 4  ;;  %vm11601_vm13 = vmmov %vm11599_vm1  ;;  %vm11604_vm6 = vcmask 1047559  }
 0x426   :  { %v5781_v22 = vmax.f32 %v5779_v3, %v5780_v14  ;;  %v6518_v32 = vunpack.c.l.b16 %v6422_v21  ;;  %v6530_v52 = vsel %vm11597_vm12, %v10649_v63, %v6529_v54  ;;  %v6540_v55 = vsel %vm11598_vm7, %v6517_v45, %v6539_v17  ;;  %vm11606_vm4 = vmmov %vm11604_vm6 }
 0x427   :  { %v6531_v57 = vsel %vm11599_vm1, %v10651_v42, %v6530_v52  ;;  %v6544_v18 = vsel %vm11600_vm15, %v10832_v44, %v6543_v38  ;;  %v5787_v37 = vmax.f32 %v5785_v16, %v5786_v35  ;;  %vm11607_vm8 = vmmov %vm11606_vm4 }
 0x428   :  { %v5782_v2 = vrot.slane %v5781_v22, 1  ;;  %v6532_v53 = vsel %vm11568_vm3, %v6500_v19, %v6531_v57  ;;  %v6545_v26 = vsel %vm11601_vm13, %v6514_v10, %v6544_v18 }
 0x429   :  { %v6533_v40 = vsel %vm11602_vm5, %v6502_v5, %v6532_v53  ;;  %v6546_v29 = vsel %vm11603_vm11, %v6516_v27, %v6545_v26  ;;  %v5788_v63 = vrot.slane %v5787_v37, 2 }
 0x42a   :  { %v5783_v31 = vmax.f32 %v5781_v22, %v5782_v2  ;;  %v6534_v30 = vsel %vm11604_vm6, %v6504_v34, %v6533_v40  ;;  %v6547_v49 = vsel %vm11605_vm14, %v6518_v32, %v6546_v29 }
 0x42b   :  { %v5789_v47 = vmax.f32 %v5787_v37, %v5788_v63 }
 0x42c   :  { %v6423_v42 = vpack.c.bf16 %v5783_v31, %v5783_v31 }
 0x42d   :  { %v5790_v44 = vrot.slane %v5789_v47, 1 }
 0x42e   :  { %v6519_v17 = vunpack.c.l.b16 %v6423_v42 }
 0x42f   :  { %v5791_v43 = vmax.f32 %v5789_v47, %v5790_v44 }
 0x430   :  { %v6541_v56 = vsel %vm11606_vm4, %v6519_v17, %v6540_v55 }
 0x431   :  { %v6549_v48 = vpack.c.b16 %v6541_v56, %v10736_v8  ;;  %v6424_v46 = vpack.c.bf16 %v5791_v43, %v5791_v43 }
 0x433   :  { %v6520_v9 = vunpack.c.l.b16 %v6424_v46 }
 0x435   :  { %v6548_v23 = vsel %vm11607_vm8, %v6520_v9, %v6547_v49 }
 0x436   :  { %v6550_v13 = vpack.c.b16 %v6548_v23, %v6534_v30 }
 0x438   :  { %6681 = vmatprep.mubr.bf16.mxu1 %v6550_v13 }
 0x439   :  { %6682 = vmatmul.mubr.bf16.vlgmr.msra.gmra.mrb[8].mxu1 %v6549_v48 }
 0x43e   :  { %v7240_v11 = vpop.f32.mrb[4].mxu1 }
 0x43f   :  { %v7241_v1 = vpop.f32.mrb[5].mxu1 }
 0x440   :  { %v7242_v28 = vadd.f32 %v7241_v1, %v7240_v11  ;;  %v7243_v51 = vpop.f32.mrb[6].mxu1 }
 0x441   :  { %v7244_v15 = vpop.f32.mrb[7].mxu1 }
 0x442   :  { %v6387_v50 = vadd.f32 %v7242_v28, %v10870_v25  ;;  %v7245_v41 = vadd.f32 %v7244_v15, %v7243_v51 }
 0x444   :  { %v6390_v62 = vadd.f32 %v7245_v41, %v10875_v6 }
 0x50c   :  { %v7262_v4 = vpop.f32.mrb[8].mxu1 }
 0x50d   :  { %v7263_v36 = vpop.f32.mrb[9].mxu1 }
 0x50e   :  { %v7264_v8 = vadd.f32 %v7263_v36, %v7262_v4  ;;  %v7265_v24 = vpop.f32.mrb[10].mxu1 }
 0x50f   :  { %v7266_v7 = vpop.f32.mrb[11].mxu1 }
 0x510   :  { %v6690_v10 = vadd.f32 %v7264_v8, %v6387_v50  ;;  %v7267_v33 = vadd.f32 %v7266_v7, %v7265_v24 }
 0x512   :  { %v6699_v59 = vadd.f32 %v7201_v60, %v6690_v10  ;;  %v6691_v19 = vadd.f32 %v7267_v33, %v6390_v62 }
 0x514   :  { %6701 = vst [vmem:[#allocation7] sm:$0xff] %v6699_v59  ;;  %v6700_v25 = vadd.f32 %v7201_v60, %v6691_v19 }
 0x516   :  { %6702 = vst [vmem:[#allocation7 + $0x8] sm:$0xff] %v6700_v25 }
 0x517   :  { %7600 = shalt.err (!%p7597_p6)
}
 0x518   :  { %s7601_s26 = scalar_lea.hbm %s10940_s9, 256 }
 0x519   :  { %p7602_p7 = scmp.ne.s32.totalorder %s10940_s9, %s7601_s26  ;;  %p7605_p8 = scmp.lt.u32.totalorder %s7601_s26, %s10940_s9 }
 0x51b   :  { %p7607_p9 = pnand %p7605_p8, %p7602_p7 }
 0x51d   :  { %7610 = shalt.err (!%p7607_p9)
}
 0x51e   :  { %s7626_s11 = smov 128   ;;  %s7627_s0 = smov 8  }
 0x51f   :  { %6714 = dma.vmem_to_hbm [thread:$0]  %s6709_s23, 256, %s10940_s9, [#allocation4], %s7626_s11, %s7626_s11, %s7627_s0  }
 0x520   :  { %7615 = dma.done.wait [#allocation4], 256  }
 0x521   :  { %7616 = vsyncadd [#allocation4], 4294967040 }
 0x522   :  { %6718 = vsyncpa [#allocation3], 1 }
 0x523   :  { %6719 = vsyncpa [#allocation6], 1 }
 0x524   :  { %6720 = vsyncpa [#allocation4], 1 }

</bundles_post_ra>
